<compile_context>
chip_gen: v5e
topology: v5e:2x2
jax: 0.10.0
libtpu: 0.0.40
codegen_flags: <defaults>
</compile_context>

<pallas_src>
import math

import jax
import jax.numpy as jnp
from jax.experimental import pallas as pl
from jax.experimental.pallas import tpu as pltpu

LATENT_DIM = 32
BASIC_LENGTH = 64
NUMBER_OF_PITCHES = 72
BN_EPS = 1e-5

# (in_dim, out_dim, kernel, stride) — mirrors Generator.__init__
BLOCK_CFG = [
    (LATENT_DIM, 256, (4, 1), (4, 1)),
    (256, 128, (4, 1), (4, 1)),
    (128, 64, (1, 4), (1, 4)),
    (64, 32, (1, 3), (1, 1)),
    (32, 16, (4, 1), (4, 1)),
    (16, 1, (1, 12), (1, 12)),
]


# ---------------------------------------------------------------------------
# In-kernel helpers
# ---------------------------------------------------------------------------
def _dot(a, b):
    return jnp.dot(a, b, preferred_element_type=jnp.float32)


def _bn_relu(x, gamma, beta, per_channel=True):
    """Training-mode BatchNorm (batch stats, biased variance) + affine + ReLU on an
    (rows, channels) tile.  Reduction runs along the sublane (row) axis."""
    rows = x.shape[0]
    if per_channel:
        cnt = float(rows)
        mean = jnp.sum(x, axis=0, keepdims=True) * (1.0 / cnt)            # (1, C)
        d = x - mean
        var = jnp.sum(d * d, axis=0, keepdims=True) * (1.0 / cnt)         # (1, C)
    else:  # single output channel: statistics over every element of the tile
        cnt = float(rows * x.shape[1])
        mean = jnp.sum(jnp.sum(x, axis=0, keepdims=True), axis=1, keepdims=True) * (1.0 / cnt)
        d = x - mean
        var = jnp.sum(jnp.sum(d * d, axis=0, keepdims=True), axis=1, keepdims=True) * (1.0 / cnt)
    y = d * jax.lax.rsqrt(var + BN_EPS) * gamma + beta
    return jnp.maximum(y, 0.0)


# ---------------------------------------------------------------------------
# Fused whole-network kernel
# ---------------------------------------------------------------------------
def _generator_kernel(z_ref,
                      w1, g1, b1, w2, g2, b2, w3, g3, b3,
                      w4, g4, b4, w5, g5, b5, w6, g6, b6,
                      out_ref,
                      x1s, x2s, x3s, x4s, x5s):
    """Whole generator forward.  Activations are (rows, channels) tiles whose row order is
    tap-major (see module docstring); the host wrapper undoes the permutation at the end."""

    def expand(x, w_ref, scratch, n_taps):
        # stride == kernel: each tap's (R, Cout) matmul result is a contiguous row block
        # of the (n_taps * R, Cout) deconv output (tap index becomes the outer row digit).
        r = x.shape[0]
        for t in range(n_taps):
            scratch[pl.ds(t * r, r), :] = _dot(x, w_ref[t])
        return scratch[...]

    x = z_ref[...]                                              # (N, 32)
    x = _bn_relu(expand(x, w1, x1s, 4), g1[...], b1[...])       # (4N, 256)
    x = _bn_relu(expand(x, w2, x2s, 4), g2[...], b2[...])       # (16N, 128)
    x = _bn_relu(expand(x, w3, x3s, 4), g3[...], b3[...])       # (64N, 64)

    # Block 4: kernel (1,3), stride (1,1) -> overlap-add of 3 shifted contiguous blocks.
    r3 = x.shape[0]                 # 64N rows; outermost row digit is input-w in {0..3}
    shift = r3 // 4                 # 16N rows per input-w slab
    x4s[...] = jnp.zeros_like(x4s)
    for t in range(3):
        y = _dot(x, w4[t])                                      # (64N, 32)
        sl = pl.ds(t * shift, r3)
        x4s[sl, :] = x4s[sl, :] + y
    x = _bn_relu(x4s[...], g4[...], b4[...])                    # (96N, 32)

    x = _bn_relu(expand(x, w5, x5s, 4), g5[...], b5[...])       # (384N, 16)

    # Block 6: Cout == 1 and stride == kernel -> the 12 kw taps are simply the matmul
    # columns; BatchNorm statistics run over every element of the single channel.
    y = _dot(x, w6[...])                                        # (384N, 12)
    out_ref[...] = _bn_relu(y, g6[...], b6[...], per_channel=False)


def _full_spec(shape):
    nd = len(shape)

    def index_map(i):
        return (0,) * nd

    return pl.BlockSpec(shape, index_map)


def generator_forward_pallas(z, kparams):
    z = z.reshape(-1, LATENT_DIM)
    n = z.shape[0]
    flat = [z]
    for w, g, b in kparams:
        flat += [w, g, b]

    out = pl.pallas_call(
        _generator_kernel,
        out_shape=jax.ShapeDtypeStruct((384 * n, 12), jnp.float32),
        grid=(1,),
        in_specs=[_full_spec(a.shape) for a in flat],
        out_specs=_full_spec((384 * n, 12)),
        scratch_shapes=[
            pltpu.VMEM((4 * n, 256), jnp.float32),
            pltpu.VMEM((16 * n, 128), jnp.float32),
            pltpu.VMEM((64 * n, 64), jnp.float32),
            pltpu.VMEM((96 * n, 32), jnp.float32),
            pltpu.VMEM((384 * n, 16), jnp.float32),
        ],
        compiler_params=pltpu.CompilerParams(
            dimension_semantics=("arbitrary",)),
    )(*flat)

    # Kernel rows are ordered (kh5, w4, kh2, h1, n); columns are kw6, with
    # h = h1*16 + kh2*4 + kh5 and w = w4*12 + kw6.  Undo the permutation once, here.
    o = out.reshape(4, 6, 4, 4, n, 12)
    o = jnp.transpose(o, (4, 3, 2, 0, 1, 5))        # (n, h1, kh2, kh5, w4, kw6)
    return o.reshape(n, 1, BASIC_LENGTH, NUMBER_OF_PITCHES)


# ---------------------------------------------------------------------------
# Pure-JAX reference (PyTorch semantics, NCHW) — for the correctness check
# ---------------------------------------------------------------------------
def _ref_forward(z, params):
    x = z.reshape(-1, LATENT_DIM, 1, 1)
    for (wt, bias, gamma, beta), (_, cout, (KH, KW), (SH, SW)) in zip(params, BLOCK_CFG):
        n, cin, h, w = x.shape
        hout = (h - 1) * SH + KH
        wout = (w - 1) * SW + KW
        y = jnp.einsum('nchw,cokl->nhwokl', x, wt)
        out = jnp.zeros((n, cout, hout, wout), jnp.float32)
        for kh in range(KH):
            for kw in range(KW):
                patch = jnp.transpose(y[:, :, :, :, kh, kw], (0, 3, 1, 2))
                out = out.at[:, :, kh:kh + (h - 1) * SH + 1:SH,
                             kw:kw + (w - 1) * SW + 1:SW].add(patch)
        out = out + bias.reshape(1, cout, 1, 1)
        mean = jnp.mean(out, axis=(0, 2, 3), keepdims=True)
        var = jnp.mean((out - mean) ** 2, axis=(0, 2, 3), keepdims=True)
        out = ((out - mean) * jax.lax.rsqrt(var + BN_EPS)
               * gamma.reshape(1, cout, 1, 1) + beta.reshape(1, cout, 1, 1))
        x = jnp.maximum(out, 0.0)
    return x.reshape(-1, 1, BASIC_LENGTH, NUMBER_OF_PITCHES)


# ---------------------------------------------------------------------------
# Parameters
# ---------------------------------------------------------------------------
def init_params(key):
    """PyTorch-layout params: weight (Cin, Cout, KH, KW), bias (Cout,), BN gamma/beta
    (Cout,).  gamma/beta are randomized (instead of the PyTorch-default ones/zeros) to
    make the numerical check stronger."""
    params = []
    for cin, cout, (kh, kw), _ in BLOCK_CFG:
        key, k1, k2, k3, k4 = jax.random.split(key, 5)
        bound = 1.0 / math.sqrt(cout * kh * kw)
        wt = jax.random.uniform(k1, (cin, cout, kh, kw), jnp.float32, -bound, bound)
        bias = jax.random.uniform(k2, (cout,), jnp.float32, -bound, bound)
        gamma = jax.random.uniform(k3, (cout,), jnp.float32, 0.5, 1.5)
        beta = jax.random.uniform(k4, (cout,), jnp.float32, -0.5, 0.5)
        params.append((wt, bias, gamma, beta))
    return params


def prepare_kernel_params(params):
    """Convert PyTorch-layout params to kernel layout.
    Blocks 1-5: weight stacked per tap as (KH*KW, Cin, Cout); block 6 (Cout=1): weight as
    (Cin, 12) so the taps are the matmul columns.  gamma/beta become (1, Cout) rows.  The
    conv bias is dropped: a per-channel constant added before training-mode BatchNorm is
    exactly cancelled by the mean subtraction (the reference keeps it, proving this)."""
    kp = []
    for i, ((wt, _bias, gamma, beta), (cin, cout, (kh, kw), _)) in enumerate(
            zip(params, BLOCK_CFG)):
        if i < 5:
            w_k = jnp.transpose(wt, (2, 3, 0, 1)).reshape(kh * kw, cin, cout)
        else:
            w_k = wt.reshape(cin, kh * kw)            # (16, 12); Cout == 1
        kp.append((w_k, gamma.reshape(1, cout), beta.reshape(1, cout)))
    return kp


if __name__ == "__main__":
    key = jax.random.PRNGKey(0)
    pkey, zkey = jax.random.split(key)
    params = init_params(pkey)
    kparams = prepare_kernel_params(params)

    batch = 2
    z = jax.random.normal(zkey, (batch, LATENT_DIM), jnp.float32)

    fwd = jax.jit(lambda latent: generator_forward_pallas(latent, kparams))
    out = jax.block_until_ready(fwd(z))
    assert out.shape == (batch, 1, BASIC_LENGTH, NUMBER_OF_PITCHES), out.shape

    ref = _ref_forward(z, params)
    if not bool(jnp.allclose(out, ref, rtol=1e-3, atol=1e-3)):
        err = float(jnp.max(jnp.abs(out - ref)))
        raise AssertionError(f"Pallas output does not match reference (max abs err {err:.3e})")

    print("KERNEL_OK")
</pallas_src>

<mosaic_0001>
module attributes {stable_mosaic.version = 11 : i64} {
  func.func @_generator_kernel(%arg0: i32, %arg1: memref<2x32xf32, #tpu.memory_space<vmem>>, %arg2: memref<4x32x256xf32, #tpu.memory_space<vmem>>, %arg3: memref<1x256xf32, #tpu.memory_space<vmem>>, %arg4: memref<1x256xf32, #tpu.memory_space<vmem>>, %arg5: memref<4x256x128xf32, #tpu.memory_space<vmem>>, %arg6: memref<1x128xf32, #tpu.memory_space<vmem>>, %arg7: memref<1x128xf32, #tpu.memory_space<vmem>>, %arg8: memref<4x128x64xf32, #tpu.memory_space<vmem>>, %arg9: memref<1x64xf32, #tpu.memory_space<vmem>>, %arg10: memref<1x64xf32, #tpu.memory_space<vmem>>, %arg11: memref<3x64x32xf32, #tpu.memory_space<vmem>>, %arg12: memref<1x32xf32, #tpu.memory_space<vmem>>, %arg13: memref<1x32xf32, #tpu.memory_space<vmem>>, %arg14: memref<4x32x16xf32, #tpu.memory_space<vmem>>, %arg15: memref<1x16xf32, #tpu.memory_space<vmem>>, %arg16: memref<1x16xf32, #tpu.memory_space<vmem>>, %arg17: memref<16x12xf32, #tpu.memory_space<vmem>>, %arg18: memref<1x1xf32, #tpu.memory_space<vmem>>, %arg19: memref<1x1xf32, #tpu.memory_space<vmem>>, %arg20: memref<768x12xf32, #tpu.memory_space<vmem>>, %arg21: memref<8x256xf32, #tpu.memory_space<vmem>>, %arg22: memref<32x128xf32, #tpu.memory_space<vmem>>, %arg23: memref<128x64xf32, #tpu.memory_space<vmem>>, %arg24: memref<192x32xf32, #tpu.memory_space<vmem>>, %arg25: memref<768x16xf32, #tpu.memory_space<vmem>>) attributes {dimension_semantics = [#tpu.dimension_semantics<arbitrary>], iteration_bounds = array<i64: 1>, scalar_prefetch = 0 : i64, scratch_operands = 5 : i64, tpu.core_type = #tpu.core_type<tc>, window_params = [{pipeline_mode = #tpu.pipeline_mode<synchronous>, transform_indices = @transform_0, window_bounds = array<i64: 2, 32>}, {pipeline_mode = #tpu.pipeline_mode<synchronous>, transform_indices = @transform_1, window_bounds = array<i64: 4, 32, 256>}, {pipeline_mode = #tpu.pipeline_mode<synchronous>, transform_indices = @transform_2, window_bounds = array<i64: 1, 256>}, {pipeline_mode = #tpu.pipeline_mode<synchronous>, transform_indices = @transform_3, window_bounds = array<i64: 1, 256>}, {pipeline_mode = #tpu.pipeline_mode<synchronous>, transform_indices = @transform_4, window_bounds = array<i64: 4, 256, 128>}, {pipeline_mode = #tpu.pipeline_mode<synchronous>, transform_indices = @transform_5, window_bounds = array<i64: 1, 128>}, {pipeline_mode = #tpu.pipeline_mode<synchronous>, transform_indices = @transform_6, window_bounds = array<i64: 1, 128>}, {pipeline_mode = #tpu.pipeline_mode<synchronous>, transform_indices = @transform_7, window_bounds = array<i64: 4, 128, 64>}, {pipeline_mode = #tpu.pipeline_mode<synchronous>, transform_indices = @transform_8, window_bounds = array<i64: 1, 64>}, {pipeline_mode = #tpu.pipeline_mode<synchronous>, transform_indices = @transform_9, window_bounds = array<i64: 1, 64>}, {pipeline_mode = #tpu.pipeline_mode<synchronous>, transform_indices = @transform_10, window_bounds = array<i64: 3, 64, 32>}, {pipeline_mode = #tpu.pipeline_mode<synchronous>, transform_indices = @transform_11, window_bounds = array<i64: 1, 32>}, {pipeline_mode = #tpu.pipeline_mode<synchronous>, transform_indices = @transform_12, window_bounds = array<i64: 1, 32>}, {pipeline_mode = #tpu.pipeline_mode<synchronous>, transform_indices = @transform_13, window_bounds = array<i64: 4, 32, 16>}, {pipeline_mode = #tpu.pipeline_mode<synchronous>, transform_indices = @transform_14, window_bounds = array<i64: 1, 16>}, {pipeline_mode = #tpu.pipeline_mode<synchronous>, transform_indices = @transform_15, window_bounds = array<i64: 1, 16>}, {pipeline_mode = #tpu.pipeline_mode<synchronous>, transform_indices = @transform_16, window_bounds = array<i64: 16, 12>}, {pipeline_mode = #tpu.pipeline_mode<synchronous>, transform_indices = @transform_17, window_bounds = array<i64: 1, 1>}, {pipeline_mode = #tpu.pipeline_mode<synchronous>, transform_indices = @transform_18, window_bounds = array<i64: 1, 1>}, {pipeline_mode = #tpu.pipeline_mode<synchronous>, transform_indices = @transform_19, window_bounds = array<i64: 768, 12>}]} {
    %c0 = arith.constant 0 : index
    %c0_0 = arith.constant 0 : index
    %0 = vector.load %arg1[%c0, %c0_0] : memref<2x32xf32, #tpu.memory_space<vmem>>, vector<2x32xf32>
    %c0_1 = arith.constant 0 : index
    %c0_2 = arith.constant 0 : index
    %c0_3 = arith.constant 0 : index
    %1 = vector.load %arg2[%c0_1, %c0_2, %c0_3] : memref<4x32x256xf32, #tpu.memory_space<vmem>>, vector<1x32x256xf32>
    %2 = vector.shape_cast %1 : vector<1x32x256xf32> to vector<32x256xf32>
    %cst = arith.constant dense<0.000000e+00> : vector<2x256xf32>
    %3 = tpu.matmul %0, %2, %cst {dimension_numbers = #tpu.dot_dimension_numbers<[1], [0], [0], [1], [0, 0, 1, 1], [], []>} : vector<2x32xf32>, vector<32x256xf32>, vector<2x256xf32> -> vector<2x256xf32>
    %c0_4 = arith.constant 0 : index
    %c0_5 = arith.constant 0 : index
    %4 = vector.load %arg21[%c0_4, %c0_5] : memref<8x256xf32, #tpu.memory_space<vmem>>, vector<2x256xf32>
    tpu.vector_store %arg21[%c0_4, %c0_5], %3 {strides = array<i32>} : memref<8x256xf32, #tpu.memory_space<vmem>>, vector<2x256xf32>,
    %c1 = arith.constant 1 : index
    %c0_6 = arith.constant 0 : index
    %c0_7 = arith.constant 0 : index
    %5 = vector.load %arg2[%c1, %c0_6, %c0_7] : memref<4x32x256xf32, #tpu.memory_space<vmem>>, vector<1x32x256xf32>
    %6 = vector.shape_cast %5 : vector<1x32x256xf32> to vector<32x256xf32>
    %cst_8 = arith.constant dense<0.000000e+00> : vector<2x256xf32>
    %7 = tpu.matmul %0, %6, %cst_8 {dimension_numbers = #tpu.dot_dimension_numbers<[1], [0], [0], [1], [0, 0, 1, 1], [], []>} : vector<2x32xf32>, vector<32x256xf32>, vector<2x256xf32> -> vector<2x256xf32>
    %c2 = arith.constant 2 : index
    %c0_9 = arith.constant 0 : index
    %8 = vector.load %arg21[%c2, %c0_9] : memref<8x256xf32, #tpu.memory_space<vmem>>, vector<2x256xf32>
    tpu.vector_store %arg21[%c2, %c0_9], %7 {strides = array<i32>} : memref<8x256xf32, #tpu.memory_space<vmem>>, vector<2x256xf32>,
    %c2_10 = arith.constant 2 : index
    %c0_11 = arith.constant 0 : index
    %c0_12 = arith.constant 0 : index
    %9 = vector.load %arg2[%c2_10, %c0_11, %c0_12] : memref<4x32x256xf32, #tpu.memory_space<vmem>>, vector<1x32x256xf32>
    %10 = vector.shape_cast %9 : vector<1x32x256xf32> to vector<32x256xf32>
    %cst_13 = arith.constant dense<0.000000e+00> : vector<2x256xf32>
    %11 = tpu.matmul %0, %10, %cst_13 {dimension_numbers = #tpu.dot_dimension_numbers<[1], [0], [0], [1], [0, 0, 1, 1], [], []>} : vector<2x32xf32>, vector<32x256xf32>, vector<2x256xf32> -> vector<2x256xf32>
    %c4 = arith.constant 4 : index
    %c0_14 = arith.constant 0 : index
    %12 = vector.load %arg21[%c4, %c0_14] : memref<8x256xf32, #tpu.memory_space<vmem>>, vector<2x256xf32>
    tpu.vector_store %arg21[%c4, %c0_14], %11 {strides = array<i32>} : memref<8x256xf32, #tpu.memory_space<vmem>>, vector<2x256xf32>,
    %c3 = arith.constant 3 : index
    %c0_15 = arith.constant 0 : index
    %c0_16 = arith.constant 0 : index
    %13 = vector.load %arg2[%c3, %c0_15, %c0_16] : memref<4x32x256xf32, #tpu.memory_space<vmem>>, vector<1x32x256xf32>
    %14 = vector.shape_cast %13 : vector<1x32x256xf32> to vector<32x256xf32>
    %cst_17 = arith.constant dense<0.000000e+00> : vector<2x256xf32>
    %15 = tpu.matmul %0, %14, %cst_17 {dimension_numbers = #tpu.dot_dimension_numbers<[1], [0], [0], [1], [0, 0, 1, 1], [], []>} : vector<2x32xf32>, vector<32x256xf32>, vector<2x256xf32> -> vector<2x256xf32>
    %c6 = arith.constant 6 : index
    %c0_18 = arith.constant 0 : index
    %16 = vector.load %arg21[%c6, %c0_18] : memref<8x256xf32, #tpu.memory_space<vmem>>, vector<2x256xf32>
    tpu.vector_store %arg21[%c6, %c0_18], %15 {strides = array<i32>} : memref<8x256xf32, #tpu.memory_space<vmem>>, vector<2x256xf32>,
    %c0_19 = arith.constant 0 : index
    %c0_20 = arith.constant 0 : index
    %17 = vector.load %arg21[%c0_19, %c0_20] : memref<8x256xf32, #tpu.memory_space<vmem>>, vector<8x256xf32>
    %c0_21 = arith.constant 0 : index
    %c0_22 = arith.constant 0 : index
    %18 = vector.load %arg3[%c0_21, %c0_22] : memref<1x256xf32, #tpu.memory_space<vmem>>, vector<1x256xf32>
    %c0_23 = arith.constant 0 : index
    %c0_24 = arith.constant 0 : index
    %19 = vector.load %arg4[%c0_23, %c0_24] : memref<1x256xf32, #tpu.memory_space<vmem>>, vector<1x256xf32>
    %cst_25 = arith.constant dense<0.000000e+00> : vector<256xf32>
    %20 = vector.multi_reduction <add>, %17, %cst_25 [0] : vector<8x256xf32> to vector<256xf32>
    %21 = vector.shape_cast %20 : vector<256xf32> to vector<1x256xf32>
    %cst_26 = arith.constant 1.250000e-01 : f32
    %22 = vector.broadcast %cst_26 : f32 to vector<1x256xf32>
    %23 = arith.mulf %21, %22 : vector<1x256xf32>
    %24 = vector.broadcast %23 : vector<1x256xf32> to vector<8x256xf32>
    %25 = arith.subf %17, %24 : vector<8x256xf32>
    %26 = arith.mulf %25, %25 : vector<8x256xf32>
    %cst_27 = arith.constant dense<0.000000e+00> : vector<256xf32>
    %27 = vector.multi_reduction <add>, %26, %cst_27 [0] : vector<8x256xf32> to vector<256xf32>
    %28 = vector.shape_cast %27 : vector<256xf32> to vector<1x256xf32>
    %cst_28 = arith.constant 1.250000e-01 : f32
    %29 = vector.broadcast %cst_28 : f32 to vector<1x256xf32>
    %30 = arith.mulf %28, %29 : vector<1x256xf32>
    %cst_29 = arith.constant 9.99999974E-6 : f32
    %31 = vector.broadcast %cst_29 : f32 to vector<1x256xf32>
    %32 = arith.addf %30, %31 : vector<1x256xf32>
    %33 = math.rsqrt %32 : vector<1x256xf32>
    %34 = vector.broadcast %33 : vector<1x256xf32> to vector<8x256xf32>
    %35 = arith.mulf %25, %34 : vector<8x256xf32>
    %36 = vector.broadcast %18 : vector<1x256xf32> to vector<8x256xf32>
    %37 = arith.mulf %35, %36 : vector<8x256xf32>
    %38 = vector.broadcast %19 : vector<1x256xf32> to vector<8x256xf32>
    %39 = arith.addf %37, %38 : vector<8x256xf32>
    %cst_30 = arith.constant 0.000000e+00 : f32
    %40 = vector.broadcast %cst_30 : f32 to vector<8x256xf32>
    %41 = arith.maximumf %39, %40 : vector<8x256xf32>
    %c0_31 = arith.constant 0 : index
    %c0_32 = arith.constant 0 : index
    %c0_33 = arith.constant 0 : index
    %42 = vector.load %arg5[%c0_31, %c0_32, %c0_33] : memref<4x256x128xf32, #tpu.memory_space<vmem>>, vector<1x256x128xf32>
    %43 = vector.shape_cast %42 : vector<1x256x128xf32> to vector<256x128xf32>
    %cst_34 = arith.constant dense<0.000000e+00> : vector<8x128xf32>
    %44 = tpu.matmul %41, %43, %cst_34 {dimension_numbers = #tpu.dot_dimension_numbers<[1], [0], [0], [1], [0, 0, 1, 1], [], []>} : vector<8x256xf32>, vector<256x128xf32>, vector<8x128xf32> -> vector<8x128xf32>
    %c0_35 = arith.constant 0 : index
    %c0_36 = arith.constant 0 : index
    %45 = vector.load %arg22[%c0_35, %c0_36] : memref<32x128xf32, #tpu.memory_space<vmem>>, vector<8x128xf32>
    tpu.vector_store %arg22[%c0_35, %c0_36], %44 {strides = array<i32>} : memref<32x128xf32, #tpu.memory_space<vmem>>, vector<8x128xf32>,
    %c1_37 = arith.constant 1 : index
    %c0_38 = arith.constant 0 : index
    %c0_39 = arith.constant 0 : index
    %46 = vector.load %arg5[%c1_37, %c0_38, %c0_39] : memref<4x256x128xf32, #tpu.memory_space<vmem>>, vector<1x256x128xf32>
    %47 = vector.shape_cast %46 : vector<1x256x128xf32> to vector<256x128xf32>
    %cst_40 = arith.constant dense<0.000000e+00> : vector<8x128xf32>
    %48 = tpu.matmul %41, %47, %cst_40 {dimension_numbers = #tpu.dot_dimension_numbers<[1], [0], [0], [1], [0, 0, 1, 1], [], []>} : vector<8x256xf32>, vector<256x128xf32>, vector<8x128xf32> -> vector<8x128xf32>
    %c8 = arith.constant 8 : index
    %c0_41 = arith.constant 0 : index
    %49 = vector.load %arg22[%c8, %c0_41] : memref<32x128xf32, #tpu.memory_space<vmem>>, vector<8x128xf32>
    tpu.vector_store %arg22[%c8, %c0_41], %48 {strides = array<i32>} : memref<32x128xf32, #tpu.memory_space<vmem>>, vector<8x128xf32>,
    %c2_42 = arith.constant 2 : index
    %c0_43 = arith.constant 0 : index
    %c0_44 = arith.constant 0 : index
    %50 = vector.load %arg5[%c2_42, %c0_43, %c0_44] : memref<4x256x128xf32, #tpu.memory_space<vmem>>, vector<1x256x128xf32>
    %51 = vector.shape_cast %50 : vector<1x256x128xf32> to vector<256x128xf32>
    %cst_45 = arith.constant dense<0.000000e+00> : vector<8x128xf32>
    %52 = tpu.matmul %41, %51, %cst_45 {dimension_numbers = #tpu.dot_dimension_numbers<[1], [0], [0], [1], [0, 0, 1, 1], [], []>} : vector<8x256xf32>, vector<256x128xf32>, vector<8x128xf32> -> vector<8x128xf32>
    %c16 = arith.constant 16 : index
    %c0_46 = arith.constant 0 : index
    %53 = vector.load %arg22[%c16, %c0_46] : memref<32x128xf32, #tpu.memory_space<vmem>>, vector<8x128xf32>
    tpu.vector_store %arg22[%c16, %c0_46], %52 {strides = array<i32>} : memref<32x128xf32, #tpu.memory_space<vmem>>, vector<8x128xf32>,
    %c3_47 = arith.constant 3 : index
    %c0_48 = arith.constant 0 : index
    %c0_49 = arith.constant 0 : index
    %54 = vector.load %arg5[%c3_47, %c0_48, %c0_49] : memref<4x256x128xf32, #tpu.memory_space<vmem>>, vector<1x256x128xf32>
    %55 = vector.shape_cast %54 : vector<1x256x128xf32> to vector<256x128xf32>
    %cst_50 = arith.constant dense<0.000000e+00> : vector<8x128xf32>
    %56 = tpu.matmul %41, %55, %cst_50 {dimension_numbers = #tpu.dot_dimension_numbers<[1], [0], [0], [1], [0, 0, 1, 1], [], []>} : vector<8x256xf32>, vector<256x128xf32>, vector<8x128xf32> -> vector<8x128xf32>
    %c24 = arith.constant 24 : index
    %c0_51 = arith.constant 0 : index
    %57 = vector.load %arg22[%c24, %c0_51] : memref<32x128xf32, #tpu.memory_space<vmem>>, vector<8x128xf32>
    tpu.vector_store %arg22[%c24, %c0_51], %56 {strides = array<i32>} : memref<32x128xf32, #tpu.memory_space<vmem>>, vector<8x128xf32>,
    %c0_52 = arith.constant 0 : index
    %c0_53 = arith.constant 0 : index
    %58 = vector.load %arg22[%c0_52, %c0_53] : memref<32x128xf32, #tpu.memory_space<vmem>>, vector<32x128xf32>
    %c0_54 = arith.constant 0 : index
    %c0_55 = arith.constant 0 : index
    %59 = vector.load %arg6[%c0_54, %c0_55] : memref<1x128xf32, #tpu.memory_space<vmem>>, vector<1x128xf32>
    %c0_56 = arith.constant 0 : index
    %c0_57 = arith.constant 0 : index
    %60 = vector.load %arg7[%c0_56, %c0_57] : memref<1x128xf32, #tpu.memory_space<vmem>>, vector<1x128xf32>
    %cst_58 = arith.constant dense<0.000000e+00> : vector<128xf32>
    %61 = vector.multi_reduction <add>, %58, %cst_58 [0] : vector<32x128xf32> to vector<128xf32>
    %62 = vector.shape_cast %61 : vector<128xf32> to vector<1x128xf32>
    %cst_59 = arith.constant 3.125000e-02 : f32
    %63 = vector.broadcast %cst_59 : f32 to vector<1x128xf32>
    %64 = arith.mulf %62, %63 : vector<1x128xf32>
    %65 = vector.broadcast %64 : vector<1x128xf32> to vector<32x128xf32>
    %66 = arith.subf %58, %65 : vector<32x128xf32>
    %67 = arith.mulf %66, %66 : vector<32x128xf32>
    %cst_60 = arith.constant dense<0.000000e+00> : vector<128xf32>
    %68 = vector.multi_reduction <add>, %67, %cst_60 [0] : vector<32x128xf32> to vector<128xf32>
    %69 = vector.shape_cast %68 : vector<128xf32> to vector<1x128xf32>
    %cst_61 = arith.constant 3.125000e-02 : f32
    %70 = vector.broadcast %cst_61 : f32 to vector<1x128xf32>
    %71 = arith.mulf %69, %70 : vector<1x128xf32>
    %cst_62 = arith.constant 9.99999974E-6 : f32
    %72 = vector.broadcast %cst_62 : f32 to vector<1x128xf32>
    %73 = arith.addf %71, %72 : vector<1x128xf32>
    %74 = math.rsqrt %73 : vector<1x128xf32>
    %75 = vector.broadcast %74 : vector<1x128xf32> to vector<32x128xf32>
    %76 = arith.mulf %66, %75 : vector<32x128xf32>
    %77 = vector.broadcast %59 : vector<1x128xf32> to vector<32x128xf32>
    %78 = arith.mulf %76, %77 : vector<32x128xf32>
    %79 = vector.broadcast %60 : vector<1x128xf32> to vector<32x128xf32>
    %80 = arith.addf %78, %79 : vector<32x128xf32>
    %cst_63 = arith.constant 0.000000e+00 : f32
    %81 = vector.broadcast %cst_63 : f32 to vector<32x128xf32>
    %82 = arith.maximumf %80, %81 : vector<32x128xf32>
    %c0_64 = arith.constant 0 : index
    %c0_65 = arith.constant 0 : index
    %c0_66 = arith.constant 0 : index
    %83 = vector.load %arg8[%c0_64, %c0_65, %c0_66] : memref<4x128x64xf32, #tpu.memory_space<vmem>>, vector<1x128x64xf32>
    %84 = vector.shape_cast %83 : vector<1x128x64xf32> to vector<128x64xf32>
    %cst_67 = arith.constant dense<0.000000e+00> : vector<32x64xf32>
    %85 = tpu.matmul %82, %84, %cst_67 {dimension_numbers = #tpu.dot_dimension_numbers<[1], [0], [0], [1], [0, 0, 1, 1], [], []>} : vector<32x128xf32>, vector<128x64xf32>, vector<32x64xf32> -> vector<32x64xf32>
    %c0_68 = arith.constant 0 : index
    %c0_69 = arith.constant 0 : index
    %86 = vector.load %arg23[%c0_68, %c0_69] : memref<128x64xf32, #tpu.memory_space<vmem>>, vector<32x64xf32>
    tpu.vector_store %arg23[%c0_68, %c0_69], %85 {strides = array<i32>} : memref<128x64xf32, #tpu.memory_space<vmem>>, vector<32x64xf32>,
    %c1_70 = arith.constant 1 : index
    %c0_71 = arith.constant 0 : index
    %c0_72 = arith.constant 0 : index
    %87 = vector.load %arg8[%c1_70, %c0_71, %c0_72] : memref<4x128x64xf32, #tpu.memory_space<vmem>>, vector<1x128x64xf32>
    %88 = vector.shape_cast %87 : vector<1x128x64xf32> to vector<128x64xf32>
    %cst_73 = arith.constant dense<0.000000e+00> : vector<32x64xf32>
    %89 = tpu.matmul %82, %88, %cst_73 {dimension_numbers = #tpu.dot_dimension_numbers<[1], [0], [0], [1], [0, 0, 1, 1], [], []>} : vector<32x128xf32>, vector<128x64xf32>, vector<32x64xf32> -> vector<32x64xf32>
    %c32 = arith.constant 32 : index
    %c0_74 = arith.constant 0 : index
    %90 = vector.load %arg23[%c32, %c0_74] : memref<128x64xf32, #tpu.memory_space<vmem>>, vector<32x64xf32>
    tpu.vector_store %arg23[%c32, %c0_74], %89 {strides = array<i32>} : memref<128x64xf32, #tpu.memory_space<vmem>>, vector<32x64xf32>,
    %c2_75 = arith.constant 2 : index
    %c0_76 = arith.constant 0 : index
    %c0_77 = arith.constant 0 : index
    %91 = vector.load %arg8[%c2_75, %c0_76, %c0_77] : memref<4x128x64xf32, #tpu.memory_space<vmem>>, vector<1x128x64xf32>
    %92 = vector.shape_cast %91 : vector<1x128x64xf32> to vector<128x64xf32>
    %cst_78 = arith.constant dense<0.000000e+00> : vector<32x64xf32>
    %93 = tpu.matmul %82, %92, %cst_78 {dimension_numbers = #tpu.dot_dimension_numbers<[1], [0], [0], [1], [0, 0, 1, 1], [], []>} : vector<32x128xf32>, vector<128x64xf32>, vector<32x64xf32> -> vector<32x64xf32>
    %c64 = arith.constant 64 : index
    %c0_79 = arith.constant 0 : index
    %94 = vector.load %arg23[%c64, %c0_79] : memref<128x64xf32, #tpu.memory_space<vmem>>, vector<32x64xf32>
    tpu.vector_store %arg23[%c64, %c0_79], %93 {strides = array<i32>} : memref<128x64xf32, #tpu.memory_space<vmem>>, vector<32x64xf32>,
    %c3_80 = arith.constant 3 : index
    %c0_81 = arith.constant 0 : index
    %c0_82 = arith.constant 0 : index
    %95 = vector.load %arg8[%c3_80, %c0_81, %c0_82] : memref<4x128x64xf32, #tpu.memory_space<vmem>>, vector<1x128x64xf32>
    %96 = vector.shape_cast %95 : vector<1x128x64xf32> to vector<128x64xf32>
    %cst_83 = arith.constant dense<0.000000e+00> : vector<32x64xf32>
    %97 = tpu.matmul %82, %96, %cst_83 {dimension_numbers = #tpu.dot_dimension_numbers<[1], [0], [0], [1], [0, 0, 1, 1], [], []>} : vector<32x128xf32>, vector<128x64xf32>, vector<32x64xf32> -> vector<32x64xf32>
    %c96 = arith.constant 96 : index
    %c0_84 = arith.constant 0 : index
    %98 = vector.load %arg23[%c96, %c0_84] : memref<128x64xf32, #tpu.memory_space<vmem>>, vector<32x64xf32>
    tpu.vector_store %arg23[%c96, %c0_84], %97 {strides = array<i32>} : memref<128x64xf32, #tpu.memory_space<vmem>>, vector<32x64xf32>,
    %c0_85 = arith.constant 0 : index
    %c0_86 = arith.constant 0 : index
    %99 = vector.load %arg23[%c0_85, %c0_86] : memref<128x64xf32, #tpu.memory_space<vmem>>, vector<128x64xf32>
    %c0_87 = arith.constant 0 : index
    %c0_88 = arith.constant 0 : index
    %100 = vector.load %arg9[%c0_87, %c0_88] : memref<1x64xf32, #tpu.memory_space<vmem>>, vector<1x64xf32>
    %c0_89 = arith.constant 0 : index
    %c0_90 = arith.constant 0 : index
    %101 = vector.load %arg10[%c0_89, %c0_90] : memref<1x64xf32, #tpu.memory_space<vmem>>, vector<1x64xf32>
    %cst_91 = arith.constant dense<0.000000e+00> : vector<64xf32>
    %102 = vector.multi_reduction <add>, %99, %cst_91 [0] : vector<128x64xf32> to vector<64xf32>
    %103 = vector.shape_cast %102 : vector<64xf32> to vector<1x64xf32>
    %cst_92 = arith.constant 7.812500e-03 : f32
    %104 = vector.broadcast %cst_92 : f32 to vector<1x64xf32>
    %105 = arith.mulf %103, %104 : vector<1x64xf32>
    %106 = vector.broadcast %105 : vector<1x64xf32> to vector<128x64xf32>
    %107 = arith.subf %99, %106 : vector<128x64xf32>
    %108 = arith.mulf %107, %107 : vector<128x64xf32>
    %cst_93 = arith.constant dense<0.000000e+00> : vector<64xf32>
    %109 = vector.multi_reduction <add>, %108, %cst_93 [0] : vector<128x64xf32> to vector<64xf32>
    %110 = vector.shape_cast %109 : vector<64xf32> to vector<1x64xf32>
    %cst_94 = arith.constant 7.812500e-03 : f32
    %111 = vector.broadcast %cst_94 : f32 to vector<1x64xf32>
    %112 = arith.mulf %110, %111 : vector<1x64xf32>
    %cst_95 = arith.constant 9.99999974E-6 : f32
    %113 = vector.broadcast %cst_95 : f32 to vector<1x64xf32>
    %114 = arith.addf %112, %113 : vector<1x64xf32>
    %115 = math.rsqrt %114 : vector<1x64xf32>
    %116 = vector.broadcast %115 : vector<1x64xf32> to vector<128x64xf32>
    %117 = arith.mulf %107, %116 : vector<128x64xf32>
    %118 = vector.broadcast %100 : vector<1x64xf32> to vector<128x64xf32>
    %119 = arith.mulf %117, %118 : vector<128x64xf32>
    %120 = vector.broadcast %101 : vector<1x64xf32> to vector<128x64xf32>
    %121 = arith.addf %119, %120 : vector<128x64xf32>
    %cst_96 = arith.constant 0.000000e+00 : f32
    %122 = vector.broadcast %cst_96 : f32 to vector<128x64xf32>
    %123 = arith.maximumf %121, %122 : vector<128x64xf32>
    %cst_97 = arith.constant 0.000000e+00 : f32
    %124 = vector.broadcast %cst_97 : f32 to vector<192x32xf32>
    %c0_98 = arith.constant 0 : index
    %c0_99 = arith.constant 0 : index
    %125 = vector.load %arg24[%c0_98, %c0_99] : memref<192x32xf32, #tpu.memory_space<vmem>>, vector<192x32xf32>
    tpu.vector_store %arg24[%c0_98, %c0_99], %124 {strides = array<i32>} : memref<192x32xf32, #tpu.memory_space<vmem>>, vector<192x32xf32>,
    %c0_100 = arith.constant 0 : index
    %c0_101 = arith.constant 0 : index
    %c0_102 = arith.constant 0 : index
    %126 = vector.load %arg11[%c0_100, %c0_101, %c0_102] : memref<3x64x32xf32, #tpu.memory_space<vmem>>, vector<1x64x32xf32>
    %127 = vector.shape_cast %126 : vector<1x64x32xf32> to vector<64x32xf32>
    %cst_103 = arith.constant dense<0.000000e+00> : vector<128x32xf32>
    %128 = tpu.matmul %123, %127, %cst_103 {dimension_numbers = #tpu.dot_dimension_numbers<[1], [0], [0], [1], [0, 0, 1, 1], [], []>} : vector<128x64xf32>, vector<64x32xf32>, vector<128x32xf32> -> vector<128x32xf32>
    %c0_104 = arith.constant 0 : index
    %c0_105 = arith.constant 0 : index
    %129 = vector.load %arg24[%c0_104, %c0_105] : memref<192x32xf32, #tpu.memory_space<vmem>>, vector<128x32xf32>
    %130 = arith.addf %129, %128 : vector<128x32xf32>
    %c0_106 = arith.constant 0 : index
    %c0_107 = arith.constant 0 : index
    %131 = vector.load %arg24[%c0_106, %c0_107] : memref<192x32xf32, #tpu.memory_space<vmem>>, vector<128x32xf32>
    tpu.vector_store %arg24[%c0_106, %c0_107], %130 {strides = array<i32>} : memref<192x32xf32, #tpu.memory_space<vmem>>, vector<128x32xf32>,
    %c1_108 = arith.constant 1 : index
    %c0_109 = arith.constant 0 : index
    %c0_110 = arith.constant 0 : index
    %132 = vector.load %arg11[%c1_108, %c0_109, %c0_110] : memref<3x64x32xf32, #tpu.memory_space<vmem>>, vector<1x64x32xf32>
    %133 = vector.shape_cast %132 : vector<1x64x32xf32> to vector<64x32xf32>
    %cst_111 = arith.constant dense<0.000000e+00> : vector<128x32xf32>
    %134 = tpu.matmul %123, %133, %cst_111 {dimension_numbers = #tpu.dot_dimension_numbers<[1], [0], [0], [1], [0, 0, 1, 1], [], []>} : vector<128x64xf32>, vector<64x32xf32>, vector<128x32xf32> -> vector<128x32xf32>
    %c32_112 = arith.constant 32 : index
    %c0_113 = arith.constant 0 : index
    %135 = vector.load %arg24[%c32_112, %c0_113] : memref<192x32xf32, #tpu.memory_space<vmem>>, vector<128x32xf32>
    %136 = arith.addf %135, %134 : vector<128x32xf32>
    %c32_114 = arith.constant 32 : index
    %c0_115 = arith.constant 0 : index
    %137 = vector.load %arg24[%c32_114, %c0_115] : memref<192x32xf32, #tpu.memory_space<vmem>>, vector<128x32xf32>
    tpu.vector_store %arg24[%c32_114, %c0_115], %136 {strides = array<i32>} : memref<192x32xf32, #tpu.memory_space<vmem>>, vector<128x32xf32>,
    %c2_116 = arith.constant 2 : index
    %c0_117 = arith.constant 0 : index
    %c0_118 = arith.constant 0 : index
    %138 = vector.load %arg11[%c2_116, %c0_117, %c0_118] : memref<3x64x32xf32, #tpu.memory_space<vmem>>, vector<1x64x32xf32>
    %139 = vector.shape_cast %138 : vector<1x64x32xf32> to vector<64x32xf32>
    %cst_119 = arith.constant dense<0.000000e+00> : vector<128x32xf32>
    %140 = tpu.matmul %123, %139, %cst_119 {dimension_numbers = #tpu.dot_dimension_numbers<[1], [0], [0], [1], [0, 0, 1, 1], [], []>} : vector<128x64xf32>, vector<64x32xf32>, vector<128x32xf32> -> vector<128x32xf32>
    %c64_120 = arith.constant 64 : index
    %c0_121 = arith.constant 0 : index
    %141 = vector.load %arg24[%c64_120, %c0_121] : memref<192x32xf32, #tpu.memory_space<vmem>>, vector<128x32xf32>
    %142 = arith.addf %141, %140 : vector<128x32xf32>
    %c64_122 = arith.constant 64 : index
    %c0_123 = arith.constant 0 : index
    %143 = vector.load %arg24[%c64_122, %c0_123] : memref<192x32xf32, #tpu.memory_space<vmem>>, vector<128x32xf32>
    tpu.vector_store %arg24[%c64_122, %c0_123], %142 {strides = array<i32>} : memref<192x32xf32, #tpu.memory_space<vmem>>, vector<128x32xf32>,
    %c0_124 = arith.constant 0 : index
    %c0_125 = arith.constant 0 : index
    %144 = vector.load %arg24[%c0_124, %c0_125] : memref<192x32xf32, #tpu.memory_space<vmem>>, vector<192x32xf32>
    %c0_126 = arith.constant 0 : index
    %c0_127 = arith.constant 0 : index
    %145 = vector.load %arg12[%c0_126, %c0_127] : memref<1x32xf32, #tpu.memory_space<vmem>>, vector<1x32xf32>
    %c0_128 = arith.constant 0 : index
    %c0_129 = arith.constant 0 : index
    %146 = vector.load %arg13[%c0_128, %c0_129] : memref<1x32xf32, #tpu.memory_space<vmem>>, vector<1x32xf32>
    %cst_130 = arith.constant dense<0.000000e+00> : vector<32xf32>
    %147 = vector.multi_reduction <add>, %144, %cst_130 [0] : vector<192x32xf32> to vector<32xf32>
    %148 = vector.shape_cast %147 : vector<32xf32> to vector<1x32xf32>
    %cst_131 = arith.constant 0.00520833349 : f32
    %149 = vector.broadcast %cst_131 : f32 to vector<1x32xf32>
    %150 = arith.mulf %148, %149 : vector<1x32xf32>
    %151 = vector.broadcast %150 : vector<1x32xf32> to vector<192x32xf32>
    %152 = arith.subf %144, %151 : vector<192x32xf32>
    %153 = arith.mulf %152, %152 : vector<192x32xf32>
    %cst_132 = arith.constant dense<0.000000e+00> : vector<32xf32>
    %154 = vector.multi_reduction <add>, %153, %cst_132 [0] : vector<192x32xf32> to vector<32xf32>
    %155 = vector.shape_cast %154 : vector<32xf32> to vector<1x32xf32>
    %cst_133 = arith.constant 0.00520833349 : f32
    %156 = vector.broadcast %cst_133 : f32 to vector<1x32xf32>
    %157 = arith.mulf %155, %156 : vector<1x32xf32>
    %cst_134 = arith.constant 9.99999974E-6 : f32
    %158 = vector.broadcast %cst_134 : f32 to vector<1x32xf32>
    %159 = arith.addf %157, %158 : vector<1x32xf32>
    %160 = math.rsqrt %159 : vector<1x32xf32>
    %161 = vector.broadcast %160 : vector<1x32xf32> to vector<192x32xf32>
    %162 = arith.mulf %152, %161 : vector<192x32xf32>
    %163 = vector.broadcast %145 : vector<1x32xf32> to vector<192x32xf32>
    %164 = arith.mulf %162, %163 : vector<192x32xf32>
    %165 = vector.broadcast %146 : vector<1x32xf32> to vector<192x32xf32>
    %166 = arith.addf %164, %165 : vector<192x32xf32>
    %cst_135 = arith.constant 0.000000e+00 : f32
    %167 = vector.broadcast %cst_135 : f32 to vector<192x32xf32>
    %168 = arith.maximumf %166, %167 : vector<192x32xf32>
    %c0_136 = arith.constant 0 : index
    %c0_137 = arith.constant 0 : index
    %c0_138 = arith.constant 0 : index
    %169 = vector.load %arg14[%c0_136, %c0_137, %c0_138] : memref<4x32x16xf32, #tpu.memory_space<vmem>>, vector<1x32x16xf32>
    %170 = vector.shape_cast %169 : vector<1x32x16xf32> to vector<32x16xf32>
    %cst_139 = arith.constant dense<0.000000e+00> : vector<192x16xf32>
    %171 = tpu.matmul %168, %170, %cst_139 {dimension_numbers = #tpu.dot_dimension_numbers<[1], [0], [0], [1], [0, 0, 1, 1], [], []>} : vector<192x32xf32>, vector<32x16xf32>, vector<192x16xf32> -> vector<192x16xf32>
    %c0_140 = arith.constant 0 : index
    %c0_141 = arith.constant 0 : index
    %172 = vector.load %arg25[%c0_140, %c0_141] : memref<768x16xf32, #tpu.memory_space<vmem>>, vector<192x16xf32>
    tpu.vector_store %arg25[%c0_140, %c0_141], %171 {strides = array<i32>} : memref<768x16xf32, #tpu.memory_space<vmem>>, vector<192x16xf32>,
    %c1_142 = arith.constant 1 : index
    %c0_143 = arith.constant 0 : index
    %c0_144 = arith.constant 0 : index
    %173 = vector.load %arg14[%c1_142, %c0_143, %c0_144] : memref<4x32x16xf32, #tpu.memory_space<vmem>>, vector<1x32x16xf32>
    %174 = vector.shape_cast %173 : vector<1x32x16xf32> to vector<32x16xf32>
    %cst_145 = arith.constant dense<0.000000e+00> : vector<192x16xf32>
    %175 = tpu.matmul %168, %174, %cst_145 {dimension_numbers = #tpu.dot_dimension_numbers<[1], [0], [0], [1], [0, 0, 1, 1], [], []>} : vector<192x32xf32>, vector<32x16xf32>, vector<192x16xf32> -> vector<192x16xf32>
    %c192 = arith.constant 192 : index
    %c0_146 = arith.constant 0 : index
    %176 = vector.load %arg25[%c192, %c0_146] : memref<768x16xf32, #tpu.memory_space<vmem>>, vector<192x16xf32>
    tpu.vector_store %arg25[%c192, %c0_146], %175 {strides = array<i32>} : memref<768x16xf32, #tpu.memory_space<vmem>>, vector<192x16xf32>,
    %c2_147 = arith.constant 2 : index
    %c0_148 = arith.constant 0 : index
    %c0_149 = arith.constant 0 : index
    %177 = vector.load %arg14[%c2_147, %c0_148, %c0_149] : memref<4x32x16xf32, #tpu.memory_space<vmem>>, vector<1x32x16xf32>
    %178 = vector.shape_cast %177 : vector<1x32x16xf32> to vector<32x16xf32>
    %cst_150 = arith.constant dense<0.000000e+00> : vector<192x16xf32>
    %179 = tpu.matmul %168, %178, %cst_150 {dimension_numbers = #tpu.dot_dimension_numbers<[1], [0], [0], [1], [0, 0, 1, 1], [], []>} : vector<192x32xf32>, vector<32x16xf32>, vector<192x16xf32> -> vector<192x16xf32>
    %c384 = arith.constant 384 : index
    %c0_151 = arith.constant 0 : index
    %180 = vector.load %arg25[%c384, %c0_151] : memref<768x16xf32, #tpu.memory_space<vmem>>, vector<192x16xf32>
    tpu.vector_store %arg25[%c384, %c0_151], %179 {strides = array<i32>} : memref<768x16xf32, #tpu.memory_space<vmem>>, vector<192x16xf32>,
    %c3_152 = arith.constant 3 : index
    %c0_153 = arith.constant 0 : index
    %c0_154 = arith.constant 0 : index
    %181 = vector.load %arg14[%c3_152, %c0_153, %c0_154] : memref<4x32x16xf32, #tpu.memory_space<vmem>>, vector<1x32x16xf32>
    %182 = vector.shape_cast %181 : vector<1x32x16xf32> to vector<32x16xf32>
    %cst_155 = arith.constant dense<0.000000e+00> : vector<192x16xf32>
    %183 = tpu.matmul %168, %182, %cst_155 {dimension_numbers = #tpu.dot_dimension_numbers<[1], [0], [0], [1], [0, 0, 1, 1], [], []>} : vector<192x32xf32>, vector<32x16xf32>, vector<192x16xf32> -> vector<192x16xf32>
    %c576 = arith.constant 576 : index
    %c0_156 = arith.constant 0 : index
    %184 = vector.load %arg25[%c576, %c0_156] : memref<768x16xf32, #tpu.memory_space<vmem>>, vector<192x16xf32>
    tpu.vector_store %arg25[%c576, %c0_156], %183 {strides = array<i32>} : memref<768x16xf32, #tpu.memory_space<vmem>>, vector<192x16xf32>,
    %c0_157 = arith.constant 0 : index
    %c0_158 = arith.constant 0 : index
    %185 = vector.load %arg25[%c0_157, %c0_158] : memref<768x16xf32, #tpu.memory_space<vmem>>, vector<768x16xf32>
    %c0_159 = arith.constant 0 : index
    %c0_160 = arith.constant 0 : index
    %186 = vector.load %arg15[%c0_159, %c0_160] : memref<1x16xf32, #tpu.memory_space<vmem>>, vector<1x16xf32>
    %c0_161 = arith.constant 0 : index
    %c0_162 = arith.constant 0 : index
    %187 = vector.load %arg16[%c0_161, %c0_162] : memref<1x16xf32, #tpu.memory_space<vmem>>, vector<1x16xf32>
    %cst_163 = arith.constant dense<0.000000e+00> : vector<16xf32>
    %188 = vector.multi_reduction <add>, %185, %cst_163 [0] : vector<768x16xf32> to vector<16xf32>
    %189 = vector.shape_cast %188 : vector<16xf32> to vector<1x16xf32>
    %cst_164 = arith.constant 0.00130208337 : f32
    %190 = vector.broadcast %cst_164 : f32 to vector<1x16xf32>
    %191 = arith.mulf %189, %190 : vector<1x16xf32>
    %192 = vector.broadcast %191 : vector<1x16xf32> to vector<768x16xf32>
    %193 = arith.subf %185, %192 : vector<768x16xf32>
    %194 = arith.mulf %193, %193 : vector<768x16xf32>
    %cst_165 = arith.constant dense<0.000000e+00> : vector<16xf32>
    %195 = vector.multi_reduction <add>, %194, %cst_165 [0] : vector<768x16xf32> to vector<16xf32>
    %196 = vector.shape_cast %195 : vector<16xf32> to vector<1x16xf32>
    %cst_166 = arith.constant 0.00130208337 : f32
    %197 = vector.broadcast %cst_166 : f32 to vector<1x16xf32>
    %198 = arith.mulf %196, %197 : vector<1x16xf32>
    %cst_167 = arith.constant 9.99999974E-6 : f32
    %199 = vector.broadcast %cst_167 : f32 to vector<1x16xf32>
    %200 = arith.addf %198, %199 : vector<1x16xf32>
    %201 = math.rsqrt %200 : vector<1x16xf32>
    %202 = vector.broadcast %201 : vector<1x16xf32> to vector<768x16xf32>
    %203 = arith.mulf %193, %202 : vector<768x16xf32>
    %204 = vector.broadcast %186 : vector<1x16xf32> to vector<768x16xf32>
    %205 = arith.mulf %203, %204 : vector<768x16xf32>
    %206 = vector.broadcast %187 : vector<1x16xf32> to vector<768x16xf32>
    %207 = arith.addf %205, %206 : vector<768x16xf32>
    %cst_168 = arith.constant 0.000000e+00 : f32
    %208 = vector.broadcast %cst_168 : f32 to vector<768x16xf32>
    %209 = arith.maximumf %207, %208 : vector<768x16xf32>
    %c0_169 = arith.constant 0 : index
    %c0_170 = arith.constant 0 : index
    %210 = vector.load %arg17[%c0_169, %c0_170] : memref<16x12xf32, #tpu.memory_space<vmem>>, vector<16x12xf32>
    %cst_171 = arith.constant dense<0.000000e+00> : vector<768x12xf32>
    %211 = tpu.matmul %209, %210, %cst_171 {dimension_numbers = #tpu.dot_dimension_numbers<[1], [0], [0], [1], [0, 0, 1, 1], [], []>} : vector<768x16xf32>, vector<16x12xf32>, vector<768x12xf32> -> vector<768x12xf32>
    %c0_172 = arith.constant 0 : index
    %c0_173 = arith.constant 0 : index
    %212 = vector.load %arg18[%c0_172, %c0_173] : memref<1x1xf32, #tpu.memory_space<vmem>>, vector<1x1xf32>
    %c0_174 = arith.constant 0 : index
    %c0_175 = arith.constant 0 : index
    %213 = vector.load %arg19[%c0_174, %c0_175] : memref<1x1xf32, #tpu.memory_space<vmem>>, vector<1x1xf32>
    %cst_176 = arith.constant dense<0.000000e+00> : vector<12xf32>
    %214 = vector.multi_reduction <add>, %211, %cst_176 [0] : vector<768x12xf32> to vector<12xf32>
    %215 = vector.shape_cast %214 : vector<12xf32> to vector<1x12xf32>
    %cst_177 = arith.constant dense<0.000000e+00> : vector<1xf32>
    %216 = vector.multi_reduction <add>, %215, %cst_177 [1] : vector<1x12xf32> to vector<1xf32>
    %217 = vector.shape_cast %216 : vector<1xf32> to vector<1x1xf32>
    %cst_178 = arith.constant 1.08506945E-4 : f32
    %218 = vector.broadcast %cst_178 : f32 to vector<1x1xf32>
    %219 = arith.mulf %217, %218 : vector<1x1xf32>
    %220 = vector.broadcast %219 : vector<1x1xf32> to vector<768x12xf32>
    %221 = arith.subf %211, %220 : vector<768x12xf32>
    %222 = arith.mulf %221, %221 : vector<768x12xf32>
    %cst_179 = arith.constant dense<0.000000e+00> : vector<12xf32>
    %223 = vector.multi_reduction <add>, %222, %cst_179 [0] : vector<768x12xf32> to vector<12xf32>
    %224 = vector.shape_cast %223 : vector<12xf32> to vector<1x12xf32>
    %cst_180 = arith.constant dense<0.000000e+00> : vector<1xf32>
    %225 = vector.multi_reduction <add>, %224, %cst_180 [1] : vector<1x12xf32> to vector<1xf32>
    %226 = vector.shape_cast %225 : vector<1xf32> to vector<1x1xf32>
    %cst_181 = arith.constant 1.08506945E-4 : f32
    %227 = vector.broadcast %cst_181 : f32 to vector<1x1xf32>
    %228 = arith.mulf %226, %227 : vector<1x1xf32>
    %cst_182 = arith.constant 9.99999974E-6 : f32
    %229 = vector.broadcast %cst_182 : f32 to vector<1x1xf32>
    %230 = arith.addf %228, %229 : vector<1x1xf32>
    %231 = math.rsqrt %230 : vector<1x1xf32>
    %232 = vector.broadcast %231 : vector<1x1xf32> to vector<768x12xf32>
    %233 = arith.mulf %221, %232 : vector<768x12xf32>
    %234 = vector.broadcast %212 : vector<1x1xf32> to vector<768x12xf32>
    %235 = arith.mulf %233, %234 : vector<768x12xf32>
    %236 = vector.broadcast %213 : vector<1x1xf32> to vector<768x12xf32>
    %237 = arith.addf %235, %236 : vector<768x12xf32>
    %cst_183 = arith.constant 0.000000e+00 : f32
    %238 = vector.broadcast %cst_183 : f32 to vector<768x12xf32>
    %239 = arith.maximumf %237, %238 : vector<768x12xf32>
    %c0_184 = arith.constant 0 : index
    %c0_185 = arith.constant 0 : index
    %240 = vector.load %arg20[%c0_184, %c0_185] : memref<768x12xf32, #tpu.memory_space<vmem>>, vector<768x12xf32>
    tpu.vector_store %arg20[%c0_184, %c0_185], %239 {strides = array<i32>} : memref<768x12xf32, #tpu.memory_space<vmem>>, vector<768x12xf32>,
    return
  }
  func.func @transform_0(%arg0: i32) -> (i32, i32) {
    %c0_i32 = arith.constant 0 : i32
    %c0_i32_0 = arith.constant 0 : i32
    %c0_i32_1 = arith.constant 0 : i32
    return %c0_i32, %c0_i32_0 : i32, i32
  }
  func.func @transform_1(%arg0: i32) -> (i32, i32, i32) {
    %c0_i32 = arith.constant 0 : i32
    %c0_i32_0 = arith.constant 0 : i32
    %c0_i32_1 = arith.constant 0 : i32
    %c0_i32_2 = arith.constant 0 : i32
    return %c0_i32, %c0_i32_0, %c0_i32_1 : i32, i32, i32
  }
  func.func @transform_2(%arg0: i32) -> (i32, i32) {
    %c0_i32 = arith.constant 0 : i32
    %c0_i32_0 = arith.constant 0 : i32
    %c0_i32_1 = arith.constant 0 : i32
    return %c0_i32, %c0_i32_0 : i32, i32
  }
  func.func @transform_3(%arg0: i32) -> (i32, i32) {
    %c0_i32 = arith.constant 0 : i32
    %c0_i32_0 = arith.constant 0 : i32
    %c0_i32_1 = arith.constant 0 : i32
    return %c0_i32, %c0_i32_0 : i32, i32
  }
  func.func @transform_4(%arg0: i32) -> (i32, i32, i32) {
    %c0_i32 = arith.constant 0 : i32
    %c0_i32_0 = arith.constant 0 : i32
    %c0_i32_1 = arith.constant 0 : i32
    %c0_i32_2 = arith.constant 0 : i32
    return %c0_i32, %c0_i32_0, %c0_i32_1 : i32, i32, i32
  }
  func.func @transform_5(%arg0: i32) -> (i32, i32) {
    %c0_i32 = arith.constant 0 : i32
    %c0_i32_0 = arith.constant 0 : i32
    %c0_i32_1 = arith.constant 0 : i32
    return %c0_i32, %c0_i32_0 : i32, i32
  }
  func.func @transform_6(%arg0: i32) -> (i32, i32) {
    %c0_i32 = arith.constant 0 : i32
    %c0_i32_0 = arith.constant 0 : i32
    %c0_i32_1 = arith.constant 0 : i32
    return %c0_i32, %c0_i32_0 : i32, i32
  }
  func.func @transform_7(%arg0: i32) -> (i32, i32, i32) {
    %c0_i32 = arith.constant 0 : i32
    %c0_i32_0 = arith.constant 0 : i32
    %c0_i32_1 = arith.constant 0 : i32
    %c0_i32_2 = arith.constant 0 : i32
    return %c0_i32, %c0_i32_0, %c0_i32_1 : i32, i32, i32
  }
  func.func @transform_8(%arg0: i32) -> (i32, i32) {
    %c0_i32 = arith.constant 0 : i32
    %c0_i32_0 = arith.constant 0 : i32
    %c0_i32_1 = arith.constant 0 : i32
    return %c0_i32, %c0_i32_0 : i32, i32
  }
  func.func @transform_9(%arg0: i32) -> (i32, i32) {
    %c0_i32 = arith.constant 0 : i32
    %c0_i32_0 = arith.constant 0 : i32
    %c0_i32_1 = arith.constant 0 : i32
    return %c0_i32, %c0_i32_0 : i32, i32
  }
  func.func @transform_10(%arg0: i32) -> (i32, i32, i32) {
    %c0_i32 = arith.constant 0 : i32
    %c0_i32_0 = arith.constant 0 : i32
    %c0_i32_1 = arith.constant 0 : i32
    %c0_i32_2 = arith.constant 0 : i32
    return %c0_i32, %c0_i32_0, %c0_i32_1 : i32, i32, i32
  }
  func.func @transform_11(%arg0: i32) -> (i32, i32) {
    %c0_i32 = arith.constant 0 : i32
    %c0_i32_0 = arith.constant 0 : i32
    %c0_i32_1 = arith.constant 0 : i32
    return %c0_i32, %c0_i32_0 : i32, i32
  }
  func.func @transform_12(%arg0: i32) -> (i32, i32) {
    %c0_i32 = arith.constant 0 : i32
    %c0_i32_0 = arith.constant 0 : i32
    %c0_i32_1 = arith.constant 0 : i32
    return %c0_i32, %c0_i32_0 : i32, i32
  }
  func.func @transform_13(%arg0: i32) -> (i32, i32, i32) {
    %c0_i32 = arith.constant 0 : i32
    %c0_i32_0 = arith.constant 0 : i32
    %c0_i32_1 = arith.constant 0 : i32
    %c0_i32_2 = arith.constant 0 : i32
    return %c0_i32, %c0_i32_0, %c0_i32_1 : i32, i32, i32
  }
  func.func @transform_14(%arg0: i32) -> (i32, i32) {
    %c0_i32 = arith.constant 0 : i32
    %c0_i32_0 = arith.constant 0 : i32
    %c0_i32_1 = arith.constant 0 : i32
    return %c0_i32, %c0_i32_0 : i32, i32
  }
  func.func @transform_15(%arg0: i32) -> (i32, i32) {
    %c0_i32 = arith.constant 0 : i32
    %c0_i32_0 = arith.constant 0 : i32
    %c0_i32_1 = arith.constant 0 : i32
    return %c0_i32, %c0_i32_0 : i32, i32
  }
  func.func @transform_16(%arg0: i32) -> (i32, i32) {
    %c0_i32 = arith.constant 0 : i32
    %c0_i32_0 = arith.constant 0 : i32
    %c0_i32_1 = arith.constant 0 : i32
    return %c0_i32, %c0_i32_0 : i32, i32
  }
  func.func @transform_17(%arg0: i32) -> (i32, i32) {
    %c0_i32 = arith.constant 0 : i32
    %c0_i32_0 = arith.constant 0 : i32
    %c0_i32_1 = arith.constant 0 : i32
    return %c0_i32, %c0_i32_0 : i32, i32
  }
  func.func @transform_18(%arg0: i32) -> (i32, i32) {
    %c0_i32 = arith.constant 0 : i32
    %c0_i32_0 = arith.constant 0 : i32
    %c0_i32_1 = arith.constant 0 : i32
    return %c0_i32, %c0_i32_0 : i32, i32
  }
  func.func @transform_19(%arg0: i32) -> (i32, i32) {
    %c0_i32 = arith.constant 0 : i32
    %c0_i32_0 = arith.constant 0 : i32
    %c0_i32_1 = arith.constant 0 : i32
    return %c0_i32, %c0_i32_0 : i32, i32
  }
}

</mosaic_0001>

<bundles_post_ra>
// kernel: _lambda_.1
= control target key start
LH: loop header
LB: loop body
LE: loop exit
PB: predicated region body
PF: predicated region fallthrough
CT: control target
= control target key end

     0   :  { %s10842_s0 = inlined_call_operand.hbm [shape: f32[2,32], index: 0, kind: input, shape index: {}]   ;;  %s10843_s1 = inlined_call_operand.hbm [shape: f32[4,32,256], index: 1, kind: input, shape index: {}]   ;;  %s10844_s2 = inlined_call_operand.hbm [shape: f32[1,256], index: 2, kind: input, shape index: {}]   ;;  %s10845_s3 = inlined_call_operand.vmem [shape: f32[1,256], index: 3, kind: input, shape index: {}]   ;;  %s10846_s4 = inlined_call_operand.hbm [shape: f32[4,256,128], index: 4, kind: input, shape index: {}]   ;;  %s10847_s5 = inlined_call_operand.hbm [shape: f32[1,128], index: 5, kind: input, shape index: {}]   ;;  %s10848_s6 = inlined_call_operand.hbm [shape: f32[1,128], index: 6, kind: input, shape index: {}]   ;;  %s10849_s7 = inlined_call_operand.hbm [shape: f32[4,128,64], index: 7, kind: input, shape index: {}]   ;;  %s10850_s8 = inlined_call_operand.hbm [shape: f32[1,64], index: 8, kind: input, shape index: {}]   ;;  %s10851_s9 = inlined_call_operand.vmem [shape: f32[1,64], index: 9, kind: input, shape index: {}]   ;;  %s10852_s10 = inlined_call_operand.hbm [shape: f32[3,64,32], index: 10, kind: input, shape index: {}]   ;;  %s10853_s11 = inlined_call_operand.vmem [shape: f32[1,32], index: 11, kind: input, shape index: {}]   ;;  %s10854_s12 = inlined_call_operand.vmem [shape: f32[1,32], index: 12, kind: input, shape index: {}]   ;;  %s10855_s13 = inlined_call_operand.hbm [shape: f32[4,32,16], index: 13, kind: input, shape index: {}]   ;;  %s10856_s14 = inlined_call_operand.vmem [shape: f32[1,16], index: 14, kind: input, shape index: {}]   ;;  %s10857_s15 = inlined_call_operand.vmem [shape: f32[1,16], index: 15, kind: input, shape index: {}]   ;;  %s10858_s16 = inlined_call_operand.hbm [shape: f32[16,12], index: 16, kind: input, shape index: {}]   ;;  %s10859_s17 = inlined_call_operand.<no memory space> [shape: f32[1,1], index: 17, kind: input, shape index: {}]   ;;  %s10860_s19 = inlined_call_operand.vmem [shape: f32[768,12], index: 19, kind: output, shape index: {}]   ;;  %s10861_s18 = inlined_call_operand.<no memory space> [shape: f32[1,1], index: 18, kind: input, shape index: {}]  }
   0x1   :  { %11063 = sst [smem:[#allocation101_spill]] %s10842_s0  ;;  %v24_v0 = vstv %s10859_s17  ;;  %v26_v1 = vstv %s10861_s18 }
   0x2   :  { %11064 = sst [smem:[#allocation102_spill]] %s10843_s1  ;;  %25 = vst [vmem:[#allocation7] sm:$0x1] %v24_v0 }
   0x3   :  { %11065 = sst [smem:[#allocation103_spill]] %s10844_s2  ;;  %27 = vst [vmem:[#allocation8] sm:$0x1] %v26_v1 }
   0x4   :  { %11066 = sst [smem:[#allocation104_spill]] %s10845_s3 }
   0x5   :  { %28 = vsyncpa [#allocation10], 0 }
   0x6   :  { %29 = vsyncpa [#allocation12], 0 }
   0x7   :  { %30 = vsyncpa [#allocation15], 0 }
   0x8   :  { %31 = vsyncpa [#allocation18], 0 }
   0x9   :  { %32 = vsyncpa [#allocation21], 0  ;;  %s11067_s2 = sld [smem:[#allocation102_spill]] }
   0xf   :  { %s49_s23 = sshll.u32 %s11067_s2, 4  ;;  %s50_s23 = int_to_ptr.hbm [resolvable:$true] %s49_s23 }
  0x10   :  { %33 = vsyncpa [#allocation24], 0  ;;  %s5937_s24 = smov [#allocation11]   ;;  %s75_s18 = sshll.u32 %s10846_s4, 4  ;;  %s76_s18 = int_to_ptr.hbm [resolvable:$true] %s75_s18 }
  0x11   :  { %s51_s25 = sshll.u32 %s5937_s24, 4  ;;  %s5938_s26 = smov 256   ;;  %s52_s25 = int_to_ptr.vmem [resolvable:$true] %s51_s25 }
  0x12   :  { %s5939_s27 = smov 16   ;;  %s5940_s28 = smov [#allocation14]  }
  0x13   :  { %57 = dma.hbm_to_vmem [thread:$0]  %s50_s23, 4096, %s52_s25, [#allocation12], %s5938_s26, %s5938_s26, %s5939_s27  }
  0x14   :  { %s77_s29 = sshll.u32 %s5940_s28, 4  ;;  %s5941_s0 = smov 128   ;;  %s78_s29 = int_to_ptr.vmem [resolvable:$true] %s77_s29 }
  0x15   :  { %s5942_s30 = smov 8   ;;  %s100_s1 = sshll.u32 %s10848_s6, 4  ;;  %s101_s1 = int_to_ptr.hbm [resolvable:$true] %s100_s1 }
  0x16   :  { %83 = dma.hbm_to_vmem [thread:$0]  %s76_s18, 16384, %s78_s29, [#allocation15], %s5941_s0, %s5941_s0, %s5942_s30  }
  0x17   :  { %s5943_s22 = smov [#allocation17]   ;;  %s124_s24 = sshll.u32 %s10850_s8, 4  ;;  %s125_s24 = int_to_ptr.hbm [resolvable:$true] %s124_s24 }
  0x18   :  { %s102_s4 = sshll.u32 %s5943_s22, 4  ;;  %s5944_s25 = smov [#allocation20]   ;;  %s103_s4 = int_to_ptr.vmem [resolvable:$true] %s102_s4 }
  0x19   :  { %105 = dma.hbm_to_vmem [thread:$0]  %s101_s1, 16, %s103_s4, [#allocation18]  }
  0x1a   :  { %s126_s17 = sshll.u32 %s5944_s25, 4  ;;  %s153_s18 = sshll.u32 %s10855_s13, 4  ;;  %s127_s17 = int_to_ptr.vmem [resolvable:$true] %s126_s17  ;;  %s154_s18 = int_to_ptr.hbm [resolvable:$true] %s153_s18 }
  0x1b   :  { %129 = dma.hbm_to_vmem [thread:$0]  %s125_s24, 16, %s127_s17, [#allocation21]  }
  0x1c   :  { %s11068_s28 = sld [smem:[#allocation101_spill]]  ;;  %s5945_s20 = smov [#allocation23]  }
  0x1d   :  { %s155_s21 = sshll.u32 %s5945_s20, 4  ;;  %s5946_s8 = smov [#allocation9]   ;;  %s156_s21 = int_to_ptr.vmem [resolvable:$true] %s155_s21 }
  0x1e   :  { %161 = dma.hbm_to_vmem [thread:$0]  %s154_s18, 2048, %s156_s21, [#allocation24], %s5941_s0, %s5941_s0, %s5942_s30  }
  0x1f   :  { %s41_s1 = sshll.u32 %s5946_s8, 4  ;;  %s11069_s13 = sld [smem:[#allocation103_spill]]  ;;  %s42_s1 = int_to_ptr.vmem [resolvable:$true] %s41_s1 }
  0x20   :  { %s89_s25 = sshll.u32 %s10847_s5, 4  ;;  %s5947_s17 = smov [#allocation13]   ;;  %s90_s25 = int_to_ptr.hbm [resolvable:$true] %s89_s25 }
  0x21   :  { %s65_s3 = sshll.u32 %s5947_s17, 4  ;;  %s5948_s26 = smov [#allocation16]   ;;  %s66_s3 = int_to_ptr.vmem [resolvable:$true] %s65_s3 }
  0x22   :  { %s39_s29 = sshll.u32 %s11068_s28, 4  ;;  %s91_s18 = sshll.u32 %s5948_s26, 4  ;;  %s40_s29 = int_to_ptr.hbm [resolvable:$true] %s39_s29  ;;  %s92_s18 = int_to_ptr.vmem [resolvable:$true] %s91_s18 }
  0x23   :  { %44 = dma.hbm_to_vmem [thread:$0]  %s40_s29, 32, %s42_s1, [#allocation10]  }
  0x24   :  { %s110_s28 = sshll.u32 %s10849_s7, 4  ;;  %s136_s21 = sshll.u32 %s10852_s10, 4  ;;  %s111_s28 = int_to_ptr.hbm [resolvable:$true] %s110_s28  ;;  %s137_s21 = int_to_ptr.hbm [resolvable:$true] %s136_s21 }
  0x25   :  { %s63_s2 = sshll.u32 %s11069_s13, 4  ;;  %s5949_s8 = smov [#allocation19]   ;;  %s64_s2 = int_to_ptr.hbm [resolvable:$true] %s63_s2 }
  0x26   :  { %68 = dma.hbm_to_vmem [thread:$0]  %s64_s2, 32, %s66_s3, [#allocation12]  }
  0x27   :  { %94 = dma.hbm_to_vmem [thread:$0]  %s90_s25, 16, %s92_s18, [#allocation15]  }
  0x28   :  { %s112_s5 = sshll.u32 %s5949_s8, 4  ;;  %s5950_s1 = smov [#allocation22]   ;;  %s113_s5 = int_to_ptr.vmem [resolvable:$true] %s112_s5 }
  0x29   :  { %118 = dma.hbm_to_vmem [thread:$0]  %s111_s28, 8192, %s113_s5, [#allocation18], %s5941_s0, %s5941_s0, %s5942_s30  }
  0x2a   :  { %s138_s22 = sshll.u32 %s5950_s1, 4  ;;  %s170_s7 = sshll.u32 %s10858_s16, 4  ;;  %s139_s22 = int_to_ptr.vmem [resolvable:$true] %s138_s22  ;;  %s171_s7 = int_to_ptr.hbm [resolvable:$true] %s170_s7 }
  0x2b   :  { %144 = dma.hbm_to_vmem [thread:$0]  %s137_s21, 3072, %s139_s22, [#allocation21], %s5941_s0, %s5941_s0, %s5942_s30  }
  0x2c   :  { %s5951_s10 = smov [#allocation25]  }
  0x2d   :  { %s172_s2 = sshll.u32 %s5951_s10, 4  ;;  %s173_s2 = int_to_ptr.vmem [resolvable:$true] %s172_s2 }
  0x2e   :  { %178 = dma.hbm_to_vmem [thread:$0]  %s171_s7, 256, %s173_s2, [#allocation24], %s5941_s0, %s5941_s0, %s5942_s30  }
  0x2f   :  { %5925 = dma.done.wait [#allocation10], 32  }
  0x30   :  { %5926 = vsyncadd [#allocation10], 4294967264 }
  0x31   :  { %5927 = dma.done.wait [#allocation12], 4128  }
  0x32   :  { %5928 = vsyncadd [#allocation12], 4294963168 }
  0x33   :  { %5929 = dma.done.wait [#allocation15], 16400  }
  0x34   :  { %5930 = vsyncadd [#allocation15], 4294950896 }
  0x35   :  { %5931 = dma.done.wait [#allocation18], 8208  }
  0x36   :  { %5932 = vsyncadd [#allocation18], 4294959088 }
  0x37   :  { %5933 = dma.done.wait [#allocation21], 3088  }
  0x38   :  { %5934 = vsyncadd [#allocation21], 4294964208 }
  0x39   :  { %5935 = dma.done.wait [#allocation24], 2304  }
  0x3a   :  { %5936 = vsyncadd [#allocation24], 4294964992  ;;  %v289_v2 = vld [vmem:[#allocation11 + $0x70] sm:$0xff]  ;;  %v290_v3 = vld [vmem:[#allocation11 + $0x78] sm:$0xff]  ;;  %vm236_vm0 = vcmask 261120   ;;  %s11070_s30 = sld [smem:[#allocation104_spill]] }
  0x3b   :  { %v287_v4 = vld [vmem:[#allocation11 + $0x60] sm:$0xff]  ;;  %303 = vmatpush.msra.mxu2 %v289_v2  ;;  %323 = vmatpush.msra.mxu3 %v290_v3  ;;  %v288_v5 = vld [vmem:[#allocation11 + $0x68] sm:$0xff]  ;;  %v285_v6 = vld [vmem:[#allocation11 + $0x50] sm:$0xff]  ;;  %vm936_vm10 = vcmask 523264  }
  0x3c   :  { %v286_v7 = vld [vmem:[#allocation11 + $0x58] sm:$0xff]  ;;  %v234_v8 = vld [vmem:[#allocation11 + $0x30] sm:$0xff]  ;;  %v283_v10 = vld [vmem:[#allocation11 + $0x40] sm:$0xff] }
  0x3d   :  { %v235_v9 = vld [vmem:[#allocation11 + $0x38] sm:$0xff]  ;;  %304 = vmatpush.msra.mxu2 %v287_v4  ;;  %324 = vmatpush.msra.mxu3 %v288_v5  ;;  %v284_v11 = vld [vmem:[#allocation11 + $0x48] sm:$0xff]  ;;  %v232_v12 = vld [vmem:[#allocation11 + $0x20] sm:$0xff] }
  0x3e   :  { %252 = vmatpush.msra.mxu0 %v234_v8  ;;  %272 = vmatpush.msra.mxu1 %v235_v9  ;;  %v233_v13 = vld [vmem:[#allocation11 + $0x28] sm:$0xff]  ;;  %v227_v14 = vld [vmem:[#allocation9] sm:$0x3]  ;;  %v403_v15 = vld [vmem:[#allocation11 + $0xf0] sm:$0xff] }
  0x3f   :  { %305 = vmatpush.msra.mxu2 %v285_v6  ;;  %325 = vmatpush.msra.mxu3 %v286_v7  ;;  %v404_v16 = vld [vmem:[#allocation11 + $0xf8] sm:$0xff]  ;;  %v230_v17 = vld [vmem:[#allocation11 + $0x10] sm:$0xff]  ;;  %v401_v19 = vld [vmem:[#allocation11 + $0xe0] sm:$0xff] }
  0x40   :  { %253 = vmatpush.msra.mxu0 %v232_v12  ;;  %273 = vmatpush.msra.mxu1 %v233_v13  ;;  %v231_v18 = vld [vmem:[#allocation11 + $0x18] sm:$0xff]  ;;  %v402_v20 = vld [vmem:[#allocation11 + $0xe8] sm:$0xff]  ;;  %v399_v21 = vld [vmem:[#allocation11 + $0xd0] sm:$0xff] }
  0x41   :  { %306 = vmatpush.msra.mxu2 %v283_v10  ;;  %326 = vmatpush.msra.mxu3 %v284_v11  ;;  %v228_v22 = vld [vmem:[#allocation11] sm:$0xff]  ;;  %v229_v23 = vld [vmem:[#allocation11 + $0x8] sm:$0xff]  ;;  %v400_v24 = vld [vmem:[#allocation11 + $0xd8] sm:$0xff] }
  0x42   :  { %5368 = vmatmul.msk.f32.vlgmr.msra.gmra.mxu2 %vm236_vm0, %v227_v14  ;;  %5369 = vmatmul.msk.f32.vlgmr.msra.gmra.mxu3 %vm236_vm0, %v227_v14  ;;  %v346_v25 = vld [vmem:[#allocation11 + $0xb0] sm:$0xff]  ;;  %v397_v26 = vld [vmem:[#allocation11 + $0xc0] sm:$0xff]  ;;  %v347_v27 = vld [vmem:[#allocation11 + $0xb8] sm:$0xff] }
  0x43   :  { %417 = vmatpush.msrb.mxu2 %v403_v15  ;;  %437 = vmatpush.msrb.mxu3 %v404_v16  ;;  %v398_v28 = vld [vmem:[#allocation11 + $0xc8] sm:$0xff]  ;;  %v344_v29 = vld [vmem:[#allocation11 + $0xa0] sm:$0xff]  ;;  %v342_v31 = vld [vmem:[#allocation11 + $0x90] sm:$0xff] }
  0x44   :  { %254 = vmatpush.msra.mxu0 %v230_v17  ;;  %274 = vmatpush.msra.mxu1 %v231_v18  ;;  %v345_v30 = vld [vmem:[#allocation11 + $0xa8] sm:$0xff]  ;;  %v343_v32 = vld [vmem:[#allocation11 + $0x98] sm:$0xff]  ;;  %v340_v33 = vld [vmem:[#allocation11 + $0x80] sm:$0xff] }
  0x45   :  { %418 = vmatpush.msrb.mxu2 %v401_v19  ;;  %438 = vmatpush.msrb.mxu3 %v402_v20  ;;  %v341_v34 = vld [vmem:[#allocation11 + $0x88] sm:$0xff]  ;;  %v544_v35 = vld [vmem:[#allocation14 + $0x78] sm:$0xff]  ;;  %v543_v36 = vld [vmem:[#allocation14 + $0x70] sm:$0xff] }
  0x46   :  { %255 = vmatpush.msra.mxu0 %v228_v22  ;;  %275 = vmatpush.msra.mxu1 %v229_v23  ;;  %v560_v37 = vld [vmem:[#allocation14 + $0xf8] sm:$0xff]  ;;  %v542_v38 = vld [vmem:[#allocation14 + $0x68] sm:$0xff]  ;;  %v559_v40 = vld [vmem:[#allocation14 + $0xf0] sm:$0xff] }
  0x47   :  { %419 = vmatpush.msrb.mxu2 %v399_v21  ;;  %439 = vmatpush.msrb.mxu3 %v400_v24  ;;  %v634_v39 = vld [vmem:[#allocation14 + $0x1f8] sm:$0xff]  ;;  %v633_v41 = vld [vmem:[#allocation14 + $0x1f0] sm:$0xff]  ;;  %v558_v42 = vld [vmem:[#allocation14 + $0xe8] sm:$0xff] }
  0x48   :  { %5366 = vmatmul.msk.f32.vlgmr.msra.gmra.mxu0 %vm236_vm0, %v227_v14  ;;  %5367 = vmatmul.msk.f32.vlgmr.msra.gmra.mxu1 %vm236_vm0, %v227_v14  ;;  %v541_v43 = vld [vmem:[#allocation14 + $0x60] sm:$0xff]  ;;  %v632_v44 = vld [vmem:[#allocation14 + $0x1e8] sm:$0xff]  ;;  %v540_v46 = vld [vmem:[#allocation14 + $0x58] sm:$0xff] }
  0x49   :  { %360 = vmatpush.msrb.mxu0 %v346_v25  ;;  %420 = vmatpush.msrb.mxu2 %v397_v26  ;;  %v557_v45 = vld [vmem:[#allocation14 + $0xe0] sm:$0xff]  ;;  %v556_v48 = vld [vmem:[#allocation14 + $0xd8] sm:$0xff]  ;;  %v539_v49 = vld [vmem:[#allocation14 + $0x50] sm:$0xff] }
  0x4a   :  { %380 = vmatpush.msrb.mxu1 %v347_v27  ;;  %440 = vmatpush.msrb.mxu3 %v398_v28  ;;  %v631_v47 = vld [vmem:[#allocation14 + $0x1e0] sm:$0xff]  ;;  %v630_v50 = vld [vmem:[#allocation14 + $0x1d8] sm:$0xff]  ;;  %v555_v51 = vld [vmem:[#allocation14 + $0xd0] sm:$0xff] }
  0x4b   :  { %361 = vmatpush.msrb.mxu0 %v344_v29  ;;  %5372 = vmatmul.msk.f32.vlgmr.msrb.gmra.mxu2 %vm236_vm0, %v227_v14  ;;  %v538_v52 = vld [vmem:[#allocation14 + $0x48] sm:$0xff]  ;;  %v629_v53 = vld [vmem:[#allocation14 + $0x1d0] sm:$0xff]  ;;  %v537_v55 = vld [vmem:[#allocation14 + $0x40] sm:$0xff] }
  0x4c   :  { %5373 = vmatmul.msk.f32.vlgmr.msrb.gmra.mxu3 %vm236_vm0, %v227_v14  ;;  %381 = vmatpush.msrb.mxu1 %v345_v30  ;;  %v554_v54 = vld [vmem:[#allocation14 + $0xc8] sm:$0xff]  ;;  %v553_v57 = vld [vmem:[#allocation14 + $0xc0] sm:$0xff]  ;;  %v692_v58 = vld [vmem:[#allocation14 + $0x278] sm:$0xff] }
  0x4d   :  { %362 = vmatpush.msrb.mxu0 %v342_v31  ;;  %561 = vmatpush.msra.mxu2 %v544_v35  ;;  %v628_v56 = vld [vmem:[#allocation14 + $0x1c8] sm:$0xff]  ;;  %v536_v59 = vld [vmem:[#allocation14 + $0x38] sm:$0xff]  ;;  %v627_v60 = vld [vmem:[#allocation14 + $0x1c0] sm:$0xff] }
  0x4e   :  { %382 = vmatpush.msrb.mxu1 %v343_v32  ;;  %655 = vmatpush.msra.mxu3 %v634_v39  ;;  %v552_v61 = vld [vmem:[#allocation14 + $0xb8] sm:$0xff]  ;;  %v691_v62 = vld [vmem:[#allocation14 + $0x270] sm:$0xff]  ;;  %v690_v1 = vld [vmem:[#allocation14 + $0x268] sm:$0xff] }
  0x4f   :  { %363 = vmatpush.msrb.mxu0 %v340_v33  ;;  %562 = vmatpush.msra.mxu2 %v543_v36  ;;  %v535_v63 = vld [vmem:[#allocation14 + $0x30] sm:$0xff]  ;;  %v626_v0 = vld [vmem:[#allocation14 + $0x1b8] sm:$0xff]  ;;  %v689_v3 = vld [vmem:[#allocation14 + $0x260] sm:$0xff] }
  0x50   :  { %383 = vmatpush.msrb.mxu1 %v341_v34  ;;  %5370 = vmatmul.msk.f32.vlgmr.msrb.gmra.mxu0 %vm236_vm0, %v227_v14  ;;  %v551_v2 = vld [vmem:[#allocation14 + $0xb0] sm:$0xff]  ;;  %v534_v6 = vld [vmem:[#allocation14 + $0x28] sm:$0xff]  ;;  %v688_v11 = vld [vmem:[#allocation14 + $0x258] sm:$0xff] }
  0x51   :  { %5371 = vmatmul.msk.f32.vlgmr.msrb.gmra.mxu1 %vm236_vm0, %v227_v14  ;;  %563 = vmatpush.msra.mxu2 %v542_v38  ;;  %v625_v7 = vld [vmem:[#allocation14 + $0x1b0] sm:$0xff]  ;;  %v550_v10 = vld [vmem:[#allocation14 + $0xa8] sm:$0xff]  ;;  %v533_v14 = vld [vmem:[#allocation14 + $0x20] sm:$0xff] }
  0x52   :  { %581 = vmatpush.msra.mxu1 %v560_v37  ;;  %656 = vmatpush.msra.mxu3 %v633_v41  ;;  %v624_v15 = vld [vmem:[#allocation14 + $0x1a8] sm:$0xff]  ;;  %v549_v16 = vld [vmem:[#allocation14 + $0xa0] sm:$0xff]  ;;  %v687_v17 = vld [vmem:[#allocation14 + $0x250] sm:$0xff] }
  0x53   :  { %564 = vmatpush.msra.mxu2 %v541_v43  ;;  %709 = vmatpush.msra.mxu0 %v692_v58  ;;  %v532_v18 = vld [vmem:[#allocation14 + $0x18] sm:$0xff]  ;;  %v623_v19 = vld [vmem:[#allocation14 + $0x1a0] sm:$0xff]  ;;  %v686_v21 = vld [vmem:[#allocation14 + $0x248] sm:$0xff] }
  0x54   :  { %582 = vmatpush.msra.mxu1 %v559_v40  ;;  %657 = vmatpush.msra.mxu3 %v632_v44  ;;  %v548_v20 = vld [vmem:[#allocation14 + $0x98] sm:$0xff]  ;;  %v531_v22 = vld [vmem:[#allocation14 + $0x10] sm:$0xff]  ;;  %v685_v25 = vld [vmem:[#allocation14 + $0x240] sm:$0xff] }
  0x55   :  { %565 = vmatpush.msra.mxu2 %v540_v46  ;;  %710 = vmatpush.msra.mxu0 %v691_v62  ;;  %v622_v23 = vld [vmem:[#allocation14 + $0x198] sm:$0xff]  ;;  %v547_v24 = vld [vmem:[#allocation14 + $0x90] sm:$0xff]  ;;  %v530_v27 = vld [vmem:[#allocation14 + $0x8] sm:$0xff] }
  0x56   :  { %583 = vmatpush.msra.mxu1 %v558_v42  ;;  %658 = vmatpush.msra.mxu3 %v631_v47  ;;  %v621_v28 = vld [vmem:[#allocation14 + $0x190] sm:$0xff]  ;;  %v546_v32 = vld [vmem:[#allocation14 + $0x88] sm:$0xff]  ;;  %v684_v33 = vld [vmem:[#allocation14 + $0x238] sm:$0xff] }
  0x57   :  { %566 = vmatpush.msra.mxu2 %v539_v49  ;;  %711 = vmatpush.msra.mxu0 %v690_v1  ;;  %v529_v37 = vld [vmem:[#allocation14] sm:$0xff]  ;;  %v620_v38 = vld [vmem:[#allocation14 + $0x188] sm:$0xff]  ;;  %v618_v40 = vld [vmem:[#allocation14 + $0x178] sm:$0xff] }
  0x58   :  { %584 = vmatpush.msra.mxu1 %v557_v45  ;;  %659 = vmatpush.msra.mxu3 %v630_v50  ;;  %v545_v41 = vld [vmem:[#allocation14 + $0x80] sm:$0xff]  ;;  %v708_v43 = vld [vmem:[#allocation14 + $0x2f8] sm:$0xff]  ;;  %v617_v44 = vld [vmem:[#allocation14 + $0x170] sm:$0xff] }
  0x59   :  { %567 = vmatpush.msra.mxu2 %v538_v52  ;;  %712 = vmatpush.msra.mxu0 %v689_v3  ;;  %v619_v42 = vld [vmem:[#allocation14 + $0x180] sm:$0xff]  ;;  %v782_v45 = vld [vmem:[#allocation14 + $0x3f8] sm:$0xff]  ;;  %v707_v46 = vld [vmem:[#allocation14 + $0x2f0] sm:$0xff] }
  0x5a   :  { %585 = vmatpush.msra.mxu1 %v556_v48  ;;  %660 = vmatpush.msra.mxu3 %v629_v53  ;;  %v683_v47 = vld [vmem:[#allocation14 + $0x230] sm:$0xff]  ;;  %v616_v48 = vld [vmem:[#allocation14 + $0x168] sm:$0xff]  ;;  %v615_v52 = vld [vmem:[#allocation14 + $0x160] sm:$0xff] }
  0x5b   :  { %568 = vmatpush.msra.mxu2 %v537_v55  ;;  %713 = vmatpush.msra.mxu0 %v688_v11  ;;  %v781_v49 = vld [vmem:[#allocation14 + $0x3f0] sm:$0xff]  ;;  %v706_v50 = vld [vmem:[#allocation14 + $0x2e8] sm:$0xff]  ;;  %v681_v55 = vld [vmem:[#allocation14 + $0x220] sm:$0xff] }
  0x5c   :  { %586 = vmatpush.msra.mxu1 %v555_v51  ;;  %661 = vmatpush.msra.mxu3 %v628_v56  ;;  %v682_v51 = vld [vmem:[#allocation14 + $0x228] sm:$0xff]  ;;  %v614_v56 = vld [vmem:[#allocation14 + $0x158] sm:$0xff]  ;;  %v703_v1 = vld [vmem:[#allocation14 + $0x2d0] sm:$0xff] }
  0x5d   :  { %569 = vmatpush.msra.mxu2 %v536_v59  ;;  %714 = vmatpush.msra.mxu0 %v687_v17  ;;  %v780_v53 = vld [vmem:[#allocation14 + $0x3e8] sm:$0xff]  ;;  %v704_v58 = vld [vmem:[#allocation14 + $0x2d8] sm:$0xff]  ;;  %v775_v17 = vld [vmem:[#allocation14 + $0x3c0] sm:$0xff] }
  0x5e   :  { %587 = vmatpush.msra.mxu1 %v554_v54  ;;  %662 = vmatpush.msra.mxu3 %v627_v60  ;;  %v705_v54 = vld [vmem:[#allocation14 + $0x2e0] sm:$0xff]  ;;  %v680_v59 = vld [vmem:[#allocation14 + $0x218] sm:$0xff]  ;;  %v776_v11 = vld [vmem:[#allocation14 + $0x3c8] sm:$0xff] }
  0x5f   :  { %570 = vmatpush.msra.mxu2 %v535_v63  ;;  %715 = vmatpush.msra.mxu0 %v686_v21  ;;  %v778_v62 = vld [vmem:[#allocation14 + $0x3d8] sm:$0xff]  ;;  %v609_v21 = vld [vmem:[#allocation14 + $0x130] sm:$0xff] }
  0x60   :  { %588 = vmatpush.msra.mxu1 %v553_v57  ;;  %663 = vmatpush.msra.mxu3 %v626_v0  ;;  %v779_v57 = vld [vmem:[#allocation14 + $0x3e0] sm:$0xff] }
  0x61   :  { %571 = vmatpush.msra.mxu2 %v534_v6  ;;  %716 = vmatpush.msra.mxu0 %v685_v25 }
  0x62   :  { %589 = vmatpush.msra.mxu1 %v552_v61  ;;  %664 = vmatpush.msra.mxu3 %v625_v7  ;;  %v613_v61 = vld [vmem:[#allocation14 + $0x150] sm:$0xff]  ;;  %v702_v7 = vld [vmem:[#allocation14 + $0x2c8] sm:$0xff] }
  0x63   :  { %572 = vmatpush.msra.mxu2 %v533_v14  ;;  %717 = vmatpush.msra.mxu0 %v684_v33  ;;  %v677_v14 = vld [vmem:[#allocation14 + $0x200] sm:$0xff] }
  0x64   :  { %590 = vmatpush.msra.mxu1 %v551_v2  ;;  %665 = vmatpush.msra.mxu3 %v624_v15  ;;  %v679_v2 = vld [vmem:[#allocation14 + $0x210] sm:$0xff] }
  0x65   :  { %573 = vmatpush.msra.mxu2 %v532_v18  ;;  %718 = vmatpush.msra.mxu0 %v683_v47 }
  0x66   :  { %591 = vmatpush.msra.mxu1 %v550_v10  ;;  %666 = vmatpush.msra.mxu3 %v623_v19  ;;  %v611_v10 = vld [vmem:[#allocation14 + $0x140] sm:$0xff]  ;;  %v700_v19 = vld [vmem:[#allocation14 + $0x2b8] sm:$0xff] }
  0x67   :  { %574 = vmatpush.msra.mxu2 %v531_v22  ;;  %719 = vmatpush.msra.mxu0 %v682_v51  ;;  %v774_v22 = vld [vmem:[#allocation14 + $0x3b8] sm:$0xff] }
  0x68   :  { %592 = vmatpush.msra.mxu1 %v549_v16  ;;  %667 = vmatpush.msra.mxu3 %v622_v23  ;;  %v610_v16 = vld [vmem:[#allocation14 + $0x138] sm:$0xff] }
  0x69   :  { %575 = vmatpush.msra.mxu2 %v530_v27  ;;  %720 = vmatpush.msra.mxu0 %v681_v55  ;;  %v773_v27 = vld [vmem:[#allocation14 + $0x3b0] sm:$0xff] }
  0x6a   :  { %593 = vmatpush.msra.mxu1 %v548_v20  ;;  %668 = vmatpush.msra.mxu3 %v621_v28 }
  0x6b   :  { %576 = vmatpush.msra.mxu2 %v529_v37  ;;  %721 = vmatpush.msra.mxu0 %v680_v59  ;;  %v771_v37 = vld [vmem:[#allocation14 + $0x3a0] sm:$0xff]  ;;  %v770_v59 = vld [vmem:[#allocation14 + $0x398] sm:$0xff] }
  0x6c   :  { %594 = vmatpush.msra.mxu1 %v547_v24  ;;  %669 = vmatpush.msra.mxu3 %v620_v38  ;;  %v699_v24 = vld [vmem:[#allocation14 + $0x2b0] sm:$0xff] }
  0x6d   :  { %635 = vmatpush.msrb.mxu2 %v618_v40  ;;  %722 = vmatpush.msra.mxu0 %v679_v2  ;;  %v605_v40 = vld [vmem:[#allocation14 + $0x110] sm:$0xff]  ;;  %v768_v2 = vld [vmem:[#allocation14 + $0x388] sm:$0xff] }
  0x6e   :  { %595 = vmatpush.msra.mxu1 %v546_v32  ;;  %670 = vmatpush.msra.mxu3 %v619_v42  ;;  %v772_v32 = vld [vmem:[#allocation14 + $0x3a8] sm:$0xff] }
  0x6f   :  { %636 = vmatpush.msrb.mxu2 %v617_v44 }
  0x70   :  { %596 = vmatpush.msra.mxu1 %v545_v41  ;;  %803 = vmatpush.msrb.mxu3 %v782_v45 }
  0x71   :  { %637 = vmatpush.msrb.mxu2 %v616_v48 }
  0x72   :  { %729 = vmatpush.msrb.mxu1 %v708_v43  ;;  %804 = vmatpush.msrb.mxu3 %v781_v49  ;;  %v604_v43 = vld [vmem:[#allocation14 + $0x108] sm:$0xff] }
  0x73   :  { %638 = vmatpush.msrb.mxu2 %v615_v52 }
  0x74   :  { %730 = vmatpush.msrb.mxu1 %v707_v46  ;;  %805 = vmatpush.msrb.mxu3 %v780_v53  ;;  %v603_v46 = vld [vmem:[#allocation14 + $0x100] sm:$0xff] }
  0x75   :  { %639 = vmatpush.msrb.mxu2 %v614_v56 }
  0x76   :  { %731 = vmatpush.msrb.mxu1 %v706_v50  ;;  %806 = vmatpush.msrb.mxu3 %v779_v57 }
  0x77   :  { %640 = vmatpush.msrb.mxu2 %v613_v61 }
  0x78   :  { %732 = vmatpush.msrb.mxu1 %v705_v54  ;;  %807 = vmatpush.msrb.mxu3 %v778_v62  ;;  %v695_v62 = vld [vmem:[#allocation14 + $0x290] sm:$0xff] }
  0x7a   :  { %733 = vmatpush.msrb.mxu1 %v704_v58  ;;  %v696_v58 = vld [vmem:[#allocation14 + $0x298] sm:$0xff] }
  0x7c   :  { %734 = vmatpush.msrb.mxu1 %v703_v1  ;;  %v694_v1 = vld [vmem:[#allocation14 + $0x288] sm:$0xff] }
  0x7e   :  { %735 = vmatpush.msrb.mxu1 %v702_v7 }
  0xc5   :  { %v257_v4 = vpop.f32.mrf.mxu0  ;;  %v277_v5 = vpop.f32.mrf.mxu1 }
  0xc6   :  { %280 = vst [vmem:[#allocation2] sm:$0x3] %v257_v4  ;;  %v308_v8 = vpop.f32.mrf.mxu2  ;;  %v328_v9 = vpop.f32.mrf.mxu3  ;;  %v612_v4 = vld [vmem:[#allocation14 + $0x148] sm:$0xff] }
  0xc7   :  { %281 = vst [vmem:[#allocation2 + $0x8] sm:$0x3] %v277_v5  ;;  %v333_v12 = vrot.slane %v308_v8, 6  ;;  %v334_v13 = vrot.slane %v328_v9, 6  ;;  %v777_v5 = vld [vmem:[#allocation14 + $0x3d0] sm:$0xff]  ;;  %v678_v8 = vld [vmem:[#allocation14 + $0x208] sm:$0xff]  ;;  %641 = vmatpush.msrb.mxu2 %v612_v4 }
  0xc8   :  { %808 = vmatpush.msrb.mxu3 %v777_v5  ;;  %723 = vmatpush.msra.mxu0 %v678_v8  ;;  %v767_v4 = vld [vmem:[#allocation14 + $0x380] sm:$0xff] }
  0xc9   :  { %337 = vst [vmem:[#allocation2] sm:$0xc] %v333_v12  ;;  %642 = vmatpush.msrb.mxu2 %v611_v10 }
  0xca   :  { %338 = vst [vmem:[#allocation2 + $0x8] sm:$0xc] %v334_v13  ;;  %v701_v13 = vld [vmem:[#allocation14 + $0x2c0] sm:$0xff]  ;;  %809 = vmatpush.msrb.mxu3 %v776_v11  ;;  %724 = vmatpush.msra.mxu0 %v677_v14 }
  0xcb   :  { %736 = vmatpush.msrb.mxu1 %v701_v13  ;;  %643 = vmatpush.msrb.mxu2 %v610_v16  ;;  %v455_v13 = vld [vmem:[#allocation13] sm:$0x3]  ;;  %v456_v16 = vld [vmem:[%s11070_s30] sm:$0x3] }
  0xcc   :  { %810 = vmatpush.msrb.mxu3 %v775_v17 }
  0xcd   :  { %v365_v26 = vpop.f32.mrf.mxu0  ;;  %737 = vmatpush.msrb.mxu1 %v700_v19  ;;  %644 = vmatpush.msrb.mxu2 %v609_v21  ;;  %v515_v21 = vperm.slane %v455_v13, 1 }
  0xce   :  { %v390_v29 = vrot.slane %v365_v26, 4  ;;  %v385_v30 = vpop.f32.mrf.mxu1  ;;  %v422_v31 = vpop.f32.mrf.mxu2  ;;  %v608_v26 = vld [vmem:[#allocation14 + $0x128] sm:$0xff]  ;;  %811 = vmatpush.msrb.mxu3 %v774_v22 }
  0xcf   :  { %v391_v34 = vrot.slane %v385_v30, 4  ;;  %v447_v35 = vrot.slane %v422_v31, 2  ;;  %v442_v36 = vpop.f32.mrf.mxu3  ;;  %v607_v31 = vld [vmem:[#allocation14 + $0x120] sm:$0xff]  ;;  %738 = vmatpush.msrb.mxu1 %v699_v24  ;;  %645 = vmatpush.msrb.mxu2 %v608_v26  ;;  %v522_v26 = vperm.slane %v456_v16, 1 }
  0xd0   :  { %394 = vst [vmem:[#allocation2] sm:$0x30] %v390_v29  ;;  %v448_v39 = vrot.slane %v442_v36, 2  ;;  %v698_v29 = vld [vmem:[#allocation14 + $0x2a8] sm:$0xff]  ;;  %812 = vmatpush.msrb.mxu3 %v773_v27  ;;  %v606_v36 = vld [vmem:[#allocation14 + $0x118] sm:$0xff] }
  0xd1   :  { %395 = vst [vmem:[#allocation2 + $0x8] sm:$0x30] %v391_v34  ;;  %v697_v34 = vld [vmem:[#allocation14 + $0x2a0] sm:$0xff]  ;;  %739 = vmatpush.msrb.mxu1 %v698_v29  ;;  %646 = vmatpush.msrb.mxu2 %v607_v31 }
  0xd2   :  { %451 = vst [vmem:[#allocation2] sm:$0xc0] %v447_v35  ;;  %813 = vmatpush.msrb.mxu3 %v772_v32 }
  0xd3   :  { %452 = vst [vmem:[#allocation2 + $0x8] sm:$0xc0] %v448_v39  ;;  %740 = vmatpush.msrb.mxu1 %v697_v34  ;;  %647 = vmatpush.msrb.mxu2 %v606_v36  ;;  %v765_v34 = vld [vmem:[#allocation14 + $0x370] sm:$0xff]  ;;  %v763_v36 = vld [vmem:[#allocation14 + $0x360] sm:$0xff] }
  0xd4   :  { %814 = vmatpush.msrb.mxu3 %v771_v37  ;;  %v762_v37 = vld [vmem:[#allocation14 + $0x358] sm:$0xff] }
  0xd5   :  { %648 = vmatpush.msrb.mxu2 %v605_v40  ;;  %741 = vmatpush.msrb.mxu1 %v696_v58  ;;  %v759_v40 = vld [vmem:[#allocation14 + $0x340] sm:$0xff] }
  0xd6   :  { %815 = vmatpush.msrb.mxu3 %v770_v59 }
  0xd7   :  { %649 = vmatpush.msrb.mxu2 %v604_v43  ;;  %742 = vmatpush.msrb.mxu1 %v695_v62  ;;  %v756_v43 = vld [vmem:[#allocation14 + $0x328] sm:$0xff] }
  0xd9   :  { %v6116_v60 = vld [vmem:[#allocation2] sm:$0xff]  ;;  %650 = vmatpush.msrb.mxu2 %v603_v46  ;;  %743 = vmatpush.msrb.mxu1 %v694_v1 }
  0xda   :  { %v457_v63 = vrot.slane %v6116_v60, 4  ;;  %v6119_v0 = vld [vmem:[#allocation2 + $0x8] sm:$0xff] }
  0xdb   :  { %v463_v3 = vrot.slane %v6119_v0, 4  ;;  %v753_v46 = vld [vmem:[#allocation14 + $0x310] sm:$0xff] }
  0xdc   :  { %v458_v6 = vadd.f32 %v457_v63, %v6116_v60  ;;  %v769_v63 = vld [vmem:[#allocation14 + $0x390] sm:$0xff] }
  0xdd   :  { %v464_v9 = vadd.f32 %v463_v3, %v6119_v0  ;;  %816 = vmatpush.msrb.mxu3 %v769_v63  ;;  %v693_v3 = vld [vmem:[#allocation14 + $0x280] sm:$0xff] }
  0xde   :  { %v459_v12 = vrot.slane %v458_v6, 2  ;;  %744 = vmatpush.msrb.mxu1 %v693_v3  ;;  %v957_v3 = vld [vmem:[#allocation19 + $0xf8] sm:$0xff] }
  0xdf   :  { %v465_v15 = vrot.slane %v464_v9, 2  ;;  %817 = vmatpush.msrb.mxu3 %v768_v2  ;;  %v906_v2 = vld [vmem:[#allocation19 + $0x78] sm:$0xff] }
  0xe0   :  { %v460_v18 = vadd.f32 %v459_v12, %v458_v6  ;;  %907 = vmatpush.msrb.mxu0 %v906_v2  ;;  %v1046_v2 = vld [vmem:[#allocation19 + $0x1a0] sm:$0xff] }
  0xe1   :  { %v466_v20 = vadd.f32 %v465_v15, %v464_v9  ;;  %818 = vmatpush.msrb.mxu3 %v767_v4  ;;  %v1007_v4 = vld [vmem:[#allocation19 + $0x178] sm:$0xff] }
  0xe2   :  { %v461_v23 = vrot.slane %v460_v18, 1 }
  0xe3   :  { %v467_v25 = vrot.slane %v466_v20, 1 }
  0xe4   :  { %v462_v28 = vadd.f32 %v461_v23, %v460_v18  ;;  %v514_v18 = vperm.slane %v455_v13, 0  ;;  %v521_v23 = vperm.slane %v456_v16, 0  ;;  %v955_v13 = vld [vmem:[#allocation19 + $0xe8] sm:$0xff] }
  0xe5   :  { %v468_v30 = vadd.f32 %v467_v25, %v466_v20 }
  0xe6   :  { %v469_v33 = vmul.f32 0.125, %v462_v28 }
  0xe7   :  { %v470_v35 = vmul.f32 0.125, %v468_v30 }
  0xe8   :  { %v6125_v38 = vsub.f32 %v6116_v60, %v469_v33  ;;  %v766_v33 = vld [vmem:[#allocation14 + $0x378] sm:$0xff] }
  0xe9   :  { %v6128_v39 = vsub.f32 %v6119_v0, %v470_v35  ;;  %v764_v35 = vld [vmem:[#allocation14 + $0x368] sm:$0xff] }
  0xea   :  { %v473_v41 = vmul.f32 %v6125_v38, %v6125_v38 }
  0xeb   :  { %v474_v42 = vmul.f32 %v6128_v39, %v6128_v39 }
  0xec   :  { %v475_v44 = vrot.slane %v473_v41, 4 }
  0xed   :  { %v481_v45 = vrot.slane %v474_v42, 4 }
  0xee   :  { %v476_v47 = vadd.f32 %v475_v44, %v473_v41  ;;  %v758_v41 = vld [vmem:[#allocation14 + $0x338] sm:$0xff]  ;;  %v755_v44 = vld [vmem:[#allocation14 + $0x320] sm:$0xff] }
  0xef   :  { %v482_v48 = vadd.f32 %v481_v45, %v474_v42  ;;  %v757_v42 = vld [vmem:[#allocation14 + $0x330] sm:$0xff]  ;;  %v754_v45 = vld [vmem:[#allocation14 + $0x318] sm:$0xff] }
  0xf0   :  { %v477_v49 = vrot.slane %v476_v47, 2 }
  0xf1   :  { %v483_v50 = vrot.slane %v482_v48, 2 }
  0xf2   :  { %v478_v51 = vadd.f32 %v477_v49, %v476_v47  ;;  %v752_v47 = vld [vmem:[#allocation14 + $0x308] sm:$0xff] }
  0xf3   :  { %v484_v52 = vadd.f32 %v483_v50, %v482_v48  ;;  %v751_v48 = vld [vmem:[#allocation14 + $0x300] sm:$0xff] }
  0xf4   :  { %v479_v53 = vrot.slane %v478_v51, 1 }
  0xf5   :  { %v485_v54 = vrot.slane %v484_v52, 1 }
  0xf6   :  { %v480_v55 = vadd.f32 %v479_v53, %v478_v51 }
  0xf7   :  { %v486_v56 = vadd.f32 %v485_v54, %v484_v52 }
  0xf8   :  { %v487_v57 = vmul.f32 0.125, %v480_v55 }
  0xf9   :  { %v488_v60 = vmul.f32 0.125, %v486_v56 }
  0xfa   :  { %v489_v61 = vadd.f32 1e-05, %v487_v57 }
  0xfb   :  { %v490_v0 = vadd.f32 1e-05, %v488_v60 }
  0xfc   :  { %5645 = vrsqrt.f32 %v489_v61  ;;  %vm497_vm3 = vweird.f32 %v489_v61 }
  0xfd   :  { %5647 = vrsqrt.f32 %v490_v0  ;;  %vm507_vm5 = vweird.f32 %v490_v0 }
 0x102   :  { %v5646_v5 = vpop.eup %5645 }
 0x103   :  { %v5648_v6 = vpop.eup %5647  ;;  %v492_v7 = vmul.f32 %v5646_v5, %v489_v61  ;;  %vm498_vm1 = vweird.f32 %v5646_v5 }
 0x104   :  { %v502_v8 = vmul.f32 %v5648_v6, %v490_v0  ;;  %vm508_vm2 = vweird.f32 %v5648_v6  ;;  %vm499_vm4 = vmor %vm497_vm3, %vm498_vm1 }
 0x105   :  { %v493_v9 = vmul.f32 %v5646_v5, %v492_v7  ;;  %vm509_vm6 = vmor %vm507_vm5, %vm508_vm2  ;;  %v905_v7 = vld [vmem:[#allocation19 + $0x70] sm:$0xff]  ;;  %vm2195_vm2 = vcmask 130048   ;;  %vm4258_vm5 = vcmask 97280  }
 0x106   :  { %v503_v10 = vmul.f32 %v5648_v6, %v502_v8  ;;  %v956_v8 = vld [vmem:[#allocation19 + $0xf0] sm:$0xff]  ;;  %908 = vmatpush.msrb.mxu0 %v905_v7  ;;  %v1045_v7 = vld [vmem:[#allocation19 + $0x198] sm:$0xff] }
 0x107   :  { %v494_v11 = vmul.f32 0.5, %v493_v9  ;;  %v1006_v9 = vld [vmem:[#allocation19 + $0x170] sm:$0xff] }
 0x108   :  { %v504_v12 = vmul.f32 0.5, %v503_v10  ;;  %v1056_v10 = vld [vmem:[#allocation19 + $0x1f0] sm:$0xff] }
 0x109   :  { %v495_v14 = vsub.f32 1.5, %v494_v11 }
 0x10a   :  { %v505_v15 = vsub.f32 1.5, %v504_v12  ;;  %v904_v12 = vld [vmem:[#allocation19 + $0x68] sm:$0xff] }
 0x10b   :  { %v496_v17 = vmul.f32 %v5646_v5, %v495_v14  ;;  %v1005_v14 = vld [vmem:[#allocation19 + $0x168] sm:$0xff]  ;;  %909 = vmatpush.msrb.mxu0 %v904_v12  ;;  %v1044_v12 = vld [vmem:[#allocation19 + $0x190] sm:$0xff] }
 0x10c   :  { %v506_v19 = vmul.f32 %v5648_v6, %v505_v15  ;;  %v1055_v15 = vld [vmem:[#allocation19 + $0x1e8] sm:$0xff] }
 0x10d   :  { %v500_v20 = vsel %vm499_vm4, %v5646_v5, %v496_v17  ;;  %v1057_v5 = vld [vmem:[#allocation19 + $0x1f8] sm:$0xff]  ;;  %v903_v17 = vld [vmem:[#allocation19 + $0x60] sm:$0xff] }
 0x10e   :  { %v511_v22 = vmul.f32 %v500_v20, %v6125_v38  ;;  %v510_v24 = vsel %vm509_vm6, %v5648_v6, %v506_v19  ;;  %v761_v38 = vld [vmem:[#allocation14 + $0x350] sm:$0xff]  ;;  %v1004_v19 = vld [vmem:[#allocation19 + $0x160] sm:$0xff]  ;;  %910 = vmatpush.msrb.mxu0 %v903_v17 }
 0x10f   :  { %v512_v25 = vmul.f32 %v510_v24, %v6128_v39  ;;  %v760_v39 = vld [vmem:[#allocation14 + $0x348] sm:$0xff]  ;;  %v1003_v24 = vld [vmem:[#allocation19 + $0x158] sm:$0xff] }
 0x110   :  { %v518_v27 = vmul.f32 %v514_v18, %v511_v22  ;;  %v954_v18 = vld [vmem:[#allocation19 + $0xe0] sm:$0xff]  ;;  %v902_v22 = vld [vmem:[#allocation19 + $0x58] sm:$0xff]  ;;  %v1043_v17 = vld [vmem:[#allocation19 + $0x188] sm:$0xff] }
 0x111   :  { %v519_v28 = vmul.f32 %v515_v21, %v512_v25  ;;  %v1054_v20 = vld [vmem:[#allocation19 + $0x1e0] sm:$0xff]  ;;  %911 = vmatpush.msrb.mxu0 %v902_v22  ;;  %v1053_v25 = vld [vmem:[#allocation19 + $0x1d8] sm:$0xff] }
 0x112   :  { %v525_v29 = vadd.f32 %v521_v23, %v518_v27  ;;  %v953_v23 = vld [vmem:[#allocation19 + $0xd8] sm:$0xff]  ;;  %v901_v27 = vld [vmem:[#allocation19 + $0x50] sm:$0xff]  ;;  %v1042_v22 = vld [vmem:[#allocation19 + $0x180] sm:$0xff] }
 0x113   :  { %v526_v30 = vadd.f32 %v522_v26, %v519_v28  ;;  %v952_v28 = vld [vmem:[#allocation19 + $0xd0] sm:$0xff]  ;;  %912 = vmatpush.msrb.mxu0 %v901_v27 }
 0x114   :  { %v527_v31 = vmax.f32 %v525_v29, 0.0  ;;  %v1002_v29 = vld [vmem:[#allocation19 + $0x150] sm:$0xff] }
 0x115   :  { %v528_v32 = vmax.f32 %v526_v30, 0.0  ;;  %v1052_v30 = vld [vmem:[#allocation19 + $0x1d0] sm:$0xff] }
 0x116   :  { %577 = vmatmul.f32.vlgmr.msra.gmra.mxu2 %v527_v31  ;;  %725 = vmatmul.f32.vlgmr.msra.gmra.mxu0 %v527_v31 }
 0x117   :  { %597 = vmatmul.f32.vlgmr.msra.gmra.mxu1 %v528_v32  ;;  %671 = vmatmul.f32.vlgmr.msra.gmra.mxu3 %v528_v32 }
 0x118   :  { %783 = vmatpush.msra.mxu2 %v766_v33  ;;  %958 = vmatpush.msra.mxu1 %v957_v3 }
 0x119   :  { %1058 = vmatpush.msra.mxu3 %v1057_v5  ;;  %v945_v5 = vld [vmem:[#allocation19 + $0x98] sm:$0xff] }
 0x11a   :  { %784 = vmatpush.msra.mxu2 %v765_v34  ;;  %959 = vmatpush.msra.mxu1 %v956_v8  ;;  %v900_v34 = vld [vmem:[#allocation19 + $0x48] sm:$0xff] }
 0x11b   :  { %1059 = vmatpush.msra.mxu3 %v1056_v10  ;;  %913 = vmatpush.msrb.mxu0 %v900_v34  ;;  %v944_v10 = vld [vmem:[#allocation19 + $0x90] sm:$0xff] }
 0x11c   :  { %785 = vmatpush.msra.mxu2 %v764_v35  ;;  %960 = vmatpush.msra.mxu1 %v955_v13  ;;  %v951_v35 = vld [vmem:[#allocation19 + $0xc8] sm:$0xff] }
 0x11d   :  { %1060 = vmatpush.msra.mxu3 %v1055_v15  ;;  %v892_v13 = vld [vmem:[#allocation19 + $0x8] sm:$0xff] }
 0x11e   :  { %786 = vmatpush.msra.mxu2 %v763_v36  ;;  %961 = vmatpush.msra.mxu1 %v954_v18  ;;  %v1001_v36 = vld [vmem:[#allocation19 + $0x148] sm:$0xff]  ;;  %v891_v18 = vld [vmem:[#allocation19] sm:$0xff] }
 0x11f   :  { %651 = vmatmul.f32.vlgmr.msrb.gmra.mxu2 %v527_v31  ;;  %745 = vmatmul.f32.vlgmr.msrb.gmra.mxu1 %v528_v32 }
 0x120   :  { %787 = vmatpush.msra.mxu2 %v762_v37  ;;  %819 = vmatmul.f32.vlgmr.msrb.gmra.mxu3 %v528_v32  ;;  %v1051_v37 = vld [vmem:[#allocation19 + $0x1c8] sm:$0xff] }
 0x121   :  { %1061 = vmatpush.msra.mxu3 %v1054_v20  ;;  %962 = vmatpush.msra.mxu1 %v953_v23 }
 0x122   :  { %788 = vmatpush.msra.mxu2 %v761_v38 }
 0x123   :  { %1062 = vmatpush.msra.mxu3 %v1053_v25  ;;  %963 = vmatpush.msra.mxu1 %v952_v28 }
 0x124   :  { %789 = vmatpush.msra.mxu2 %v760_v39 }
 0x125   :  { %1063 = vmatpush.msra.mxu3 %v1052_v30  ;;  %964 = vmatpush.msra.mxu1 %v951_v35  ;;  %v5635_v35 = vld [vmem:[#allocation16] ss:$0 sm:$0xff] }
 0x126   :  { %790 = vmatpush.msra.mxu2 %v759_v40 }
 0x127   :  { %1064 = vmatpush.msra.mxu3 %v1051_v37 }
 0x128   :  { %791 = vmatpush.msra.mxu2 %v758_v41  ;;  %v899_v41 = vld [vmem:[#allocation19 + $0x40] sm:$0xff] }
 0x129   :  { %914 = vmatpush.msrb.mxu0 %v899_v41 }
 0x12a   :  { %792 = vmatpush.msra.mxu2 %v757_v42  ;;  %v950_v42 = vld [vmem:[#allocation19 + $0xc0] sm:$0xff] }
 0x12b   :  { %965 = vmatpush.msra.mxu1 %v950_v42 }
 0x12c   :  { %793 = vmatpush.msra.mxu2 %v756_v43  ;;  %v1000_v43 = vld [vmem:[#allocation19 + $0x140] sm:$0xff] }
 0x12e   :  { %794 = vmatpush.msra.mxu2 %v755_v44  ;;  %v1050_v44 = vld [vmem:[#allocation19 + $0x1c0] sm:$0xff] }
 0x12f   :  { %1065 = vmatpush.msra.mxu3 %v1050_v44 }
 0x130   :  { %795 = vmatpush.msra.mxu2 %v754_v45 }
 0x132   :  { %796 = vmatpush.msra.mxu2 %v753_v46 }
 0x134   :  { %797 = vmatpush.msra.mxu2 %v752_v47  ;;  %v898_v47 = vld [vmem:[#allocation19 + $0x38] sm:$0xff] }
 0x135   :  { %915 = vmatpush.msrb.mxu0 %v898_v47 }
 0x136   :  { %798 = vmatpush.msra.mxu2 %v751_v48  ;;  %v949_v48 = vld [vmem:[#allocation19 + $0xb8] sm:$0xff] }
 0x137   :  { %799 = vmatmul.f32.vlgmr.msra.gmra.mxu2 %v527_v31  ;;  %966 = vmatpush.msra.mxu1 %v949_v48 }
 0x138   :  { %1008 = vmatpush.msrb.mxu2 %v1007_v4  ;;  %v894_v4 = vld [vmem:[#allocation19 + $0x18] sm:$0xff] }
 0x13a   :  { %1009 = vmatpush.msrb.mxu2 %v1006_v9  ;;  %v893_v9 = vld [vmem:[#allocation19 + $0x10] sm:$0xff] }
 0x13c   :  { %1010 = vmatpush.msrb.mxu2 %v1005_v14  ;;  %v943_v14 = vld [vmem:[#allocation19 + $0x88] sm:$0xff] }
 0x13e   :  { %1011 = vmatpush.msrb.mxu2 %v1004_v19  ;;  %v942_v19 = vld [vmem:[#allocation19 + $0x80] sm:$0xff] }
 0x140   :  { %1012 = vmatpush.msrb.mxu2 %v1003_v24 }
 0x142   :  { %1013 = vmatpush.msrb.mxu2 %v1002_v29 }
 0x144   :  { %1014 = vmatpush.msrb.mxu2 %v1001_v36 }
 0x146   :  { %1015 = vmatpush.msrb.mxu2 %v1000_v43 }
 0x193   :  { %v726_v57 = vpop.f32.mrf.mxu0 }
 0x194   :  { %v598_v50 = vpop.f32.mrf.mxu1 }
 0x199   :  { %v578_v49 = vpop.f32.mrf.mxu2 }
 0x19a   :  { %v672_v51 = vpop.f32.mrf.mxu3  ;;  %v6141_v54 = vadd.f32 %v598_v50, %v578_v49  ;;  %v999_v49 = vld [vmem:[#allocation19 + $0x138] sm:$0xff] }
 0x19b   :  { %v1049_v50 = vld [vmem:[#allocation19 + $0x1b8] sm:$0xff]  ;;  %1016 = vmatpush.msrb.mxu2 %v999_v49 }
 0x19c   :  { %v746_v55 = vpop.f32.mrf.mxu1  ;;  %1066 = vmatpush.msra.mxu3 %v1049_v50 }
 0x19d   :  { %v747_v58 = vadd.f32 %v746_v55, %v726_v57  ;;  %v998_v55 = vld [vmem:[#allocation19 + $0x130] sm:$0xff] }
 0x19e   :  { %1017 = vmatpush.msrb.mxu2 %v998_v55 }
 0x1a2   :  { %v652_v52 = vpop.f32.mrf.mxu2 }
 0x1a3   :  { %v6139_v53 = vadd.f32 %v672_v51, %v652_v52  ;;  %v820_v59 = vpop.f32.mrf.mxu3 }
 0x1a5   :  { %v830_v56 = vadd.f32 %v6139_v53, %v6141_v54 }
 0x1a7   :  { %v831_v62 = vadd.f32 %v830_v56, %v747_v58  ;;  %v1048_v56 = vld [vmem:[#allocation19 + $0x1b0] sm:$0xff] }
 0x1a8   :  { %1067 = vmatpush.msra.mxu3 %v1048_v56 }
 0x1ba   :  { %v800_v60 = vpop.f32.mrf.mxu2 }
 0x1bb   :  { %v6145_v61 = vadd.f32 %v820_v59, %v800_v60  ;;  %v947_v59 = vld [vmem:[#allocation19 + $0xa8] sm:$0xff] }
 0x1bc   :  { %v997_v60 = vld [vmem:[#allocation19 + $0x128] sm:$0xff] }
 0x1bd   :  { %v832_v63 = vadd.f32 %v831_v62, %v6145_v61  ;;  %1018 = vmatpush.msrb.mxu2 %v997_v60  ;;  %v1497_v60 = vld [vmem:[#allocation22 + $0x68] sm:$0xff] }
 0x1bf   :  { %v833_v0 = vrot.slane %v832_v63, 4 }
 0x1c1   :  { %v834_v1 = vadd.f32 %v833_v0, %v832_v63  ;;  %v895_v63 = vld [vmem:[#allocation19 + $0x20] sm:$0xff] }
 0x1c2   :  { %v946_v0 = vld [vmem:[#allocation19 + $0xa0] sm:$0xff] }
 0x1c3   :  { %v835_v6 = vrot.slane %v834_v1, 2 }
 0x1c5   :  { %v836_v11 = vadd.f32 %v835_v6, %v834_v1  ;;  %v996_v1 = vld [vmem:[#allocation19 + $0x120] sm:$0xff]  ;;  %v995_v6 = vld [vmem:[#allocation19 + $0x118] sm:$0xff] }
 0x1c6   :  { %1019 = vmatpush.msrb.mxu2 %v996_v1 }
 0x1c7   :  { %v837_v16 = vrot.slane %v836_v11, 1 }
 0x1c8   :  { %1020 = vmatpush.msrb.mxu2 %v995_v6  ;;  %v1325_v6 = vld [vmem:[#allocation22 + $0x18] sm:$0xff] }
 0x1c9   :  { %v838_v21 = vadd.f32 %v837_v16, %v836_v11  ;;  %v994_v11 = vld [vmem:[#allocation19 + $0x110] sm:$0xff]  ;;  %v993_v16 = vld [vmem:[#allocation19 + $0x108] sm:$0xff] }
 0x1ca   :  { %1021 = vmatpush.msrb.mxu2 %v994_v11  ;;  %v1492_v11 = vld [vmem:[#allocation22 + $0x40] sm:$0xff] }
 0x1cb   :  { %v839_v26 = vmul.f32 0.03125, %v838_v21  ;;  %v992_v21 = vld [vmem:[#allocation19 + $0x100] sm:$0xff] }
 0x1cc   :  { %1022 = vmatpush.msrb.mxu2 %v993_v16 }
 0x1cd   :  { %v6149_v31 = vsub.f32 %v6141_v54, %v839_v26  ;;  %v6152_v32 = vsub.f32 %v6139_v53, %v839_v26  ;;  %v6154_v33 = vsub.f32 %v747_v58, %v839_v26  ;;  %v6157_v38 = vsub.f32 %v6145_v61, %v839_v26  ;;  %v897_v53 = vld [vmem:[#allocation19 + $0x30] sm:$0xff]  ;;  %v896_v58 = vld [vmem:[#allocation19 + $0x28] sm:$0xff] }
 0x1ce   :  { %v948_v54 = vld [vmem:[#allocation19 + $0xb0] sm:$0xff]  ;;  %916 = vmatpush.msrb.mxu0 %v897_v53  ;;  %v1047_v61 = vld [vmem:[#allocation19 + $0x1a8] sm:$0xff]  ;;  %1023 = vmatpush.msrb.mxu2 %v992_v21 }
 0x1cf   :  { %v844_v39 = vmul.f32 %v6149_v31, %v6149_v31  ;;  %v845_v40 = vmul.f32 %v6152_v32, %v6152_v32  ;;  %v846_v45 = vmul.f32 %v6154_v33, %v6154_v33  ;;  %v847_v51 = vmul.f32 %v6157_v38, %v6157_v38  ;;  %967 = vmatpush.msra.mxu1 %v948_v54 }
 0x1d0   :  { %917 = vmatpush.msrb.mxu0 %v896_v58  ;;  %1068 = vmatpush.msra.mxu3 %v1047_v61  ;;  %v1498_v58 = vld [vmem:[#allocation22 + $0x70] sm:$0xff] }
 0x1d1   :  { %v848_v46 = vadd.f32 %v845_v40, %v844_v39  ;;  %968 = vmatpush.msra.mxu1 %v947_v59  ;;  %v5636_v39 = vld [vmem:[#allocation17] ss:$0 sm:$0xff]  ;;  %v1328_v61 = vld [vmem:[#allocation22 + $0x30] sm:$0xff] }
 0x1d2   :  { %918 = vmatpush.msrb.mxu0 %v895_v63  ;;  %1069 = vmatpush.msra.mxu3 %v1046_v2  ;;  %v1329_v59 = vld [vmem:[#allocation22 + $0x38] sm:$0xff]  ;;  %v1496_v63 = vld [vmem:[#allocation22 + $0x60] sm:$0xff] }
 0x1d3   :  { %v849_v52 = vadd.f32 %v848_v46, %v846_v45  ;;  %969 = vmatpush.msra.mxu1 %v946_v0  ;;  %v1326_v0 = vld [vmem:[#allocation22 + $0x20] sm:$0xff] }
 0x1d4   :  { %919 = vmatpush.msrb.mxu0 %v894_v4  ;;  %1070 = vmatpush.msra.mxu3 %v1045_v7  ;;  %v1494_v7 = vld [vmem:[#allocation22 + $0x50] sm:$0xff] }
 0x1d5   :  { %v850_v57 = vadd.f32 %v849_v52, %v847_v51  ;;  %970 = vmatpush.msra.mxu1 %v945_v5 }
 0x1d6   :  { %920 = vmatpush.msrb.mxu0 %v893_v9  ;;  %1071 = vmatpush.msra.mxu3 %v1044_v12  ;;  %v1493_v9 = vld [vmem:[#allocation22 + $0x48] sm:$0xff]  ;;  %v1322_v12 = vld [vmem:[#allocation22] sm:$0xff] }
 0x1d7   :  { %v851_v62 = vrot.slane %v850_v57, 4  ;;  %971 = vmatpush.msra.mxu1 %v944_v10  ;;  %v1323_v10 = vld [vmem:[#allocation22 + $0x8] sm:$0xff] }
 0x1d8   :  { %921 = vmatpush.msrb.mxu0 %v892_v13  ;;  %1072 = vmatpush.msra.mxu3 %v1043_v17 }
 0x1d9   :  { %v852_v3 = vadd.f32 %v851_v62, %v850_v57  ;;  %972 = vmatpush.msra.mxu1 %v943_v14  ;;  %v1499_v57 = vld [vmem:[#allocation22 + $0x78] sm:$0xff]  ;;  %v1327_v62 = vld [vmem:[#allocation22 + $0x28] sm:$0xff] }
 0x1da   :  { %922 = vmatpush.msrb.mxu0 %v891_v18  ;;  %1073 = vmatpush.msra.mxu3 %v1042_v22 }
 0x1db   :  { %v853_v8 = vrot.slane %v852_v3, 2  ;;  %973 = vmatpush.msra.mxu1 %v942_v19  ;;  %1508 = vmatpush.msra.mxu2 %v1499_v57 }
 0x1dc   :  { %1386 = vmatpush.msra.mxu0 %v1329_v59 }
 0x1dd   :  { %v854_v15 = vadd.f32 %v853_v8, %v852_v3  ;;  %1509 = vmatpush.msra.mxu2 %v1498_v58  ;;  %v1495_v3 = vld [vmem:[#allocation22 + $0x58] sm:$0xff]  ;;  %v1324_v8 = vld [vmem:[#allocation22 + $0x10] sm:$0xff] }
 0x1de   :  { %1387 = vmatpush.msra.mxu0 %v1328_v61 }
 0x1df   :  { %v855_v20 = vrot.slane %v854_v15, 1  ;;  %1510 = vmatpush.msra.mxu2 %v1497_v60 }
 0x1e0   :  { %1388 = vmatpush.msra.mxu0 %v1327_v62 }
 0x1e1   :  { %v856_v23 = vadd.f32 %v855_v20, %v854_v15  ;;  %1511 = vmatpush.msra.mxu2 %v1496_v63 }
 0x1e2   :  { %1389 = vmatpush.msra.mxu0 %v1326_v0 }
 0x1e3   :  { %v857_v24 = vmul.f32 0.03125, %v856_v23  ;;  %1512 = vmatpush.msra.mxu2 %v1495_v3 }
 0x1e4   :  { %1390 = vmatpush.msra.mxu0 %v1325_v6 }
 0x1e5   :  { %v858_v25 = vadd.f32 1e-05, %v857_v24  ;;  %1513 = vmatpush.msra.mxu2 %v1494_v7 }
 0x1e6   :  { %1391 = vmatpush.msra.mxu0 %v1324_v8 }
 0x1e7   :  { %5649 = vrsqrt.f32 %v858_v25  ;;  %vm865_vm8 = vweird.f32 %v858_v25  ;;  %1514 = vmatpush.msra.mxu2 %v1493_v9 }
 0x1e8   :  { %1392 = vmatpush.msra.mxu0 %v1323_v10 }
 0x1e9   :  { %1515 = vmatpush.msra.mxu2 %v1492_v11 }
 0x1ea   :  { %1393 = vmatpush.msra.mxu0 %v1322_v12 }
 0x1ed   :  { %v5650_v26 = vpop.eup %5649 }
 0x1ee   :  { %v860_v27 = vmul.f32 %v5650_v26, %v858_v25  ;;  %vm866_vm7 = vweird.f32 %v5650_v26 }
 0x1ef   :  { %vm867_vm9 = vmor %vm865_vm8, %vm866_vm7 }
 0x1f0   :  { %v861_v28 = vmul.f32 %v5650_v26, %v860_v27 }
 0x1f2   :  { %v862_v29 = vmul.f32 0.5, %v861_v28 }
 0x1f4   :  { %v863_v30 = vsub.f32 1.5, %v862_v29 }
 0x1f6   :  { %v864_v34 = vmul.f32 %v5650_v26, %v863_v30 }
 0x1f8   :  { %v868_v36 = vsel %vm867_vm9, %v5650_v26, %v864_v34 }
 0x1f9   :  { %v869_v37 = vmul.f32 %v868_v36, %v6149_v31  ;;  %v870_v41 = vmul.f32 %v868_v36, %v6152_v32  ;;  %v871_v46 = vmul.f32 %v868_v36, %v6154_v33  ;;  %v872_v31 = vmul.f32 %v868_v36, %v6157_v38 }
 0x1fb   :  { %v876_v40 = vmul.f32 %v5635_v35, %v869_v37  ;;  %v877_v44 = vmul.f32 %v5635_v35, %v870_v41  ;;  %v878_v48 = vmul.f32 %v5635_v35, %v871_v46  ;;  %v879_v32 = vmul.f32 %v5635_v35, %v872_v31 }
 0x1fd   :  { %v883_v42 = vadd.f32 %v5636_v39, %v876_v40  ;;  %v884_v45 = vadd.f32 %v5636_v39, %v877_v44  ;;  %v885_v49 = vadd.f32 %v5636_v39, %v878_v48  ;;  %v886_v51 = vadd.f32 %v5636_v39, %v879_v32 }
 0x1ff   :  { %v887_v43 = vmax.f32 %v883_v42, 0.0  ;;  %v888_v47 = vmax.f32 %v884_v45, 0.0  ;;  %v889_v50 = vmax.f32 %v885_v49, 0.0  ;;  %v890_v52 = vmax.f32 %v886_v51, 0.0 }
 0x201   :  { %923 = vmatmul.f32.vlgmr.msrb.gmra.mxu0 %v887_v43  ;;  %974 = vmatmul.f32.vlgmr.msra.gmra.mxu1 %v887_v43 }
 0x202   :  { %1024 = vmatmul.f32.vlgmr.msrb.gmra.mxu2 %v887_v43  ;;  %1074 = vmatmul.f32.vlgmr.msra.gmra.mxu3 %v887_v43 }
 0x209   :  { %926 = vmatmul.f32.gmra.mxu0 %v888_v47  ;;  %977 = vmatmul.f32.gmra.mxu1 %v888_v47 }
 0x20a   :  { %1027 = vmatmul.f32.gmra.mxu2 %v888_v47  ;;  %1077 = vmatmul.f32.gmra.mxu3 %v888_v47 }
 0x211   :  { %929 = vmatmul.f32.gmra.mxu0 %v889_v50  ;;  %980 = vmatmul.f32.gmra.mxu1 %v889_v50 }
 0x212   :  { %1030 = vmatmul.f32.gmra.mxu2 %v889_v50  ;;  %1080 = vmatmul.f32.gmra.mxu3 %v889_v50 }
 0x219   :  { %932 = vmatmul.f32.gmra.mxu0 %v890_v52  ;;  %983 = vmatmul.f32.gmra.mxu1 %v890_v52 }
 0x21a   :  { %1033 = vmatmul.f32.gmra.mxu2 %v890_v52  ;;  %1083 = vmatmul.f32.gmra.mxu3 %v890_v52 }
 0x27e   :  { %v924_v33 = vpop.f32.mrf.mxu0  ;;  %v975_v53 = vpop.f32.mrf.mxu1 }
 0x27f   :  { %937 = vst.msk [vmem:[#allocation4] sm:$0xff] %vm936_vm10, %v924_v33 }
 0x280   :  { %987 = vst.msk [vmem:[#allocation4 + $0x20] sm:$0xff] %vm936_vm10, %v975_v53 }
 0x285   :  { %v1025_v38 = vpop.f32.mrf.mxu2  ;;  %v1075_v54 = vpop.f32.mrf.mxu3 }
 0x286   :  { %1037 = vst.msk [vmem:[#allocation4 + $0x40] sm:$0xff] %vm936_vm10, %v1025_v38  ;;  %v927_v55 = vpop.f32.mrf.mxu0  ;;  %v978_v56 = vpop.f32.mrf.mxu1  ;;  %v1091_v18 = vld [vmem:[#allocation4] sm:$0xff] }
 0x287   :  { %1087 = vst.msk [vmem:[#allocation4 + $0x60] sm:$0xff] %vm936_vm10, %v1075_v54  ;;  %v1109_v21 = vsel %vm936_vm10, %v1091_v18, 0.0  ;;  %v1095_v27 = vld [vmem:[#allocation4 + $0x20] sm:$0xff] }
 0x288   :  { %938 = vst.msk [vmem:[#allocation4 + $0x8] sm:$0xff] %vm936_vm10, %v927_v55  ;;  %v1116_v35 = vsel %vm936_vm10, %v1095_v27, 0.0 }
 0x289   :  { %988 = vst.msk [vmem:[#allocation4 + $0x28] sm:$0xff] %vm936_vm10, %v978_v56 }
 0x28d   :  { %v1028_v1 = vpop.f32.mrf.mxu2  ;;  %v1078_v2 = vpop.f32.mrf.mxu3  ;;  %v1099_v43 = vld [vmem:[#allocation4 + $0x40] sm:$0xff] }
 0x28e   :  { %1038 = vst.msk [vmem:[#allocation4 + $0x48] sm:$0xff] %vm936_vm10, %v1028_v1  ;;  %v930_v4 = vpop.f32.mrf.mxu0  ;;  %v981_v5 = vpop.f32.mrf.mxu1  ;;  %v1124_v48 = vsel %vm936_vm10, %v1099_v43, 0.0  ;;  %v1103_v33 = vld [vmem:[#allocation4 + $0x60] sm:$0xff] }
 0x28f   :  { %1088 = vst.msk [vmem:[#allocation4 + $0x68] sm:$0xff] %vm936_vm10, %v1078_v2  ;;  %v1092_v17 = vld [vmem:[#allocation4 + $0x8] sm:$0xff]  ;;  %v1132_v56 = vsel %vm936_vm10, %v1103_v33, 0.0 }
 0x290   :  { %939 = vst.msk [vmem:[#allocation4 + $0x10] sm:$0xff] %vm936_vm10, %v930_v4  ;;  %v1110_v20 = vsel %vm936_vm10, %v1092_v17, 0.0  ;;  %v1096_v30 = vld [vmem:[#allocation4 + $0x28] sm:$0xff] }
 0x291   :  { %989 = vst.msk [vmem:[#allocation4 + $0x30] sm:$0xff] %vm936_vm10, %v981_v5  ;;  %v1111_v25 = vadd.f32 %v1110_v20, %v1109_v21  ;;  %v1118_v39 = vsel %vm936_vm10, %v1096_v30, 0.0 }
 0x295   :  { %v1031_v13 = vpop.f32.mrf.mxu2  ;;  %v1081_v14 = vpop.f32.mrf.mxu3  ;;  %v1100_v46 = vld [vmem:[#allocation4 + $0x48] sm:$0xff] }
 0x296   :  { %1039 = vst.msk [vmem:[#allocation4 + $0x50] sm:$0xff] %vm936_vm10, %v1031_v13  ;;  %v933_v15 = vpop.f32.mrf.mxu0  ;;  %v984_v16 = vpop.f32.mrf.mxu1  ;;  %v1126_v32 = vsel %vm936_vm10, %v1100_v46, 0.0  ;;  %v1104_v54 = vld [vmem:[#allocation4 + $0x68] sm:$0xff] }
 0x297   :  { %1089 = vst.msk [vmem:[#allocation4 + $0x70] sm:$0xff] %vm936_vm10, %v1081_v14  ;;  %v1093_v19 = vld [vmem:[#allocation4 + $0x10] sm:$0xff]  ;;  %v1134_v59 = vsel %vm936_vm10, %v1104_v54, 0.0 }
 0x298   :  { %940 = vst.msk [vmem:[#allocation4 + $0x18] sm:$0xff] %vm936_vm10, %v933_v15  ;;  %v1112_v22 = vsel %vm936_vm10, %v1093_v19, 0.0  ;;  %v1097_v36 = vld [vmem:[#allocation4 + $0x30] sm:$0xff] }
 0x299   :  { %990 = vst.msk [vmem:[#allocation4 + $0x38] sm:$0xff] %vm936_vm10, %v984_v16  ;;  %v1113_v28 = vadd.f32 %v1112_v22, %v1111_v25  ;;  %v1120_v42 = vsel %vm936_vm10, %v1097_v36, 0.0 }
 0x29d   :  { %v1034_v23 = vpop.f32.mrf.mxu2  ;;  %v1084_v24 = vpop.f32.mrf.mxu3  ;;  %v1101_v31 = vld [vmem:[#allocation4 + $0x50] sm:$0xff] }
 0x29e   :  { %1040 = vst.msk [vmem:[#allocation4 + $0x58] sm:$0xff] %vm936_vm10, %v1034_v23  ;;  %v1128_v52 = vsel %vm936_vm10, %v1101_v31, 0.0  ;;  %v1105_v57 = vld [vmem:[#allocation4 + $0x70] sm:$0xff] }
 0x29f   :  { %1090 = vst.msk [vmem:[#allocation4 + $0x78] sm:$0xff] %vm936_vm10, %v1084_v24  ;;  %v1094_v26 = vld [vmem:[#allocation4 + $0x18] sm:$0xff]  ;;  %v1136_v62 = vsel %vm936_vm10, %v1105_v57, 0.0 }
 0x2a0   :  { %v1114_v29 = vsel %vm936_vm10, %v1094_v26, 0.0  ;;  %v1098_v40 = vld [vmem:[#allocation4 + $0x38] sm:$0xff] }
 0x2a1   :  { %v1115_v34 = vadd.f32 %v1114_v29, %v1113_v28  ;;  %v1122_v45 = vsel %vm936_vm10, %v1098_v40, 0.0 }
 0x2a3   :  { %v1117_v37 = vadd.f32 %v1116_v35, %v1115_v34 }
 0x2a5   :  { %v1119_v41 = vadd.f32 %v1118_v39, %v1117_v37  ;;  %v1102_v50 = vld [vmem:[#allocation4 + $0x58] sm:$0xff] }
 0x2a6   :  { %v1130_v38 = vsel %vm936_vm10, %v1102_v50, 0.0  ;;  %v1106_v60 = vld [vmem:[#allocation4 + $0x78] sm:$0xff] }
 0x2a7   :  { %v1121_v44 = vadd.f32 %v1120_v42, %v1119_v41  ;;  %v1138_v0 = vsel %vm936_vm10, %v1106_v60, 0.0 }
 0x2a9   :  { %v1123_v47 = vadd.f32 %v1122_v45, %v1121_v44 }
 0x2ab   :  { %v1125_v49 = vadd.f32 %v1124_v48, %v1123_v47 }
 0x2ad   :  { %v1127_v51 = vadd.f32 %v1126_v32, %v1125_v49 }
 0x2af   :  { %v1129_v53 = vadd.f32 %v1128_v52, %v1127_v51 }
 0x2b1   :  { %v1131_v55 = vadd.f32 %v1130_v38, %v1129_v53 }
 0x2b3   :  { %v1133_v58 = vadd.f32 %v1132_v56, %v1131_v55 }
 0x2b5   :  { %v1135_v61 = vadd.f32 %v1134_v59, %v1133_v58 }
 0x2b7   :  { %v1137_v63 = vadd.f32 %v1136_v62, %v1135_v61 }
 0x2b9   :  { %v1139_v1 = vadd.f32 %v1138_v0, %v1137_v63 }
 0x2bb   :  { %v1140_v2 = vrot.slane %v1139_v1, 4 }
 0x2bd   :  { %v1141_v3 = vadd.f32 %v1140_v2, %v1139_v1 }
 0x2bf   :  { %v1142_v4 = vrot.slane %v1141_v3, 2 }
 0x2c1   :  { %v1143_v5 = vadd.f32 %v1142_v4, %v1141_v3 }
 0x2c3   :  { %v1144_v6 = vrot.slane %v1143_v5, 1 }
 0x2c5   :  { %v1145_v7 = vadd.f32 %v1144_v6, %v1143_v5 }
 0x2c7   :  { %v1146_v8 = vmul.f32 0.0078125, %v1145_v7 }
 0x2c9   :  { %v6203_v9 = vsub.f32 %v1091_v18, %v1146_v8  ;;  %v6205_v10 = vsub.f32 %v1092_v17, %v1146_v8  ;;  %v6207_v11 = vsub.f32 %v1093_v19, %v1146_v8  ;;  %v6209_v12 = vsub.f32 %v1094_v26, %v1146_v8 }
 0x2ca   :  { %v6215_v15 = vsub.f32 %v1095_v27, %v1146_v8  ;;  %v6219_v20 = vsub.f32 %v1096_v30, %v1146_v8  ;;  %v6225_v22 = vsub.f32 %v1097_v36, %v1146_v8  ;;  %v6230_v26 = vsub.f32 %v1098_v40, %v1146_v8 }
 0x2cb   :  { %v1163_v13 = vmul.f32 %v6203_v9, %v6203_v9  ;;  %v1164_v14 = vmul.f32 %v6205_v10, %v6205_v10  ;;  %v1165_v16 = vmul.f32 %v6207_v11, %v6207_v11  ;;  %v1166_v17 = vmul.f32 %v6209_v12, %v6209_v12 }
 0x2cc   :  { %v1167_v23 = vmul.f32 %v6215_v15, %v6215_v15  ;;  %v1168_v27 = vmul.f32 %v6219_v20, %v6219_v20  ;;  %v6235_v30 = vsub.f32 %v1099_v43, %v1146_v8  ;;  %v1169_v34 = vmul.f32 %v6225_v22, %v6225_v22 }
 0x2cd   :  { %v1179_v18 = vsel %vm936_vm10, %v1163_v13, 0.0  ;;  %v1180_v19 = vsel %vm936_vm10, %v1164_v14, 0.0  ;;  %v1182_v24 = vsel %vm936_vm10, %v1165_v16, 0.0  ;;  %v1184_v28 = vsel %vm936_vm10, %v1166_v17, 0.0 }
 0x2ce   :  { %v1181_v21 = vadd.f32 %v1180_v19, %v1179_v18  ;;  %v1186_v35 = vsel %vm936_vm10, %v1167_v23, 0.0  ;;  %v6240_v37 = vsub.f32 %v1100_v46, %v1146_v8  ;;  %v1170_v39 = vmul.f32 %v6230_v26, %v6230_v26  ;;  %v1621_v19 = vld [vmem:[#allocation22 + $0xb8] sm:$0xff] }
 0x2cf   :  { %v1188_v40 = vsel %vm936_vm10, %v1168_v27, 0.0  ;;  %v6245_v42 = vsub.f32 %v1101_v31, %v1146_v8  ;;  %v1171_v43 = vmul.f32 %v6235_v30, %v6235_v30  ;;  %v1190_v44 = vsel %vm936_vm10, %v1169_v34, 0.0  ;;  %1630 = vmatpush.msrb.mxu2 %v1621_v19 }
 0x2d0   :  { %v1183_v25 = vadd.f32 %v1182_v24, %v1181_v21  ;;  %v6250_v47 = vsub.f32 %v1102_v50, %v1146_v8  ;;  %v1172_v46 = vmul.f32 %v6240_v37, %v6240_v37  ;;  %v1192_v48 = vsel %vm936_vm10, %v1170_v39, 0.0 }
 0x2d1   :  { %v6255_v32 = vsub.f32 %v1103_v33, %v1146_v8  ;;  %v1173_v31 = vmul.f32 %v6245_v42, %v6245_v42  ;;  %v1194_v51 = vsel %vm936_vm10, %v1171_v43, 0.0  ;;  %v6260_v53 = vsub.f32 %v1104_v54, %v1146_v8 }
 0x2d2   :  { %v1185_v29 = vadd.f32 %v1184_v28, %v1183_v25  ;;  %v1174_v50 = vmul.f32 %v6250_v47, %v6250_v47  ;;  %v1196_v38 = vsel %vm936_vm10, %v1172_v46, 0.0  ;;  %v1161_v56 = vsub.f32 %v1105_v57, %v1146_v8  ;;  %v1620_v28 = vld [vmem:[#allocation22 + $0xb0] sm:$0xff] }
 0x2d3   :  { %v1175_v58 = vmul.f32 %v6255_v32, %v6255_v32  ;;  %v1198_v33 = vsel %vm936_vm10, %v1173_v31, 0.0  ;;  %v1162_v61 = vsub.f32 %v1106_v60, %v1146_v8  ;;  %v1176_v62 = vmul.f32 %v6260_v53, %v6260_v53  ;;  %1631 = vmatpush.msrb.mxu2 %v1620_v28 }
 0x2d4   :  { %v1187_v36 = vadd.f32 %v1186_v35, %v1185_v29  ;;  %v1200_v54 = vsel %vm936_vm10, %v1174_v50, 0.0  ;;  %v1177_v0 = vmul.f32 %v1161_v56, %v1161_v56 }
 0x2d5   :  { %v1202_v1 = vsel %vm936_vm10, %v1175_v58, 0.0  ;;  %v1178_v3 = vmul.f32 %v1162_v61, %v1162_v61  ;;  %v1204_v57 = vsel %vm936_vm10, %v1176_v62, 0.0 }
 0x2d6   :  { %v1189_v41 = vadd.f32 %v1188_v40, %v1187_v36  ;;  %v1206_v5 = vsel %vm936_vm10, %v1177_v0, 0.0  ;;  %v6275_v36 = vld [vmem:[#allocation20] ss:$0 sm:$0xff] }
 0x2d7   :  { %v1208_v7 = vsel %vm936_vm10, %v1178_v3, 0.0 }
 0x2d8   :  { %v1191_v45 = vadd.f32 %v1190_v44, %v1189_v41  ;;  %v6284_v41 = vld [vmem:[%s10851_s9] ss:$0 sm:$0xff] }
 0x2da   :  { %v1193_v49 = vadd.f32 %v1192_v48, %v1191_v45 }
 0x2dc   :  { %v1195_v52 = vadd.f32 %v1194_v51, %v1193_v49 }
 0x2de   :  { %v1197_v55 = vadd.f32 %v1196_v38, %v1195_v52 }
 0x2e0   :  { %v1199_v59 = vadd.f32 %v1198_v33, %v1197_v55 }
 0x2e2   :  { %v1201_v63 = vadd.f32 %v1200_v54, %v1199_v59 }
 0x2e4   :  { %v1203_v2 = vadd.f32 %v1202_v1, %v1201_v63 }
 0x2e6   :  { %v1205_v4 = vadd.f32 %v1204_v57, %v1203_v2 }
 0x2e8   :  { %v1207_v6 = vadd.f32 %v1206_v5, %v1205_v4 }
 0x2ea   :  { %v1209_v60 = vadd.f32 %v1208_v7, %v1207_v6 }
 0x2ec   :  { %v1210_v8 = vrot.slane %v1209_v60, 4 }
 0x2ee   :  { %v1211_v13 = vadd.f32 %v1210_v8, %v1209_v60  ;;  %v1618_v60 = vld [vmem:[#allocation22 + $0xa0] sm:$0xff] }
 0x2f0   :  { %v1212_v14 = vrot.slane %v1211_v13, 2 }
 0x2f2   :  { %v1213_v16 = vadd.f32 %v1212_v14, %v1211_v13 }
 0x2f4   :  { %v1214_v17 = vrot.slane %v1213_v16, 1 }
 0x2f6   :  { %v1215_v18 = vadd.f32 %v1214_v17, %v1213_v16 }
 0x2f8   :  { %v1216_v21 = vmul.f32 0.0078125, %v1215_v18 }
 0x2fa   :  { %v1217_v23 = vadd.f32 1e-05, %v1216_v21 }
 0x2fc   :  { %5651 = vrsqrt.f32 %v1217_v23  ;;  %vm1224_vm12 = vweird.f32 %v1217_v23 }
 0x302   :  { %v5652_v24 = vpop.eup %5651 }
 0x303   :  { %v1219_v25 = vmul.f32 %v5652_v24, %v1217_v23  ;;  %vm1225_vm11 = vweird.f32 %v5652_v24 }
 0x304   :  { %vm1226_vm13 = vmor %vm1224_vm12, %vm1225_vm11 }
 0x305   :  { %v1220_v27 = vmul.f32 %v5652_v24, %v1219_v25 }
 0x307   :  { %v1221_v29 = vmul.f32 0.5, %v1220_v27 }
 0x309   :  { %v1222_v34 = vsub.f32 1.5, %v1221_v29 }
 0x30b   :  { %v1223_v35 = vmul.f32 %v5652_v24, %v1222_v34 }
 0x30d   :  { %v6277_v39 = vsel %vm1226_vm13, %v5652_v24, %v1223_v35 }
 0x30e   :  { %v1228_v40 = vmul.f32 %v6277_v39, %v6203_v9  ;;  %v1229_v43 = vmul.f32 %v6277_v39, %v6205_v10  ;;  %v1230_v9 = vmul.f32 %v6277_v39, %v6207_v11  ;;  %v1619_v10 = vld [vmem:[#allocation22 + $0xa8] sm:$0xff]  ;;  %v1236_v31 = vmul.f32 %v6277_v39, %v6235_v30 }
 0x30f   :  { %v1237_v51 = vmul.f32 %v6277_v39, %v6240_v37  ;;  %v1238_v52 = vmul.f32 %v6277_v39, %v6245_v42  ;;  %1632 = vmatpush.msrb.mxu2 %v1619_v10  ;;  %v1239_v11 = vmul.f32 %v6277_v39, %v6250_v47  ;;  %v1240_v50 = vmul.f32 %v6277_v39, %v6255_v32 }
 0x310   :  { %v1247_v44 = vmul.f32 %v6275_v36, %v1228_v40  ;;  %v1248_v45 = vmul.f32 %v6275_v36, %v1229_v43  ;;  %v1241_v38 = vmul.f32 %v6277_v39, %v6260_v53  ;;  %v1242_v55 = vmul.f32 %v6277_v39, %v1161_v56 }
 0x311   :  { %v1255_v30 = vmul.f32 %v6275_v36, %v1236_v31  ;;  %v1256_v58 = vmul.f32 %v6275_v36, %v1237_v51  ;;  %v1257_v37 = vmul.f32 %v6275_v36, %v1238_v52  ;;  %v1243_v42 = vmul.f32 %v6277_v39, %v1162_v61  ;;  %1633 = vmatpush.msrb.mxu2 %v1618_v60 }
 0x312   :  { %v1266_v46 = vadd.f32 %v6284_v41, %v1247_v44  ;;  %v1267_v49 = vadd.f32 %v6284_v41, %v1248_v45  ;;  %v1258_v33 = vmul.f32 %v6275_v36, %v1239_v11  ;;  %v1259_v47 = vmul.f32 %v6275_v36, %v1240_v50 }
 0x313   :  { %v1260_v59 = vmul.f32 %v6275_v36, %v1241_v38  ;;  %v1261_v32 = vmul.f32 %v6275_v36, %v1242_v55  ;;  %v1274_v53 = vadd.f32 %v6284_v41, %v1255_v30  ;;  %v1275_v56 = vadd.f32 %v6284_v41, %v1256_v58 }
 0x314   :  { %v6291_v48 = vmax.f32 %v1266_v46, 0.0  ;;  %v1276_v62 = vadd.f32 %v6284_v41, %v1257_v37  ;;  %v1262_v54 = vmul.f32 %v6275_v36, %v1243_v42  ;;  %v1277_v63 = vadd.f32 %v6284_v41, %v1258_v33 }
 0x315   :  { %v6327_v61 = vadd.f32 %v6284_v41, %v1259_v47  ;;  %v6330_v0 = vadd.f32 %v6284_v41, %v1260_v59  ;;  %v6333_v1 = vadd.f32 %v6284_v41, %v1261_v32  ;;  %v6335_v2 = vmax.f32 %v1267_v49, 0.0 }
 0x316   :  { %5374 = vmatmul.msk.f32.vlgmr.msra.gmra.mxu0 %vm936_vm10, %v6291_v48  ;;  %5390 = vmatmul.msk.f32.vlgmr.msra.gmra.mxu2 %vm936_vm10, %v6291_v48  ;;  %v1249_v3 = vmul.f32 %v6275_v36, %v1230_v9  ;;  %v6339_v57 = vadd.f32 %v6284_v41, %v1262_v54  ;;  %v1231_v5 = vmul.f32 %v6277_v39, %v6209_v12  ;;  %v6414_v40 = vmax.f32 %v1276_v62, 0.0 }
 0x317   :  { %v1232_v13 = vmul.f32 %v6277_v39, %v6215_v15  ;;  %v1233_v17 = vmul.f32 %v6277_v39, %v6219_v20  ;;  %v1617_v15 = vld [vmem:[#allocation22 + $0x98] sm:$0xff]  ;;  %v1234_v23 = vmul.f32 %v6277_v39, %v6225_v22  ;;  %v1235_v27 = vmul.f32 %v6277_v39, %v6230_v26  ;;  %v1616_v22 = vld [vmem:[#allocation22 + $0x90] sm:$0xff] }
 0x318   :  { %v1268_v4 = vadd.f32 %v6284_v41, %v1249_v3  ;;  %v1250_v7 = vmul.f32 %v6275_v36, %v1231_v5  ;;  %1634 = vmatpush.msrb.mxu2 %v1617_v15  ;;  %v6402_v26 = vmax.f32 %v1274_v53, 0.0  ;;  %v6408_v39 = vmax.f32 %v1275_v56, 0.0 }
 0x319   :  { %v1251_v12 = vmul.f32 %v6275_v36, %v1232_v13  ;;  %v1252_v19 = vmul.f32 %v6275_v36, %v1233_v17  ;;  %v1253_v20 = vmul.f32 %v6275_v36, %v1234_v23  ;;  %v1254_v29 = vmul.f32 %v6275_v36, %v1235_v27  ;;  %v1615_v36 = vld [vmem:[#allocation22 + $0x88] sm:$0xff] }
 0x31a   :  { %v6348_v6 = vmax.f32 %v1268_v4, 0.0  ;;  %v1269_v8 = vadd.f32 %v6284_v41, %v1250_v7  ;;  %1635 = vmatpush.msrb.mxu2 %v1616_v22  ;;  %v6420_v43 = vmax.f32 %v1277_v63, 0.0  ;;  %v5952_v44 = vmov 0.0  }
 0x31b   :  { %v1270_v16 = vadd.f32 %v6284_v41, %v1251_v12  ;;  %v1271_v21 = vadd.f32 %v6284_v41, %v1252_v19  ;;  %v1272_v25 = vadd.f32 %v6284_v41, %v1253_v20  ;;  %v1273_v34 = vadd.f32 %v6284_v41, %v1254_v29  ;;  %v1614_v41 = vld [vmem:[#allocation22 + $0x80] sm:$0xff]  ;;  %1298 = vst.msk [vmem:[#allocation5] sm:$0xff] %vm236_vm0, %v5952_v44 }
 0x31c   :  { %v6358_v14 = vmax.f32 %v1269_v8, 0.0  ;;  %1636 = vmatpush.msrb.mxu2 %v1615_v36  ;;  %1299 = vst.msk [vmem:[#allocation5 + $0x8] sm:$0xff] %vm236_vm0, %v5952_v44  ;;  %v6432_v45 = vmax.f32 %v6327_v61, 0.0  ;;  %v6447_v46 = vmax.f32 %v6330_v0, 0.0  ;;  %v6462_v49 = vmax.f32 %v6333_v1, 0.0 }
 0x31d   :  { %v6368_v18 = vmax.f32 %v1270_v16, 0.0  ;;  %v6378_v24 = vmax.f32 %v1271_v21, 0.0  ;;  %v6388_v28 = vmax.f32 %v1272_v25, 0.0  ;;  %v6396_v35 = vmax.f32 %v1273_v34, 0.0  ;;  %1300 = vst.msk [vmem:[#allocation5 + $0x10] sm:$0xff] %vm236_vm0, %v5952_v44 }
 0x31e   :  { %5375 = vmatmul.msk.f32.gmra.mxu0 %vm936_vm10, %v6335_v2  ;;  %5391 = vmatmul.msk.f32.gmra.mxu2 %vm936_vm10, %v6335_v2  ;;  %1301 = vst.msk [vmem:[#allocation5 + $0x18] sm:$0xff] %vm236_vm0, %v5952_v44  ;;  %v6472_v9 = vmax.f32 %v6339_v57, 0.0 }
 0x31f   :  { %1637 = vmatpush.msrb.mxu2 %v1614_v41  ;;  %1302 = vst.msk [vmem:[#allocation5 + $0x20] sm:$0xff] %vm236_vm0, %v5952_v44 }
 0x320   :  { %1303 = vst.msk [vmem:[#allocation5 + $0x28] sm:$0xff] %vm236_vm0, %v5952_v44 }
 0x321   :  { %1304 = vst.msk [vmem:[#allocation5 + $0x30] sm:$0xff] %vm236_vm0, %v5952_v44 }
 0x322   :  { %1305 = vst.msk [vmem:[#allocation5 + $0x38] sm:$0xff] %vm236_vm0, %v5952_v44  ;;  %v1443_v10 = vld [vmem:[#allocation5] sm:$0xff] }
 0x323   :  { %1306 = vst.msk [vmem:[#allocation5 + $0x40] sm:$0xff] %vm236_vm0, %v5952_v44  ;;  %v1444_v11 = vld [vmem:[#allocation5 + $0x8] sm:$0xff] }
 0x324   :  { %1307 = vst.msk [vmem:[#allocation5 + $0x48] sm:$0xff] %vm236_vm0, %v5952_v44  ;;  %v1445_v30 = vld [vmem:[#allocation5 + $0x10] sm:$0xff] }
 0x325   :  { %1308 = vst.msk [vmem:[#allocation5 + $0x50] sm:$0xff] %vm236_vm0, %v5952_v44 }
 0x326   :  { %5376 = vmatmul.msk.f32.gmra.mxu0 %vm936_vm10, %v6348_v6  ;;  %5392 = vmatmul.msk.f32.gmra.mxu2 %vm936_vm10, %v6348_v6  ;;  %1309 = vst.msk [vmem:[#allocation5 + $0x58] sm:$0xff] %vm236_vm0, %v5952_v44  ;;  %v1447_v32 = vld [vmem:[#allocation5 + $0x20] sm:$0xff] }
 0x327   :  { %1310 = vst.msk [vmem:[#allocation5 + $0x60] sm:$0xff] %vm236_vm0, %v5952_v44  ;;  %v1448_v54 = vld [vmem:[#allocation5 + $0x28] sm:$0xff] }
 0x328   :  { %1311 = vst.msk [vmem:[#allocation5 + $0x68] sm:$0xff] %vm236_vm0, %v5952_v44  ;;  %v1449_v3 = vld [vmem:[#allocation5 + $0x30] sm:$0xff] }
 0x329   :  { %1312 = vst.msk [vmem:[#allocation5 + $0x70] sm:$0xff] %vm236_vm0, %v5952_v44  ;;  %v1450_v60 = vld [vmem:[#allocation5 + $0x38] sm:$0xff] }
 0x32a   :  { %1313 = vst.msk [vmem:[#allocation5 + $0x78] sm:$0xff] %vm236_vm0, %v5952_v44  ;;  %v1451_v17 = vld [vmem:[#allocation5 + $0x40] sm:$0xff] }
 0x32b   :  { %1314 = vst.msk [vmem:[#allocation5 + $0x80] sm:$0xff] %vm236_vm0, %v5952_v44 }
 0x32c   :  { %1315 = vst.msk [vmem:[#allocation5 + $0x88] sm:$0xff] %vm236_vm0, %v5952_v44  ;;  %v1453_v22 = vld [vmem:[#allocation5 + $0x50] sm:$0xff] }
 0x32d   :  { %1316 = vst.msk [vmem:[#allocation5 + $0x90] sm:$0xff] %vm236_vm0, %v5952_v44 }
 0x32e   :  { %5377 = vmatmul.msk.f32.gmra.mxu0 %vm936_vm10, %v6358_v14  ;;  %5393 = vmatmul.msk.f32.gmra.mxu2 %vm936_vm10, %v6358_v14  ;;  %1317 = vst.msk [vmem:[#allocation5 + $0x98] sm:$0xff] %vm236_vm0, %v5952_v44 }
 0x32f   :  { %1318 = vst.msk [vmem:[#allocation5 + $0xa0] sm:$0xff] %vm236_vm0, %v5952_v44 }
 0x330   :  { %1319 = vst.msk [vmem:[#allocation5 + $0xa8] sm:$0xff] %vm236_vm0, %v5952_v44 }
 0x331   :  { %1320 = vst.msk [vmem:[#allocation5 + $0xb0] sm:$0xff] %vm236_vm0, %v5952_v44 }
 0x332   :  { %1321 = vst.msk [vmem:[#allocation5 + $0xb8] sm:$0xff] %vm236_vm0, %v5952_v44  ;;  %v1454_v44 = vld [vmem:[#allocation5 + $0x58] sm:$0xff] }
 0x336   :  { %5378 = vmatmul.msk.f32.gmra.mxu0 %vm936_vm10, %v6368_v18  ;;  %5394 = vmatmul.msk.f32.gmra.mxu2 %vm936_vm10, %v6368_v18 }
 0x33e   :  { %5379 = vmatmul.msk.f32.gmra.mxu0 %vm936_vm10, %v6378_v24  ;;  %5395 = vmatmul.msk.f32.gmra.mxu2 %vm936_vm10, %v6378_v24 }
 0x346   :  { %5380 = vmatmul.msk.f32.gmra.mxu0 %vm936_vm10, %v6388_v28  ;;  %5396 = vmatmul.msk.f32.gmra.mxu2 %vm936_vm10, %v6388_v28 }
 0x34e   :  { %5381 = vmatmul.msk.f32.gmra.mxu0 %vm936_vm10, %v6396_v35  ;;  %5397 = vmatmul.msk.f32.gmra.mxu2 %vm936_vm10, %v6396_v35 }
 0x356   :  { %5382 = vmatmul.msk.f32.gmra.mxu0 %vm936_vm10, %v6402_v26  ;;  %5398 = vmatmul.msk.f32.gmra.mxu2 %vm936_vm10, %v6402_v26 }
 0x35e   :  { %5383 = vmatmul.msk.f32.gmra.mxu0 %vm936_vm10, %v6408_v39  ;;  %5399 = vmatmul.msk.f32.gmra.mxu2 %vm936_vm10, %v6408_v39 }
 0x366   :  { %5384 = vmatmul.msk.f32.gmra.mxu0 %vm936_vm10, %v6414_v40  ;;  %5400 = vmatmul.msk.f32.gmra.mxu2 %vm936_vm10, %v6414_v40 }
 0x36e   :  { %5385 = vmatmul.msk.f32.gmra.mxu0 %vm936_vm10, %v6420_v43  ;;  %5401 = vmatmul.msk.f32.gmra.mxu2 %vm936_vm10, %v6420_v43 }
 0x376   :  { %5386 = vmatmul.msk.f32.gmra.mxu0 %vm936_vm10, %v6432_v45  ;;  %5402 = vmatmul.msk.f32.gmra.mxu2 %vm936_vm10, %v6432_v45 }
 0x37e   :  { %5387 = vmatmul.msk.f32.gmra.mxu0 %vm936_vm10, %v6447_v46  ;;  %5403 = vmatmul.msk.f32.gmra.mxu2 %vm936_vm10, %v6447_v46 }
 0x386   :  { %5388 = vmatmul.msk.f32.gmra.mxu0 %vm936_vm10, %v6462_v49  ;;  %5404 = vmatmul.msk.f32.gmra.mxu2 %vm936_vm10, %v6462_v49 }
 0x38e   :  { %5389 = vmatmul.msk.f32.gmra.mxu0 %vm936_vm10, %v6472_v9  ;;  %5405 = vmatmul.msk.f32.gmra.mxu2 %vm936_vm10, %v6472_v9 }
 0x393   :  { %v1395_v31 = vpop.f32.mrf.mxu0 }
 0x394   :  { %v1459_v51 = vadd.f32 %v1443_v10, %v1395_v31 }
 0x396   :  { %1475 = vst.msk [vmem:[#allocation5] sm:$0xff] %vm236_vm0, %v1459_v51  ;;  %5406 = vmatmul.msk.f32.vlgmr.msrb.gmra.mxu2 %vm936_vm10, %v6291_v48  ;;  %v1446_v48 = vld [vmem:[#allocation5 + $0x18] sm:$0xff] }
 0x399   :  { %v1517_v52 = vpop.f32.mrf.mxu2 }
 0x39b   :  { %v1398_v50 = vpop.f32.mrf.mxu0 }
 0x39c   :  { %v1460_v38 = vadd.f32 %v1444_v11, %v1398_v50  ;;  %v1455_v11 = vld [vmem:[#allocation5 + $0x60] sm:$0xff] }
 0x39e   :  { %1476 = vst.msk [vmem:[#allocation5 + $0x8] sm:$0xff] %vm236_vm0, %v1460_v38  ;;  %5407 = vmatmul.msk.f32.gmra.mxu2 %vm936_vm10, %v6335_v2 }
 0x3a1   :  { %v1520_v55 = vpop.f32.mrf.mxu2 }
 0x3a3   :  { %v1401_v58 = vpop.f32.mrf.mxu0 }
 0x3a4   :  { %v1461_v37 = vadd.f32 %v1445_v30, %v1401_v58  ;;  %v1577_v30 = vld [vmem:[#allocation5 + $0x80] sm:$0xff] }
 0x3a6   :  { %1477 = vst.msk [vmem:[#allocation5 + $0x10] sm:$0xff] %vm236_vm0, %v1461_v37  ;;  %5408 = vmatmul.msk.f32.gmra.mxu2 %vm936_vm10, %v6348_v6  ;;  %v1456_v37 = vld [vmem:[#allocation5 + $0x68] sm:$0xff] }
 0x3a9   :  { %v1523_v42 = vpop.f32.mrf.mxu2 }
 0x3ab   :  { %v1404_v33 = vpop.f32.mrf.mxu0 }
 0x3ac   :  { %v1462_v47 = vadd.f32 %v1446_v48, %v1404_v33 }
 0x3ae   :  { %1478 = vst.msk [vmem:[#allocation5 + $0x18] sm:$0xff] %vm236_vm0, %v1462_v47  ;;  %5409 = vmatmul.msk.f32.gmra.mxu2 %vm936_vm10, %v6358_v14 }
 0x3b1   :  { %v1526_v59 = vpop.f32.mrf.mxu2 }
 0x3b3   :  { %v1407_v53 = vpop.f32.mrf.mxu0 }
 0x3b4   :  { %v1463_v56 = vadd.f32 %v1447_v32, %v1407_v53  ;;  %v1457_v32 = vld [vmem:[#allocation5 + $0x70] sm:$0xff] }
 0x3b6   :  { %1479 = vst.msk [vmem:[#allocation5 + $0x20] sm:$0xff] %vm236_vm0, %v1463_v56  ;;  %5410 = vmatmul.msk.f32.gmra.mxu2 %vm936_vm10, %v6368_v18 }
 0x3b9   :  { %v1529_v62 = vpop.f32.mrf.mxu2 }
 0x3bb   :  { %v1410_v63 = vpop.f32.mrf.mxu0 }
 0x3bc   :  { %v1464_v61 = vadd.f32 %v1448_v54, %v1410_v63 }
 0x3bd   :  { %v1565_v0 = vld [vmem:[#allocation5 + $0x20] sm:$0xff] }
 0x3be   :  { %v1581_v1 = vadd.f32 %v1565_v0, %v1517_v52  ;;  %1480 = vst.msk [vmem:[#allocation5 + $0x28] sm:$0xff] %vm236_vm0, %v1464_v61  ;;  %5411 = vmatmul.msk.f32.gmra.mxu2 %vm936_vm10, %v6378_v24  ;;  %v1452_v24 = vld [vmem:[#allocation5 + $0x48] sm:$0xff]  ;;  %v1579_v61 = vld [vmem:[#allocation5 + $0x90] sm:$0xff]  ;;  %v1458_v0 = vld [vmem:[#allocation5 + $0x78] sm:$0xff] }
 0x3c0   :  { %1597 = vst.msk [vmem:[#allocation5 + $0x20] sm:$0xff] %vm236_vm0, %v1581_v1 }
 0x3c1   :  { %v1532_v2 = vpop.f32.mrf.mxu2 }
 0x3c3   :  { %v1413_v57 = vpop.f32.mrf.mxu0 }
 0x3c4   :  { %v1465_v4 = vadd.f32 %v1449_v3, %v1413_v57 }
 0x3c5   :  { %v1566_v5 = vld [vmem:[#allocation5 + $0x28] sm:$0xff] }
 0x3c6   :  { %v1582_v6 = vadd.f32 %v1566_v5, %v1520_v55  ;;  %1481 = vst.msk [vmem:[#allocation5 + $0x30] sm:$0xff] %vm236_vm0, %v1465_v4  ;;  %5412 = vmatmul.msk.f32.gmra.mxu2 %vm936_vm10, %v6388_v28  ;;  %v1580_v5 = vld [vmem:[#allocation5 + $0x98] sm:$0xff] }
 0x3c8   :  { %1598 = vst.msk [vmem:[#allocation5 + $0x28] sm:$0xff] %vm236_vm0, %v1582_v6 }
 0x3c9   :  { %v1535_v7 = vpop.f32.mrf.mxu2 }
 0x3cb   :  { %v1416_v8 = vpop.f32.mrf.mxu0 }
 0x3cc   :  { %v1466_v13 = vadd.f32 %v1450_v60, %v1416_v8 }
 0x3cd   :  { %v1567_v14 = vld [vmem:[#allocation5 + $0x30] sm:$0xff] }
 0x3ce   :  { %v1583_v12 = vadd.f32 %v1567_v14, %v1523_v42  ;;  %1482 = vst.msk [vmem:[#allocation5 + $0x38] sm:$0xff] %vm236_vm0, %v1466_v13  ;;  %5413 = vmatmul.msk.f32.gmra.mxu2 %vm936_vm10, %v6396_v35 }
 0x3d0   :  { %1599 = vst.msk [vmem:[#allocation5 + $0x30] sm:$0xff] %vm236_vm0, %v1583_v12 }
 0x3d1   :  { %v1538_v16 = vpop.f32.mrf.mxu2 }
 0x3d3   :  { %v1419_v18 = vpop.f32.mrf.mxu0 }
 0x3d4   :  { %v1467_v19 = vadd.f32 %v1451_v17, %v1419_v18 }
 0x3d5   :  { %v1568_v15 = vld [vmem:[#allocation5 + $0x38] sm:$0xff] }
 0x3d6   :  { %v1584_v21 = vadd.f32 %v1568_v15, %v1526_v59  ;;  %1483 = vst.msk [vmem:[#allocation5 + $0x40] sm:$0xff] %vm236_vm0, %v1467_v19  ;;  %5414 = vmatmul.msk.f32.gmra.mxu2 %vm936_vm10, %v6402_v26  ;;  %v1578_v59 = vld [vmem:[#allocation5 + $0x88] sm:$0xff] }
 0x3d8   :  { %1600 = vst.msk [vmem:[#allocation5 + $0x38] sm:$0xff] %vm236_vm0, %v1584_v21 }
 0x3d9   :  { %v1541_v23 = vpop.f32.mrf.mxu2 }
 0x3db   :  { %v1422_v20 = vpop.f32.mrf.mxu0 }
 0x3dc   :  { %v1468_v25 = vadd.f32 %v1452_v24, %v1422_v20 }
 0x3dd   :  { %v1569_v27 = vld [vmem:[#allocation5 + $0x40] sm:$0xff] }
 0x3de   :  { %1484 = vst.msk [vmem:[#allocation5 + $0x48] sm:$0xff] %vm236_vm0, %v1468_v25  ;;  %5415 = vmatmul.msk.f32.gmra.mxu2 %vm936_vm10, %v6408_v39  ;;  %v1585_v28 = vadd.f32 %v1569_v27, %v1529_v62 }
 0x3e0   :  { %1601 = vst.msk [vmem:[#allocation5 + $0x40] sm:$0xff] %vm236_vm0, %v1585_v28 }
 0x3e1   :  { %v1544_v29 = vpop.f32.mrf.mxu2 }
 0x3e3   :  { %v1425_v34 = vpop.f32.mrf.mxu0 }
 0x3e4   :  { %v1469_v35 = vadd.f32 %v1453_v22, %v1425_v34 }
 0x3e5   :  { %v1570_v26 = vld [vmem:[#allocation5 + $0x48] sm:$0xff] }
 0x3e6   :  { %1485 = vst.msk [vmem:[#allocation5 + $0x50] sm:$0xff] %vm236_vm0, %v1469_v35  ;;  %5416 = vmatmul.msk.f32.gmra.mxu2 %vm936_vm10, %v6414_v40  ;;  %v1586_v36 = vadd.f32 %v1570_v26, %v1532_v2 }
 0x3e7   :  { %v1687_v13 = vld [vmem:[#allocation5 + $0x40] sm:$0xff] }
 0x3e8   :  { %1602 = vst.msk [vmem:[#allocation5 + $0x48] sm:$0xff] %vm236_vm0, %v1586_v36 }
 0x3e9   :  { %v1547_v41 = vpop.f32.mrf.mxu2 }
 0x3eb   :  { %v1428_v10 = vpop.f32.mrf.mxu0 }
 0x3ec   :  { %v1470_v39 = vadd.f32 %v1454_v44, %v1428_v10 }
 0x3ed   :  { %v1571_v31 = vld [vmem:[#allocation5 + $0x50] sm:$0xff] }
 0x3ee   :  { %1486 = vst.msk [vmem:[#allocation5 + $0x58] sm:$0xff] %vm236_vm0, %v1470_v39  ;;  %5417 = vmatmul.msk.f32.gmra.mxu2 %vm936_vm10, %v6420_v43  ;;  %v1587_v51 = vadd.f32 %v1571_v31, %v1535_v7 }
 0x3f0   :  { %1603 = vst.msk [vmem:[#allocation5 + $0x50] sm:$0xff] %vm236_vm0, %v1587_v51 }
 0x3f1   :  { %v1550_v52 = vpop.f32.mrf.mxu2 }
 0x3f3   :  { %v1431_v50 = vpop.f32.mrf.mxu0 }
 0x3f4   :  { %v1471_v40 = vadd.f32 %v1455_v11, %v1431_v50 }
 0x3f5   :  { %v1572_v38 = vld [vmem:[#allocation5 + $0x58] sm:$0xff] }
 0x3f6   :  { %1487 = vst.msk [vmem:[#allocation5 + $0x60] sm:$0xff] %vm236_vm0, %v1471_v40  ;;  %5418 = vmatmul.msk.f32.gmra.mxu2 %vm936_vm10, %v6432_v45  ;;  %v1588_v55 = vadd.f32 %v1572_v38, %v1538_v16  ;;  %v1688_v16 = vld [vmem:[#allocation5 + $0x48] sm:$0xff] }
 0x3f7   :  { %v1689_v18 = vld [vmem:[#allocation5 + $0x50] sm:$0xff]  ;;  %v6552_v38 = vld [vmem:[#allocation5 + $0x8] sm:$0xff] }
 0x3f8   :  { %1604 = vst.msk [vmem:[#allocation5 + $0x58] sm:$0xff] %vm236_vm0, %v1588_v55  ;;  %v6555_v55 = vld [vmem:[#allocation5] sm:$0xff] }
 0x3f9   :  { %v1553_v58 = vpop.f32.mrf.mxu2 }
 0x3fa   :  { %v1593_v43 = vadd.f32 %v1577_v30, %v1553_v58  ;;  %v6557_v30 = vld [vmem:[#allocation5 + $0x10] sm:$0xff]  ;;  %v1762_v58 = vsel %vm236_vm0, %v6552_v38, 0.0 }
 0x3fb   :  { %v1434_v42 = vpop.f32.mrf.mxu0 }
 0x3fc   :  { %1609 = vst.msk [vmem:[#allocation5 + $0x80] sm:$0xff] %vm236_vm0, %v1593_v43  ;;  %v1472_v48 = vadd.f32 %v1456_v37, %v1434_v42  ;;  %v6561_v37 = vld [vmem:[#allocation5 + $0x18] sm:$0xff]  ;;  %v1761_v43 = vsel %vm236_vm0, %v6555_v55, 0.0  ;;  %v1764_v42 = vsel %vm236_vm0, %v6557_v30, 0.0 }
 0x3fd   :  { %v1573_v33 = vld [vmem:[#allocation5 + $0x60] sm:$0xff] }
 0x3fe   :  { %1488 = vst.msk [vmem:[#allocation5 + $0x68] sm:$0xff] %vm236_vm0, %v1472_v48  ;;  %5419 = vmatmul.msk.f32.gmra.mxu2 %vm936_vm10, %v6447_v46  ;;  %v1589_v47 = vadd.f32 %v1573_v33, %v1541_v23 }
 0x3ff   :  { %v1690_v21 = vld [vmem:[#allocation5 + $0x58] sm:$0xff] }
 0x400   :  { %1605 = vst.msk [vmem:[#allocation5 + $0x60] sm:$0xff] %vm236_vm0, %v1589_v47  ;;  %v6567_v47 = vld [vmem:[#allocation5 + $0x20] sm:$0xff] }
 0x401   :  { %v1556_v45 = vpop.f32.mrf.mxu2 }
 0x402   :  { %v1594_v53 = vadd.f32 %v1578_v59, %v1556_v45  ;;  %v1763_v59 = vadd.f32 %v1762_v58, %v1761_v43 }
 0x403   :  { %v1437_v56 = vpop.f32.mrf.mxu0  ;;  %v1695_v10 = vld [vmem:[#allocation5 + $0x80] sm:$0xff] }
 0x404   :  { %1610 = vst.msk [vmem:[#allocation5 + $0x88] sm:$0xff] %vm236_vm0, %v1594_v53  ;;  %v1473_v62 = vadd.f32 %v1457_v32, %v1437_v56  ;;  %v1766_v32 = vsel %vm236_vm0, %v6561_v37, 0.0  ;;  %v6571_v53 = vld [vmem:[#allocation5 + $0x28] sm:$0xff]  ;;  %v1765_v56 = vadd.f32 %v1764_v42, %v1763_v59 }
 0x405   :  { %v1574_v54 = vld [vmem:[#allocation5 + $0x68] sm:$0xff] }
 0x406   :  { %1489 = vst.msk [vmem:[#allocation5 + $0x70] sm:$0xff] %vm236_vm0, %v1473_v62  ;;  %5420 = vmatmul.msk.f32.gmra.mxu2 %vm936_vm10, %v6462_v49  ;;  %v1590_v63 = vadd.f32 %v1574_v54, %v1544_v29  ;;  %v2033_v62 = vld [vmem:[#allocation23 + $0x18] sm:$0xff]  ;;  %v1768_v54 = vsel %vm236_vm0, %v6567_v47, 0.0 }
 0x407   :  { %v1691_v20 = vld [vmem:[#allocation5 + $0x60] sm:$0xff]  ;;  %2118 = vmatpush.msrb.mxu0 %v2033_v62 }
 0x408   :  { %1606 = vst.msk [vmem:[#allocation5 + $0x68] sm:$0xff] %vm236_vm0, %v1590_v63  ;;  %v6576_v63 = vld [vmem:[#allocation5 + $0x30] sm:$0xff] }
 0x409   :  { %v1559_v46 = vpop.f32.mrf.mxu2 }
 0x40a   :  { %v1595_v1 = vadd.f32 %v1579_v61, %v1559_v46  ;;  %v1767_v61 = vadd.f32 %v1766_v32, %v1765_v56  ;;  %v1770_v46 = vsel %vm236_vm0, %v6571_v53, 0.0 }
 0x40b   :  { %v1440_v2 = vpop.f32.mrf.mxu0  ;;  %v1696_v51 = vld [vmem:[#allocation5 + $0x88] sm:$0xff] }
 0x40c   :  { %1611 = vst.msk [vmem:[#allocation5 + $0x90] sm:$0xff] %vm236_vm0, %v1595_v1  ;;  %v1474_v3 = vadd.f32 %v1458_v0, %v1440_v2  ;;  %v1699_v0 = vld [vmem:[#allocation5 + $0xa0] sm:$0xff]  ;;  %v6580_v1 = vld [vmem:[#allocation5 + $0x38] sm:$0xff]  ;;  %v1769_v2 = vadd.f32 %v1768_v54, %v1767_v61 }
 0x40d   :  { %v1575_v57 = vld [vmem:[#allocation5 + $0x70] sm:$0xff] }
 0x40e   :  { %1490 = vst.msk [vmem:[#allocation5 + $0x78] sm:$0xff] %vm236_vm0, %v1474_v3  ;;  %5421 = vmatmul.msk.f32.gmra.mxu2 %vm936_vm10, %v6472_v9  ;;  %v1591_v4 = vadd.f32 %v1575_v57, %v1547_v41  ;;  %v1772_v3 = vsel %vm236_vm0, %v6576_v63, 0.0 }
 0x40f   :  { %v1692_v28 = vld [vmem:[#allocation5 + $0x68] sm:$0xff] }
 0x410   :  { %1607 = vst.msk [vmem:[#allocation5 + $0x70] sm:$0xff] %vm236_vm0, %v1591_v4 }
 0x411   :  { %v1562_v49 = vpop.f32.mrf.mxu2 }
 0x412   :  { %v1596_v6 = vadd.f32 %v1580_v5, %v1562_v49  ;;  %v1771_v5 = vadd.f32 %v1770_v46, %v1769_v2 }
 0x413   :  { %v1697_v50 = vld [vmem:[#allocation5 + $0x90] sm:$0xff] }
 0x414   :  { %1612 = vst.msk [vmem:[#allocation5 + $0x98] sm:$0xff] %vm236_vm0, %v1596_v6  ;;  %v1774_v6 = vsel %vm236_vm0, %v6580_v1, 0.0 }
 0x415   :  { %v1576_v7 = vld [vmem:[#allocation5 + $0x78] sm:$0xff] }
 0x416   :  { %v1592_v60 = vadd.f32 %v1576_v7, %v1550_v52 }
 0x417   :  { %v1693_v34 = vld [vmem:[#allocation5 + $0x70] sm:$0xff] }
 0x418   :  { %1608 = vst.msk [vmem:[#allocation5 + $0x78] sm:$0xff] %vm236_vm0, %v1592_v60  ;;  %v1773_v60 = vadd.f32 %v1772_v3, %v1771_v5 }
 0x419   :  { %v1639_v8 = vpop.f32.mrf.mxu2 }
 0x41a   :  { %v1703_v14 = vadd.f32 %v1687_v13, %v1639_v8  ;;  %v2032_v13 = vld [vmem:[#allocation23 + $0x10] sm:$0xff] }
 0x41b   :  { %v1698_v33 = vld [vmem:[#allocation5 + $0x98] sm:$0xff]  ;;  %2119 = vmatpush.msrb.mxu0 %v2032_v13 }
 0x41c   :  { %1719 = vst.msk [vmem:[#allocation5 + $0x40] sm:$0xff] %vm236_vm0, %v1703_v14  ;;  %v2031_v14 = vld [vmem:[#allocation23 + $0x8] sm:$0xff] }
 0x41d   :  { %2120 = vmatpush.msrb.mxu0 %v2031_v14 }
 0x41f   :  { %v1694_v36 = vld [vmem:[#allocation5 + $0x78] sm:$0xff] }
 0x421   :  { %v1642_v12 = vpop.f32.mrf.mxu2 }
 0x422   :  { %v1704_v9 = vadd.f32 %v1688_v16, %v1642_v12  ;;  %v2342_v16 = vld [vmem:[#allocation23 + $0x58] sm:$0xff] }
 0x423   :  { %v6584_v4 = vld [vmem:[#allocation5 + $0x40] sm:$0xff]  ;;  %2355 = vmatpush.msrb.mxu1 %v2342_v16 }
 0x424   :  { %1720 = vst.msk [vmem:[#allocation5 + $0x48] sm:$0xff] %vm236_vm0, %v1704_v9  ;;  %v1776_v12 = vsel %vm236_vm0, %v6584_v4, 0.0  ;;  %v2460_v9 = vld [vmem:[#allocation23 + $0x78] sm:$0xff] }
 0x425   :  { %2473 = vmatpush.msra.mxu2 %v2460_v9 }
 0x429   :  { %v1645_v17 = vpop.f32.mrf.mxu2 }
 0x42a   :  { %v1705_v19 = vadd.f32 %v1689_v18, %v1645_v17  ;;  %v2341_v17 = vld [vmem:[#allocation23 + $0x50] sm:$0xff]  ;;  %v1775_v18 = vadd.f32 %v1774_v6, %v1773_v60 }
 0x42b   :  { %v6588_v7 = vld [vmem:[#allocation5 + $0x48] sm:$0xff]  ;;  %2356 = vmatpush.msrb.mxu1 %v2341_v17 }
 0x42c   :  { %1721 = vst.msk [vmem:[#allocation5 + $0x50] sm:$0xff] %vm236_vm0, %v1705_v19 }
 0x431   :  { %v1648_v15 = vpop.f32.mrf.mxu2 }
 0x432   :  { %v1706_v23 = vadd.f32 %v1690_v21, %v1648_v15  ;;  %v2030_v15 = vld [vmem:[#allocation23] sm:$0xff]  ;;  %v2459_v21 = vld [vmem:[#allocation23 + $0x70] sm:$0xff] }
 0x433   :  { %v6590_v8 = vld [vmem:[#allocation5 + $0x50] sm:$0xff]  ;;  %2474 = vmatpush.msra.mxu2 %v2459_v21  ;;  %2121 = vmatpush.msrb.mxu0 %v2030_v15 }
 0x434   :  { %1722 = vst.msk [vmem:[#allocation5 + $0x58] sm:$0xff] %vm236_vm0, %v1706_v23  ;;  %v1778_v23 = vsel %vm236_vm0, %v6588_v7, 0.0 }
 0x439   :  { %v1651_v24 = vpop.f32.mrf.mxu2 }
 0x43a   :  { %v1707_v25 = vadd.f32 %v1691_v20, %v1651_v24  ;;  %v1700_v24 = vld [vmem:[#allocation5 + $0xa8] sm:$0xff]  ;;  %v2340_v20 = vld [vmem:[#allocation23 + $0x48] sm:$0xff] }
 0x43b   :  { %v6595_v19 = vld [vmem:[#allocation5 + $0x58] sm:$0xff]  ;;  %2357 = vmatpush.msrb.mxu1 %v2340_v20 }
 0x43c   :  { %1723 = vst.msk [vmem:[#allocation5 + $0x60] sm:$0xff] %vm236_vm0, %v1707_v25  ;;  %v2458_v25 = vld [vmem:[#allocation23 + $0x68] sm:$0xff] }
 0x43d   :  { %2475 = vmatpush.msra.mxu2 %v2458_v25 }
 0x441   :  { %v1654_v27 = vpop.f32.mrf.mxu2 }
 0x442   :  { %v1708_v29 = vadd.f32 %v1692_v28, %v1654_v27  ;;  %v1777_v27 = vadd.f32 %v1776_v12, %v1775_v18  ;;  %v1780_v28 = vsel %vm236_vm0, %v6590_v8, 0.0 }
 0x444   :  { %1724 = vst.msk [vmem:[#allocation5 + $0x68] sm:$0xff] %vm236_vm0, %v1708_v29  ;;  %v6601_v29 = vld [vmem:[#allocation5 + $0x60] sm:$0xff] }
 0x449   :  { %v1657_v22 = vpop.f32.mrf.mxu2 }
 0x44a   :  { %v1709_v35 = vadd.f32 %v1693_v34, %v1657_v22  ;;  %v2339_v34 = vld [vmem:[#allocation23 + $0x40] sm:$0xff] }
 0x44b   :  { %2358 = vmatpush.msrb.mxu1 %v2339_v34 }
 0x44c   :  { %1725 = vst.msk [vmem:[#allocation5 + $0x70] sm:$0xff] %vm236_vm0, %v1709_v35  ;;  %v2457_v35 = vld [vmem:[#allocation23 + $0x60] sm:$0xff] }
 0x44d   :  { %2476 = vmatpush.msra.mxu2 %v2457_v35 }
 0x451   :  { %v1660_v26 = vpop.f32.mrf.mxu2 }
 0x452   :  { %v1710_v41 = vadd.f32 %v1694_v36, %v1660_v26  ;;  %v1779_v26 = vadd.f32 %v1778_v23, %v1777_v27  ;;  %v1782_v36 = vsel %vm236_vm0, %v6595_v19, 0.0 }
 0x454   :  { %1726 = vst.msk [vmem:[#allocation5 + $0x78] sm:$0xff] %vm236_vm0, %v1710_v41 }
 0x459   :  { %v1663_v44 = vpop.f32.mrf.mxu2 }
 0x45a   :  { %v1711_v39 = vadd.f32 %v1695_v10, %v1663_v44  ;;  %v6605_v44 = vld [vmem:[#allocation5 + $0x68] sm:$0xff]  ;;  %v1781_v10 = vadd.f32 %v1780_v28, %v1779_v26 }
 0x45c   :  { %1727 = vst.msk [vmem:[#allocation5 + $0x80] sm:$0xff] %vm236_vm0, %v1711_v39  ;;  %v1784_v39 = vsel %vm236_vm0, %v6601_v29, 0.0 }
 0x461   :  { %v1666_v31 = vpop.f32.mrf.mxu2 }
 0x462   :  { %v1712_v52 = vadd.f32 %v1696_v51, %v1666_v31  ;;  %v6610_v31 = vld [vmem:[#allocation5 + $0x70] sm:$0xff]  ;;  %v1783_v51 = vadd.f32 %v1782_v36, %v1781_v10 }
 0x463   :  { %v1788_v58 = vsel %vm236_vm0, %v6610_v31, 0.0  ;;  %v6618_v43 = vld [vmem:[#allocation5 + $0x80] sm:$0xff] }
 0x464   :  { %1728 = vst.msk [vmem:[#allocation5 + $0x88] sm:$0xff] %vm236_vm0, %v1712_v52  ;;  %v1786_v52 = vsel %vm236_vm0, %v6605_v44, 0.0  ;;  %v1792_v56 = vsel %vm236_vm0, %v6618_v43, 0.0 }
 0x469   :  { %v1669_v11 = vpop.f32.mrf.mxu2 }
 0x46a   :  { %v1713_v40 = vadd.f32 %v1697_v50, %v1669_v11  ;;  %v6614_v11 = vld [vmem:[#allocation5 + $0x78] sm:$0xff]  ;;  %v1701_v50 = vld [vmem:[#allocation5 + $0xb0] sm:$0xff] }
 0x46c   :  { %1729 = vst.msk [vmem:[#allocation5 + $0x90] sm:$0xff] %vm236_vm0, %v1713_v40  ;;  %v1785_v40 = vadd.f32 %v1784_v39, %v1783_v51 }
 0x471   :  { %v1672_v48 = vpop.f32.mrf.mxu2 }
 0x472   :  { %v1714_v45 = vadd.f32 %v1698_v33, %v1672_v48  ;;  %v1787_v48 = vadd.f32 %v1786_v52, %v1785_v40  ;;  %v1790_v33 = vsel %vm236_vm0, %v6614_v11, 0.0 }
 0x473   :  { %v6627_v62 = vld [vmem:[#allocation5 + $0x90] sm:$0xff] }
 0x474   :  { %1730 = vst.msk [vmem:[#allocation5 + $0x98] sm:$0xff] %vm236_vm0, %v1714_v45  ;;  %v6622_v45 = vld [vmem:[#allocation5 + $0x88] sm:$0xff]  ;;  %v1789_v32 = vadd.f32 %v1788_v58, %v1787_v48  ;;  %v1796_v3 = vsel %vm236_vm0, %v6627_v62, 0.0 }
 0x475   :  { %v1794_v61 = vsel %vm236_vm0, %v6622_v45, 0.0 }
 0x476   :  { %v1791_v54 = vadd.f32 %v1790_v33, %v1789_v32 }
 0x478   :  { %v1793_v2 = vadd.f32 %v1792_v56, %v1791_v54 }
 0x479   :  { %v1675_v57 = vpop.f32.mrf.mxu2 }
 0x47a   :  { %v1715_v49 = vadd.f32 %v1699_v0, %v1675_v57  ;;  %v1702_v0 = vld [vmem:[#allocation5 + $0xb8] sm:$0xff] }
 0x47b   :  { %v6631_v46 = vld [vmem:[#allocation5 + $0x98] sm:$0xff] }
 0x47c   :  { %1731 = vst.msk [vmem:[#allocation5 + $0xa0] sm:$0xff] %vm236_vm0, %v1715_v49  ;;  %v1795_v49 = vadd.f32 %v1794_v61, %v1793_v2  ;;  %v1798_v6 = vsel %vm236_vm0, %v6631_v46, 0.0 }
 0x47e   :  { %v1797_v14 = vadd.f32 %v1796_v3, %v1795_v49 }
 0x480   :  { %v1799_v9 = vadd.f32 %v1798_v6, %v1797_v14 }
 0x481   :  { %v1678_v22 = vpop.f32.mrf.mxu2 }
 0x482   :  { %v1716_v41 = vadd.f32 %v1700_v24, %v1678_v22 }
 0x483   :  { %v6635_v57 = vld [vmem:[#allocation5 + $0xa0] sm:$0xff] }
 0x484   :  { %1732 = vst.msk [vmem:[#allocation5 + $0xa8] sm:$0xff] %vm236_vm0, %v1716_v41  ;;  %v1800_v12 = vsel %vm236_vm0, %v6635_v57, 0.0 }
 0x485   :  { %v1801_v18 = vadd.f32 %v1800_v12, %v1799_v9 }
 0x489   :  { %v1681_v42 = vpop.f32.mrf.mxu2 }
 0x48a   :  { %v1717_v59 = vadd.f32 %v1701_v50, %v1681_v42 }
 0x48b   :  { %v6639_v13 = vld [vmem:[#allocation5 + $0xa8] sm:$0xff] }
 0x48c   :  { %1733 = vst.msk [vmem:[#allocation5 + $0xb0] sm:$0xff] %vm236_vm0, %v1717_v59  ;;  %v1802_v17 = vsel %vm236_vm0, %v6639_v13, 0.0 }
 0x48d   :  { %v1803_v21 = vadd.f32 %v1802_v17, %v1801_v18 }
 0x491   :  { %v1684_v5 = vpop.f32.mrf.mxu2 }
 0x492   :  { %v1718_v60 = vadd.f32 %v1702_v0, %v1684_v5 }
 0x493   :  { %v6644_v16 = vld [vmem:[#allocation5 + $0xb0] sm:$0xff] }
 0x494   :  { %1734 = vst.msk [vmem:[#allocation5 + $0xb8] sm:$0xff] %vm236_vm0, %v1718_v60  ;;  %v1804_v15 = vsel %vm236_vm0, %v6644_v16, 0.0 }
 0x495   :  { %v1805_v24 = vadd.f32 %v1804_v15, %v1803_v21 }
 0x49b   :  { %v6650_v23 = vld [vmem:[#allocation5 + $0xb8] sm:$0xff] }
 0x49c   :  { %v1806_v20 = vsel %vm236_vm0, %v6650_v23, 0.0 }
 0x49d   :  { %v1807_v25 = vadd.f32 %v1806_v20, %v1805_v24 }
 0x49f   :  { %v1808_v27 = vrot.slane %v1807_v25, 4 }
 0x4a1   :  { %v1809_v28 = vadd.f32 %v1808_v27, %v1807_v25 }
 0x4a3   :  { %v1810_v22 = vrot.slane %v1809_v28, 2 }
 0x4a5   :  { %v1811_v34 = vadd.f32 %v1810_v22, %v1809_v28 }
 0x4a7   :  { %v1812_v35 = vrot.slane %v1811_v34, 1 }
 0x4a9   :  { %v1813_v26 = vadd.f32 %v1812_v35, %v1811_v34 }
 0x4ab   :  { %v6654_v36 = vmul.f32 0.0052083335, %v1813_v26 }
 0x4ad   :  { %v6658_v41 = vsub.f32 %v6555_v55, %v6654_v36  ;;  %v6662_v10 = vsub.f32 %v6552_v38, %v6654_v36  ;;  %v6666_v39 = vsub.f32 %v6557_v30, %v6654_v36  ;;  %v6670_v51 = vsub.f32 %v6561_v37, %v6654_v36 }
 0x4ae   :  { %v6678_v55 = vsub.f32 %v6567_v47, %v6654_v36  ;;  %v6684_v30 = vsub.f32 %v6571_v53, %v6654_v36  ;;  %v6692_v48 = vsub.f32 %v6576_v63, %v6654_v36  ;;  %v6699_v53 = vsub.f32 %v6580_v1, %v6654_v36 }
 0x4af   :  { %v1839_v52 = vmul.f32 %v6658_v41, %v6658_v41  ;;  %v1840_v50 = vmul.f32 %v6662_v10, %v6662_v10  ;;  %v1841_v38 = vmul.f32 %v6666_v39, %v6666_v39  ;;  %v1842_v37 = vmul.f32 %v6670_v51, %v6670_v51 }
 0x4b0   :  { %v1843_v47 = vmul.f32 %v6678_v55, %v6678_v55  ;;  %v1844_v32 = vmul.f32 %v6684_v30, %v6684_v30  ;;  %v6706_v63 = vsub.f32 %v6584_v4, %v6654_v36  ;;  %v1845_v61 = vmul.f32 %v6692_v48, %v6692_v48 }
 0x4b1   :  { %v1863_v40 = vsel %vm236_vm0, %v1839_v52, 0.0  ;;  %v1864_v58 = vsel %vm236_vm0, %v1840_v50, 0.0  ;;  %v1866_v33 = vsel %vm236_vm0, %v1841_v38, 0.0  ;;  %v1868_v56 = vsel %vm236_vm0, %v1842_v37, 0.0 }
 0x4b2   :  { %v1865_v42 = vadd.f32 %v1864_v58, %v1863_v40  ;;  %v1870_v0 = vsel %vm236_vm0, %v1843_v47, 0.0  ;;  %v6713_v1 = vsub.f32 %v6588_v7, %v6654_v36  ;;  %v1846_v3 = vmul.f32 %v6699_v53, %v6699_v53 }
 0x4b3   :  { %v1872_v5 = vsel %vm236_vm0, %v1844_v32, 0.0  ;;  %v6720_v4 = vsub.f32 %v6590_v8, %v6654_v36  ;;  %v1847_v6 = vmul.f32 %v6706_v63, %v6706_v63  ;;  %v1874_v60 = vsel %vm236_vm0, %v1845_v61, 0.0 }
 0x4b4   :  { %v1867_v59 = vadd.f32 %v1866_v33, %v1865_v42  ;;  %v6727_v7 = vsub.f32 %v6595_v19, %v6654_v36  ;;  %v1848_v12 = vmul.f32 %v6713_v1, %v6713_v1  ;;  %v1876_v9 = vsel %vm236_vm0, %v1846_v3, 0.0 }
 0x4b5   :  { %v6734_v8 = vsub.f32 %v6601_v29, %v6654_v36  ;;  %v1849_v18 = vmul.f32 %v6720_v4, %v6720_v4  ;;  %v1878_v15 = vsel %vm236_vm0, %v1847_v6, 0.0  ;;  %v6741_v19 = vsub.f32 %v6605_v44, %v6654_v36 }
 0x4b6   :  { %v1869_v54 = vadd.f32 %v1868_v56, %v1867_v59  ;;  %v1850_v24 = vmul.f32 %v6727_v7, %v6727_v7  ;;  %v1880_v20 = vsel %vm236_vm0, %v1848_v12, 0.0  ;;  %v6748_v29 = vsub.f32 %v6610_v31, %v6654_v36 }
 0x4b7   :  { %v1851_v27 = vmul.f32 %v6734_v8, %v6734_v8  ;;  %v1882_v28 = vsel %vm236_vm0, %v1849_v18, 0.0  ;;  %v6755_v44 = vsub.f32 %v6614_v11, %v6654_v36  ;;  %v1852_v34 = vmul.f32 %v6741_v19, %v6741_v19 }
 0x4b8   :  { %v1871_v2 = vadd.f32 %v1870_v0, %v1869_v54  ;;  %v1884_v35 = vsel %vm236_vm0, %v1850_v24, 0.0  ;;  %v6762_v31 = vsub.f32 %v6618_v43, %v6654_v36  ;;  %v1853_v52 = vmul.f32 %v6748_v29, %v6748_v29 }
 0x4b9   :  { %v1886_v50 = vsel %vm236_vm0, %v1851_v27, 0.0  ;;  %v6769_v11 = vsub.f32 %v6622_v45, %v6654_v36  ;;  %v1854_v37 = vmul.f32 %v6755_v44, %v6755_v44  ;;  %v1888_v40 = vsel %vm236_vm0, %v1852_v34, 0.0 }
 0x4ba   :  { %v1873_v49 = vadd.f32 %v1872_v5, %v1871_v2  ;;  %v6776_v43 = vsub.f32 %v6627_v62, %v6654_v36  ;;  %v1855_v42 = vmul.f32 %v6762_v31, %v6762_v31  ;;  %v1890_v47 = vsel %vm236_vm0, %v1853_v52, 0.0  ;;  %v2224_v52 = vld [vmem:[#allocation23 + $0x38] sm:$0xff] }
 0x4bb   :  { %v6783_v45 = vsub.f32 %v6631_v46, %v6654_v36  ;;  %v1856_v59 = vmul.f32 %v6769_v11, %v6769_v11  ;;  %v1892_v32 = vsel %vm236_vm0, %v1854_v37, 0.0  ;;  %v6790_v62 = vsub.f32 %v6635_v57, %v6654_v36  ;;  %2237 = vmatpush.msra.mxu0 %v2224_v52 }
 0x4bc   :  { %v1875_v14 = vadd.f32 %v1874_v60, %v1873_v49  ;;  %v1857_v54 = vmul.f32 %v6776_v43, %v6776_v43  ;;  %v1894_v61 = vsel %vm236_vm0, %v1855_v42, 0.0  ;;  %v6797_v46 = vsub.f32 %v6639_v13, %v6654_v36 }
 0x4bd   :  { %v1858_v2 = vmul.f32 %v6783_v45, %v6783_v45  ;;  %v1896_v3 = vsel %vm236_vm0, %v1856_v59, 0.0  ;;  %v6804_v57 = vsub.f32 %v6644_v16, %v6654_v36  ;;  %v1859_v49 = vmul.f32 %v6790_v62, %v6790_v62  ;;  %v6827_v59 = vld [vmem:[%s10853_s11] ss:$0 sm:$0xff] }
 0x4be   :  { %v1877_v17 = vadd.f32 %v1876_v9, %v1875_v14  ;;  %v1898_v6 = vsel %vm236_vm0, %v1857_v54, 0.0  ;;  %v6811_v13 = vsub.f32 %v6650_v23, %v6654_v36  ;;  %v1860_v14 = vmul.f32 %v6797_v46, %v6797_v46  ;;  %v6836_v54 = vld [vmem:[%s10854_s12] ss:$0 sm:$0xff] }
 0x4bf   :  { %v1900_v12 = vsel %vm236_vm0, %v1858_v2, 0.0  ;;  %v1861_v16 = vmul.f32 %v6804_v57, %v6804_v57 }
 0x4c0   :  { %v1879_v21 = vadd.f32 %v1878_v15, %v1877_v17  ;;  %v1902_v17 = vsel %vm236_vm0, %v1859_v49, 0.0  ;;  %v1862_v15 = vmul.f32 %v6811_v13, %v6811_v13 }
 0x4c1   :  { %v1906_v23 = vsel %vm236_vm0, %v1861_v16, 0.0 }
 0x4c2   :  { %v1881_v25 = vadd.f32 %v1880_v20, %v1879_v21  ;;  %v1904_v21 = vsel %vm236_vm0, %v1860_v14, 0.0  ;;  %v1908_v20 = vsel %vm236_vm0, %v1862_v15, 0.0 }
 0x4c4   :  { %v1883_v22 = vadd.f32 %v1882_v28, %v1881_v25 }
 0x4c6   :  { %v1885_v26 = vadd.f32 %v1884_v35, %v1883_v22 }
 0x4c8   :  { %v1887_v38 = vadd.f32 %v1886_v50, %v1885_v26 }
 0x4ca   :  { %v1889_v58 = vadd.f32 %v1888_v40, %v1887_v38 }
 0x4cc   :  { %v1891_v33 = vadd.f32 %v1890_v47, %v1889_v58 }
 0x4ce   :  { %v1893_v56 = vadd.f32 %v1892_v32, %v1891_v33 }
 0x4d0   :  { %v1895_v0 = vadd.f32 %v1894_v61, %v1893_v56 }
 0x4d2   :  { %v1897_v5 = vadd.f32 %v1896_v3, %v1895_v0 }
 0x4d4   :  { %v1899_v60 = vadd.f32 %v1898_v6, %v1897_v5 }
 0x4d6   :  { %v1901_v9 = vadd.f32 %v1900_v12, %v1899_v60 }
 0x4d8   :  { %v1903_v18 = vadd.f32 %v1902_v17, %v1901_v9 }
 0x4da   :  { %v1905_v24 = vadd.f32 %v1904_v21, %v1903_v18 }
 0x4dc   :  { %v1907_v36 = vadd.f32 %v1906_v23, %v1905_v24 }
 0x4de   :  { %v1909_v25 = vadd.f32 %v1908_v20, %v1907_v36 }
 0x4e0   :  { %v1910_v27 = vrot.slane %v1909_v25, 4 }
 0x4e2   :  { %v1911_v28 = vadd.f32 %v1910_v27, %v1909_v25 }
 0x4e4   :  { %v1912_v22 = vrot.slane %v1911_v28, 2 }
 0x4e6   :  { %v1913_v34 = vadd.f32 %v1912_v22, %v1911_v28 }
 0x4e8   :  { %v1914_v35 = vrot.slane %v1913_v34, 1 }
 0x4ea   :  { %v1915_v26 = vadd.f32 %v1914_v35, %v1913_v34 }
 0x4ec   :  { %v1916_v50 = vmul.f32 0.0052083335, %v1915_v26 }
 0x4ee   :  { %v1917_v38 = vadd.f32 1e-05, %v1916_v50 }
 0x4f0   :  { %5653 = vrsqrt.f32 %v1917_v38  ;;  %vm1924_vm15 = vweird.f32 %v1917_v38 }
 0x4f6   :  { %v5654_v37 = vpop.eup %5653 }
 0x4f7   :  { %v1919_v40 = vmul.f32 %v5654_v37, %v1917_v38  ;;  %vm1925_vm14 = vweird.f32 %v5654_v37 }
 0x4f8   :  { %vm1926_vm1 = vmor %vm1924_vm15, %vm1925_vm14 }
 0x4f9   :  { %v1920_v58 = vmul.f32 %v5654_v37, %v1919_v40 }
 0x4fb   :  { %v1921_v42 = vmul.f32 0.5, %v1920_v58 }
 0x4fd   :  { %v1922_v47 = vsub.f32 1.5, %v1921_v42 }
 0x4ff   :  { %v1923_v33 = vmul.f32 %v5654_v37, %v1922_v47 }
 0x501   :  { %v6829_v32 = vsel %vm1926_vm1, %v5654_v37, %v1923_v33 }
 0x502   :  { %v1928_v56 = vmul.f32 %v6829_v32, %v6658_v41  ;;  %v1929_v61 = vmul.f32 %v6829_v32, %v6662_v10  ;;  %v1930_v3 = vmul.f32 %v6829_v32, %v6666_v39  ;;  %v1936_v10 = vmul.f32 %v6829_v32, %v6706_v63 }
 0x503   :  { %v1937_v39 = vmul.f32 %v6829_v32, %v6713_v1  ;;  %v1938_v60 = vmul.f32 %v6829_v32, %v6720_v4  ;;  %v1939_v14 = vmul.f32 %v6829_v32, %v6727_v7  ;;  %v1940_v12 = vmul.f32 %v6829_v32, %v6734_v8 }
 0x504   :  { %v1955_v0 = vmul.f32 %v6827_v59, %v1928_v56  ;;  %v1956_v2 = vmul.f32 %v6827_v59, %v1929_v61  ;;  %v1957_v6 = vmul.f32 %v6827_v59, %v1930_v3  ;;  %v1941_v9 = vmul.f32 %v6829_v32, %v6741_v19 }
 0x505   :  { %v1942_v63 = vmul.f32 %v6829_v32, %v6748_v29  ;;  %v1963_v1 = vmul.f32 %v6827_v59, %v1936_v10  ;;  %v1964_v16 = vmul.f32 %v6827_v59, %v1937_v39  ;;  %v1965_v4 = vmul.f32 %v6827_v59, %v1938_v60 }
 0x506   :  { %v1982_v5 = vadd.f32 %v6836_v54, %v1955_v0  ;;  %v1983_v41 = vadd.f32 %v6836_v54, %v1956_v2  ;;  %v1943_v17 = vmul.f32 %v6829_v32, %v6755_v44  ;;  %v1966_v7 = vmul.f32 %v6827_v59, %v1939_v14 }
 0x507   :  { %v1967_v18 = vmul.f32 %v6827_v59, %v1940_v12  ;;  %v1968_v8 = vmul.f32 %v6827_v59, %v1941_v9  ;;  %v1969_v19 = vmul.f32 %v6827_v59, %v1942_v63  ;;  %v6879_v15 = vadd.f32 %v6836_v54, %v1963_v1 }
 0x508   :  { %v6845_v49 = vmax.f32 %v1982_v5, 0.0  ;;  %v6882_v29 = vadd.f32 %v6836_v54, %v1964_v16  ;;  %v6885_v21 = vadd.f32 %v6836_v54, %v1965_v4  ;;  %v1970_v24 = vmul.f32 %v6827_v59, %v1943_v17  ;;  %v2223_v5 = vld [vmem:[#allocation23 + $0x30] sm:$0xff] }
 0x509   :  { %v6889_v44 = vadd.f32 %v6836_v54, %v1966_v7  ;;  %v6892_v23 = vadd.f32 %v6836_v54, %v1967_v18  ;;  %v6895_v36 = vadd.f32 %v6836_v54, %v1968_v8  ;;  %v6898_v20 = vadd.f32 %v6836_v54, %v1969_v19  ;;  %2238 = vmatpush.msra.mxu0 %v2223_v5 }
 0x50a   :  { %5422 = vmatmul.msk.f32.vlgmr.msrb.gmra.mxu0 %vm236_vm0, %v6845_v49  ;;  %5470 = vmatmul.msk.f32.vlgmr.msrb.gmra.mxu1 %vm236_vm0, %v6845_v49  ;;  %v6900_v25 = vmax.f32 %v1983_v41, 0.0  ;;  %v6903_v27 = vadd.f32 %v6836_v54, %v1970_v24  ;;  %v1984_v28 = vadd.f32 %v6836_v54, %v1957_v6  ;;  %v1931_v22 = vmul.f32 %v6829_v32, %v6670_v51  ;;  %v2221_v24 = vld [vmem:[#allocation23 + $0x20] sm:$0xff] }
 0x50b   :  { %5494 = vmatmul.msk.f32.vlgmr.msra.gmra.mxu2 %vm236_vm0, %v6845_v49  ;;  %v1944_v34 = vmul.f32 %v6829_v32, %v6762_v31  ;;  %v1945_v35 = vmul.f32 %v6829_v32, %v6769_v11  ;;  %v1946_v26 = vmul.f32 %v6829_v32, %v6776_v43  ;;  %v1947_v51 = vmul.f32 %v6829_v32, %v6783_v45 }
 0x50c   :  { %v1948_v52 = vmul.f32 %v6829_v32, %v6790_v62  ;;  %v1949_v50 = vmul.f32 %v6829_v32, %v6797_v46  ;;  %v1950_v31 = vmul.f32 %v6829_v32, %v6804_v57  ;;  %v1951_v37 = vmul.f32 %v6829_v32, %v6811_v13 }
 0x50d   :  { %v1971_v11 = vmul.f32 %v6827_v59, %v1944_v34  ;;  %v1972_v38 = vmul.f32 %v6827_v59, %v1945_v35  ;;  %v1973_v43 = vmul.f32 %v6827_v59, %v1946_v26  ;;  %v1974_v45 = vmul.f32 %v6827_v59, %v1947_v51 }
 0x50e   :  { %v1975_v40 = vmul.f32 %v6827_v59, %v1948_v52  ;;  %v1976_v62 = vmul.f32 %v6827_v59, %v1949_v50  ;;  %v1977_v46 = vmul.f32 %v6827_v59, %v1950_v31  ;;  %v1978_v47 = vmul.f32 %v6827_v59, %v1951_v37 }
 0x50f   :  { %v6938_v58 = vadd.f32 %v6836_v54, %v1971_v11  ;;  %v6941_v57 = vadd.f32 %v6836_v54, %v1972_v38  ;;  %v6944_v42 = vadd.f32 %v6836_v54, %v1973_v43  ;;  %v6948_v13 = vadd.f32 %v6836_v54, %v1974_v45 }
 0x510   :  { %v6951_v33 = vadd.f32 %v6836_v54, %v1975_v40  ;;  %v6954_v56 = vadd.f32 %v6836_v54, %v1976_v62  ;;  %v6957_v61 = vadd.f32 %v6836_v54, %v1977_v46  ;;  %v6959_v0 = vmax.f32 %v1984_v28, 0.0 }
 0x511   :  { %v1958_v2 = vmul.f32 %v6827_v59, %v1931_v22  ;;  %v6963_v3 = vadd.f32 %v6836_v54, %v1978_v47  ;;  %v1932_v6 = vmul.f32 %v6829_v32, %v6678_v55  ;;  %v1933_v14 = vmul.f32 %v6829_v32, %v6684_v30 }
 0x512   :  { %5423 = vmatmul.msk.f32.gmra.mxu0 %vm236_vm0, %v6900_v25  ;;  %5471 = vmatmul.msk.f32.gmra.mxu1 %vm236_vm0, %v6900_v25  ;;  %v1934_v63 = vmul.f32 %v6829_v32, %v6692_v48  ;;  %v1935_v4 = vmul.f32 %v6829_v32, %v6699_v53  ;;  %v7029_v53 = vmax.f32 %v6879_v15, 0.0  ;;  %v7038_v32 = vmax.f32 %v6882_v29, 0.0 }
 0x513   :  { %5495 = vmatmul.msk.f32.gmra.mxu2 %vm236_vm0, %v6900_v25  ;;  %v1985_v41 = vadd.f32 %v6836_v54, %v1958_v2  ;;  %v1959_v39 = vmul.f32 %v6827_v59, %v1932_v6  ;;  %v1960_v55 = vmul.f32 %v6827_v59, %v1933_v14  ;;  %v7056_v8 = vmax.f32 %v6889_v44, 0.0 }
 0x514   :  { %v1961_v30 = vmul.f32 %v6827_v59, %v1934_v63  ;;  %v1962_v48 = vmul.f32 %v6827_v59, %v1935_v4  ;;  %v2222_v59 = vld [vmem:[#allocation23 + $0x28] sm:$0xff]  ;;  %v7065_v19 = vmax.f32 %v6892_v23, 0.0  ;;  %v7074_v15 = vmax.f32 %v6895_v36, 0.0 }
 0x515   :  { %v6974_v10 = vmax.f32 %v1985_v41, 0.0  ;;  %v1986_v60 = vadd.f32 %v6836_v54, %v1959_v39  ;;  %v1987_v9 = vadd.f32 %v6836_v54, %v1960_v55  ;;  %2239 = vmatpush.msra.mxu0 %v2222_v59  ;;  %v7083_v29 = vmax.f32 %v6898_v20, 0.0 }
 0x516   :  { %v1988_v16 = vadd.f32 %v6836_v54, %v1961_v30  ;;  %v1989_v7 = vadd.f32 %v6836_v54, %v1962_v48  ;;  %v7047_v54 = vmax.f32 %v6885_v21, 0.0  ;;  %v7092_v21 = vmax.f32 %v6903_v27, 0.0 }
 0x517   :  { %v6986_v12 = vmax.f32 %v1986_v60, 0.0  ;;  %v6998_v1 = vmax.f32 %v1987_v9, 0.0  ;;  %2240 = vmatpush.msra.mxu0 %v2221_v24  ;;  %v7102_v36 = vmax.f32 %v6938_v58, 0.0  ;;  %v7114_v22 = vmax.f32 %v6941_v57, 0.0 }
 0x518   :  { %v7010_v17 = vmax.f32 %v1988_v16, 0.0  ;;  %v7020_v18 = vmax.f32 %v1989_v7, 0.0  ;;  %v7126_v51 = vmax.f32 %v6944_v42, 0.0  ;;  %v7138_v11 = vmax.f32 %v6948_v13, 0.0 }
 0x519   :  { %v7150_v45 = vmax.f32 %v6951_v33, 0.0  ;;  %v7162_v58 = vmax.f32 %v6954_v56, 0.0  ;;  %v7174_v13 = vmax.f32 %v6957_v61, 0.0  ;;  %v7186_v61 = vmax.f32 %v6963_v3, 0.0 }
 0x51a   :  { %5424 = vmatmul.msk.f32.gmra.mxu0 %vm236_vm0, %v6959_v0  ;;  %5472 = vmatmul.msk.f32.gmra.mxu1 %vm236_vm0, %v6959_v0 }
 0x51b   :  { %5496 = vmatmul.msk.f32.gmra.mxu2 %vm236_vm0, %v6959_v0 }
 0x522   :  { %5425 = vmatmul.msk.f32.gmra.mxu0 %vm236_vm0, %v6974_v10  ;;  %5473 = vmatmul.msk.f32.gmra.mxu1 %vm236_vm0, %v6974_v10 }
 0x523   :  { %5497 = vmatmul.msk.f32.gmra.mxu2 %vm236_vm0, %v6974_v10 }
 0x52a   :  { %5426 = vmatmul.msk.f32.gmra.mxu0 %vm236_vm0, %v6986_v12  ;;  %5474 = vmatmul.msk.f32.gmra.mxu1 %vm236_vm0, %v6986_v12 }
 0x52b   :  { %5498 = vmatmul.msk.f32.gmra.mxu2 %vm236_vm0, %v6986_v12 }
 0x532   :  { %5427 = vmatmul.msk.f32.gmra.mxu0 %vm236_vm0, %v6998_v1  ;;  %5475 = vmatmul.msk.f32.gmra.mxu1 %vm236_vm0, %v6998_v1 }
 0x533   :  { %5499 = vmatmul.msk.f32.gmra.mxu2 %vm236_vm0, %v6998_v1 }
 0x53a   :  { %5428 = vmatmul.msk.f32.gmra.mxu0 %vm236_vm0, %v7010_v17  ;;  %5476 = vmatmul.msk.f32.gmra.mxu1 %vm236_vm0, %v7010_v17 }
 0x53b   :  { %5500 = vmatmul.msk.f32.gmra.mxu2 %vm236_vm0, %v7010_v17 }
 0x542   :  { %5429 = vmatmul.msk.f32.gmra.mxu0 %vm236_vm0, %v7020_v18  ;;  %5477 = vmatmul.msk.f32.gmra.mxu1 %vm236_vm0, %v7020_v18 }
 0x543   :  { %5501 = vmatmul.msk.f32.gmra.mxu2 %vm236_vm0, %v7020_v18 }
 0x54a   :  { %5430 = vmatmul.msk.f32.gmra.mxu0 %vm236_vm0, %v7029_v53  ;;  %5478 = vmatmul.msk.f32.gmra.mxu1 %vm236_vm0, %v7029_v53 }
 0x54b   :  { %5502 = vmatmul.msk.f32.gmra.mxu2 %vm236_vm0, %v7029_v53 }
 0x552   :  { %5431 = vmatmul.msk.f32.gmra.mxu0 %vm236_vm0, %v7038_v32  ;;  %5479 = vmatmul.msk.f32.gmra.mxu1 %vm236_vm0, %v7038_v32 }
 0x553   :  { %5503 = vmatmul.msk.f32.gmra.mxu2 %vm236_vm0, %v7038_v32 }
 0x55a   :  { %5432 = vmatmul.msk.f32.gmra.mxu0 %vm236_vm0, %v7047_v54  ;;  %5480 = vmatmul.msk.f32.gmra.mxu1 %vm236_vm0, %v7047_v54 }
 0x55b   :  { %5504 = vmatmul.msk.f32.gmra.mxu2 %vm236_vm0, %v7047_v54 }
 0x562   :  { %5433 = vmatmul.msk.f32.gmra.mxu0 %vm236_vm0, %v7056_v8  ;;  %5481 = vmatmul.msk.f32.gmra.mxu1 %vm236_vm0, %v7056_v8 }
 0x563   :  { %5505 = vmatmul.msk.f32.gmra.mxu2 %vm236_vm0, %v7056_v8 }
 0x56a   :  { %5434 = vmatmul.msk.f32.gmra.mxu0 %vm236_vm0, %v7065_v19  ;;  %5482 = vmatmul.msk.f32.gmra.mxu1 %vm236_vm0, %v7065_v19 }
 0x56b   :  { %5506 = vmatmul.msk.f32.gmra.mxu2 %vm236_vm0, %v7065_v19 }
 0x572   :  { %5435 = vmatmul.msk.f32.gmra.mxu0 %vm236_vm0, %v7074_v15  ;;  %5483 = vmatmul.msk.f32.gmra.mxu1 %vm236_vm0, %v7074_v15 }
 0x573   :  { %5507 = vmatmul.msk.f32.gmra.mxu2 %vm236_vm0, %v7074_v15 }
 0x57a   :  { %5436 = vmatmul.msk.f32.gmra.mxu0 %vm236_vm0, %v7083_v29  ;;  %5484 = vmatmul.msk.f32.gmra.mxu1 %vm236_vm0, %v7083_v29 }
 0x57b   :  { %5508 = vmatmul.msk.f32.gmra.mxu2 %vm236_vm0, %v7083_v29 }
 0x582   :  { %5437 = vmatmul.msk.f32.gmra.mxu0 %vm236_vm0, %v7092_v21  ;;  %5485 = vmatmul.msk.f32.gmra.mxu1 %vm236_vm0, %v7092_v21 }
 0x583   :  { %5509 = vmatmul.msk.f32.gmra.mxu2 %vm236_vm0, %v7092_v21 }
 0x587   :  { %v2123_v44 = vpop.f32.mrf.mxu0  ;;  %v2360_v23 = vpop.f32.mrf.mxu1 }
 0x588   :  { %2196 = vst.msk [vmem:[#allocation6] sm:$0xff] %vm2195_vm2, %v2123_v44 }
 0x589   :  { %2432 = vst.msk [vmem:[#allocation6 + $0x180] sm:$0xff] %vm2195_vm2, %v2360_v23 }
 0x58a   :  { %5438 = vmatmul.msk.f32.gmra.mxu0 %vm236_vm0, %v7102_v36  ;;  %5486 = vmatmul.msk.f32.gmra.mxu1 %vm236_vm0, %v7102_v36 }
 0x58b   :  { %5510 = vmatmul.msk.f32.gmra.mxu2 %vm236_vm0, %v7102_v36 }
 0x58e   :  { %v2478_v20 = vpop.f32.mrf.mxu2 }
 0x58f   :  { %2550 = vst.msk [vmem:[#allocation6 + $0x240] sm:$0xff] %vm2195_vm2, %v2478_v20  ;;  %v2126_v27 = vpop.f32.mrf.mxu0  ;;  %v2363_v28 = vpop.f32.mrf.mxu1 }
 0x590   :  { %2197 = vst.msk [vmem:[#allocation6 + $0x8] sm:$0xff] %vm2195_vm2, %v2126_v27 }
 0x591   :  { %2433 = vst.msk [vmem:[#allocation6 + $0x188] sm:$0xff] %vm2195_vm2, %v2363_v28 }
 0x592   :  { %5439 = vmatmul.msk.f32.gmra.mxu0 %vm236_vm0, %v7114_v22  ;;  %5487 = vmatmul.msk.f32.gmra.mxu1 %vm236_vm0, %v7114_v22 }
 0x593   :  { %5511 = vmatmul.msk.f32.gmra.mxu2 %vm236_vm0, %v7114_v22 }
 0x596   :  { %v2481_v34 = vpop.f32.mrf.mxu2 }
 0x597   :  { %2551 = vst.msk [vmem:[#allocation6 + $0x248] sm:$0xff] %vm2195_vm2, %v2481_v34  ;;  %v2129_v35 = vpop.f32.mrf.mxu0  ;;  %v2366_v26 = vpop.f32.mrf.mxu1 }
 0x598   :  { %2198 = vst.msk [vmem:[#allocation6 + $0x10] sm:$0xff] %vm2195_vm2, %v2129_v35 }
 0x599   :  { %2434 = vst.msk [vmem:[#allocation6 + $0x190] sm:$0xff] %vm2195_vm2, %v2366_v26 }
 0x59a   :  { %5440 = vmatmul.msk.f32.gmra.mxu0 %vm236_vm0, %v7126_v51  ;;  %5488 = vmatmul.msk.f32.gmra.mxu1 %vm236_vm0, %v7126_v51 }
 0x59b   :  { %5512 = vmatmul.msk.f32.gmra.mxu2 %vm236_vm0, %v7126_v51 }
 0x59e   :  { %v2484_v52 = vpop.f32.mrf.mxu2 }
 0x59f   :  { %2552 = vst.msk [vmem:[#allocation6 + $0x250] sm:$0xff] %vm2195_vm2, %v2484_v52  ;;  %v2132_v50 = vpop.f32.mrf.mxu0  ;;  %v2369_v31 = vpop.f32.mrf.mxu1 }
 0x5a0   :  { %2199 = vst.msk [vmem:[#allocation6 + $0x18] sm:$0xff] %vm2195_vm2, %v2132_v50 }
 0x5a1   :  { %2435 = vst.msk [vmem:[#allocation6 + $0x198] sm:$0xff] %vm2195_vm2, %v2369_v31 }
 0x5a2   :  { %5441 = vmatmul.msk.f32.gmra.mxu0 %vm236_vm0, %v7138_v11  ;;  %5489 = vmatmul.msk.f32.gmra.mxu1 %vm236_vm0, %v7138_v11 }
 0x5a3   :  { %5513 = vmatmul.msk.f32.gmra.mxu2 %vm236_vm0, %v7138_v11 }
 0x5a6   :  { %v2487_v38 = vpop.f32.mrf.mxu2 }
 0x5a7   :  { %2553 = vst.msk [vmem:[#allocation6 + $0x258] sm:$0xff] %vm2195_vm2, %v2487_v38  ;;  %v2135_v43 = vpop.f32.mrf.mxu0  ;;  %v2372_v37 = vpop.f32.mrf.mxu1 }
 0x5a8   :  { %2200 = vst.msk [vmem:[#allocation6 + $0x20] sm:$0xff] %vm2195_vm2, %v2135_v43 }
 0x5a9   :  { %2436 = vst.msk [vmem:[#allocation6 + $0x1a0] sm:$0xff] %vm2195_vm2, %v2372_v37 }
 0x5aa   :  { %5442 = vmatmul.msk.f32.gmra.mxu0 %vm236_vm0, %v7150_v45  ;;  %5490 = vmatmul.msk.f32.gmra.mxu1 %vm236_vm0, %v7150_v45 }
 0x5ab   :  { %5514 = vmatmul.msk.f32.gmra.mxu2 %vm236_vm0, %v7150_v45 }
 0x5ae   :  { %v2490_v40 = vpop.f32.mrf.mxu2 }
 0x5af   :  { %2554 = vst.msk [vmem:[#allocation6 + $0x260] sm:$0xff] %vm2195_vm2, %v2490_v40  ;;  %v2138_v62 = vpop.f32.mrf.mxu0  ;;  %v2375_v46 = vpop.f32.mrf.mxu1 }
 0x5b0   :  { %2201 = vst.msk [vmem:[#allocation6 + $0x28] sm:$0xff] %vm2195_vm2, %v2138_v62 }
 0x5b1   :  { %2437 = vst.msk [vmem:[#allocation6 + $0x1a8] sm:$0xff] %vm2195_vm2, %v2375_v46 }
 0x5b2   :  { %5443 = vmatmul.msk.f32.gmra.mxu0 %vm236_vm0, %v7162_v58  ;;  %5491 = vmatmul.msk.f32.gmra.mxu1 %vm236_vm0, %v7162_v58 }
 0x5b3   :  { %5515 = vmatmul.msk.f32.gmra.mxu2 %vm236_vm0, %v7162_v58 }
 0x5b6   :  { %v2493_v57 = vpop.f32.mrf.mxu2 }
 0x5b7   :  { %2555 = vst.msk [vmem:[#allocation6 + $0x268] sm:$0xff] %vm2195_vm2, %v2493_v57  ;;  %v2141_v42 = vpop.f32.mrf.mxu0  ;;  %v2378_v47 = vpop.f32.mrf.mxu1 }
 0x5b8   :  { %2202 = vst.msk [vmem:[#allocation6 + $0x30] sm:$0xff] %vm2195_vm2, %v2141_v42 }
 0x5b9   :  { %2438 = vst.msk [vmem:[#allocation6 + $0x1b0] sm:$0xff] %vm2195_vm2, %v2378_v47 }
 0x5ba   :  { %5444 = vmatmul.msk.f32.gmra.mxu0 %vm236_vm0, %v7174_v13  ;;  %5492 = vmatmul.msk.f32.gmra.mxu1 %vm236_vm0, %v7174_v13 }
 0x5bb   :  { %5516 = vmatmul.msk.f32.gmra.mxu2 %vm236_vm0, %v7174_v13 }
 0x5be   :  { %v2496_v33 = vpop.f32.mrf.mxu2 }
 0x5bf   :  { %2556 = vst.msk [vmem:[#allocation6 + $0x270] sm:$0xff] %vm2195_vm2, %v2496_v33  ;;  %v2144_v56 = vpop.f32.mrf.mxu0  ;;  %v2381_v2 = vpop.f32.mrf.mxu1 }
 0x5c0   :  { %2203 = vst.msk [vmem:[#allocation6 + $0x38] sm:$0xff] %vm2195_vm2, %v2144_v56 }
 0x5c1   :  { %2439 = vst.msk [vmem:[#allocation6 + $0x1b8] sm:$0xff] %vm2195_vm2, %v2381_v2 }
 0x5c2   :  { %5445 = vmatmul.msk.f32.gmra.mxu0 %vm236_vm0, %v7186_v61  ;;  %5493 = vmatmul.msk.f32.gmra.mxu1 %vm236_vm0, %v7186_v61 }
 0x5c3   :  { %5517 = vmatmul.msk.f32.gmra.mxu2 %vm236_vm0, %v7186_v61 }
 0x5c6   :  { %v2499_v5 = vpop.f32.mrf.mxu2 }
 0x5c7   :  { %2557 = vst.msk [vmem:[#allocation6 + $0x278] sm:$0xff] %vm2195_vm2, %v2499_v5  ;;  %v2147_v41 = vpop.f32.mrf.mxu0  ;;  %v2384_v6 = vpop.f32.mrf.mxu1  ;;  %v7307_v5 = vld [vmem:[#allocation6] sm:$0xff] }
 0x5c8   :  { %2204 = vst.msk [vmem:[#allocation6 + $0x40] sm:$0xff] %vm2195_vm2, %v2147_v41 }
 0x5c9   :  { %2440 = vst.msk [vmem:[#allocation6 + $0x1c0] sm:$0xff] %vm2195_vm2, %v2384_v6  ;;  %v7313_v6 = vld [vmem:[#allocation6 + $0x18] sm:$0xff] }
 0x5ca   :  { %5446 = vmatmul.msk.f32.vlgmr.msra.gmra.mxu0 %vm236_vm0, %v6845_v49 }
 0x5ce   :  { %v2502_v3 = vpop.f32.mrf.mxu2 }
 0x5cf   :  { %2558 = vst.msk [vmem:[#allocation6 + $0x280] sm:$0xff] %vm2195_vm2, %v2502_v3  ;;  %v2150_v39 = vpop.f32.mrf.mxu0  ;;  %v2387_v60 = vpop.f32.mrf.mxu1  ;;  %v2672_v3 = vsel %vm2195_vm2, %v7307_v5, 0.0 }
 0x5d0   :  { %2205 = vst.msk [vmem:[#allocation6 + $0x48] sm:$0xff] %vm2195_vm2, %v2150_v39 }
 0x5d1   :  { %2441 = vst.msk [vmem:[#allocation6 + $0x1c8] sm:$0xff] %vm2195_vm2, %v2387_v60  ;;  %v7319_v60 = vld [vmem:[#allocation6 + $0x20] sm:$0xff] }
 0x5d2   :  { %5447 = vmatmul.msk.f32.gmra.mxu0 %vm236_vm0, %v6900_v25 }
 0x5d6   :  { %v2505_v14 = vpop.f32.mrf.mxu2 }
 0x5d7   :  { %2559 = vst.msk [vmem:[#allocation6 + $0x288] sm:$0xff] %vm2195_vm2, %v2505_v14  ;;  %v2153_v55 = vpop.f32.mrf.mxu0  ;;  %v2390_v9 = vpop.f32.mrf.mxu1 }
 0x5d8   :  { %2206 = vst.msk [vmem:[#allocation6 + $0x50] sm:$0xff] %vm2195_vm2, %v2153_v55  ;;  %v2677_v55 = vsel %vm2195_vm2, %v7313_v6, 0.0 }
 0x5d9   :  { %2442 = vst.msk [vmem:[#allocation6 + $0x1d0] sm:$0xff] %vm2195_vm2, %v2390_v9  ;;  %v7323_v9 = vld [vmem:[#allocation6 + $0x28] sm:$0xff] }
 0x5da   :  { %5448 = vmatmul.msk.f32.gmra.mxu0 %vm236_vm0, %v6959_v0 }
 0x5de   :  { %v2508_v49 = vpop.f32.mrf.mxu2 }
 0x5df   :  { %2560 = vst.msk [vmem:[#allocation6 + $0x290] sm:$0xff] %vm2195_vm2, %v2508_v49  ;;  %v2156_v63 = vpop.f32.mrf.mxu0  ;;  %v2393_v30 = vpop.f32.mrf.mxu1 }
 0x5e0   :  { %2207 = vst.msk [vmem:[#allocation6 + $0x58] sm:$0xff] %vm2195_vm2, %v2156_v63 }
 0x5e1   :  { %2443 = vst.msk [vmem:[#allocation6 + $0x1d8] sm:$0xff] %vm2195_vm2, %v2393_v30  ;;  %v2679_v30 = vsel %vm2195_vm2, %v7319_v60, 0.0 }
 0x5e2   :  { %5449 = vmatmul.msk.f32.gmra.mxu0 %vm236_vm0, %v6974_v10 }
 0x5e6   :  { %v2511_v25 = vpop.f32.mrf.mxu2 }
 0x5e7   :  { %2561 = vst.msk [vmem:[#allocation6 + $0x298] sm:$0xff] %vm2195_vm2, %v2511_v25  ;;  %v2159_v16 = vpop.f32.mrf.mxu0  ;;  %v2396_v4 = vpop.f32.mrf.mxu1  ;;  %v7328_v25 = vld [vmem:[#allocation6 + $0x30] sm:$0xff] }
 0x5e8   :  { %2208 = vst.msk [vmem:[#allocation6 + $0x60] sm:$0xff] %vm2195_vm2, %v2159_v16 }
 0x5e9   :  { %2444 = vst.msk [vmem:[#allocation6 + $0x1e0] sm:$0xff] %vm2195_vm2, %v2396_v4  ;;  %v2681_v4 = vsel %vm2195_vm2, %v7323_v9, 0.0 }
 0x5ea   :  { %5450 = vmatmul.msk.f32.gmra.mxu0 %vm236_vm0, %v6986_v12 }
 0x5ee   :  { %v2514_v0 = vpop.f32.mrf.mxu2 }
 0x5ef   :  { %2562 = vst.msk [vmem:[#allocation6 + $0x2a0] sm:$0xff] %vm2195_vm2, %v2514_v0  ;;  %v2162_v48 = vpop.f32.mrf.mxu0  ;;  %v2399_v7 = vpop.f32.mrf.mxu1  ;;  %v7332_v0 = vld [vmem:[#allocation6 + $0x38] sm:$0xff] }
 0x5f0   :  { %2209 = vst.msk [vmem:[#allocation6 + $0x68] sm:$0xff] %vm2195_vm2, %v2162_v48 }
 0x5f1   :  { %2445 = vst.msk [vmem:[#allocation6 + $0x1e8] sm:$0xff] %vm2195_vm2, %v2399_v7  ;;  %v2683_v7 = vsel %vm2195_vm2, %v7328_v25, 0.0 }
 0x5f2   :  { %5451 = vmatmul.msk.f32.gmra.mxu0 %vm236_vm0, %v6998_v1 }
 0x5f6   :  { %v2517_v10 = vpop.f32.mrf.mxu2 }
 0x5f7   :  { %2563 = vst.msk [vmem:[#allocation6 + $0x2a8] sm:$0xff] %vm2195_vm2, %v2517_v10  ;;  %v2165_v59 = vpop.f32.mrf.mxu0  ;;  %v2402_v24 = vpop.f32.mrf.mxu1  ;;  %v7336_v10 = vld [vmem:[#allocation6 + $0x40] sm:$0xff] }
 0x5f8   :  { %2210 = vst.msk [vmem:[#allocation6 + $0x70] sm:$0xff] %vm2195_vm2, %v2165_v59 }
 0x5f9   :  { %2446 = vst.msk [vmem:[#allocation6 + $0x1f0] sm:$0xff] %vm2195_vm2, %v2402_v24  ;;  %v2685_v24 = vsel %vm2195_vm2, %v7332_v0, 0.0 }
 0x5fa   :  { %5452 = vmatmul.msk.f32.gmra.mxu0 %vm236_vm0, %v7010_v17 }
 0x5fe   :  { %v2520_v12 = vpop.f32.mrf.mxu2 }
 0x5ff   :  { %2564 = vst.msk [vmem:[#allocation6 + $0x2b0] sm:$0xff] %vm2195_vm2, %v2520_v12  ;;  %v2168_v44 = vpop.f32.mrf.mxu0  ;;  %v2405_v23 = vpop.f32.mrf.mxu1  ;;  %v7340_v12 = vld [vmem:[#allocation6 + $0x48] sm:$0xff] }
 0x600   :  { %2211 = vst.msk [vmem:[#allocation6 + $0x78] sm:$0xff] %vm2195_vm2, %v2168_v44 }
 0x601   :  { %2447 = vst.msk [vmem:[#allocation6 + $0x1f8] sm:$0xff] %vm2195_vm2, %v2405_v23 }
 0x602   :  { %5453 = vmatmul.msk.f32.gmra.mxu0 %vm236_vm0, %v7020_v18 }
 0x606   :  { %v2523_v1 = vpop.f32.mrf.mxu2 }
 0x607   :  { %2565 = vst.msk [vmem:[#allocation6 + $0x2b8] sm:$0xff] %vm2195_vm2, %v2523_v1  ;;  %v2171_v20 = vpop.f32.mrf.mxu0  ;;  %v2408_v27 = vpop.f32.mrf.mxu1  ;;  %v2687_v1 = vsel %vm2195_vm2, %v7336_v10, 0.0 }
 0x608   :  { %2212 = vst.msk [vmem:[#allocation6 + $0x80] sm:$0xff] %vm2195_vm2, %v2171_v20  ;;  %v7345_v20 = vld [vmem:[#allocation6 + $0x50] sm:$0xff] }
 0x609   :  { %2448 = vst.msk [vmem:[#allocation6 + $0x200] sm:$0xff] %vm2195_vm2, %v2408_v27 }
 0x60a   :  { %5454 = vmatmul.msk.f32.gmra.mxu0 %vm236_vm0, %v7029_v53 }
 0x60e   :  { %v2526_v17 = vpop.f32.mrf.mxu2 }
 0x60f   :  { %2566 = vst.msk [vmem:[#allocation6 + $0x2c0] sm:$0xff] %vm2195_vm2, %v2526_v17  ;;  %v2174_v28 = vpop.f32.mrf.mxu0  ;;  %v2411_v34 = vpop.f32.mrf.mxu1  ;;  %v2689_v17 = vsel %vm2195_vm2, %v7340_v12, 0.0 }
 0x610   :  { %2213 = vst.msk [vmem:[#allocation6 + $0x88] sm:$0xff] %vm2195_vm2, %v2174_v28  ;;  %v7349_v28 = vld [vmem:[#allocation6 + $0x58] sm:$0xff] }
 0x611   :  { %2449 = vst.msk [vmem:[#allocation6 + $0x208] sm:$0xff] %vm2195_vm2, %v2411_v34 }
 0x612   :  { %5455 = vmatmul.msk.f32.gmra.mxu0 %vm236_vm0, %v7038_v32 }
 0x616   :  { %v2529_v18 = vpop.f32.mrf.mxu2 }
 0x617   :  { %2567 = vst.msk [vmem:[#allocation6 + $0x2c8] sm:$0xff] %vm2195_vm2, %v2529_v18  ;;  %v2177_v35 = vpop.f32.mrf.mxu0  ;;  %v2414_v26 = vpop.f32.mrf.mxu1  ;;  %v2691_v18 = vsel %vm2195_vm2, %v7345_v20, 0.0 }
 0x618   :  { %2214 = vst.msk [vmem:[#allocation6 + $0x90] sm:$0xff] %vm2195_vm2, %v2177_v35  ;;  %v7353_v35 = vld [vmem:[#allocation6 + $0x60] sm:$0xff] }
 0x619   :  { %2450 = vst.msk [vmem:[#allocation6 + $0x210] sm:$0xff] %vm2195_vm2, %v2414_v26 }
 0x61a   :  { %5456 = vmatmul.msk.f32.gmra.mxu0 %vm236_vm0, %v7047_v54 }
 0x61e   :  { %v2532_v53 = vpop.f32.mrf.mxu2 }
 0x61f   :  { %2568 = vst.msk [vmem:[#allocation6 + $0x2d0] sm:$0xff] %vm2195_vm2, %v2532_v53  ;;  %v2180_v52 = vpop.f32.mrf.mxu0  ;;  %v2417_v50 = vpop.f32.mrf.mxu1  ;;  %v2693_v53 = vsel %vm2195_vm2, %v7349_v28, 0.0 }
 0x620   :  { %2215 = vst.msk [vmem:[#allocation6 + $0x98] sm:$0xff] %vm2195_vm2, %v2180_v52  ;;  %v7357_v52 = vld [vmem:[#allocation6 + $0x68] sm:$0xff] }
 0x621   :  { %2451 = vst.msk [vmem:[#allocation6 + $0x218] sm:$0xff] %vm2195_vm2, %v2417_v50 }
 0x622   :  { %5457 = vmatmul.msk.f32.gmra.mxu0 %vm236_vm0, %v7056_v8 }
 0x626   :  { %v2535_v32 = vpop.f32.mrf.mxu2 }
 0x627   :  { %2569 = vst.msk [vmem:[#allocation6 + $0x2d8] sm:$0xff] %vm2195_vm2, %v2535_v32  ;;  %v2183_v31 = vpop.f32.mrf.mxu0  ;;  %v2420_v38 = vpop.f32.mrf.mxu1 }
 0x628   :  { %2216 = vst.msk [vmem:[#allocation6 + $0xa0] sm:$0xff] %vm2195_vm2, %v2183_v31  ;;  %v2695_v31 = vsel %vm2195_vm2, %v7353_v35, 0.0 }
 0x629   :  { %2452 = vst.msk [vmem:[#allocation6 + $0x220] sm:$0xff] %vm2195_vm2, %v2420_v38  ;;  %v7362_v38 = vld [vmem:[#allocation6 + $0x70] sm:$0xff] }
 0x62a   :  { %5458 = vmatmul.msk.f32.gmra.mxu0 %vm236_vm0, %v7065_v19 }
 0x62e   :  { %v2538_v54 = vpop.f32.mrf.mxu2 }
 0x62f   :  { %2570 = vst.msk [vmem:[#allocation6 + $0x2e0] sm:$0xff] %vm2195_vm2, %v2538_v54  ;;  %v2186_v43 = vpop.f32.mrf.mxu0  ;;  %v2423_v37 = vpop.f32.mrf.mxu1 }
 0x630   :  { %2217 = vst.msk [vmem:[#allocation6 + $0xa8] sm:$0xff] %vm2195_vm2, %v2186_v43  ;;  %v2697_v43 = vsel %vm2195_vm2, %v7357_v52, 0.0 }
 0x631   :  { %2453 = vst.msk [vmem:[#allocation6 + $0x228] sm:$0xff] %vm2195_vm2, %v2423_v37  ;;  %v7366_v37 = vld [vmem:[#allocation6 + $0x78] sm:$0xff] }
 0x632   :  { %5459 = vmatmul.msk.f32.gmra.mxu0 %vm236_vm0, %v7074_v15 }
 0x636   :  { %v2541_v8 = vpop.f32.mrf.mxu2 }
 0x637   :  { %2571 = vst.msk [vmem:[#allocation6 + $0x2e8] sm:$0xff] %vm2195_vm2, %v2541_v8  ;;  %v2189_v40 = vpop.f32.mrf.mxu0  ;;  %v2426_v62 = vpop.f32.mrf.mxu1 }
 0x638   :  { %2218 = vst.msk [vmem:[#allocation6 + $0xb0] sm:$0xff] %vm2195_vm2, %v2189_v40  ;;  %v2699_v40 = vsel %vm2195_vm2, %v7362_v38, 0.0 }
 0x639   :  { %2454 = vst.msk [vmem:[#allocation6 + $0x230] sm:$0xff] %vm2195_vm2, %v2426_v62  ;;  %v7370_v62 = vld [vmem:[#allocation6 + $0x80] sm:$0xff] }
 0x63a   :  { %5460 = vmatmul.msk.f32.gmra.mxu0 %vm236_vm0, %v7083_v29 }
 0x63e   :  { %v2544_v19 = vpop.f32.mrf.mxu2 }
 0x63f   :  { %2572 = vst.msk [vmem:[#allocation6 + $0x2f0] sm:$0xff] %vm2195_vm2, %v2544_v19  ;;  %v2192_v46 = vpop.f32.mrf.mxu0  ;;  %v2429_v57 = vpop.f32.mrf.mxu1 }
 0x640   :  { %2219 = vst.msk [vmem:[#allocation6 + $0xb8] sm:$0xff] %vm2195_vm2, %v2192_v46  ;;  %v2701_v46 = vsel %vm2195_vm2, %v7366_v37, 0.0 }
 0x641   :  { %2455 = vst.msk [vmem:[#allocation6 + $0x238] sm:$0xff] %vm2195_vm2, %v2429_v57  ;;  %v7374_v57 = vld [vmem:[#allocation6 + $0x88] sm:$0xff] }
 0x642   :  { %5461 = vmatmul.msk.f32.gmra.mxu0 %vm236_vm0, %v7092_v21 }
 0x646   :  { %v2547_v15 = vpop.f32.mrf.mxu2 }
 0x647   :  { %2573 = vst.msk [vmem:[#allocation6 + $0x2f8] sm:$0xff] %vm2195_vm2, %v2547_v15  ;;  %v2242_v42 = vpop.f32.mrf.mxu0 }
 0x648   :  { %2314 = vst.msk [vmem:[#allocation6 + $0xc0] sm:$0xff] %vm2195_vm2, %v2242_v42 }
 0x64a   :  { %5462 = vmatmul.msk.f32.gmra.mxu0 %vm236_vm0, %v7102_v36 }
 0x64f   :  { %v2245_v29 = vpop.f32.mrf.mxu0 }
 0x650   :  { %2315 = vst.msk [vmem:[#allocation6 + $0xc8] sm:$0xff] %vm2195_vm2, %v2245_v29  ;;  %v2703_v29 = vsel %vm2195_vm2, %v7370_v62, 0.0 }
 0x652   :  { %5463 = vmatmul.msk.f32.gmra.mxu0 %vm236_vm0, %v7114_v22 }
 0x657   :  { %v2248_v47 = vpop.f32.mrf.mxu0 }
 0x658   :  { %2316 = vst.msk [vmem:[#allocation6 + $0xd0] sm:$0xff] %vm2195_vm2, %v2248_v47  ;;  %v7379_v47 = vld [vmem:[#allocation6 + $0x90] sm:$0xff] }
 0x65a   :  { %5464 = vmatmul.msk.f32.gmra.mxu0 %vm236_vm0, %v7126_v51 }
 0x65f   :  { %v2251_v21 = vpop.f32.mrf.mxu0 }
 0x660   :  { %2317 = vst.msk [vmem:[#allocation6 + $0xd8] sm:$0xff] %vm2195_vm2, %v2251_v21 }
 0x662   :  { %5465 = vmatmul.msk.f32.gmra.mxu0 %vm236_vm0, %v7138_v11 }
 0x667   :  { %v2254_v33 = vpop.f32.mrf.mxu0 }
 0x668   :  { %2318 = vst.msk [vmem:[#allocation6 + $0xe0] sm:$0xff] %vm2195_vm2, %v2254_v33  ;;  %v2705_v33 = vsel %vm2195_vm2, %v7374_v57, 0.0 }
 0x66a   :  { %5466 = vmatmul.msk.f32.gmra.mxu0 %vm236_vm0, %v7150_v45 }
 0x66f   :  { %v2257_v36 = vpop.f32.mrf.mxu0 }
 0x670   :  { %2319 = vst.msk [vmem:[#allocation6 + $0xe8] sm:$0xff] %vm2195_vm2, %v2257_v36  ;;  %v7383_v36 = vld [vmem:[#allocation6 + $0x98] sm:$0xff] }
 0x672   :  { %5467 = vmatmul.msk.f32.gmra.mxu0 %vm236_vm0, %v7162_v58 }
 0x677   :  { %v2260_v22 = vpop.f32.mrf.mxu0 }
 0x678   :  { %2320 = vst.msk [vmem:[#allocation6 + $0xf0] sm:$0xff] %vm2195_vm2, %v2260_v22 }
 0x67a   :  { %5468 = vmatmul.msk.f32.gmra.mxu0 %vm236_vm0, %v7174_v13  ;;  %v7304_v13 = vld [vmem:[#allocation6 + $0x8] sm:$0xff] }
 0x67b   :  { %v2673_v41 = vsel %vm2195_vm2, %v7304_v13, 0.0 }
 0x67c   :  { %v2674_v14 = vadd.f32 %v2673_v41, %v2672_v3 }
 0x67f   :  { %v2263_v51 = vpop.f32.mrf.mxu0 }
 0x680   :  { %2321 = vst.msk [vmem:[#allocation6 + $0xf8] sm:$0xff] %vm2195_vm2, %v2263_v51  ;;  %v2707_v51 = vsel %vm2195_vm2, %v7379_v47, 0.0 }
 0x682   :  { %5469 = vmatmul.msk.f32.gmra.mxu0 %vm236_vm0, %v7186_v61  ;;  %v7309_v61 = vld [vmem:[#allocation6 + $0x10] sm:$0xff] }
 0x683   :  { %v2675_v39 = vsel %vm2195_vm2, %v7309_v61, 0.0 }
 0x684   :  { %v2676_v63 = vadd.f32 %v2675_v39, %v2674_v14  ;;  %v7396_v39 = vld [vmem:[#allocation6 + $0xb0] sm:$0xff] }
 0x686   :  { %v2678_v16 = vadd.f32 %v2677_v55, %v2676_v63 }
 0x687   :  { %v2266_v11 = vpop.f32.mrf.mxu0 }
 0x688   :  { %2322 = vst.msk [vmem:[#allocation6 + $0x100] sm:$0xff] %vm2195_vm2, %v2266_v11  ;;  %v2680_v48 = vadd.f32 %v2679_v30, %v2678_v16  ;;  %v7387_v11 = vld [vmem:[#allocation6 + $0xa0] sm:$0xff]  ;;  %v2715_v30 = vsel %vm2195_vm2, %v7396_v39, 0.0 }
 0x689   :  { %v2711_v3 = vsel %vm2195_vm2, %v7387_v11, 0.0  ;;  %v7404_v16 = vld [vmem:[#allocation6 + $0xc0] sm:$0xff] }
 0x68a   :  { %v2682_v59 = vadd.f32 %v2681_v4, %v2680_v48 }
 0x68c   :  { %v2684_v23 = vadd.f32 %v2683_v7, %v2682_v59  ;;  %v7408_v7 = vld [vmem:[#allocation6 + $0xc8] sm:$0xff] }
 0x68e   :  { %v2686_v27 = vadd.f32 %v2685_v24, %v2684_v23  ;;  %v7413_v23 = vld [vmem:[#allocation6 + $0xd0] sm:$0xff] }
 0x68f   :  { %v2269_v45 = vpop.f32.mrf.mxu0 }
 0x690   :  { %2323 = vst.msk [vmem:[#allocation6 + $0x108] sm:$0xff] %vm2195_vm2, %v2269_v45  ;;  %v2688_v34 = vadd.f32 %v2687_v1, %v2686_v27  ;;  %v2721_v27 = vsel %vm2195_vm2, %v7408_v7, 0.0 }
 0x692   :  { %v2690_v26 = vadd.f32 %v2689_v17, %v2688_v34  ;;  %v7417_v17 = vld [vmem:[#allocation6 + $0xd8] sm:$0xff] }
 0x694   :  { %v2692_v32 = vadd.f32 %v2691_v18, %v2690_v26  ;;  %v2723_v18 = vsel %vm2195_vm2, %v7413_v23, 0.0  ;;  %v7421_v26 = vld [vmem:[#allocation6 + $0xe0] sm:$0xff] }
 0x696   :  { %v2694_v54 = vadd.f32 %v2693_v53, %v2692_v32  ;;  %v7425_v32 = vld [vmem:[#allocation6 + $0xe8] sm:$0xff] }
 0x697   :  { %v2272_v56 = vpop.f32.mrf.mxu0 }
 0x698   :  { %2324 = vst.msk [vmem:[#allocation6 + $0x110] sm:$0xff] %vm2195_vm2, %v2272_v56  ;;  %v2696_v8 = vadd.f32 %v2695_v31, %v2694_v54  ;;  %v2709_v56 = vsel %vm2195_vm2, %v7383_v36, 0.0 }
 0x69a   :  { %v2698_v19 = vadd.f32 %v2697_v43, %v2696_v8  ;;  %v2727_v43 = vsel %vm2195_vm2, %v7421_v26, 0.0  ;;  %v7430_v8 = vld [vmem:[#allocation6 + $0xf0] sm:$0xff] }
 0x69c   :  { %v2700_v42 = vadd.f32 %v2699_v40, %v2698_v19  ;;  %v2729_v19 = vsel %vm2195_vm2, %v7425_v32, 0.0 }
 0x69e   :  { %v2702_v21 = vadd.f32 %v2701_v46, %v2700_v42  ;;  %v7434_v46 = vld [vmem:[#allocation6 + $0xf8] sm:$0xff]  ;;  %v2731_v42 = vsel %vm2195_vm2, %v7430_v8, 0.0 }
 0x69f   :  { %v2275_v58 = vpop.f32.mrf.mxu0 }
 0x6a0   :  { %2325 = vst.msk [vmem:[#allocation6 + $0x118] sm:$0xff] %vm2195_vm2, %v2275_v58  ;;  %v2704_v22 = vadd.f32 %v2703_v29, %v2702_v21  ;;  %v7391_v58 = vld [vmem:[#allocation6 + $0xa8] sm:$0xff]  ;;  %v7438_v29 = vld [vmem:[#allocation6 + $0x100] sm:$0xff] }
 0x6a1   :  { %v2713_v55 = vsel %vm2195_vm2, %v7391_v58, 0.0 }
 0x6a2   :  { %v2706_v45 = vadd.f32 %v2705_v33, %v2704_v22  ;;  %v2733_v33 = vsel %vm2195_vm2, %v7434_v46, 0.0  ;;  %v7442_v22 = vld [vmem:[#allocation6 + $0x108] sm:$0xff] }
 0x6a4   :  { %v2708_v41 = vadd.f32 %v2707_v51, %v2706_v45 }
 0x6a6   :  { %v2710_v14 = vadd.f32 %v2709_v56, %v2708_v41  ;;  %v2735_v56 = vsel %vm2195_vm2, %v7438_v29, 0.0 }
 0x6a7   :  { %v2278_v2 = vpop.f32.mrf.mxu0 }
 0x6a8   :  { %2326 = vst.msk [vmem:[#allocation6 + $0x120] sm:$0xff] %vm2195_vm2, %v2278_v2  ;;  %v2712_v63 = vadd.f32 %v2711_v3, %v2710_v14  ;;  %v2737_v3 = vsel %vm2195_vm2, %v7442_v22, 0.0  ;;  %v7451_v14 = vld [vmem:[#allocation6 + $0x118] sm:$0xff] }
 0x6aa   :  { %v2714_v4 = vadd.f32 %v2713_v55, %v2712_v63 }
 0x6ac   :  { %v2716_v24 = vadd.f32 %v2715_v30, %v2714_v4 }
 0x6af   :  { %v2281_v49 = vpop.f32.mrf.mxu0  ;;  %v7455_v30 = vld [vmem:[#allocation6 + $0x120] sm:$0xff] }
 0x6b0   :  { %2327 = vst.msk [vmem:[#allocation6 + $0x128] sm:$0xff] %vm2195_vm2, %v2281_v49  ;;  %v7400_v49 = vld [vmem:[#allocation6 + $0xb8] sm:$0xff] }
 0x6b1   :  { %v2717_v48 = vsel %vm2195_vm2, %v7400_v49, 0.0 }
 0x6b2   :  { %v2718_v1 = vadd.f32 %v2717_v48, %v2716_v24  ;;  %v2741_v48 = vsel %vm2195_vm2, %v7451_v14, 0.0 }
 0x6b7   :  { %v2284_v44 = vpop.f32.mrf.mxu0 }
 0x6b8   :  { %2328 = vst.msk [vmem:[#allocation6 + $0x130] sm:$0xff] %vm2195_vm2, %v2284_v44  ;;  %v2719_v44 = vsel %vm2195_vm2, %v7404_v16, 0.0 }
 0x6b9   :  { %v2720_v34 = vadd.f32 %v2719_v44, %v2718_v1  ;;  %v2743_v1 = vsel %vm2195_vm2, %v7455_v30, 0.0 }
 0x6bb   :  { %v2722_v53 = vadd.f32 %v2721_v27, %v2720_v34 }
 0x6bd   :  { %v2724_v54 = vadd.f32 %v2723_v18, %v2722_v53 }
 0x6bf   :  { %v2287_v50 = vpop.f32.mrf.mxu0  ;;  %v7464_v27 = vld [vmem:[#allocation6 + $0x130] sm:$0xff] }
 0x6c0   :  { %2329 = vst.msk [vmem:[#allocation6 + $0x138] sm:$0xff] %vm2195_vm2, %v2287_v50  ;;  %v2725_v50 = vsel %vm2195_vm2, %v7417_v17, 0.0 }
 0x6c1   :  { %v2726_v40 = vadd.f32 %v2725_v50, %v2724_v54 }
 0x6c7   :  { %v2290_v15 = vpop.f32.mrf.mxu0  ;;  %v7468_v53 = vld [vmem:[#allocation6 + $0x138] sm:$0xff] }
 0x6c8   :  { %2330 = vst.msk [vmem:[#allocation6 + $0x140] sm:$0xff] %vm2195_vm2, %v2290_v15  ;;  %v2728_v15 = vadd.f32 %v2727_v43, %v2726_v40  ;;  %v2749_v40 = vsel %vm2195_vm2, %v7468_v53, 0.0 }
 0x6ca   :  { %v2730_v21 = vadd.f32 %v2729_v19, %v2728_v15 }
 0x6cc   :  { %v2732_v45 = vadd.f32 %v2731_v42, %v2730_v21 }
 0x6ce   :  { %v2734_v41 = vadd.f32 %v2733_v33, %v2732_v45 }
 0x6cf   :  { %v2293_v2 = vpop.f32.mrf.mxu0  ;;  %v7472_v54 = vld [vmem:[#allocation6 + $0x140] sm:$0xff] }
 0x6d0   :  { %2331 = vst.msk [vmem:[#allocation6 + $0x148] sm:$0xff] %vm2195_vm2, %v2293_v2  ;;  %v7447_v2 = vld [vmem:[#allocation6 + $0x110] sm:$0xff]  ;;  %v2736_v55 = vadd.f32 %v2735_v56, %v2734_v41  ;;  %v2751_v21 = vsel %vm2195_vm2, %v7472_v54, 0.0 }
 0x6d1   :  { %v2739_v63 = vsel %vm2195_vm2, %v7447_v2, 0.0 }
 0x6d2   :  { %v2738_v4 = vadd.f32 %v2737_v3, %v2736_v55 }
 0x6d4   :  { %v2740_v44 = vadd.f32 %v2739_v63, %v2738_v4 }
 0x6d6   :  { %v2742_v34 = vadd.f32 %v2741_v48, %v2740_v44 }
 0x6d7   :  { %v2296_v59 = vpop.f32.mrf.mxu0  ;;  %v7476_v19 = vld [vmem:[#allocation6 + $0x148] sm:$0xff] }
 0x6d8   :  { %2332 = vst.msk [vmem:[#allocation6 + $0x150] sm:$0xff] %vm2195_vm2, %v2296_v59  ;;  %v7459_v59 = vld [vmem:[#allocation6 + $0x128] sm:$0xff]  ;;  %v2744_v50 = vadd.f32 %v2743_v1, %v2742_v34  ;;  %v2753_v45 = vsel %vm2195_vm2, %v7476_v19, 0.0 }
 0x6d9   :  { %v2745_v18 = vsel %vm2195_vm2, %v7459_v59, 0.0 }
 0x6da   :  { %v2746_v43 = vadd.f32 %v2745_v18, %v2744_v50 }
 0x6df   :  { %v2299_v31 = vpop.f32.mrf.mxu0  ;;  %v7481_v33 = vld [vmem:[#allocation6 + $0x150] sm:$0xff] }
 0x6e0   :  { %2333 = vst.msk [vmem:[#allocation6 + $0x158] sm:$0xff] %vm2195_vm2, %v2299_v31  ;;  %v2747_v31 = vsel %vm2195_vm2, %v7464_v27, 0.0  ;;  %v2755_v3 = vsel %vm2195_vm2, %v7481_v33, 0.0 }
 0x6e1   :  { %v2748_v42 = vadd.f32 %v2747_v31, %v2746_v43 }
 0x6e7   :  { %v2302_v51 = vpop.f32.mrf.mxu0  ;;  %v7485_v56 = vld [vmem:[#allocation6 + $0x158] sm:$0xff] }
 0x6e8   :  { %2334 = vst.msk [vmem:[#allocation6 + $0x160] sm:$0xff] %vm2195_vm2, %v2302_v51  ;;  %v2750_v51 = vadd.f32 %v2749_v40, %v2748_v42  ;;  %v2757_v4 = vsel %vm2195_vm2, %v7485_v56, 0.0 }
 0x6ea   :  { %v2752_v41 = vadd.f32 %v2751_v21, %v2750_v51 }
 0x6ec   :  { %v2754_v63 = vadd.f32 %v2753_v45, %v2752_v41  ;;  %v7510_v45 = vld [vmem:[#allocation6 + $0x188] sm:$0xff] }
 0x6ed   :  { %11071 = vst [vmem:[#allocation32_spill] sm:$0xff] %v7510_v45 }
 0x6ee   :  { %v2756_v44 = vadd.f32 %v2755_v3, %v2754_v63  ;;  %v7514_v63 = vld [vmem:[#allocation6 + $0x190] sm:$0xff] }
 0x6ef   :  { %v2305_v24 = vpop.f32.mrf.mxu0  ;;  %v7489_v55 = vld [vmem:[#allocation6 + $0x160] sm:$0xff]  ;;  %11072 = vst [vmem:[#allocation33_spill] sm:$0xff] %v7514_v63 }
 0x6f0   :  { %2335 = vst.msk [vmem:[#allocation6 + $0x168] sm:$0xff] %vm2195_vm2, %v2305_v24  ;;  %v2759_v1 = vsel %vm2195_vm2, %v7489_v55, 0.0  ;;  %v2758_v18 = vadd.f32 %v2757_v4, %v2756_v44  ;;  %v7518_v44 = vld [vmem:[#allocation6 + $0x198] sm:$0xff] }
 0x6f1   :  { %11073 = vst [vmem:[#allocation34_spill] sm:$0xff] %v7518_v44 }
 0x6f2   :  { %v2760_v31 = vadd.f32 %v2759_v1, %v2758_v18  ;;  %v2771_v18 = vsel %vm2195_vm2, %v7514_v63, 0.0 }
 0x6f7   :  { %v2308_v15 = vpop.f32.mrf.mxu0  ;;  %v7493_v48 = vld [vmem:[#allocation6 + $0x168] sm:$0xff] }
 0x6f8   :  { %2336 = vst.msk [vmem:[#allocation6 + $0x170] sm:$0xff] %vm2195_vm2, %v2308_v15  ;;  %v2761_v50 = vsel %vm2195_vm2, %v7493_v48, 0.0  ;;  %v7504_v15 = vld [vmem:[#allocation6 + $0x180] sm:$0xff] }
 0x6f9   :  { %v2762_v40 = vadd.f32 %v2761_v50, %v2760_v31  ;;  %v2767_v3 = vsel %vm2195_vm2, %v7504_v15, 0.0  ;;  %v7522_v50 = vld [vmem:[#allocation6 + $0x1a0] sm:$0xff] }
 0x6fa   :  { %11074 = vst [vmem:[#allocation35_spill] sm:$0xff] %v7522_v50 }
 0x6ff   :  { %v2311_v24 = vpop.f32.mrf.mxu0  ;;  %v7498_v34 = vld [vmem:[#allocation6 + $0x170] sm:$0xff] }
 0x700   :  { %2337 = vst.msk [vmem:[#allocation6 + $0x178] sm:$0xff] %vm2195_vm2, %v2311_v24  ;;  %v2763_v43 = vsel %vm2195_vm2, %v7498_v34, 0.0  ;;  %v2769_v24 = vsel %vm2195_vm2, %v7510_v45, 0.0 }
 0x701   :  { %v2764_v21 = vadd.f32 %v2763_v43, %v2762_v40  ;;  %v2773_v43 = vsel %vm2195_vm2, %v7518_v44, 0.0  ;;  %v7526_v40 = vld [vmem:[#allocation6 + $0x1a8] sm:$0xff] }
 0x702   :  { %11075 = vst [vmem:[#allocation36_spill] sm:$0xff] %v7526_v40 }
 0x707   :  { %v7506_v42 = vld [vmem:[#allocation6 + $0x178] sm:$0xff] }
 0x708   :  { %v2765_v51 = vsel %vm2195_vm2, %v7506_v42, 0.0 }
 0x709   :  { %v2766_v41 = vadd.f32 %v2765_v51, %v2764_v21  ;;  %v2775_v51 = vsel %vm2195_vm2, %v7522_v50, 0.0 }
 0x70b   :  { %v2768_v4 = vadd.f32 %v2767_v3, %v2766_v41  ;;  %v7530_v41 = vld [vmem:[#allocation6 + $0x1b0] sm:$0xff] }
 0x70c   :  { %11076 = vst [vmem:[#allocation37_spill] sm:$0xff] %v7530_v41 }
 0x70d   :  { %v2770_v1 = vadd.f32 %v2769_v24, %v2768_v4  ;;  %v2777_v4 = vsel %vm2195_vm2, %v7526_v40, 0.0  ;;  %v7534_v24 = vld [vmem:[#allocation6 + $0x1b8] sm:$0xff] }
 0x70e   :  { %11077 = vst [vmem:[#allocation38_spill] sm:$0xff] %v7534_v24 }
 0x70f   :  { %v2772_v31 = vadd.f32 %v2771_v18, %v2770_v1  ;;  %v2779_v1 = vsel %vm2195_vm2, %v7530_v41, 0.0  ;;  %v7538_v18 = vld [vmem:[#allocation6 + $0x1c0] sm:$0xff] }
 0x710   :  { %11078 = vst [vmem:[#allocation39_spill] sm:$0xff] %v7538_v18 }
 0x711   :  { %v2774_v21 = vadd.f32 %v2773_v43, %v2772_v31  ;;  %v2781_v31 = vsel %vm2195_vm2, %v7534_v24, 0.0  ;;  %v7542_v43 = vld [vmem:[#allocation6 + $0x1c8] sm:$0xff] }
 0x712   :  { %11079 = vst [vmem:[#allocation40_spill] sm:$0xff] %v7542_v43 }
 0x713   :  { %v2776_v3 = vadd.f32 %v2775_v51, %v2774_v21  ;;  %v2783_v21 = vsel %vm2195_vm2, %v7538_v18, 0.0  ;;  %v7546_v51 = vld [vmem:[#allocation6 + $0x1d0] sm:$0xff] }
 0x714   :  { %11080 = vst [vmem:[#allocation41_spill] sm:$0xff] %v7546_v51 }
 0x715   :  { %v2778_v63 = vadd.f32 %v2777_v4, %v2776_v3  ;;  %v2785_v3 = vsel %vm2195_vm2, %v7542_v43, 0.0  ;;  %v7550_v4 = vld [vmem:[#allocation6 + $0x1d8] sm:$0xff] }
 0x716   :  { %11081 = vst [vmem:[#allocation42_spill] sm:$0xff] %v7550_v4 }
 0x717   :  { %v2780_v44 = vadd.f32 %v2779_v1, %v2778_v63  ;;  %v2787_v63 = vsel %vm2195_vm2, %v7546_v51, 0.0  ;;  %v7554_v1 = vld [vmem:[#allocation6 + $0x1e0] sm:$0xff] }
 0x718   :  { %11082 = vst [vmem:[#allocation43_spill] sm:$0xff] %v7554_v1 }
 0x719   :  { %v2782_v50 = vadd.f32 %v2781_v31, %v2780_v44  ;;  %v2789_v44 = vsel %vm2195_vm2, %v7550_v4, 0.0  ;;  %v7558_v31 = vld [vmem:[#allocation6 + $0x1e8] sm:$0xff] }
 0x71a   :  { %11083 = vst [vmem:[#allocation44_spill] sm:$0xff] %v7558_v31 }
 0x71b   :  { %v2784_v40 = vadd.f32 %v2783_v21, %v2782_v50  ;;  %v2791_v50 = vsel %vm2195_vm2, %v7554_v1, 0.0  ;;  %v7562_v21 = vld [vmem:[#allocation6 + $0x1f0] sm:$0xff] }
 0x71c   :  { %11084 = vst [vmem:[#allocation45_spill] sm:$0xff] %v7562_v21 }
 0x71d   :  { %v2786_v41 = vadd.f32 %v2785_v3, %v2784_v40  ;;  %v2793_v40 = vsel %vm2195_vm2, %v7558_v31, 0.0  ;;  %v7566_v3 = vld [vmem:[#allocation6 + $0x1f8] sm:$0xff] }
 0x71e   :  { %11085 = vst [vmem:[#allocation46_spill] sm:$0xff] %v7566_v3 }
 0x71f   :  { %v2788_v24 = vadd.f32 %v2787_v63, %v2786_v41  ;;  %v2795_v41 = vsel %vm2195_vm2, %v7562_v21, 0.0  ;;  %v7570_v63 = vld [vmem:[#allocation6 + $0x200] sm:$0xff] }
 0x720   :  { %11086 = vst [vmem:[#allocation47_spill] sm:$0xff] %v7570_v63 }
 0x721   :  { %v2790_v18 = vadd.f32 %v2789_v44, %v2788_v24  ;;  %v2797_v24 = vsel %vm2195_vm2, %v7566_v3, 0.0  ;;  %v7574_v44 = vld [vmem:[#allocation6 + $0x208] sm:$0xff] }
 0x722   :  { %11087 = vst [vmem:[#allocation48_spill] sm:$0xff] %v7574_v44 }
 0x723   :  { %v2792_v43 = vadd.f32 %v2791_v50, %v2790_v18  ;;  %v2799_v18 = vsel %vm2195_vm2, %v7570_v63, 0.0  ;;  %v7578_v50 = vld [vmem:[#allocation6 + $0x210] sm:$0xff] }
 0x724   :  { %11088 = vst [vmem:[#allocation49_spill] sm:$0xff] %v7578_v50 }
 0x725   :  { %v2794_v51 = vadd.f32 %v2793_v40, %v2792_v43  ;;  %v2801_v43 = vsel %vm2195_vm2, %v7574_v44, 0.0  ;;  %v7582_v40 = vld [vmem:[#allocation6 + $0x218] sm:$0xff] }
 0x726   :  { %11089 = vst [vmem:[#allocation50_spill] sm:$0xff] %v7582_v40 }
 0x727   :  { %v2796_v4 = vadd.f32 %v2795_v41, %v2794_v51  ;;  %v2803_v51 = vsel %vm2195_vm2, %v7578_v50, 0.0  ;;  %v7586_v41 = vld [vmem:[#allocation6 + $0x220] sm:$0xff] }
 0x728   :  { %11090 = vst [vmem:[#allocation51_spill] sm:$0xff] %v7586_v41 }
 0x729   :  { %v2798_v1 = vadd.f32 %v2797_v24, %v2796_v4  ;;  %v2805_v4 = vsel %vm2195_vm2, %v7582_v40, 0.0  ;;  %v7590_v24 = vld [vmem:[#allocation6 + $0x228] sm:$0xff] }
 0x72a   :  { %11091 = vst [vmem:[#allocation52_spill] sm:$0xff] %v7590_v24  ;;  %v2809_v44 = vsel %vm2195_vm2, %v7590_v24, 0.0 }
 0x72b   :  { %v2800_v31 = vadd.f32 %v2799_v18, %v2798_v1  ;;  %v2807_v1 = vsel %vm2195_vm2, %v7586_v41, 0.0  ;;  %v3661_v41 = vld [vmem:[#allocation25] sm:$0xff] }
 0x72d   :  { %v2802_v21 = vadd.f32 %v2801_v43, %v2800_v31  ;;  %v7596_v31 = vld [vmem:[#allocation6 + $0x230] sm:$0xff] }
 0x72e   :  { %11092 = vst [vmem:[#allocation53_spill] sm:$0xff] %v7596_v31  ;;  %v2811_v50 = vsel %vm2195_vm2, %v7596_v31, 0.0 }
 0x72f   :  { %v2804_v3 = vadd.f32 %v2803_v51, %v2802_v21  ;;  %v7600_v21 = vld [vmem:[#allocation6 + $0x238] sm:$0xff] }
 0x730   :  { %11093 = vst [vmem:[#allocation54_spill] sm:$0xff] %v7600_v21  ;;  %v2813_v40 = vsel %vm2195_vm2, %v7600_v21, 0.0 }
 0x731   :  { %v2806_v63 = vadd.f32 %v2805_v4, %v2804_v3  ;;  %v7604_v3 = vld [vmem:[#allocation6 + $0x240] sm:$0xff] }
 0x732   :  { %11094 = vst [vmem:[#allocation55_spill] sm:$0xff] %v7604_v3 }
 0x733   :  { %v2808_v18 = vadd.f32 %v2807_v1, %v2806_v63  ;;  %v2815_v63 = vsel %vm2195_vm2, %v7604_v3, 0.0  ;;  %v7608_v1 = vld [vmem:[#allocation6 + $0x248] sm:$0xff] }
 0x734   :  { %11095 = vst [vmem:[#allocation56_spill] sm:$0xff] %v7608_v1 }
 0x735   :  { %v2810_v43 = vadd.f32 %v2809_v44, %v2808_v18  ;;  %v2817_v44 = vsel %vm2195_vm2, %v7608_v1, 0.0  ;;  %v7612_v18 = vld [vmem:[#allocation6 + $0x250] sm:$0xff] }
 0x736   :  { %11096 = vst [vmem:[#allocation57_spill] sm:$0xff] %v7612_v18 }
 0x737   :  { %v2812_v51 = vadd.f32 %v2811_v50, %v2810_v43  ;;  %v2819_v50 = vsel %vm2195_vm2, %v7612_v18, 0.0  ;;  %v7616_v43 = vld [vmem:[#allocation6 + $0x258] sm:$0xff] }
 0x738   :  { %11097 = vst [vmem:[#allocation58_spill] sm:$0xff] %v7616_v43 }
 0x739   :  { %v2814_v4 = vadd.f32 %v2813_v40, %v2812_v51  ;;  %v2821_v40 = vsel %vm2195_vm2, %v7616_v43, 0.0  ;;  %v7620_v51 = vld [vmem:[#allocation6 + $0x260] sm:$0xff] }
 0x73a   :  { %11098 = vst [vmem:[#allocation59_spill] sm:$0xff] %v7620_v51 }
 0x73b   :  { %v2816_v24 = vadd.f32 %v2815_v63, %v2814_v4  ;;  %v2823_v4 = vsel %vm2195_vm2, %v7620_v51, 0.0  ;;  %v7624_v63 = vld [vmem:[#allocation6 + $0x268] sm:$0xff] }
 0x73c   :  { %11099 = vst [vmem:[#allocation60_spill] sm:$0xff] %v7624_v63 }
 0x73d   :  { %v2818_v31 = vadd.f32 %v2817_v44, %v2816_v24  ;;  %v2825_v24 = vsel %vm2195_vm2, %v7624_v63, 0.0  ;;  %v7628_v44 = vld [vmem:[#allocation6 + $0x270] sm:$0xff] }
 0x73e   :  { %11100 = vst [vmem:[#allocation61_spill] sm:$0xff] %v7628_v44 }
 0x73f   :  { %v2820_v21 = vadd.f32 %v2819_v50, %v2818_v31  ;;  %v2827_v31 = vsel %vm2195_vm2, %v7628_v44, 0.0  ;;  %v7632_v50 = vld [vmem:[#allocation6 + $0x278] sm:$0xff] }
 0x740   :  { %11101 = vst [vmem:[#allocation62_spill] sm:$0xff] %v7632_v50 }
 0x741   :  { %v2822_v3 = vadd.f32 %v2821_v40, %v2820_v21  ;;  %v2829_v21 = vsel %vm2195_vm2, %v7632_v50, 0.0  ;;  %v7636_v40 = vld [vmem:[#allocation6 + $0x280] sm:$0xff] }
 0x742   :  { %11102 = vst [vmem:[#allocation63_spill] sm:$0xff] %v7636_v40 }
 0x743   :  { %v2824_v1 = vadd.f32 %v2823_v4, %v2822_v3  ;;  %v2831_v3 = vsel %vm2195_vm2, %v7636_v40, 0.0  ;;  %v7640_v4 = vld [vmem:[#allocation6 + $0x288] sm:$0xff] }
 0x744   :  { %11103 = vst [vmem:[#allocation64_spill] sm:$0xff] %v7640_v4 }
 0x745   :  { %v2826_v18 = vadd.f32 %v2825_v24, %v2824_v1  ;;  %v2833_v1 = vsel %vm2195_vm2, %v7640_v4, 0.0  ;;  %v7644_v24 = vld [vmem:[#allocation6 + $0x290] sm:$0xff] }
 0x746   :  { %11104 = vst [vmem:[#allocation65_spill] sm:$0xff] %v7644_v24 }
 0x747   :  { %v2828_v43 = vadd.f32 %v2827_v31, %v2826_v18  ;;  %v2835_v18 = vsel %vm2195_vm2, %v7644_v24, 0.0  ;;  %v7648_v31 = vld [vmem:[#allocation6 + $0x298] sm:$0xff] }
 0x748   :  { %11105 = vst [vmem:[#allocation66_spill] sm:$0xff] %v7648_v31 }
 0x749   :  { %v2830_v51 = vadd.f32 %v2829_v21, %v2828_v43  ;;  %v2837_v43 = vsel %vm2195_vm2, %v7648_v31, 0.0  ;;  %v7652_v21 = vld [vmem:[#allocation6 + $0x2a0] sm:$0xff] }
 0x74a   :  { %11106 = vst [vmem:[#allocation67_spill] sm:$0xff] %v7652_v21 }
 0x74b   :  { %v2832_v63 = vadd.f32 %v2831_v3, %v2830_v51  ;;  %v2839_v51 = vsel %vm2195_vm2, %v7652_v21, 0.0  ;;  %v7656_v3 = vld [vmem:[#allocation6 + $0x2a8] sm:$0xff] }
 0x74c   :  { %11107 = vst [vmem:[#allocation68_spill] sm:$0xff] %v7656_v3 }
 0x74d   :  { %v2834_v44 = vadd.f32 %v2833_v1, %v2832_v63  ;;  %v2841_v63 = vsel %vm2195_vm2, %v7656_v3, 0.0  ;;  %v7660_v1 = vld [vmem:[#allocation6 + $0x2b0] sm:$0xff] }
 0x74e   :  { %11108 = vst [vmem:[#allocation69_spill] sm:$0xff] %v7660_v1 }
 0x74f   :  { %v2836_v50 = vadd.f32 %v2835_v18, %v2834_v44  ;;  %v2843_v44 = vsel %vm2195_vm2, %v7660_v1, 0.0  ;;  %v7664_v18 = vld [vmem:[#allocation6 + $0x2b8] sm:$0xff] }
 0x750   :  { %11109 = vst [vmem:[#allocation70_spill] sm:$0xff] %v7664_v18 }
 0x751   :  { %v2838_v40 = vadd.f32 %v2837_v43, %v2836_v50  ;;  %v2845_v50 = vsel %vm2195_vm2, %v7664_v18, 0.0  ;;  %v7668_v43 = vld [vmem:[#allocation6 + $0x2c0] sm:$0xff] }
 0x752   :  { %11110 = vst [vmem:[#allocation71_spill] sm:$0xff] %v7668_v43 }
 0x753   :  { %v2840_v4 = vadd.f32 %v2839_v51, %v2838_v40  ;;  %v2847_v40 = vsel %vm2195_vm2, %v7668_v43, 0.0  ;;  %v7672_v51 = vld [vmem:[#allocation6 + $0x2c8] sm:$0xff] }
 0x754   :  { %11111 = vst [vmem:[#allocation72_spill] sm:$0xff] %v7672_v51 }
 0x755   :  { %v2842_v24 = vadd.f32 %v2841_v63, %v2840_v4  ;;  %v2849_v4 = vsel %vm2195_vm2, %v7672_v51, 0.0  ;;  %v7676_v63 = vld [vmem:[#allocation6 + $0x2d0] sm:$0xff] }
 0x756   :  { %11112 = vst [vmem:[#allocation73_spill] sm:$0xff] %v7676_v63 }
 0x757   :  { %v2844_v31 = vadd.f32 %v2843_v44, %v2842_v24  ;;  %v2851_v24 = vsel %vm2195_vm2, %v7676_v63, 0.0  ;;  %v7680_v44 = vld [vmem:[#allocation6 + $0x2d8] sm:$0xff] }
 0x758   :  { %11113 = vst [vmem:[#allocation74_spill] sm:$0xff] %v7680_v44 }
 0x759   :  { %v2846_v21 = vadd.f32 %v2845_v50, %v2844_v31  ;;  %v2853_v31 = vsel %vm2195_vm2, %v7680_v44, 0.0  ;;  %v7684_v50 = vld [vmem:[#allocation6 + $0x2e0] sm:$0xff] }
 0x75a   :  { %11114 = vst [vmem:[#allocation75_spill] sm:$0xff] %v7684_v50 }
 0x75b   :  { %v2848_v3 = vadd.f32 %v2847_v40, %v2846_v21  ;;  %v2855_v21 = vsel %vm2195_vm2, %v7684_v50, 0.0  ;;  %v7688_v40 = vld [vmem:[#allocation6 + $0x2e8] sm:$0xff]  ;;  %v3662_v50 = vld [vmem:[#allocation25 + $0x8] sm:$0xff] }
 0x75c   :  { %11115 = vst [vmem:[#allocation76_spill] sm:$0xff] %v7688_v40  ;;  %3965 = vmatpush.msra.mxu1 %v3662_v50  ;;  %5614 = vmatpush.msrb.mxu3 %v3662_v50 }
 0x75d   :  { %v2850_v1 = vadd.f32 %v2849_v4, %v2848_v3  ;;  %v2857_v3 = vsel %vm2195_vm2, %v7688_v40, 0.0  ;;  %v7692_v4 = vld [vmem:[#allocation6 + $0x2f0] sm:$0xff] }
 0x75e   :  { %11116 = vst [vmem:[#allocation77_spill] sm:$0xff] %v7692_v4  ;;  %3966 = vmatpush.msra.mxu1 %v3661_v41  ;;  %5615 = vmatpush.msrb.mxu3 %v3661_v41 }
 0x75f   :  { %v2852_v18 = vadd.f32 %v2851_v24, %v2850_v1  ;;  %v2859_v1 = vsel %vm2195_vm2, %v7692_v4, 0.0  ;;  %v7696_v24 = vld [vmem:[#allocation6 + $0x2f8] sm:$0xff] }
 0x761   :  { %v2854_v43 = vadd.f32 %v2853_v31, %v2852_v18  ;;  %v2861_v18 = vsel %vm2195_vm2, %v7696_v24, 0.0 }
 0x763   :  { %v2856_v51 = vadd.f32 %v2855_v21, %v2854_v43 }
 0x765   :  { %v2858_v63 = vadd.f32 %v2857_v3, %v2856_v51 }
 0x767   :  { %v2860_v44 = vadd.f32 %v2859_v1, %v2858_v63 }
 0x769   :  { %v2862_v31 = vadd.f32 %v2861_v18, %v2860_v44 }
 0x76b   :  { %v2863_v43 = vrot.slane %v2862_v31, 4 }
 0x76d   :  { %v2864_v21 = vadd.f32 %v2863_v43, %v2862_v31 }
 0x76f   :  { %v2865_v40 = vrot.slane %v2864_v21, 2 }
 0x771   :  { %v2866_v51 = vadd.f32 %v2865_v40, %v2864_v21 }
 0x773   :  { %v2867_v3 = vrot.slane %v2866_v51, 1 }
 0x775   :  { %v2868_v45 = vadd.f32 %v2867_v3, %v2866_v51 }
 0x777   :  { %v7700_v4 = vmul.f32 0.0013020834, %v2868_v45 }
 0x779   :  { %v7704_v63 = vsub.f32 %v7307_v5, %v7700_v4  ;;  %v7708_v44 = vsub.f32 %v7304_v13, %v7700_v4  ;;  %v7712_v50 = vsub.f32 %v7309_v61, %v7700_v4  ;;  %v7716_v41 = vsub.f32 %v7313_v6, %v7700_v4 }
 0x77a   :  { %v7720_v45 = vsub.f32 %v7319_v60, %v7700_v4  ;;  %v7730_v61 = vsub.f32 %v7323_v9, %v7700_v4  ;;  %v7738_v31 = vsub.f32 %v7328_v25, %v7700_v4  ;;  %v7745_v9 = vsub.f32 %v7332_v0, %v7700_v4 }
 0x77b   :  { %v2966_v5 = vmul.f32 %v7704_v63, %v7704_v63  ;;  %v2967_v40 = vmul.f32 %v7708_v44, %v7708_v44  ;;  %v2968_v13 = vmul.f32 %v7712_v50, %v7712_v50  ;;  %v2969_v6 = vmul.f32 %v7716_v41, %v7716_v41 }
 0x77c   :  { %v2970_v43 = vmul.f32 %v7720_v45, %v7720_v45  ;;  %v2971_v3 = vmul.f32 %v7730_v61, %v7730_v61  ;;  %v7752_v25 = vsub.f32 %v7336_v10, %v7700_v4  ;;  %v7759_v0 = vsub.f32 %v7340_v12, %v7700_v4 }
 0x77d   :  { %v3062_v1 = vsel %vm2195_vm2, %v2966_v5, 0.0  ;;  %v3063_v60 = vsel %vm2195_vm2, %v2967_v40, 0.0  ;;  %v3065_v21 = vsel %vm2195_vm2, %v2968_v13, 0.0  ;;  %v3067_v5 = vsel %vm2195_vm2, %v2969_v6, 0.0 }
 0x77e   :  { %v3064_v18 = vadd.f32 %v3063_v60, %v3062_v1  ;;  %v2972_v1 = vmul.f32 %v7738_v31, %v7738_v31  ;;  %v3069_v13 = vsel %vm2195_vm2, %v2970_v43, 0.0  ;;  %v3071_v6 = vsel %vm2195_vm2, %v2971_v3, 0.0 }
 0x77f   :  { %v7766_v10 = vsub.f32 %v7345_v20, %v7700_v4  ;;  %v7773_v12 = vsub.f32 %v7349_v28, %v7700_v4  ;;  %v7780_v20 = vsub.f32 %v7353_v35, %v7700_v4  ;;  %v7787_v28 = vsub.f32 %v7357_v52, %v7700_v4 }
 0x780   :  { %v3066_v51 = vadd.f32 %v3065_v21, %v3064_v18  ;;  %v2973_v18 = vmul.f32 %v7745_v9, %v7745_v9  ;;  %v3073_v43 = vsel %vm2195_vm2, %v2972_v1, 0.0  ;;  %v7794_v35 = vsub.f32 %v7362_v38, %v7700_v4 }
 0x781   :  { %v7801_v52 = vsub.f32 %v7366_v37, %v7700_v4  ;;  %v7808_v38 = vsub.f32 %v7370_v62, %v7700_v4  ;;  %v7815_v37 = vsub.f32 %v7374_v57, %v7700_v4  ;;  %v7822_v62 = vsub.f32 %v7379_v47, %v7700_v4 }
 0x782   :  { %v3068_v40 = vadd.f32 %v3067_v5, %v3066_v51  ;;  %v2974_v51 = vmul.f32 %v7752_v25, %v7752_v25  ;;  %v3075_v3 = vsel %vm2195_vm2, %v2973_v18, 0.0  ;;  %v7829_v57 = vsub.f32 %v7383_v36, %v7700_v4 }
 0x783   :  { %v7836_v47 = vsub.f32 %v7387_v11, %v7700_v4  ;;  %v7843_v36 = vsub.f32 %v7391_v58, %v7700_v4  ;;  %v7850_v11 = vsub.f32 %v7396_v39, %v7700_v4  ;;  %v7857_v58 = vsub.f32 %v7400_v49, %v7700_v4 }
 0x784   :  { %v3070_v60 = vadd.f32 %v3069_v13, %v3068_v40  ;;  %v2975_v40 = vmul.f32 %v7759_v0, %v7759_v0  ;;  %v3077_v1 = vsel %vm2195_vm2, %v2974_v51, 0.0  ;;  %v7864_v39 = vsub.f32 %v7404_v16, %v7700_v4 }
 0x785   :  { %11117 = vst [vmem:[#allocation78_spill] sm:$0xff] %v7850_v11  ;;  %v7871_v49 = vsub.f32 %v7408_v7, %v7700_v4  ;;  %v7878_v16 = vsub.f32 %v7413_v23, %v7700_v4  ;;  %v7885_v7 = vsub.f32 %v7417_v17, %v7700_v4  ;;  %v7892_v23 = vsub.f32 %v7421_v26, %v7700_v4 }
 0x786   :  { %v3072_v21 = vadd.f32 %v3071_v6, %v3070_v60  ;;  %v2976_v60 = vmul.f32 %v7766_v10, %v7766_v10  ;;  %v3079_v18 = vsel %vm2195_vm2, %v2975_v40, 0.0  ;;  %11118 = vst [vmem:[#allocation79_spill] sm:$0xff] %v7857_v58  ;;  %v7899_v17 = vsub.f32 %v7425_v32, %v7700_v4 }
 0x787   :  { %11119 = vst [vmem:[#allocation80_spill] sm:$0xff] %v7864_v39  ;;  %v7906_v26 = vsub.f32 %v7430_v8, %v7700_v4  ;;  %v7913_v32 = vsub.f32 %v7434_v46, %v7700_v4  ;;  %v7920_v8 = vsub.f32 %v7438_v29, %v7700_v4  ;;  %v7927_v46 = vsub.f32 %v7442_v22, %v7700_v4 }
 0x788   :  { %v3074_v5 = vadd.f32 %v3073_v43, %v3072_v21  ;;  %v2977_v21 = vmul.f32 %v7773_v12, %v7773_v12  ;;  %v3081_v51 = vsel %vm2195_vm2, %v2976_v60, 0.0  ;;  %11120 = vst [vmem:[#allocation81_spill] sm:$0xff] %v7871_v49  ;;  %v7934_v29 = vsub.f32 %v7447_v2, %v7700_v4 }
 0x789   :  { %11121 = vst [vmem:[#allocation82_spill] sm:$0xff] %v7878_v16  ;;  %v7941_v22 = vsub.f32 %v7451_v14, %v7700_v4  ;;  %v7948_v2 = vsub.f32 %v7455_v30, %v7700_v4  ;;  %v7955_v14 = vsub.f32 %v7459_v59, %v7700_v4  ;;  %v7962_v30 = vsub.f32 %v7464_v27, %v7700_v4 }
 0x78a   :  { %v3076_v13 = vadd.f32 %v3075_v3, %v3074_v5  ;;  %v2978_v5 = vmul.f32 %v7780_v20, %v7780_v20  ;;  %v3083_v40 = vsel %vm2195_vm2, %v2977_v21, 0.0  ;;  %11122 = vst [vmem:[#allocation83_spill] sm:$0xff] %v7885_v7  ;;  %v7969_v59 = vsub.f32 %v7468_v53, %v7700_v4 }
 0x78b   :  { %11123 = vst [vmem:[#allocation84_spill] sm:$0xff] %v7892_v23  ;;  %v7976_v27 = vsub.f32 %v7472_v54, %v7700_v4  ;;  %v7983_v53 = vsub.f32 %v7476_v19, %v7700_v4  ;;  %v7990_v54 = vsub.f32 %v7481_v33, %v7700_v4  ;;  %v7997_v19 = vsub.f32 %v7485_v56, %v7700_v4 }
 0x78c   :  { %v3078_v6 = vadd.f32 %v3077_v1, %v3076_v13  ;;  %v2979_v13 = vmul.f32 %v7787_v28, %v7787_v28  ;;  %v3085_v60 = vsel %vm2195_vm2, %v2978_v5, 0.0  ;;  %11124 = vst [vmem:[#allocation85_spill] sm:$0xff] %v7899_v17  ;;  %v8004_v33 = vsub.f32 %v7489_v55, %v7700_v4 }
 0x78d   :  { %11125 = vst [vmem:[#allocation86_spill] sm:$0xff] %v7906_v26  ;;  %v8011_v56 = vsub.f32 %v7493_v48, %v7700_v4  ;;  %v8018_v55 = vsub.f32 %v7498_v34, %v7700_v4  ;;  %v8025_v48 = vsub.f32 %v7506_v42, %v7700_v4  ;;  %v8032_v34 = vsub.f32 %v7504_v15, %v7700_v4 }
 0x78e   :  { %v3080_v43 = vadd.f32 %v3079_v18, %v3078_v6  ;;  %v2980_v6 = vmul.f32 %v7794_v35, %v7794_v35  ;;  %v3087_v21 = vsel %vm2195_vm2, %v2979_v13, 0.0  ;;  %11126 = vst [vmem:[#allocation87_spill] sm:$0xff] %v7913_v32 }
 0x78f   :  { %11127 = vst [vmem:[#allocation88_spill] sm:$0xff] %v7920_v8  ;;  %v3013_v42 = vmul.f32 %v8025_v48, %v8025_v48 }
 0x790   :  { %v3082_v3 = vadd.f32 %v3081_v51, %v3080_v43  ;;  %v2981_v43 = vmul.f32 %v7801_v52, %v7801_v52  ;;  %v3089_v5 = vsel %vm2195_vm2, %v2980_v6, 0.0  ;;  %11128 = vst [vmem:[#allocation89_spill] sm:$0xff] %v7927_v46 }
 0x791   :  { %11129 = vst [vmem:[#allocation90_spill] sm:$0xff] %v7934_v29 }
 0x792   :  { %v3084_v1 = vadd.f32 %v3083_v40, %v3082_v3  ;;  %v2982_v3 = vmul.f32 %v7808_v38, %v7808_v38  ;;  %v3091_v13 = vsel %vm2195_vm2, %v2981_v43, 0.0  ;;  %11130 = vst [vmem:[#allocation91_spill] sm:$0xff] %v7941_v22 }
 0x794   :  { %v3086_v18 = vadd.f32 %v3085_v60, %v3084_v1  ;;  %v2983_v1 = vmul.f32 %v7815_v37, %v7815_v37  ;;  %v3093_v6 = vsel %vm2195_vm2, %v2982_v3, 0.0 }
 0x796   :  { %v3088_v51 = vadd.f32 %v3087_v21, %v3086_v18  ;;  %v2984_v18 = vmul.f32 %v7822_v62, %v7822_v62  ;;  %v3095_v43 = vsel %vm2195_vm2, %v2983_v1, 0.0 }
 0x798   :  { %v3090_v40 = vadd.f32 %v3089_v5, %v3088_v51  ;;  %v2985_v51 = vmul.f32 %v7829_v57, %v7829_v57  ;;  %v3097_v3 = vsel %vm2195_vm2, %v2984_v18, 0.0 }
 0x79a   :  { %v3092_v60 = vadd.f32 %v3091_v13, %v3090_v40  ;;  %v2986_v40 = vmul.f32 %v7836_v47, %v7836_v47  ;;  %v3099_v1 = vsel %vm2195_vm2, %v2985_v51, 0.0 }
 0x79c   :  { %v3094_v21 = vadd.f32 %v3093_v6, %v3092_v60  ;;  %v2987_v60 = vmul.f32 %v7843_v36, %v7843_v36  ;;  %v3101_v18 = vsel %vm2195_vm2, %v2986_v40, 0.0 }
 0x79e   :  { %v3096_v5 = vadd.f32 %v3095_v43, %v3094_v21  ;;  %v2988_v21 = vmul.f32 %v7850_v11, %v7850_v11  ;;  %v3103_v51 = vsel %vm2195_vm2, %v2987_v60, 0.0 }
 0x7a0   :  { %v3098_v13 = vadd.f32 %v3097_v3, %v3096_v5  ;;  %v2989_v5 = vmul.f32 %v7857_v58, %v7857_v58  ;;  %v3105_v40 = vsel %vm2195_vm2, %v2988_v21, 0.0 }
 0x7a2   :  { %v3100_v6 = vadd.f32 %v3099_v1, %v3098_v13  ;;  %v2990_v13 = vmul.f32 %v7864_v39, %v7864_v39  ;;  %v3107_v60 = vsel %vm2195_vm2, %v2989_v5, 0.0 }
 0x7a4   :  { %v3102_v43 = vadd.f32 %v3101_v18, %v3100_v6  ;;  %v2991_v6 = vmul.f32 %v7871_v49, %v7871_v49  ;;  %v3109_v21 = vsel %vm2195_vm2, %v2990_v13, 0.0 }
 0x7a6   :  { %v3104_v3 = vadd.f32 %v3103_v51, %v3102_v43  ;;  %v2992_v43 = vmul.f32 %v7878_v16, %v7878_v16  ;;  %v3111_v5 = vsel %vm2195_vm2, %v2991_v6, 0.0 }
 0x7a8   :  { %v3106_v1 = vadd.f32 %v3105_v40, %v3104_v3  ;;  %v2993_v3 = vmul.f32 %v7885_v7, %v7885_v7  ;;  %v3113_v13 = vsel %vm2195_vm2, %v2992_v43, 0.0 }
 0x7aa   :  { %v3108_v18 = vadd.f32 %v3107_v60, %v3106_v1  ;;  %v2994_v1 = vmul.f32 %v7892_v23, %v7892_v23  ;;  %v3115_v6 = vsel %vm2195_vm2, %v2993_v3, 0.0 }
 0x7ac   :  { %v3110_v51 = vadd.f32 %v3109_v21, %v3108_v18  ;;  %v2995_v18 = vmul.f32 %v7899_v17, %v7899_v17  ;;  %v3117_v43 = vsel %vm2195_vm2, %v2994_v1, 0.0 }
 0x7ae   :  { %v3112_v40 = vadd.f32 %v3111_v5, %v3110_v51  ;;  %v2996_v51 = vmul.f32 %v7906_v26, %v7906_v26  ;;  %v3119_v3 = vsel %vm2195_vm2, %v2995_v18, 0.0 }
 0x7b0   :  { %v3114_v60 = vadd.f32 %v3113_v13, %v3112_v40  ;;  %v2997_v40 = vmul.f32 %v7913_v32, %v7913_v32  ;;  %v3121_v1 = vsel %vm2195_vm2, %v2996_v51, 0.0 }
 0x7b2   :  { %v3116_v21 = vadd.f32 %v3115_v6, %v3114_v60  ;;  %v2998_v60 = vmul.f32 %v7920_v8, %v7920_v8  ;;  %v3123_v18 = vsel %vm2195_vm2, %v2997_v40, 0.0 }
 0x7b4   :  { %v3118_v5 = vadd.f32 %v3117_v43, %v3116_v21  ;;  %v2999_v21 = vmul.f32 %v7927_v46, %v7927_v46  ;;  %v3125_v51 = vsel %vm2195_vm2, %v2998_v60, 0.0 }
 0x7b6   :  { %v3120_v13 = vadd.f32 %v3119_v3, %v3118_v5  ;;  %v3000_v5 = vmul.f32 %v7934_v29, %v7934_v29  ;;  %v3127_v40 = vsel %vm2195_vm2, %v2999_v21, 0.0  ;;  %v11133_v29 = vld [vmem:[#allocation34_spill] sm:$0xff] }
 0x7b7   :  { %v8054_v46 = vsub.f32 %v11133_v29, %v7700_v4 }
 0x7b8   :  { %v3122_v6 = vadd.f32 %v3121_v1, %v3120_v13  ;;  %v3001_v13 = vmul.f32 %v7941_v22, %v7941_v22  ;;  %v3129_v60 = vsel %vm2195_vm2, %v3000_v5, 0.0  ;;  %v3014_v22 = vmul.f32 %v8032_v34, %v8032_v34 }
 0x7b9   :  { %v3017_v29 = vmul.f32 %v8054_v46, %v8054_v46 }
 0x7ba   :  { %v3124_v43 = vadd.f32 %v3123_v18, %v3122_v6  ;;  %v3002_v6 = vmul.f32 %v7948_v2, %v7948_v2  ;;  %v3131_v21 = vsel %vm2195_vm2, %v3001_v13, 0.0 }
 0x7bc   :  { %v3126_v3 = vadd.f32 %v3125_v51, %v3124_v43  ;;  %v3003_v43 = vmul.f32 %v7955_v14, %v7955_v14  ;;  %v3133_v5 = vsel %vm2195_vm2, %v3002_v6, 0.0 }
 0x7be   :  { %v3128_v1 = vadd.f32 %v3127_v40, %v3126_v3  ;;  %v3004_v3 = vmul.f32 %v7962_v30, %v7962_v30  ;;  %v3135_v13 = vsel %vm2195_vm2, %v3003_v43, 0.0 }
 0x7c0   :  { %v3130_v18 = vadd.f32 %v3129_v60, %v3128_v1  ;;  %v3005_v1 = vmul.f32 %v7969_v59, %v7969_v59  ;;  %v3137_v6 = vsel %vm2195_vm2, %v3004_v3, 0.0 }
 0x7c2   :  { %v3132_v51 = vadd.f32 %v3131_v21, %v3130_v18  ;;  %v3006_v18 = vmul.f32 %v7976_v27, %v7976_v27  ;;  %v3139_v43 = vsel %vm2195_vm2, %v3005_v1, 0.0 }
 0x7c4   :  { %v3134_v40 = vadd.f32 %v3133_v5, %v3132_v51  ;;  %v3007_v51 = vmul.f32 %v7983_v53, %v7983_v53  ;;  %v3141_v3 = vsel %vm2195_vm2, %v3006_v18, 0.0 }
 0x7c6   :  { %v3136_v60 = vadd.f32 %v3135_v13, %v3134_v40  ;;  %v3008_v40 = vmul.f32 %v7990_v54, %v7990_v54  ;;  %v3143_v1 = vsel %vm2195_vm2, %v3007_v51, 0.0 }
 0x7c8   :  { %v3138_v21 = vadd.f32 %v3137_v6, %v3136_v60  ;;  %v3009_v60 = vmul.f32 %v7997_v19, %v7997_v19  ;;  %v3145_v18 = vsel %vm2195_vm2, %v3008_v40, 0.0 }
 0x7ca   :  { %v3140_v5 = vadd.f32 %v3139_v43, %v3138_v21  ;;  %v3010_v21 = vmul.f32 %v8004_v33, %v8004_v33  ;;  %v3147_v51 = vsel %vm2195_vm2, %v3009_v60, 0.0 }
 0x7cc   :  { %v3142_v13 = vadd.f32 %v3141_v3, %v3140_v5  ;;  %v3011_v5 = vmul.f32 %v8011_v56, %v8011_v56  ;;  %v3149_v40 = vsel %vm2195_vm2, %v3010_v21, 0.0 }
 0x7ce   :  { %v3144_v6 = vadd.f32 %v3143_v1, %v3142_v13  ;;  %v3012_v13 = vmul.f32 %v8018_v55, %v8018_v55  ;;  %v3151_v60 = vsel %vm2195_vm2, %v3011_v5, 0.0 }
 0x7d0   :  { %v3146_v43 = vadd.f32 %v3145_v18, %v3144_v6  ;;  %v11131_v6 = vld [vmem:[#allocation32_spill] sm:$0xff]  ;;  %v3153_v21 = vsel %vm2195_vm2, %v3012_v13, 0.0  ;;  %v3157_v13 = vsel %vm2195_vm2, %v3014_v22, 0.0 }
 0x7d1   :  { %v8041_v18 = vsub.f32 %v11131_v6, %v7700_v4  ;;  %v11134_v6 = vld [vmem:[#allocation35_spill] sm:$0xff] }
 0x7d2   :  { %v3148_v3 = vadd.f32 %v3147_v51, %v3146_v43  ;;  %v11132_v51 = vld [vmem:[#allocation33_spill] sm:$0xff] }
 0x7d3   :  { %v8046_v15 = vsub.f32 %v11132_v51, %v7700_v4  ;;  %v3015_v5 = vmul.f32 %v8041_v18, %v8041_v18 }
 0x7d4   :  { %v3150_v1 = vadd.f32 %v3149_v40, %v3148_v3  ;;  %v3155_v40 = vsel %vm2195_vm2, %v3013_v42, 0.0  ;;  %v11135_v42 = vld [vmem:[#allocation36_spill] sm:$0xff] }
 0x7d5   :  { %v3016_v51 = vmul.f32 %v8046_v15, %v8046_v15  ;;  %v3159_v8 = vsel %vm2195_vm2, %v3015_v5, 0.0  ;;  %v3163_v5 = vsel %vm2195_vm2, %v3017_v29, 0.0 }
 0x7d6   :  { %v3152_v43 = vadd.f32 %v3151_v60, %v3150_v1  ;;  %v8060_v60 = vsub.f32 %v11134_v6, %v7700_v4 }
 0x7d7   :  { %v3161_v22 = vsel %vm2195_vm2, %v3016_v51, 0.0 }
 0x7d8   :  { %v3154_v3 = vadd.f32 %v3153_v21, %v3152_v43  ;;  %v8067_v21 = vsub.f32 %v11135_v42, %v7700_v4  ;;  %v3018_v32 = vmul.f32 %v8060_v60, %v8060_v60 }
 0x7da   :  { %v3156_v1 = vadd.f32 %v3155_v40, %v3154_v3  ;;  %v11136_v40 = vld [vmem:[#allocation37_spill] sm:$0xff]  ;;  %v3019_v26 = vmul.f32 %v8067_v21, %v8067_v21  ;;  %v3165_v51 = vsel %vm2195_vm2, %v3018_v32, 0.0 }
 0x7db   :  { %v8074_v6 = vsub.f32 %v11136_v40, %v7700_v4 }
 0x7dc   :  { %v3158_v43 = vadd.f32 %v3157_v13, %v3156_v1  ;;  %v11137_v13 = vld [vmem:[#allocation38_spill] sm:$0xff]  ;;  %v3167_v29 = vsel %vm2195_vm2, %v3019_v26, 0.0 }
 0x7dd   :  { %v8081_v42 = vsub.f32 %v11137_v13, %v7700_v4  ;;  %v3020_v17 = vmul.f32 %v8074_v6, %v8074_v6 }
 0x7de   :  { %v3160_v3 = vadd.f32 %v3159_v8, %v3158_v43  ;;  %v11138_v43 = vld [vmem:[#allocation39_spill] sm:$0xff] }
 0x7df   :  { %v8088_v40 = vsub.f32 %v11138_v43, %v7700_v4  ;;  %v3021_v23 = vmul.f32 %v8081_v42, %v8081_v42  ;;  %v3169_v32 = vsel %vm2195_vm2, %v3020_v17, 0.0 }
 0x7e0   :  { %v3162_v1 = vadd.f32 %v3161_v22, %v3160_v3  ;;  %v11139_v22 = vld [vmem:[#allocation40_spill] sm:$0xff] }
 0x7e1   :  { %v8095_v13 = vsub.f32 %v11139_v22, %v7700_v4  ;;  %v3022_v7 = vmul.f32 %v8088_v40, %v8088_v40  ;;  %v3171_v26 = vsel %vm2195_vm2, %v3021_v23, 0.0 }
 0x7e2   :  { %v3164_v8 = vadd.f32 %v3163_v5, %v3162_v1  ;;  %v11141_v5 = vld [vmem:[#allocation41_spill] sm:$0xff] }
 0x7e3   :  { %11140 = vst [vmem:[#allocation32_spill] sm:$0xff] %v8095_v13  ;;  %v8102_v43 = vsub.f32 %v11141_v5, %v7700_v4  ;;  %v3023_v16 = vmul.f32 %v8095_v13, %v8095_v13  ;;  %v3173_v17 = vsel %vm2195_vm2, %v3022_v7, 0.0 }
 0x7e4   :  { %v3166_v3 = vadd.f32 %v3165_v51, %v3164_v8  ;;  %v11143_v51 = vld [vmem:[#allocation42_spill] sm:$0xff] }
 0x7e5   :  { %11142 = vst [vmem:[#allocation33_spill] sm:$0xff] %v8102_v43  ;;  %v8109_v22 = vsub.f32 %v11143_v51, %v7700_v4  ;;  %v3024_v49 = vmul.f32 %v8102_v43, %v8102_v43  ;;  %v3175_v23 = vsel %vm2195_vm2, %v3023_v16, 0.0 }
 0x7e6   :  { %v3168_v1 = vadd.f32 %v3167_v29, %v3166_v3  ;;  %v11145_v29 = vld [vmem:[#allocation43_spill] sm:$0xff] }
 0x7e7   :  { %11144 = vst [vmem:[#allocation34_spill] sm:$0xff] %v8109_v22  ;;  %v8116_v5 = vsub.f32 %v11145_v29, %v7700_v4  ;;  %v3025_v39 = vmul.f32 %v8109_v22, %v8109_v22  ;;  %v3177_v7 = vsel %vm2195_vm2, %v3024_v49, 0.0 }
 0x7e8   :  { %v3170_v8 = vadd.f32 %v3169_v32, %v3168_v1  ;;  %v11147_v32 = vld [vmem:[#allocation44_spill] sm:$0xff] }
 0x7e9   :  { %11146 = vst [vmem:[#allocation35_spill] sm:$0xff] %v8116_v5  ;;  %v8123_v51 = vsub.f32 %v11147_v32, %v7700_v4  ;;  %v3026_v58 = vmul.f32 %v8116_v5, %v8116_v5  ;;  %v3179_v16 = vsel %vm2195_vm2, %v3025_v39, 0.0 }
 0x7ea   :  { %v3172_v3 = vadd.f32 %v3171_v26, %v3170_v8  ;;  %v11149_v26 = vld [vmem:[#allocation45_spill] sm:$0xff] }
 0x7eb   :  { %11148 = vst [vmem:[#allocation36_spill] sm:$0xff] %v8123_v51  ;;  %v8130_v29 = vsub.f32 %v11149_v26, %v7700_v4  ;;  %v3027_v22 = vmul.f32 %v8123_v51, %v8123_v51  ;;  %v3181_v49 = vsel %vm2195_vm2, %v3026_v58, 0.0 }
 0x7ec   :  { %v3174_v1 = vadd.f32 %v3173_v17, %v3172_v3  ;;  %v11151_v17 = vld [vmem:[#allocation46_spill] sm:$0xff] }
 0x7ed   :  { %11150 = vst [vmem:[#allocation37_spill] sm:$0xff] %v8130_v29  ;;  %v8137_v32 = vsub.f32 %v11151_v17, %v7700_v4  ;;  %v3028_v5 = vmul.f32 %v8130_v29, %v8130_v29  ;;  %v3183_v39 = vsel %vm2195_vm2, %v3027_v22, 0.0 }
 0x7ee   :  { %v3176_v8 = vadd.f32 %v3175_v23, %v3174_v1  ;;  %v11153_v23 = vld [vmem:[#allocation47_spill] sm:$0xff] }
 0x7ef   :  { %11152 = vst [vmem:[#allocation38_spill] sm:$0xff] %v8137_v32  ;;  %v8144_v26 = vsub.f32 %v11153_v23, %v7700_v4  ;;  %v3029_v51 = vmul.f32 %v8137_v32, %v8137_v32  ;;  %v3185_v58 = vsel %vm2195_vm2, %v3028_v5, 0.0 }
 0x7f0   :  { %v3178_v3 = vadd.f32 %v3177_v7, %v3176_v8  ;;  %v11155_v7 = vld [vmem:[#allocation48_spill] sm:$0xff] }
 0x7f1   :  { %11154 = vst [vmem:[#allocation39_spill] sm:$0xff] %v8144_v26  ;;  %v8151_v17 = vsub.f32 %v11155_v7, %v7700_v4  ;;  %v3030_v29 = vmul.f32 %v8144_v26, %v8144_v26  ;;  %v3187_v22 = vsel %vm2195_vm2, %v3029_v51, 0.0 }
 0x7f2   :  { %v3180_v1 = vadd.f32 %v3179_v16, %v3178_v3  ;;  %v11157_v16 = vld [vmem:[#allocation49_spill] sm:$0xff] }
 0x7f3   :  { %11156 = vst [vmem:[#allocation40_spill] sm:$0xff] %v8151_v17  ;;  %v8158_v23 = vsub.f32 %v11157_v16, %v7700_v4  ;;  %v3031_v32 = vmul.f32 %v8151_v17, %v8151_v17  ;;  %v3189_v5 = vsel %vm2195_vm2, %v3030_v29, 0.0 }
 0x7f4   :  { %v3182_v8 = vadd.f32 %v3181_v49, %v3180_v1  ;;  %v11159_v49 = vld [vmem:[#allocation50_spill] sm:$0xff] }
 0x7f5   :  { %11158 = vst [vmem:[#allocation41_spill] sm:$0xff] %v8158_v23  ;;  %v8165_v7 = vsub.f32 %v11159_v49, %v7700_v4  ;;  %v3032_v26 = vmul.f32 %v8158_v23, %v8158_v23  ;;  %v3191_v51 = vsel %vm2195_vm2, %v3031_v32, 0.0 }
 0x7f6   :  { %v3184_v3 = vadd.f32 %v3183_v39, %v3182_v8  ;;  %v11161_v39 = vld [vmem:[#allocation51_spill] sm:$0xff] }
 0x7f7   :  { %11160 = vst [vmem:[#allocation42_spill] sm:$0xff] %v8165_v7  ;;  %v8172_v16 = vsub.f32 %v11161_v39, %v7700_v4  ;;  %v3033_v17 = vmul.f32 %v8165_v7, %v8165_v7  ;;  %v3193_v29 = vsel %vm2195_vm2, %v3032_v26, 0.0 }
 0x7f8   :  { %v3186_v1 = vadd.f32 %v3185_v58, %v3184_v3  ;;  %v11163_v58 = vld [vmem:[#allocation52_spill] sm:$0xff] }
 0x7f9   :  { %11162 = vst [vmem:[#allocation43_spill] sm:$0xff] %v8172_v16  ;;  %v8179_v49 = vsub.f32 %v11163_v58, %v7700_v4  ;;  %v3034_v23 = vmul.f32 %v8172_v16, %v8172_v16  ;;  %v3195_v32 = vsel %vm2195_vm2, %v3033_v17, 0.0 }
 0x7fa   :  { %v3188_v8 = vadd.f32 %v3187_v22, %v3186_v1  ;;  %v11165_v22 = vld [vmem:[#allocation53_spill] sm:$0xff] }
 0x7fb   :  { %11164 = vst [vmem:[#allocation44_spill] sm:$0xff] %v8179_v49  ;;  %v8186_v39 = vsub.f32 %v11165_v22, %v7700_v4  ;;  %v3035_v7 = vmul.f32 %v8179_v49, %v8179_v49  ;;  %v3197_v26 = vsel %vm2195_vm2, %v3034_v23, 0.0 }
 0x7fc   :  { %v3190_v3 = vadd.f32 %v3189_v5, %v3188_v8  ;;  %v11167_v5 = vld [vmem:[#allocation54_spill] sm:$0xff] }
 0x7fd   :  { %11166 = vst [vmem:[#allocation45_spill] sm:$0xff] %v8186_v39  ;;  %v8193_v58 = vsub.f32 %v11167_v5, %v7700_v4  ;;  %v3036_v16 = vmul.f32 %v8186_v39, %v8186_v39  ;;  %v3199_v17 = vsel %vm2195_vm2, %v3035_v7, 0.0 }
 0x7fe   :  { %v3192_v1 = vadd.f32 %v3191_v51, %v3190_v3  ;;  %v11169_v51 = vld [vmem:[#allocation55_spill] sm:$0xff] }
 0x7ff   :  { %11168 = vst [vmem:[#allocation46_spill] sm:$0xff] %v8193_v58  ;;  %v8200_v22 = vsub.f32 %v11169_v51, %v7700_v4  ;;  %v3037_v49 = vmul.f32 %v8193_v58, %v8193_v58  ;;  %v3201_v23 = vsel %vm2195_vm2, %v3036_v16, 0.0 }
 0x800   :  { %v3194_v8 = vadd.f32 %v3193_v29, %v3192_v1  ;;  %v11171_v29 = vld [vmem:[#allocation56_spill] sm:$0xff] }
 0x801   :  { %11170 = vst [vmem:[#allocation47_spill] sm:$0xff] %v8200_v22  ;;  %v8207_v5 = vsub.f32 %v11171_v29, %v7700_v4  ;;  %v3038_v39 = vmul.f32 %v8200_v22, %v8200_v22  ;;  %v3203_v7 = vsel %vm2195_vm2, %v3037_v49, 0.0 }
 0x802   :  { %v3196_v3 = vadd.f32 %v3195_v32, %v3194_v8  ;;  %v11173_v32 = vld [vmem:[#allocation57_spill] sm:$0xff] }
 0x803   :  { %11172 = vst [vmem:[#allocation48_spill] sm:$0xff] %v8207_v5  ;;  %v8214_v51 = vsub.f32 %v11173_v32, %v7700_v4  ;;  %v3039_v58 = vmul.f32 %v8207_v5, %v8207_v5  ;;  %v3205_v16 = vsel %vm2195_vm2, %v3038_v39, 0.0 }
 0x804   :  { %v3198_v1 = vadd.f32 %v3197_v26, %v3196_v3  ;;  %v11175_v26 = vld [vmem:[#allocation58_spill] sm:$0xff] }
 0x805   :  { %11174 = vst [vmem:[#allocation49_spill] sm:$0xff] %v8214_v51  ;;  %v8221_v29 = vsub.f32 %v11175_v26, %v7700_v4  ;;  %v3040_v22 = vmul.f32 %v8214_v51, %v8214_v51  ;;  %v3207_v49 = vsel %vm2195_vm2, %v3039_v58, 0.0 }
 0x806   :  { %v3200_v8 = vadd.f32 %v3199_v17, %v3198_v1  ;;  %v11177_v17 = vld [vmem:[#allocation59_spill] sm:$0xff] }
 0x807   :  { %11176 = vst [vmem:[#allocation50_spill] sm:$0xff] %v8221_v29  ;;  %v8228_v32 = vsub.f32 %v11177_v17, %v7700_v4  ;;  %v3041_v5 = vmul.f32 %v8221_v29, %v8221_v29  ;;  %v3209_v39 = vsel %vm2195_vm2, %v3040_v22, 0.0 }
 0x808   :  { %v3202_v3 = vadd.f32 %v3201_v23, %v3200_v8  ;;  %v11179_v23 = vld [vmem:[#allocation60_spill] sm:$0xff] }
 0x809   :  { %11178 = vst [vmem:[#allocation51_spill] sm:$0xff] %v8228_v32  ;;  %v8235_v26 = vsub.f32 %v11179_v23, %v7700_v4  ;;  %v3042_v51 = vmul.f32 %v8228_v32, %v8228_v32  ;;  %v3211_v58 = vsel %vm2195_vm2, %v3041_v5, 0.0 }
 0x80a   :  { %v3204_v1 = vadd.f32 %v3203_v7, %v3202_v3  ;;  %v11181_v7 = vld [vmem:[#allocation61_spill] sm:$0xff] }
 0x80b   :  { %11180 = vst [vmem:[#allocation52_spill] sm:$0xff] %v8235_v26  ;;  %v8242_v17 = vsub.f32 %v11181_v7, %v7700_v4  ;;  %v3043_v29 = vmul.f32 %v8235_v26, %v8235_v26  ;;  %v3213_v22 = vsel %vm2195_vm2, %v3042_v51, 0.0 }
 0x80c   :  { %v3206_v8 = vadd.f32 %v3205_v16, %v3204_v1  ;;  %v11183_v16 = vld [vmem:[#allocation62_spill] sm:$0xff] }
 0x80d   :  { %11182 = vst [vmem:[#allocation53_spill] sm:$0xff] %v8242_v17  ;;  %v8249_v23 = vsub.f32 %v11183_v16, %v7700_v4  ;;  %v3044_v32 = vmul.f32 %v8242_v17, %v8242_v17  ;;  %v3215_v5 = vsel %vm2195_vm2, %v3043_v29, 0.0 }
 0x80e   :  { %v3208_v3 = vadd.f32 %v3207_v49, %v3206_v8  ;;  %v11185_v49 = vld [vmem:[#allocation63_spill] sm:$0xff] }
 0x80f   :  { %11184 = vst [vmem:[#allocation54_spill] sm:$0xff] %v8249_v23  ;;  %v8256_v7 = vsub.f32 %v11185_v49, %v7700_v4  ;;  %v3045_v26 = vmul.f32 %v8249_v23, %v8249_v23  ;;  %v3217_v51 = vsel %vm2195_vm2, %v3044_v32, 0.0 }
 0x810   :  { %v3210_v1 = vadd.f32 %v3209_v39, %v3208_v3  ;;  %v11187_v39 = vld [vmem:[#allocation64_spill] sm:$0xff] }
 0x811   :  { %11186 = vst [vmem:[#allocation55_spill] sm:$0xff] %v8256_v7  ;;  %v8263_v16 = vsub.f32 %v11187_v39, %v7700_v4  ;;  %v3046_v17 = vmul.f32 %v8256_v7, %v8256_v7  ;;  %v3219_v29 = vsel %vm2195_vm2, %v3045_v26, 0.0 }
 0x812   :  { %v3212_v8 = vadd.f32 %v3211_v58, %v3210_v1  ;;  %v11189_v58 = vld [vmem:[#allocation65_spill] sm:$0xff] }
 0x813   :  { %11188 = vst [vmem:[#allocation56_spill] sm:$0xff] %v8263_v16  ;;  %v8270_v49 = vsub.f32 %v11189_v58, %v7700_v4  ;;  %v3047_v23 = vmul.f32 %v8263_v16, %v8263_v16  ;;  %v3221_v32 = vsel %vm2195_vm2, %v3046_v17, 0.0 }
 0x814   :  { %v3214_v3 = vadd.f32 %v3213_v22, %v3212_v8  ;;  %v11191_v22 = vld [vmem:[#allocation66_spill] sm:$0xff] }
 0x815   :  { %11190 = vst [vmem:[#allocation57_spill] sm:$0xff] %v8270_v49  ;;  %v8277_v39 = vsub.f32 %v11191_v22, %v7700_v4  ;;  %v3048_v7 = vmul.f32 %v8270_v49, %v8270_v49  ;;  %v3223_v26 = vsel %vm2195_vm2, %v3047_v23, 0.0 }
 0x816   :  { %v3216_v1 = vadd.f32 %v3215_v5, %v3214_v3  ;;  %v11193_v5 = vld [vmem:[#allocation67_spill] sm:$0xff] }
 0x817   :  { %11192 = vst [vmem:[#allocation58_spill] sm:$0xff] %v8277_v39  ;;  %v8284_v58 = vsub.f32 %v11193_v5, %v7700_v4  ;;  %v3049_v16 = vmul.f32 %v8277_v39, %v8277_v39  ;;  %v3225_v17 = vsel %vm2195_vm2, %v3048_v7, 0.0 }
 0x818   :  { %v3218_v8 = vadd.f32 %v3217_v51, %v3216_v1  ;;  %v11195_v51 = vld [vmem:[#allocation68_spill] sm:$0xff] }
 0x819   :  { %11194 = vst [vmem:[#allocation59_spill] sm:$0xff] %v8284_v58  ;;  %v8291_v22 = vsub.f32 %v11195_v51, %v7700_v4  ;;  %v3050_v49 = vmul.f32 %v8284_v58, %v8284_v58  ;;  %v3227_v23 = vsel %vm2195_vm2, %v3049_v16, 0.0 }
 0x81a   :  { %v3220_v3 = vadd.f32 %v3219_v29, %v3218_v8  ;;  %v11197_v29 = vld [vmem:[#allocation69_spill] sm:$0xff] }
 0x81b   :  { %11196 = vst [vmem:[#allocation60_spill] sm:$0xff] %v8291_v22  ;;  %v8298_v5 = vsub.f32 %v11197_v29, %v7700_v4  ;;  %v3051_v39 = vmul.f32 %v8291_v22, %v8291_v22  ;;  %v3229_v7 = vsel %vm2195_vm2, %v3050_v49, 0.0 }
 0x81c   :  { %v3222_v1 = vadd.f32 %v3221_v32, %v3220_v3  ;;  %v11199_v32 = vld [vmem:[#allocation70_spill] sm:$0xff] }
 0x81d   :  { %11198 = vst [vmem:[#allocation61_spill] sm:$0xff] %v8298_v5  ;;  %v8305_v51 = vsub.f32 %v11199_v32, %v7700_v4  ;;  %v3052_v58 = vmul.f32 %v8298_v5, %v8298_v5  ;;  %v3231_v16 = vsel %vm2195_vm2, %v3051_v39, 0.0 }
 0x81e   :  { %v3224_v8 = vadd.f32 %v3223_v26, %v3222_v1  ;;  %v11201_v26 = vld [vmem:[#allocation71_spill] sm:$0xff] }
 0x81f   :  { %11200 = vst [vmem:[#allocation62_spill] sm:$0xff] %v8305_v51  ;;  %v8312_v29 = vsub.f32 %v11201_v26, %v7700_v4  ;;  %v3053_v22 = vmul.f32 %v8305_v51, %v8305_v51  ;;  %v3233_v49 = vsel %vm2195_vm2, %v3052_v58, 0.0 }
 0x820   :  { %v3226_v3 = vadd.f32 %v3225_v17, %v3224_v8  ;;  %v11203_v17 = vld [vmem:[#allocation72_spill] sm:$0xff] }
 0x821   :  { %11202 = vst [vmem:[#allocation63_spill] sm:$0xff] %v8312_v29  ;;  %v8319_v32 = vsub.f32 %v11203_v17, %v7700_v4  ;;  %v3054_v5 = vmul.f32 %v8312_v29, %v8312_v29  ;;  %v3235_v39 = vsel %vm2195_vm2, %v3053_v22, 0.0 }
 0x822   :  { %v3228_v1 = vadd.f32 %v3227_v23, %v3226_v3  ;;  %v11205_v23 = vld [vmem:[#allocation73_spill] sm:$0xff] }
 0x823   :  { %11204 = vst [vmem:[#allocation64_spill] sm:$0xff] %v8319_v32  ;;  %v8326_v26 = vsub.f32 %v11205_v23, %v7700_v4  ;;  %v3055_v51 = vmul.f32 %v8319_v32, %v8319_v32  ;;  %v3237_v58 = vsel %vm2195_vm2, %v3054_v5, 0.0 }
 0x824   :  { %v3230_v8 = vadd.f32 %v3229_v7, %v3228_v1  ;;  %v11207_v7 = vld [vmem:[#allocation74_spill] sm:$0xff] }
 0x825   :  { %11206 = vst [vmem:[#allocation65_spill] sm:$0xff] %v8326_v26  ;;  %v8333_v17 = vsub.f32 %v11207_v7, %v7700_v4  ;;  %v3056_v29 = vmul.f32 %v8326_v26, %v8326_v26  ;;  %v3239_v22 = vsel %vm2195_vm2, %v3055_v51, 0.0 }
 0x826   :  { %v3232_v3 = vadd.f32 %v3231_v16, %v3230_v8  ;;  %v11209_v16 = vld [vmem:[#allocation75_spill] sm:$0xff] }
 0x827   :  { %11208 = vst [vmem:[#allocation66_spill] sm:$0xff] %v8333_v17  ;;  %v8340_v23 = vsub.f32 %v11209_v16, %v7700_v4  ;;  %v3057_v32 = vmul.f32 %v8333_v17, %v8333_v17  ;;  %v3241_v5 = vsel %vm2195_vm2, %v3056_v29, 0.0 }
 0x828   :  { %v3234_v1 = vadd.f32 %v3233_v49, %v3232_v3  ;;  %v11211_v49 = vld [vmem:[#allocation76_spill] sm:$0xff] }
 0x829   :  { %11210 = vst [vmem:[#allocation67_spill] sm:$0xff] %v8340_v23  ;;  %v8347_v7 = vsub.f32 %v11211_v49, %v7700_v4  ;;  %v3058_v26 = vmul.f32 %v8340_v23, %v8340_v23  ;;  %v3243_v51 = vsel %vm2195_vm2, %v3057_v32, 0.0 }
 0x82a   :  { %v3236_v8 = vadd.f32 %v3235_v39, %v3234_v1  ;;  %v11213_v39 = vld [vmem:[#allocation77_spill] sm:$0xff] }
 0x82b   :  { %11212 = vst [vmem:[#allocation68_spill] sm:$0xff] %v8347_v7  ;;  %v8354_v16 = vsub.f32 %v11213_v39, %v7700_v4  ;;  %v3059_v49 = vmul.f32 %v8347_v7, %v8347_v7  ;;  %v3245_v39 = vsel %vm2195_vm2, %v3058_v26, 0.0 }
 0x82c   :  { %v3238_v3 = vadd.f32 %v3237_v58, %v3236_v8  ;;  %v8361_v58 = vsub.f32 %v7696_v24, %v7700_v4 }
 0x82d   :  { %11214 = vst [vmem:[#allocation69_spill] sm:$0xff] %v8354_v16 }
 0x82e   :  { %v3240_v1 = vadd.f32 %v3239_v22, %v3238_v3  ;;  %11215 = vst [vmem:[#allocation70_spill] sm:$0xff] %v8361_v58  ;;  %v3060_v22 = vmul.f32 %v8354_v16, %v8354_v16  ;;  %v3061_v29 = vmul.f32 %v8361_v58, %v8361_v58 }
 0x830   :  { %v3242_v8 = vadd.f32 %v3241_v5, %v3240_v1  ;;  %v3247_v1 = vsel %vm2195_vm2, %v3059_v49, 0.0  ;;  %v3249_v4 = vsel %vm2195_vm2, %v3060_v22, 0.0  ;;  %v3251_v7 = vsel %vm2195_vm2, %v3061_v29, 0.0 }
 0x832   :  { %v3244_v3 = vadd.f32 %v3243_v51, %v3242_v8 }
 0x834   :  { %v3246_v17 = vadd.f32 %v3245_v39, %v3244_v3 }
 0x836   :  { %v3248_v5 = vadd.f32 %v3247_v1, %v3246_v17 }
 0x838   :  { %v3250_v24 = vadd.f32 %v3249_v4, %v3248_v5 }
 0x83a   :  { %v3252_v23 = vadd.f32 %v3251_v7, %v3250_v24 }
 0x83c   :  { %v3253_v32 = vrot.slane %v3252_v23, 4 }
 0x83e   :  { %v3254_v8 = vadd.f32 %v3253_v32, %v3252_v23  ;;  %v8377_v23 = vld [vmem:[%s10856_s14] ss:$0 sm:$0xff] }
 0x840   :  { %v3255_v51 = vrot.slane %v3254_v8, 2 }
 0x842   :  { %v3256_v43 = vadd.f32 %v3255_v51, %v3254_v8 }
 0x844   :  { %v3257_v16 = vrot.slane %v3256_v43, 1 }
 0x846   :  { %v3258_v11 = vadd.f32 %v3257_v16, %v3256_v43  ;;  %v8386_v43 = vld [vmem:[%s10857_s15] ss:$0 sm:$0xff] }
 0x848   :  { %v3259_v26 = vmul.f32 0.0013020834, %v3258_v11 }
 0x84a   :  { %v3260_v3 = vadd.f32 1e-05, %v3259_v26 }
 0x84c   :  { %5655 = vrsqrt.f32 %v3260_v3  ;;  %vm3267_vm3 = vweird.f32 %v3260_v3 }
 0x852   :  { %v5656_v39 = vpop.eup %5655 }
 0x853   :  { %v3262_v58 = vmul.f32 %v5656_v39, %v3260_v3  ;;  %vm3268_vm0 = vweird.f32 %v5656_v39 }
 0x854   :  { %vm3269_vm4 = vmor %vm3267_vm3, %vm3268_vm0 }
 0x855   :  { %v3263_v13 = vmul.f32 %v5656_v39, %v3262_v58 }
 0x857   :  { %v3264_v49 = vmul.f32 0.5, %v3263_v13 }
 0x859   :  { %v3265_v17 = vsub.f32 1.5, %v3264_v49 }
 0x85b   :  { %v3266_v22 = vmul.f32 %v5656_v39, %v3265_v17 }
 0x85d   :  { %v8379_v7 = vsel %vm3269_vm4, %v5656_v39, %v3266_v22 }
 0x85e   :  { %v3271_v11 = vmul.f32 %v8379_v7, %v7704_v63  ;;  %v3307_v13 = vmul.f32 %v8379_v7, %v7948_v2  ;;  %v3272_v29 = vmul.f32 %v8379_v7, %v7708_v44  ;;  %v3308_v1 = vmul.f32 %v8379_v7, %v7955_v14 }
 0x85f   :  { %v3273_v14 = vmul.f32 %v8379_v7, %v7712_v50  ;;  %v3309_v51 = vmul.f32 %v8379_v7, %v7962_v30  ;;  %v3274_v50 = vmul.f32 %v8379_v7, %v7716_v41  ;;  %v3310_v30 = vmul.f32 %v8379_v7, %v7969_v59 }
 0x860   :  { %v3370_v16 = vmul.f32 %v8377_v23, %v3271_v11  ;;  %v3406_v58 = vmul.f32 %v8377_v23, %v3307_v13  ;;  %v3371_v32 = vmul.f32 %v8377_v23, %v3272_v29  ;;  %v3407_v2 = vmul.f32 %v8377_v23, %v3308_v1 }
 0x861   :  { %v3372_v39 = vmul.f32 %v8377_v23, %v3273_v14  ;;  %v3408_v49 = vmul.f32 %v8377_v23, %v3309_v51  ;;  %v3275_v41 = vmul.f32 %v8379_v7, %v7720_v45  ;;  %v3311_v59 = vmul.f32 %v8379_v7, %v7976_v27 }
 0x862   :  { %v3469_v63 = vadd.f32 %v8386_v43, %v3370_v16  ;;  %v3505_v5 = vadd.f32 %v8386_v43, %v3406_v58  ;;  %v3470_v8 = vadd.f32 %v8386_v43, %v3371_v32  ;;  %v3506_v44 = vadd.f32 %v8386_v43, %v3407_v2 }
 0x863   :  { %v3471_v17 = vadd.f32 %v8386_v43, %v3372_v39  ;;  %v3507_v22 = vadd.f32 %v8386_v43, %v3408_v49  ;;  %v3373_v16 = vmul.f32 %v8377_v23, %v3274_v50  ;;  %v3409_v58 = vmul.f32 %v8377_v23, %v3310_v30 }
 0x864   :  { %v3565_v4 = vmax.f32 %v3469_v63, 0.0  ;;  %v3601_v24 = vmax.f32 %v3505_v5, 0.0  ;;  %v3566_v26 = vmax.f32 %v3470_v8, 0.0  ;;  %v3602_v3 = vmax.f32 %v3506_v44, 0.0 }
 0x865   :  { %v3567_v11 = vmax.f32 %v3471_v17, 0.0  ;;  %v3603_v13 = vmax.f32 %v3507_v22, 0.0  ;;  %v3472_v29 = vadd.f32 %v8386_v43, %v3373_v16  ;;  %v3508_v1 = vadd.f32 %v8386_v43, %v3409_v58 }
 0x866   :  { %5518 = vmatmul.msk.f32.vlgmr.msra.gmra.mxu1 %vm2195_vm2, %v3565_v4  ;;  %5554 = vmatmul.msk.f32.vlgmr.msrb.gmra.mxu3 %vm2195_vm2, %v3601_v24  ;;  %v3374_v4 = vmul.f32 %v8377_v23, %v3275_v41  ;;  %v3410_v24 = vmul.f32 %v8377_v23, %v3311_v59  ;;  %v3276_v45 = vmul.f32 %v8379_v7, %v7730_v61 }
 0x867   :  { %v3568_v63 = vmax.f32 %v3472_v29, 0.0  ;;  %v3604_v5 = vmax.f32 %v3508_v1, 0.0  ;;  %v3312_v27 = vmul.f32 %v8379_v7, %v7983_v53  ;;  %v3277_v61 = vmul.f32 %v8379_v7, %v7738_v31 }
 0x868   :  { %v3473_v32 = vadd.f32 %v8386_v43, %v3374_v4  ;;  %v3509_v2 = vadd.f32 %v8386_v43, %v3410_v24  ;;  %v3375_v14 = vmul.f32 %v8377_v23, %v3276_v45  ;;  %v3313_v53 = vmul.f32 %v8379_v7, %v7990_v54 }
 0x869   :  { %v3411_v51 = vmul.f32 %v8377_v23, %v3312_v27  ;;  %v3376_v17 = vmul.f32 %v8377_v23, %v3277_v61  ;;  %v3278_v31 = vmul.f32 %v8379_v7, %v7745_v9  ;;  %v3314_v54 = vmul.f32 %v8379_v7, %v7997_v19 }
 0x86a   :  { %v3569_v8 = vmax.f32 %v3473_v32, 0.0  ;;  %v3605_v44 = vmax.f32 %v3509_v2, 0.0  ;;  %v3412_v22 = vmul.f32 %v8377_v23, %v3313_v53  ;;  %v3279_v9 = vmul.f32 %v8379_v7, %v7752_v25 }
 0x86b   :  { %v3475_v50 = vadd.f32 %v8386_v43, %v3376_v17  ;;  %v3377_v16 = vmul.f32 %v8377_v23, %v3278_v31  ;;  %v3413_v58 = vmul.f32 %v8377_v23, %v3314_v54  ;;  %v3315_v19 = vmul.f32 %v8379_v7, %v8004_v33 }
 0x86c   :  { %v3511_v30 = vadd.f32 %v8386_v43, %v3412_v22  ;;  %v3280_v25 = vmul.f32 %v8379_v7, %v7759_v0  ;;  %v3316_v33 = vmul.f32 %v8379_v7, %v8011_v56  ;;  %v3281_v0 = vmul.f32 %v8379_v7, %v7766_v10 }
 0x86d   :  { %v3476_v29 = vadd.f32 %v8386_v43, %v3377_v16  ;;  %v3512_v1 = vadd.f32 %v8386_v43, %v3413_v58  ;;  %v3317_v56 = vmul.f32 %v8379_v7, %v8018_v55  ;;  %v3282_v10 = vmul.f32 %v8379_v7, %v7773_v12 }
 0x86e   :  { %5519 = vmatmul.msk.f32.gmra.mxu1 %vm2195_vm2, %v3566_v26  ;;  %5555 = vmatmul.msk.f32.gmra.mxu3 %vm2195_vm2, %v3602_v3  ;;  %v3474_v26 = vadd.f32 %v8386_v43, %v3375_v14  ;;  %v3510_v3 = vadd.f32 %v8386_v43, %v3411_v51  ;;  %v3379_v45 = vmul.f32 %v8377_v23, %v3280_v25 }
 0x86f   :  { %v3572_v41 = vmax.f32 %v3476_v29, 0.0  ;;  %v3608_v59 = vmax.f32 %v3512_v1, 0.0  ;;  %v3415_v27 = vmul.f32 %v8377_v23, %v3316_v33  ;;  %v3318_v55 = vmul.f32 %v8379_v7, %v8025_v48 }
 0x870   :  { %v3570_v39 = vmax.f32 %v3474_v26, 0.0  ;;  %v3606_v49 = vmax.f32 %v3510_v3, 0.0  ;;  %v3380_v26 = vmul.f32 %v8377_v23, %v3281_v0  ;;  %v3416_v3 = vmul.f32 %v8377_v23, %v3317_v56 }
 0x871   :  { %v3381_v17 = vmul.f32 %v8377_v23, %v3282_v10  ;;  %v3417_v22 = vmul.f32 %v8377_v23, %v3318_v55  ;;  %v3283_v12 = vmul.f32 %v8379_v7, %v7780_v20  ;;  %v3319_v48 = vmul.f32 %v8379_v7, %v8032_v34 }
 0x872   :  { %v3479_v61 = vadd.f32 %v8386_v43, %v3380_v26  ;;  %v3515_v53 = vadd.f32 %v8386_v43, %v3416_v3  ;;  %v3284_v20 = vmul.f32 %v8379_v7, %v7787_v28  ;;  %v3320_v34 = vmul.f32 %v8379_v7, %v8041_v18 }
 0x873   :  { %v3285_v28 = vmul.f32 %v8379_v7, %v7794_v35  ;;  %v3321_v18 = vmul.f32 %v8379_v7, %v8046_v15  ;;  %v3286_v35 = vmul.f32 %v8379_v7, %v7801_v52  ;;  %v3322_v15 = vmul.f32 %v8379_v7, %v8054_v46 }
 0x874   :  { %v3287_v52 = vmul.f32 %v8379_v7, %v7808_v38  ;;  %v3323_v46 = vmul.f32 %v8379_v7, %v8060_v60  ;;  %v3288_v38 = vmul.f32 %v8379_v7, %v7815_v37  ;;  %v3324_v60 = vmul.f32 %v8379_v7, %v8067_v21 }
 0x875   :  { %v3289_v37 = vmul.f32 %v8379_v7, %v7822_v62  ;;  %v3325_v21 = vmul.f32 %v8379_v7, %v8074_v6  ;;  %v3290_v6 = vmul.f32 %v8379_v7, %v7829_v57 }
 0x876   :  { %5520 = vmatmul.msk.f32.gmra.mxu1 %vm2195_vm2, %v3567_v11  ;;  %5556 = vmatmul.msk.f32.gmra.mxu3 %vm2195_vm2, %v3603_v13  ;;  %v3571_v11 = vmax.f32 %v3475_v50, 0.0  ;;  %v3607_v13 = vmax.f32 %v3511_v30, 0.0  ;;  %v3480_v50 = vadd.f32 %v8386_v43, %v3381_v17  ;;  %v3516_v30 = vadd.f32 %v8386_v43, %v3417_v22 }
 0x877   :  { %v3387_v55 = vmul.f32 %v8377_v23, %v3288_v38 }
 0x878   :  { %v3576_v31 = vmax.f32 %v3480_v50, 0.0  ;;  %v3612_v54 = vmax.f32 %v3516_v30, 0.0 }
 0x87e   :  { %5521 = vmatmul.msk.f32.gmra.mxu1 %vm2195_vm2, %v3568_v63  ;;  %5557 = vmatmul.msk.f32.gmra.mxu3 %vm2195_vm2, %v3604_v5  ;;  %v3378_v63 = vmul.f32 %v8377_v23, %v3279_v9  ;;  %v3414_v5 = vmul.f32 %v8377_v23, %v3315_v19  ;;  %v3383_v9 = vmul.f32 %v8377_v23, %v3284_v20 }
 0x87f   :  { %v3419_v19 = vmul.f32 %v8377_v23, %v3320_v34  ;;  %v3389_v34 = vmul.f32 %v8377_v23, %v3290_v6 }
 0x880   :  { %v3477_v4 = vadd.f32 %v8386_v43, %v3378_v63  ;;  %v3513_v24 = vadd.f32 %v8386_v43, %v3414_v5 }
 0x882   :  { %v3573_v32 = vmax.f32 %v3477_v4, 0.0  ;;  %v3609_v2 = vmax.f32 %v3513_v24, 0.0  ;;  %v3384_v4 = vmul.f32 %v8377_v23, %v3285_v28  ;;  %v3420_v24 = vmul.f32 %v8377_v23, %v3321_v18 }
 0x884   :  { %v3483_v25 = vadd.f32 %v8386_v43, %v3384_v4  ;;  %v3519_v33 = vadd.f32 %v8386_v43, %v3420_v24  ;;  %v11219_v4 = vld [vmem:[#allocation32_spill] sm:$0xff] }
 0x885   :  { %v3328_v24 = vmul.f32 %v8379_v7, %v11219_v4 }
 0x886   :  { %5522 = vmatmul.msk.f32.gmra.mxu1 %vm2195_vm2, %v3569_v8  ;;  %5558 = vmatmul.msk.f32.gmra.mxu3 %vm2195_vm2, %v3605_v44  ;;  %v3478_v8 = vadd.f32 %v8386_v43, %v3379_v45  ;;  %v3514_v44 = vadd.f32 %v8386_v43, %v3415_v27  ;;  %v3385_v45 = vmul.f32 %v8377_v23, %v3286_v35 }
 0x887   :  { %v3421_v27 = vmul.f32 %v8377_v23, %v3322_v15 }
 0x888   :  { %v3574_v14 = vmax.f32 %v3478_v8, 0.0  ;;  %v3610_v51 = vmax.f32 %v3514_v44, 0.0  ;;  %v3484_v8 = vadd.f32 %v8386_v43, %v3385_v45 }
 0x889   :  { %v3520_v44 = vadd.f32 %v8386_v43, %v3421_v27  ;;  %v11221_v27 = vld [vmem:[#allocation78_spill] sm:$0xff] }
 0x88a   :  { %v3580_v0 = vmax.f32 %v3484_v8, 0.0  ;;  %v3293_v8 = vmul.f32 %v8379_v7, %v11221_v27 }
 0x88b   :  { %v3616_v56 = vmax.f32 %v3520_v44, 0.0  ;;  %v11222_v44 = vld [vmem:[#allocation33_spill] sm:$0xff] }
 0x88e   :  { %5523 = vmatmul.msk.f32.gmra.mxu1 %vm2195_vm2, %v3570_v39  ;;  %5559 = vmatmul.msk.f32.gmra.mxu3 %vm2195_vm2, %v3606_v49  ;;  %v3575_v39 = vmax.f32 %v3479_v61, 0.0  ;;  %v3611_v49 = vmax.f32 %v3515_v53, 0.0 }
 0x896   :  { %5524 = vmatmul.msk.f32.gmra.mxu1 %vm2195_vm2, %v3571_v11  ;;  %5560 = vmatmul.msk.f32.gmra.mxu3 %vm2195_vm2, %v3607_v13  ;;  %v3382_v11 = vmul.f32 %v8377_v23, %v3283_v12  ;;  %v3418_v13 = vmul.f32 %v8377_v23, %v3319_v48  ;;  %v3388_v48 = vmul.f32 %v8377_v23, %v3289_v37 }
 0x898   :  { %v3481_v16 = vadd.f32 %v8386_v43, %v3382_v11  ;;  %v3517_v58 = vadd.f32 %v8386_v43, %v3418_v13  ;;  %v3326_v11 = vmul.f32 %v8379_v7, %v8081_v42  ;;  %v3291_v42 = vmul.f32 %v8379_v7, %v7836_v47 }
 0x89a   :  { %v3577_v29 = vmax.f32 %v3481_v16, 0.0  ;;  %v3613_v1 = vmax.f32 %v3517_v58, 0.0  ;;  %v3390_v18 = vmul.f32 %v8377_v23, %v3291_v42 }
 0x89e   :  { %5525 = vmatmul.msk.f32.gmra.mxu1 %vm2195_vm2, %v3572_v41  ;;  %5561 = vmatmul.msk.f32.gmra.mxu3 %vm2195_vm2, %v3608_v59  ;;  %v3482_v41 = vadd.f32 %v8386_v43, %v3383_v9  ;;  %v3518_v59 = vadd.f32 %v8386_v43, %v3419_v19  ;;  %v3327_v9 = vmul.f32 %v8379_v7, %v8088_v40 }
 0x89f   :  { %v3292_v40 = vmul.f32 %v8379_v7, %v7843_v36 }
 0x8a0   :  { %v3578_v63 = vmax.f32 %v3482_v41, 0.0  ;;  %v3614_v5 = vmax.f32 %v3518_v59, 0.0 }
 0x8a6   :  { %5526 = vmatmul.msk.f32.gmra.mxu1 %vm2195_vm2, %v3573_v32  ;;  %5562 = vmatmul.msk.f32.gmra.mxu3 %vm2195_vm2, %v3609_v2  ;;  %v3579_v32 = vmax.f32 %v3483_v25, 0.0  ;;  %v3615_v2 = vmax.f32 %v3519_v33, 0.0 }
 0x8ae   :  { %5527 = vmatmul.msk.f32.gmra.mxu1 %vm2195_vm2, %v3574_v14  ;;  %5563 = vmatmul.msk.f32.gmra.mxu3 %vm2195_vm2, %v3610_v51  ;;  %v3386_v14 = vmul.f32 %v8377_v23, %v3287_v52  ;;  %v3422_v51 = vmul.f32 %v8377_v23, %v3323_v46  ;;  %v3329_v52 = vmul.f32 %v8379_v7, %v11222_v44 }
 0x8b0   :  { %v3485_v26 = vadd.f32 %v8386_v43, %v3386_v14  ;;  %v3521_v3 = vadd.f32 %v8386_v43, %v3422_v51  ;;  %v3392_v51 = vmul.f32 %v8377_v23, %v3293_v8 }
 0x8b2   :  { %v3581_v53 = vmax.f32 %v3485_v26, 0.0  ;;  %v3617_v10 = vmax.f32 %v3521_v3, 0.0  ;;  %v3428_v26 = vmul.f32 %v8377_v23, %v3329_v52  ;;  %v3491_v3 = vadd.f32 %v8386_v43, %v3392_v51 }
 0x8b4   :  { %v3527_v38 = vadd.f32 %v8386_v43, %v3428_v26 }
 0x8b6   :  { %5528 = vmatmul.msk.f32.gmra.mxu1 %vm2195_vm2, %v3575_v39  ;;  %5564 = vmatmul.msk.f32.gmra.mxu3 %vm2195_vm2, %v3611_v49  ;;  %v3423_v39 = vmul.f32 %v8377_v23, %v3324_v60  ;;  %v3486_v49 = vadd.f32 %v8386_v43, %v3387_v55  ;;  %v11225_v60 = vld [vmem:[#allocation79_spill] sm:$0xff]  ;;  %v3623_v37 = vmax.f32 %v3527_v38, 0.0 }
 0x8b8   :  { %v3522_v17 = vadd.f32 %v8386_v43, %v3423_v39  ;;  %v3582_v30 = vmax.f32 %v3486_v49, 0.0 }
 0x8ba   :  { %v3618_v12 = vmax.f32 %v3522_v17, 0.0  ;;  %v3587_v17 = vmax.f32 %v3491_v3, 0.0  ;;  %v11234_v3 = vld [vmem:[#allocation83_spill] sm:$0xff] }
 0x8bb   :  { %v3298_v38 = vmul.f32 %v8379_v7, %v11234_v3 }
 0x8be   :  { %5529 = vmatmul.msk.f32.gmra.mxu1 %vm2195_vm2, %v3576_v31  ;;  %5565 = vmatmul.msk.f32.gmra.mxu3 %vm2195_vm2, %v3612_v54  ;;  %v3424_v31 = vmul.f32 %v8377_v23, %v3325_v21  ;;  %v3487_v54 = vadd.f32 %v8386_v43, %v3388_v48 }
 0x8c0   :  { %v3523_v62 = vadd.f32 %v8386_v43, %v3424_v31  ;;  %v3583_v58 = vmax.f32 %v3487_v54, 0.0  ;;  %v11227_v31 = vld [vmem:[#allocation80_spill] sm:$0xff] }
 0x8c1   :  { %v3295_v54 = vmul.f32 %v8379_v7, %v11227_v31  ;;  %v11237_v31 = vld [vmem:[#allocation84_spill] sm:$0xff] }
 0x8c2   :  { %v3619_v20 = vmax.f32 %v3523_v62, 0.0  ;;  %v11228_v62 = vld [vmem:[#allocation35_spill] sm:$0xff] }
 0x8c3   :  { %v3331_v6 = vmul.f32 %v8379_v7, %v11228_v62  ;;  %v11238_v62 = vld [vmem:[#allocation39_spill] sm:$0xff] }
 0x8c6   :  { %5530 = vmatmul.msk.f32.gmra.mxu1 %vm2195_vm2, %v3577_v29  ;;  %5566 = vmatmul.msk.f32.gmra.mxu3 %vm2195_vm2, %v3613_v1  ;;  %v3425_v29 = vmul.f32 %v8377_v23, %v3326_v11  ;;  %v3488_v1 = vadd.f32 %v8386_v43, %v3389_v34 }
 0x8c8   :  { %v3524_v57 = vadd.f32 %v8386_v43, %v3425_v29  ;;  %v3584_v59 = vmax.f32 %v3488_v1, 0.0  ;;  %v3394_v29 = vmul.f32 %v8377_v23, %v3295_v54  ;;  %v3430_v1 = vmul.f32 %v8377_v23, %v3331_v6 }
 0x8c9   :  { %v3299_v54 = vmul.f32 %v8379_v7, %v11237_v31  ;;  %v3335_v6 = vmul.f32 %v8379_v7, %v11238_v62 }
 0x8ca   :  { %v3620_v28 = vmax.f32 %v3524_v57, 0.0  ;;  %v3493_v57 = vadd.f32 %v8386_v43, %v3394_v29  ;;  %v3529_v42 = vadd.f32 %v8386_v43, %v3430_v1 }
 0x8ce   :  { %5531 = vmatmul.msk.f32.gmra.mxu1 %vm2195_vm2, %v3578_v63  ;;  %5567 = vmatmul.msk.f32.gmra.mxu3 %vm2195_vm2, %v3614_v5  ;;  %v3426_v63 = vmul.f32 %v8377_v23, %v3327_v9  ;;  %v3489_v5 = vadd.f32 %v8386_v43, %v3390_v18  ;;  %v11229_v9 = vld [vmem:[#allocation81_spill] sm:$0xff] }
 0x8d0   :  { %v3525_v47 = vadd.f32 %v8386_v43, %v3426_v63  ;;  %v3585_v35 = vmax.f32 %v3489_v5, 0.0 }
 0x8d2   :  { %v3621_v15 = vmax.f32 %v3525_v47, 0.0  ;;  %v3589_v47 = vmax.f32 %v3493_v57, 0.0  ;;  %v3398_v57 = vmul.f32 %v8377_v23, %v3299_v54 }
 0x8d6   :  { %5532 = vmatmul.msk.f32.gmra.mxu1 %vm2195_vm2, %v3579_v32  ;;  %5568 = vmatmul.msk.f32.gmra.mxu3 %vm2195_vm2, %v3615_v2  ;;  %v3391_v32 = vmul.f32 %v8377_v23, %v3292_v40  ;;  %v3427_v2 = vmul.f32 %v8377_v23, %v3328_v24  ;;  %v3625_v40 = vmax.f32 %v3529_v42, 0.0  ;;  %v3434_v42 = vmul.f32 %v8377_v23, %v3335_v6 }
 0x8d8   :  { %v3490_v45 = vadd.f32 %v8386_v43, %v3391_v32  ;;  %v3526_v36 = vadd.f32 %v8386_v43, %v3427_v2  ;;  %v11232_v32 = vld [vmem:[#allocation82_spill] sm:$0xff] }
 0x8d9   :  { %v3297_v2 = vmul.f32 %v8379_v7, %v11232_v32 }
 0x8da   :  { %v3622_v14 = vmax.f32 %v3526_v36, 0.0 }
 0x8de   :  { %5533 = vmatmul.msk.f32.gmra.mxu1 %vm2195_vm2, %v3580_v0  ;;  %5569 = vmatmul.msk.f32.gmra.mxu3 %vm2195_vm2, %v3616_v56  ;;  %v3586_v56 = vmax.f32 %v3490_v45, 0.0  ;;  %v11233_v45 = vld [vmem:[#allocation37_spill] sm:$0xff] }
 0x8df   :  { %v3333_v36 = vmul.f32 %v8379_v7, %v11233_v45 }
 0x8e3   :  { %v8558_v61 = vpop.f32.mrf.mxu1 }
 0x8e4   :  { %11216 = vst [vmem:[#allocation71_spill] sm:$0xff] %v8558_v61 }
 0x8e6   :  { %5534 = vmatmul.msk.f32.gmra.mxu1 %vm2195_vm2, %v3581_v53  ;;  %5570 = vmatmul.msk.f32.gmra.mxu3 %vm2195_vm2, %v3617_v10  ;;  %v3294_v53 = vmul.f32 %v8379_v7, %v11225_v60  ;;  %v11226_v10 = vld [vmem:[#allocation34_spill] sm:$0xff] }
 0x8e7   :  { %v3330_v55 = vmul.f32 %v8379_v7, %v11226_v10  ;;  %v11235_v60 = vld [vmem:[#allocation38_spill] sm:$0xff] }
 0x8e8   :  { %v3393_v21 = vmul.f32 %v8377_v23, %v3294_v53  ;;  %v3334_v53 = vmul.f32 %v8379_v7, %v11235_v60 }
 0x8e9   :  { %v8570_v22 = vpop.f32.mrf.mxu3 }
 0x8eb   :  { %v8572_v50 = vpop.f32.mrf.mxu1 }
 0x8ec   :  { %11217 = vst [vmem:[#allocation72_spill] sm:$0xff] %v8572_v50 }
 0x8ee   :  { %5535 = vmatmul.msk.f32.gmra.mxu1 %vm2195_vm2, %v3582_v30  ;;  %5571 = vmatmul.msk.f32.gmra.mxu3 %vm2195_vm2, %v3618_v12  ;;  %v3429_v30 = vmul.f32 %v8377_v23, %v3330_v55  ;;  %v3492_v12 = vadd.f32 %v8386_v43, %v3393_v21  ;;  %v3397_v21 = vmul.f32 %v8377_v23, %v3298_v38 }
 0x8f0   :  { %v3528_v48 = vadd.f32 %v8386_v43, %v3429_v30  ;;  %v3433_v30 = vmul.f32 %v8377_v23, %v3334_v53 }
 0x8f1   :  { %v8584_v13 = vpop.f32.mrf.mxu3 }
 0x8f2   :  { %11218 = vst [vmem:[#allocation73_spill] sm:$0xff] %v8584_v13  ;;  %v3624_v34 = vmax.f32 %v3528_v48, 0.0  ;;  %v3532_v48 = vadd.f32 %v8386_v43, %v3433_v30 }
 0x8f3   :  { %v8586_v16 = vpop.f32.mrf.mxu1 }
 0x8f4   :  { %v3628_v1 = vmax.f32 %v3532_v48, 0.0 }
 0x8f6   :  { %5536 = vmatmul.msk.f32.gmra.mxu1 %vm2195_vm2, %v3583_v58  ;;  %5572 = vmatmul.msk.f32.gmra.mxu3 %vm2195_vm2, %v3619_v20  ;;  %v3588_v20 = vmax.f32 %v3492_v12, 0.0  ;;  %v3496_v12 = vadd.f32 %v8386_v43, %v3397_v21  ;;  %v11243_v21 = vld [vmem:[#allocation87_spill] sm:$0xff] }
 0x8f7   :  { %v3302_v30 = vmul.f32 %v8379_v7, %v11243_v21 }
 0x8f8   :  { %v3592_v29 = vmax.f32 %v3496_v12, 0.0  ;;  %v11244_v12 = vld [vmem:[#allocation42_spill] sm:$0xff] }
 0x8f9   :  { %v8598_v19 = vpop.f32.mrf.mxu3  ;;  %v3338_v48 = vmul.f32 %v8379_v7, %v11244_v12  ;;  %v11254_v12 = vld [vmem:[#allocation90_spill] sm:$0xff] }
 0x8fb   :  { %v8600_v41 = vpop.f32.mrf.mxu1 }
 0x8fe   :  { %5537 = vmatmul.msk.f32.gmra.mxu1 %vm2195_vm2, %v3584_v59  ;;  %5573 = vmatmul.msk.f32.gmra.mxu3 %vm2195_vm2, %v3620_v28  ;;  %v3296_v59 = vmul.f32 %v8379_v7, %v11229_v9  ;;  %v11230_v28 = vld [vmem:[#allocation36_spill] sm:$0xff]  ;;  %v3497_v9 = vadd.f32 %v8386_v43, %v3398_v57 }
 0x8ff   :  { %v3332_v18 = vmul.f32 %v8379_v7, %v11230_v28  ;;  %v11239_v28 = vld [vmem:[#allocation85_spill] sm:$0xff] }
 0x900   :  { %v3395_v4 = vmul.f32 %v8377_v23, %v3296_v59  ;;  %v3533_v59 = vadd.f32 %v8386_v43, %v3434_v42 }
 0x901   :  { %v8612_v25 = vpop.f32.mrf.mxu3  ;;  %v3431_v24 = vmul.f32 %v8377_v23, %v3332_v18  ;;  %v3300_v18 = vmul.f32 %v8379_v7, %v11239_v28  ;;  %v11247_v28 = vld [vmem:[#allocation43_spill] sm:$0xff] }
 0x903   :  { %v8614_v33 = vpop.f32.mrf.mxu1  ;;  %v3399_v32 = vmul.f32 %v8377_v23, %v3300_v18  ;;  %v3339_v18 = vmul.f32 %v8379_v7, %v11247_v28 }
 0x904   :  { %11220 = vst [vmem:[#allocation74_spill] sm:$0xff] %v8614_v33 }
 0x905   :  { %v3498_v45 = vadd.f32 %v8386_v43, %v3399_v32 }
 0x906   :  { %5538 = vmatmul.msk.f32.gmra.mxu1 %vm2195_vm2, %v3585_v35  ;;  %5574 = vmatmul.msk.f32.gmra.mxu3 %vm2195_vm2, %v3621_v15  ;;  %v3494_v35 = vadd.f32 %v8386_v43, %v3395_v4  ;;  %v3530_v15 = vadd.f32 %v8386_v43, %v3431_v24 }
 0x907   :  { %v3594_v3 = vmax.f32 %v3498_v45, 0.0 }
 0x908   :  { %v3590_v44 = vmax.f32 %v3494_v35, 0.0  ;;  %v3626_v52 = vmax.f32 %v3530_v15, 0.0  ;;  %v3593_v35 = vmax.f32 %v3497_v9, 0.0  ;;  %v3629_v15 = vmax.f32 %v3533_v59, 0.0  ;;  %v11246_v9 = vld [vmem:[#allocation88_spill] sm:$0xff] }
 0x909   :  { %v8626_v46 = vpop.f32.mrf.mxu3  ;;  %v3303_v59 = vmul.f32 %v8379_v7, %v11246_v9 }
 0x90a   :  { %11223 = vst [vmem:[#allocation75_spill] sm:$0xff] %v8626_v46 }
 0x90b   :  { %v8628_v0 = vpop.f32.mrf.mxu1  ;;  %v3402_v32 = vmul.f32 %v8377_v23, %v3303_v59 }
 0x90c   :  { %11224 = vst [vmem:[#allocation76_spill] sm:$0xff] %v8628_v0 }
 0x90d   :  { %v3501_v45 = vadd.f32 %v8386_v43, %v3402_v32  ;;  %v11258_v32 = vld [vmem:[#allocation46_spill] sm:$0xff] }
 0x90e   :  { %5539 = vmatmul.msk.f32.gmra.mxu1 %vm2195_vm2, %v3586_v56  ;;  %5575 = vmatmul.msk.f32.gmra.mxu3 %vm2195_vm2, %v3622_v14  ;;  %v3396_v56 = vmul.f32 %v8377_v23, %v3297_v2  ;;  %v3432_v14 = vmul.f32 %v8377_v23, %v3333_v36 }
 0x910   :  { %v3495_v51 = vadd.f32 %v8386_v43, %v3396_v56  ;;  %v3531_v26 = vadd.f32 %v8386_v43, %v3432_v14  ;;  %v11242_v56 = vld [vmem:[#allocation41_spill] sm:$0xff] }
 0x911   :  { %v8640_v39 = vpop.f32.mrf.mxu3  ;;  %v3337_v14 = vmul.f32 %v8379_v7, %v11242_v56  ;;  %v11251_v56 = vld [vmem:[#allocation44_spill] sm:$0xff] }
 0x913   :  { %v8642_v49 = vpop.f32.mrf.mxu1  ;;  %v3436_v53 = vmul.f32 %v8377_v23, %v3337_v14  ;;  %v3340_v14 = vmul.f32 %v8379_v7, %v11251_v56 }
 0x916   :  { %5540 = vmatmul.msk.f32.gmra.mxu1 %vm2195_vm2, %v3587_v17  ;;  %5576 = vmatmul.msk.f32.gmra.mxu3 %vm2195_vm2, %v3623_v37  ;;  %v3591_v17 = vmax.f32 %v3495_v51, 0.0  ;;  %v3627_v37 = vmax.f32 %v3531_v26, 0.0 }
 0x919   :  { %v8654_v11 = vpop.f32.mrf.mxu3 }
 0x91b   :  { %v8656_v58 = vpop.f32.mrf.mxu1 }
 0x91e   :  { %5541 = vmatmul.msk.f32.gmra.mxu1 %vm2195_vm2, %v3588_v20  ;;  %5577 = vmatmul.msk.f32.gmra.mxu3 %vm2195_vm2, %v3624_v34 }
 0x921   :  { %v8668_v63 = vpop.f32.mrf.mxu3 }
 0x923   :  { %v8670_v5 = vpop.f32.mrf.mxu1 }
 0x924   :  { %11231 = vst [vmem:[#allocation77_spill] sm:$0xff] %v8670_v5 }
 0x926   :  { %5542 = vmatmul.msk.f32.gmra.mxu1 %vm2195_vm2, %v3589_v47  ;;  %5578 = vmatmul.msk.f32.gmra.mxu3 %vm2195_vm2, %v3625_v40  ;;  %v11240_v47 = vld [vmem:[#allocation40_spill] sm:$0xff] }
 0x927   :  { %v3336_v40 = vmul.f32 %v8379_v7, %v11240_v47 }
 0x929   :  { %v8682_v27 = vpop.f32.mrf.mxu3  ;;  %v3435_v2 = vmul.f32 %v8377_v23, %v3336_v40 }
 0x92b   :  { %v8684_v8 = vpop.f32.mrf.mxu1  ;;  %v3534_v36 = vadd.f32 %v8386_v43, %v3435_v2  ;;  %v3438_v2 = vmul.f32 %v8377_v23, %v3339_v18 }
 0x92d   :  { %v3630_v38 = vmax.f32 %v3534_v36, 0.0  ;;  %v3537_v36 = vadd.f32 %v8386_v43, %v3438_v2  ;;  %v3342_v2 = vmul.f32 %v8379_v7, %v11258_v32 }
 0x92e   :  { %5543 = vmatmul.msk.f32.gmra.mxu1 %vm2195_vm2, %v3590_v44  ;;  %5579 = vmatmul.msk.f32.gmra.mxu3 %vm2195_vm2, %v3626_v52  ;;  %v11241_v44 = vld [vmem:[#allocation86_spill] sm:$0xff] }
 0x92f   :  { %v3301_v52 = vmul.f32 %v8379_v7, %v11241_v44  ;;  %v11250_v44 = vld [vmem:[#allocation89_spill] sm:$0xff] }
 0x931   :  { %v8696_v10 = vpop.f32.mrf.mxu3  ;;  %v3400_v60 = vmul.f32 %v8377_v23, %v3301_v52  ;;  %v3304_v52 = vmul.f32 %v8379_v7, %v11250_v44 }
 0x932   :  { %11236 = vst [vmem:[#allocation32_spill] sm:$0xff] %v8696_v10 }
 0x933   :  { %v8698_v55 = vpop.f32.mrf.mxu1 }
 0x936   :  { %5544 = vmatmul.msk.f32.gmra.mxu1 %vm2195_vm2, %v3591_v17  ;;  %5580 = vmatmul.msk.f32.gmra.mxu3 %vm2195_vm2, %v3627_v37  ;;  %v3499_v17 = vadd.f32 %v8386_v43, %v3400_v60  ;;  %v3535_v37 = vadd.f32 %v8386_v43, %v3436_v53  ;;  %v3597_v60 = vmax.f32 %v3501_v45, 0.0  ;;  %v3633_v53 = vmax.f32 %v3537_v36, 0.0 }
 0x938   :  { %v3595_v62 = vmax.f32 %v3499_v17, 0.0  ;;  %v3631_v6 = vmax.f32 %v3535_v37, 0.0  ;;  %v3403_v17 = vmul.f32 %v8377_v23, %v3304_v52  ;;  %v3439_v37 = vmul.f32 %v8377_v23, %v3340_v14 }
 0x939   :  { %v8710_v20 = vpop.f32.mrf.mxu3  ;;  %v3441_v14 = vmul.f32 %v8377_v23, %v3342_v2 }
 0x93a   :  { %v3502_v21 = vadd.f32 %v8386_v43, %v3403_v17  ;;  %v11261_v17 = vld [vmem:[#allocation47_spill] sm:$0xff] }
 0x93b   :  { %v8712_v34 = vpop.f32.mrf.mxu1 }
 0x93e   :  { %5545 = vmatmul.msk.f32.gmra.mxu1 %vm2195_vm2, %v3592_v29  ;;  %5581 = vmatmul.msk.f32.gmra.mxu3 %vm2195_vm2, %v3628_v1  ;;  %v3401_v29 = vmul.f32 %v8377_v23, %v3302_v30  ;;  %v3437_v1 = vmul.f32 %v8377_v23, %v3338_v48  ;;  %v3538_v30 = vadd.f32 %v8386_v43, %v3439_v37 }
 0x93f   :  { %v3305_v48 = vmul.f32 %v8379_v7, %v11254_v12  ;;  %v3343_v37 = vmul.f32 %v8379_v7, %v11261_v17 }
 0x940   :  { %v3500_v57 = vadd.f32 %v8386_v43, %v3401_v29  ;;  %v3536_v42 = vadd.f32 %v8386_v43, %v3437_v1 }
 0x941   :  { %v8724_v4 = vpop.f32.mrf.mxu3  ;;  %v3404_v9 = vmul.f32 %v8377_v23, %v3305_v48 }
 0x943   :  { %v8726_v24 = vpop.f32.mrf.mxu1  ;;  %v3503_v28 = vadd.f32 %v8386_v43, %v3404_v9 }
 0x945   :  { %v3599_v44 = vmax.f32 %v3503_v28, 0.0 }
 0x946   :  { %5546 = vmatmul.msk.f32.gmra.mxu1 %vm2195_vm2, %v3593_v35  ;;  %5582 = vmatmul.msk.f32.gmra.mxu3 %vm2195_vm2, %v3629_v15  ;;  %v3596_v35 = vmax.f32 %v3500_v57, 0.0  ;;  %v3632_v15 = vmax.f32 %v3536_v42, 0.0  ;;  %v3598_v57 = vmax.f32 %v3502_v21, 0.0  ;;  %v3634_v42 = vmax.f32 %v3538_v30, 0.0 }
 0x949   :  { %v8738_v51 = vpop.f32.mrf.mxu3 }
 0x94b   :  { %v8740_v26 = vpop.f32.mrf.mxu1 }
 0x94e   :  { %5547 = vmatmul.msk.f32.gmra.mxu1 %vm2195_vm2, %v3594_v3  ;;  %5583 = vmatmul.msk.f32.gmra.mxu3 %vm2195_vm2, %v3630_v38 }
 0x951   :  { %v8752_v31 = vpop.f32.mrf.mxu3 }
 0x953   :  { %v8754_v54 = vpop.f32.mrf.mxu1 }
 0x954   :  { %11245 = vst [vmem:[#allocation78_spill] sm:$0xff] %v8754_v54 }
 0x956   :  { %5548 = vmatmul.msk.f32.gmra.mxu1 %vm2195_vm2, %v3595_v62  ;;  %5584 = vmatmul.msk.f32.gmra.mxu3 %vm2195_vm2, %v3631_v6  ;;  %v11255_v62 = vld [vmem:[#allocation45_spill] sm:$0xff] }
 0x957   :  { %v3341_v6 = vmul.f32 %v8379_v7, %v11255_v62  ;;  %v3442_v62 = vmul.f32 %v8377_v23, %v3343_v37 }
 0x959   :  { %v8766_v47 = vpop.f32.mrf.mxu3  ;;  %v3440_v59 = vmul.f32 %v8377_v23, %v3341_v6  ;;  %v3541_v6 = vadd.f32 %v8386_v43, %v3442_v62 }
 0x95a   :  { %11248 = vst [vmem:[#allocation33_spill] sm:$0xff] %v8766_v47 }
 0x95b   :  { %v8768_v40 = vpop.f32.mrf.mxu1  ;;  %v3539_v18 = vadd.f32 %v8386_v43, %v3440_v59  ;;  %v3637_v28 = vmax.f32 %v3541_v6, 0.0  ;;  %v11270_v6 = vld [vmem:[#allocation51_spill] sm:$0xff] }
 0x95c   :  { %11249 = vst [vmem:[#allocation79_spill] sm:$0xff] %v8768_v40 }
 0x95d   :  { %v3635_v52 = vmax.f32 %v3539_v18, 0.0 }
 0x95e   :  { %5549 = vmatmul.msk.f32.gmra.mxu1 %vm2195_vm2, %v3596_v35  ;;  %5585 = vmatmul.msk.f32.gmra.mxu3 %vm2195_vm2, %v3632_v15  ;;  %v11257_v35 = vld [vmem:[#allocation91_spill] sm:$0xff] }
 0x95f   :  { %v3306_v15 = vmul.f32 %v8379_v7, %v11257_v35 }
 0x961   :  { %v8780_v3 = vpop.f32.mrf.mxu3  ;;  %v3405_v56 = vmul.f32 %v8377_v23, %v3306_v15  ;;  %v11265_v15 = vld [vmem:[#allocation49_spill] sm:$0xff] }
 0x962   :  { %11252 = vst [vmem:[#allocation34_spill] sm:$0xff] %v8780_v3  ;;  %v3345_v32 = vmul.f32 %v8379_v7, %v11265_v15 }
 0x963   :  { %v8782_v38 = vpop.f32.mrf.mxu1 }
 0x964   :  { %11253 = vst [vmem:[#allocation80_spill] sm:$0xff] %v8782_v38 }
 0x966   :  { %5550 = vmatmul.msk.f32.gmra.mxu1 %vm2195_vm2, %v3597_v60  ;;  %5586 = vmatmul.msk.f32.gmra.mxu3 %vm2195_vm2, %v3633_v53  ;;  %v3504_v60 = vadd.f32 %v8386_v43, %v3405_v56  ;;  %v3540_v53 = vadd.f32 %v8386_v43, %v3441_v14  ;;  %v3444_v56 = vmul.f32 %v8377_v23, %v3345_v32  ;;  %v11273_v32 = vld [vmem:[#allocation52_spill] sm:$0xff] }
 0x968   :  { %v3600_v12 = vmax.f32 %v3504_v60, 0.0  ;;  %v3636_v48 = vmax.f32 %v3540_v53, 0.0  ;;  %v3543_v14 = vadd.f32 %v8386_v43, %v3444_v56  ;;  %v11267_v60 = vld [vmem:[#allocation50_spill] sm:$0xff] }
 0x969   :  { %v8794_v29 = vpop.f32.mrf.mxu3  ;;  %v3346_v53 = vmul.f32 %v8379_v7, %v11267_v60 }
 0x96a   :  { %11256 = vst [vmem:[#allocation35_spill] sm:$0xff] %v8794_v29 }
 0x96b   :  { %v8796_v1 = vpop.f32.mrf.mxu1 }
 0x96e   :  { %5551 = vmatmul.msk.f32.gmra.mxu1 %vm2195_vm2, %v3598_v57  ;;  %5587 = vmatmul.msk.f32.gmra.mxu3 %vm2195_vm2, %v3634_v42  ;;  %v11263_v57 = vld [vmem:[#allocation48_spill] sm:$0xff] }
 0x96f   :  { %v3344_v42 = vmul.f32 %v8379_v7, %v11263_v57  ;;  %v3347_v57 = vmul.f32 %v8379_v7, %v11270_v6 }
 0x971   :  { %v8808_v45 = vpop.f32.mrf.mxu3  ;;  %v3443_v18 = vmul.f32 %v8377_v23, %v3344_v42 }
 0x972   :  { %11259 = vst [vmem:[#allocation81_spill] sm:$0xff] %v8808_v45 }
 0x973   :  { %v8810_v36 = vpop.f32.mrf.mxu1  ;;  %v3542_v35 = vadd.f32 %v8386_v43, %v3443_v18 }
 0x974   :  { %11260 = vst [vmem:[#allocation36_spill] sm:$0xff] %v8810_v36 }
 0x976   :  { %5552 = vmatmul.msk.f32.gmra.mxu1 %vm2195_vm2, %v3599_v44  ;;  %5588 = vmatmul.msk.f32.gmra.mxu3 %vm2195_vm2, %v3635_v52  ;;  %v3638_v52 = vmax.f32 %v3542_v35, 0.0  ;;  %v3446_v35 = vmul.f32 %v8377_v23, %v3347_v57 }
 0x978   :  { %v3545_v15 = vadd.f32 %v8386_v43, %v3446_v35 }
 0x979   :  { %v8820_v21 = vpop.f32.mrf.mxu3 }
 0x97a   :  { %11262 = vst [vmem:[#allocation82_spill] sm:$0xff] %v8820_v21  ;;  %v3641_v60 = vmax.f32 %v3545_v15, 0.0 }
 0x97b   :  { %v8822_v30 = vpop.f32.mrf.mxu1 }
 0x97e   :  { %5553 = vmatmul.msk.f32.gmra.mxu1 %vm2195_vm2, %v3600_v12  ;;  %5589 = vmatmul.msk.f32.gmra.mxu3 %vm2195_vm2, %v3636_v48  ;;  %v3639_v12 = vmax.f32 %v3543_v14, 0.0  ;;  %v3445_v48 = vmul.f32 %v8377_v23, %v3346_v53 }
 0x980   :  { %v3544_v62 = vadd.f32 %v8386_v43, %v3445_v48  ;;  %v11275_v48 = vld [vmem:[#allocation53_spill] sm:$0xff] }
 0x981   :  { %v8830_v9 = vpop.f32.mrf.mxu3 }
 0x982   :  { %11264 = vst [vmem:[#allocation37_spill] sm:$0xff] %v8830_v9  ;;  %v3640_v18 = vmax.f32 %v3544_v62, 0.0  ;;  %v3349_v62 = vmul.f32 %v8379_v7, %v11275_v48 }
 0x983   :  { %v8832_v59 = vpop.f32.mrf.mxu1 }
 0x986   :  { %5590 = vmatmul.msk.f32.gmra.mxu3 %vm2195_vm2, %v3637_v28 }
 0x989   :  { %v8839_v2 = vpop.f32.mrf.mxu3 }
 0x98a   :  { %11266 = vst [vmem:[#allocation83_spill] sm:$0xff] %v8839_v2  ;;  %v11284_v2 = vld [vmem:[#allocation57_spill] sm:$0xff] }
 0x98b   :  { %v8841_v44 = vpop.f32.mrf.mxu1 }
 0x98e   :  { %5591 = vmatmul.msk.f32.gmra.mxu3 %vm2195_vm2, %v3638_v52  ;;  %v3348_v52 = vmul.f32 %v8379_v7, %v11273_v32  ;;  %v11278_v32 = vld [vmem:[#allocation54_spill] sm:$0xff] }
 0x990   :  { %v3447_v53 = vmul.f32 %v8377_v23, %v3348_v52  ;;  %v3350_v52 = vmul.f32 %v8379_v7, %v11278_v32  ;;  %v11282_v32 = vld [vmem:[#allocation56_spill] sm:$0xff] }
 0x991   :  { %v8848_v17 = vpop.f32.mrf.mxu3 }
 0x992   :  { %11268 = vst [vmem:[#allocation38_spill] sm:$0xff] %v8848_v17 }
 0x993   :  { %v8850_v37 = vpop.f32.mrf.mxu1 }
 0x994   :  { %11269 = vst [vmem:[#allocation84_spill] sm:$0xff] %v8850_v37 }
 0x996   :  { %5592 = vmatmul.msk.f32.gmra.mxu3 %vm2195_vm2, %v3639_v12  ;;  %v3546_v12 = vadd.f32 %v8386_v43, %v3447_v53 }
 0x998   :  { %v3642_v57 = vmax.f32 %v3546_v12, 0.0 }
 0x999   :  { %v8857_v42 = vpop.f32.mrf.mxu3 }
 0x99a   :  { %11271 = vst [vmem:[#allocation39_spill] sm:$0xff] %v8857_v42 }
 0x99b   :  { %v8859_v28 = vpop.f32.mrf.mxu1 }
 0x99c   :  { %11272 = vst [vmem:[#allocation85_spill] sm:$0xff] %v8859_v28 }
 0x99e   :  { %5593 = vmatmul.msk.f32.gmra.mxu3 %vm2195_vm2, %v3640_v18  ;;  %v3448_v18 = vmul.f32 %v8377_v23, %v3349_v62  ;;  %v11281_v62 = vld [vmem:[#allocation55_spill] sm:$0xff] }
 0x9a0   :  { %v3547_v15 = vadd.f32 %v8386_v43, %v3448_v18 }
 0x9a1   :  { %v8866_v56 = vpop.f32.mrf.mxu3 }
 0x9a2   :  { %11274 = vst [vmem:[#allocation40_spill] sm:$0xff] %v8866_v56  ;;  %v3643_v53 = vmax.f32 %v3547_v15, 0.0  ;;  %v3449_v56 = vmul.f32 %v8377_v23, %v3350_v52  ;;  %v3352_v52 = vmul.f32 %v8379_v7, %v11282_v32  ;;  %v4264_v32 = vsel %vm4258_vm5, %v8600_v41, 0.0 }
 0x9a3   :  { %v8868_v14 = vpop.f32.mrf.mxu1 }
 0x9a4   :  { %v3548_v12 = vadd.f32 %v8386_v43, %v3449_v56  ;;  %v4260_v56 = vsel %vm4258_vm5, %v8572_v50, 0.0  ;;  %v4266_v50 = vsel %vm4258_vm5, %v8614_v33, 0.0 }
 0x9a6   :  { %5594 = vmatmul.msk.f32.gmra.mxu3 %vm2195_vm2, %v3641_v60  ;;  %v3644_v18 = vmax.f32 %v3548_v12, 0.0  ;;  %v4259_v12 = vsel %vm4258_vm5, %v8558_v61, 0.0  ;;  %v3353_v61 = vmul.f32 %v8379_v7, %v11284_v2 }
 0x9a9   :  { %v8878_v35 = vpop.f32.mrf.mxu3 }
 0x9aa   :  { %11277 = vst [vmem:[#allocation41_spill] sm:$0xff] %v8878_v35  ;;  %v3351_v35 = vmul.f32 %v8379_v7, %v11281_v62 }
 0x9ab   :  { %v8875_v6 = vpop.f32.mrf.mxu1 }
 0x9ac   :  { %11276 = vst [vmem:[#allocation86_spill] sm:$0xff] %v8875_v6  ;;  %v3450_v42 = vmul.f32 %v8377_v23, %v3351_v35  ;;  %v4262_v35 = vsel %vm4258_vm5, %v8586_v16, 0.0 }
 0x9ae   :  { %5595 = vmatmul.msk.f32.gmra.mxu3 %vm2195_vm2, %v3642_v57  ;;  %v3549_v15 = vadd.f32 %v8386_v43, %v3450_v42  ;;  %v3451_v42 = vmul.f32 %v8377_v23, %v3352_v52 }
 0x9b0   :  { %v3645_v62 = vmax.f32 %v3549_v15, 0.0  ;;  %v3550_v17 = vadd.f32 %v8386_v43, %v3451_v42  ;;  %v4268_v15 = vsel %vm4258_vm5, %v8628_v0, 0.0  ;;  %v4272_v42 = vsel %vm4258_vm5, %v8656_v58, 0.0 }
 0x9b1   :  { %v8888_v48 = vpop.f32.mrf.mxu3 }
 0x9b2   :  { %11280 = vst [vmem:[#allocation42_spill] sm:$0xff] %v8888_v48 }
 0x9b3   :  { %v8884_v60 = vpop.f32.mrf.mxu1 }
 0x9b4   :  { %11279 = vst [vmem:[#allocation87_spill] sm:$0xff] %v8884_v60 }
 0x9b6   :  { %5596 = vmatmul.msk.f32.gmra.mxu3 %vm2195_vm2, %v3643_v53 }
 0x9b9   :  { %v8900_v53 = vpop.f32.mrf.mxu3 }
 0x9ba   :  { %11283 = vst [vmem:[#allocation88_spill] sm:$0xff] %v8900_v53 }
 0x9bb   :  { %v8893_v57 = vpop.f32.mrf.mxu1 }
 0x9be   :  { %5597 = vmatmul.msk.f32.gmra.mxu3 %vm2195_vm2, %v3644_v18  ;;  %v4261_v18 = vadd.f32 %v4260_v56, %v4259_v12 }
 0x9c0   :  { %v4263_v53 = vadd.f32 %v4262_v35, %v4261_v18  ;;  %v4270_v35 = vsel %vm4258_vm5, %v8642_v49, 0.0  ;;  %v3452_v18 = vmul.f32 %v8377_v23, %v3353_v61 }
 0x9c1   :  { %v8921_v56 = vpop.f32.mrf.mxu3 }
 0x9c2   :  { %v4265_v9 = vadd.f32 %v4264_v32, %v4263_v53  ;;  %11285 = vst [vmem:[#allocation43_spill] sm:$0xff] %v8921_v56  ;;  %v11286_v53 = vld [vmem:[#allocation58_spill] sm:$0xff] }
 0x9c3   :  { %v8904_v48 = vpop.f32.mrf.mxu1  ;;  %v3354_v32 = vmul.f32 %v8379_v7, %v11286_v53 }
 0x9c4   :  { %v4267_v52 = vadd.f32 %v4266_v50, %v4265_v9  ;;  %v4274_v50 = vsel %vm4258_vm5, %v8670_v5, 0.0  ;;  %v3551_v9 = vadd.f32 %v8386_v43, %v3452_v18  ;;  %v4280_v18 = vsel %vm4258_vm5, %v8712_v34, 0.0 }
 0x9c6   :  { %5598 = vmatmul.msk.f32.gmra.mxu3 %vm2195_vm2, %v3645_v62  ;;  %v3646_v62 = vmax.f32 %v3550_v17, 0.0  ;;  %v4269_v33 = vadd.f32 %v4268_v15, %v4267_v52  ;;  %v4276_v17 = vsel %vm4258_vm5, %v8684_v8, 0.0  ;;  %v4278_v52 = vsel %vm4258_vm5, %v8698_v55, 0.0 }
 0x9c8   :  { %v4271_v2 = vadd.f32 %v4270_v35, %v4269_v33  ;;  %v3453_v33 = vmul.f32 %v8377_v23, %v3354_v32  ;;  %v4284_v23 = vsel %vm4258_vm5, %v8740_v26, 0.0 }
 0x9c9   :  { %v8943_v5 = vpop.f32.mrf.mxu3 }
 0x9ca   :  { %v4273_v0 = vadd.f32 %v4272_v42, %v4271_v2  ;;  %v3552_v2 = vadd.f32 %v8386_v43, %v3453_v33 }
 0x9cb   :  { %v8923_v12 = vpop.f32.mrf.mxu1 }
 0x9cc   :  { %v4275_v61 = vadd.f32 %v4274_v50, %v4273_v0  ;;  %v4282_v0 = vsel %vm4258_vm5, %v8726_v24, 0.0  ;;  %v11287_v50 = vld [vmem:[#allocation59_spill] sm:$0xff] }
 0x9cd   :  { %v3355_v53 = vmul.f32 %v8379_v7, %v11287_v50 }
 0x9ce   :  { %5599 = vmatmul.msk.f32.gmra.mxu3 %vm2195_vm2, %v3646_v62  ;;  %v3647_v62 = vmax.f32 %v3551_v9, 0.0  ;;  %v4277_v35 = vadd.f32 %v4276_v17, %v4275_v61  ;;  %v4286_v61 = vsel %vm4258_vm5, %v8754_v54, 0.0 }
 0x9d0   :  { %v4279_v42 = vadd.f32 %v4278_v52, %v4277_v35  ;;  %v8962_v52 = vld [vmem:[%s10856_s14] ss:$0 sm:$0xff]  ;;  %v4288_v35 = vsel %vm4258_vm5, %v8768_v40, 0.0 }
 0x9d1   :  { %v3454_v43 = vmul.f32 %v8962_v52, %v3355_v53  ;;  %v11290_v53 = vld [vmem:[#allocation60_spill] sm:$0xff] }
 0x9d2   :  { %v4281_v9 = vadd.f32 %v4280_v18, %v4279_v42  ;;  %v8968_v42 = vpop.f32.mrf.mxu3 }
 0x9d3   :  { %v8938_v15 = vpop.f32.mrf.mxu1  ;;  %11289 = vst [vmem:[#allocation44_spill] sm:$0xff] %v8968_v42 }
 0x9d4   :  { %v4283_v32 = vadd.f32 %v4282_v0, %v4281_v9  ;;  %v4290_v0 = vsel %vm4258_vm5, %v8782_v38, 0.0  ;;  %v3356_v9 = vmul.f32 %v8379_v7, %v11290_v53 }
 0x9d6   :  { %5600 = vmatmul.msk.f32.gmra.mxu3 %vm2195_vm2, %v3647_v62  ;;  %v3648_v62 = vmax.f32 %v3552_v2, 0.0  ;;  %v4285_v33 = vadd.f32 %v4284_v23, %v4283_v32  ;;  %v8975_v2 = vld [vmem:[%s10857_s15] ss:$0 sm:$0xff]  ;;  %v4292_v32 = vsel %vm4258_vm5, %v8796_v1, 0.0  ;;  %v3455_v38 = vmul.f32 %v8962_v52, %v3356_v9 }
 0x9d7   :  { %v3553_v50 = vadd.f32 %v8975_v2, %v3454_v43  ;;  %v4296_v43 = vsel %vm4258_vm5, %v8822_v30, 0.0  ;;  %v4300_v9 = vsel %vm4258_vm5, %v8841_v44, 0.0 }
 0x9d8   :  { %v4287_v18 = vadd.f32 %v4286_v61, %v4285_v33 }
 0x9d9   :  { %v3649_v33 = vmax.f32 %v3553_v50, 0.0 }
 0x9da   :  { %v4289_v23 = vadd.f32 %v4288_v35, %v4287_v18  ;;  %v4298_v35 = vsel %vm4258_vm5, %v8832_v59, 0.0  ;;  %v3554_v18 = vadd.f32 %v8975_v2, %v3455_v38  ;;  %v4304_v38 = vsel %vm4258_vm5, %v8859_v28, 0.0 }
 0x9db   :  { %v8955_v17 = vpop.f32.mrf.mxu1 }
 0x9dc   :  { %11288 = vst [vmem:[#allocation89_spill] sm:$0xff] %v8955_v17  ;;  %v4291_v61 = vadd.f32 %v4290_v0, %v4289_v23  ;;  %v11291_v0 = vld [vmem:[#allocation61_spill] sm:$0xff] }
 0x9dd   :  { %v3357_v23 = vmul.f32 %v8379_v7, %v11291_v0 }
 0x9de   :  { %5601 = vmatmul.msk.f32.gmra.mxu3 %vm2195_vm2, %v3648_v62  ;;  %v4294_v62 = vsel %vm4258_vm5, %v8810_v36, 0.0  ;;  %v4293_v40 = vadd.f32 %v4292_v32, %v4291_v61  ;;  %v8995_v36 = vpop.f32.mrf.mxu3  ;;  %v4302_v61 = vsel %vm4258_vm5, %v8850_v37, 0.0 }
 0x9e0   :  { %v4295_v53 = vadd.f32 %v4294_v62, %v4293_v40  ;;  %v3456_v40 = vmul.f32 %v8962_v52, %v3357_v23  ;;  %v4308_v23 = vsel %vm4258_vm5, %v8875_v6, 0.0 }
 0x9e2   :  { %v4297_v50 = vadd.f32 %v4296_v43, %v4295_v53  ;;  %v4306_v53 = vsel %vm4258_vm5, %v8868_v14, 0.0 }
 0x9e3   :  { %v8985_v54 = vpop.f32.mrf.mxu1 }
 0x9e4   :  { %v4299_v32 = vadd.f32 %v4298_v35, %v4297_v50  ;;  %v3555_v35 = vadd.f32 %v8975_v2, %v3456_v40  ;;  %v11293_v50 = vld [vmem:[#allocation62_spill] sm:$0xff]  ;;  %v4312_v40 = vsel %vm4258_vm5, %v8893_v57, 0.0 }
 0x9e5   :  { %v3358_v37 = vmul.f32 %v8379_v7, %v11293_v50 }
 0x9e6   :  { %5602 = vmatmul.msk.f32.gmra.mxu3 %vm2195_vm2, %v3649_v33  ;;  %v3650_v33 = vmax.f32 %v3554_v18, 0.0  ;;  %v4301_v62 = vadd.f32 %v4300_v9, %v4299_v32  ;;  %v9014_v32 = vpop.f32.mrf.mxu3 }
 0x9e7   :  { %11294 = vst [vmem:[#allocation45_spill] sm:$0xff] %v9014_v32 }
 0x9e8   :  { %v4303_v0 = vadd.f32 %v4302_v61, %v4301_v62  ;;  %v4310_v61 = vsel %vm4258_vm5, %v8884_v60, 0.0  ;;  %v3457_v62 = vmul.f32 %v8962_v52, %v3358_v37  ;;  %v4316_v37 = vsel %vm4258_vm5, %v8923_v12, 0.0 }
 0x9ea   :  { %v4305_v18 = vadd.f32 %v4304_v38, %v4303_v0  ;;  %v4314_v38 = vsel %vm4258_vm5, %v8904_v48, 0.0  ;;  %v3556_v0 = vadd.f32 %v8975_v2, %v3457_v62  ;;  %v4320_v62 = vsel %vm4258_vm5, %v8955_v17, 0.0 }
 0x9eb   :  { %v9005_v43 = vpop.f32.mrf.mxu1 }
 0x9ec   :  { %11292 = vst [vmem:[#allocation90_spill] sm:$0xff] %v9005_v43  ;;  %v4307_v9 = vadd.f32 %v4306_v53, %v4305_v18  ;;  %v11295_v53 = vld [vmem:[#allocation63_spill] sm:$0xff] }
 0x9ed   :  { %v3359_v18 = vmul.f32 %v8379_v7, %v11295_v53 }
 0x9ee   :  { %5603 = vmatmul.msk.f32.gmra.mxu3 %vm2195_vm2, %v3650_v33  ;;  %v3651_v33 = vmax.f32 %v3555_v35, 0.0  ;;  %v4309_v28 = vadd.f32 %v4308_v23, %v4307_v9  ;;  %v4318_v23 = vsel %vm4258_vm5, %v8938_v15, 0.0  ;;  %v3652_v9 = vmax.f32 %v3556_v0, 0.0 }
 0x9f0   :  { %v4311_v50 = vadd.f32 %v4310_v61, %v4309_v28  ;;  %v3458_v28 = vmul.f32 %v8962_v52, %v3359_v18  ;;  %v4324_v18 = vsel %vm4258_vm5, %v9005_v43, 0.0 }
 0x9f2   :  { %v4313_v6 = vadd.f32 %v4312_v40, %v4311_v50  ;;  %v4322_v50 = vsel %vm4258_vm5, %v8985_v54, 0.0 }
 0x9f3   :  { %v9027_v60 = vpop.f32.mrf.mxu1 }
 0x9f4   :  { %11296 = vst [vmem:[#allocation91_spill] sm:$0xff] %v9027_v60  ;;  %v4315_v35 = vadd.f32 %v4314_v38, %v4313_v6  ;;  %v3557_v6 = vadd.f32 %v8975_v2, %v3458_v28  ;;  %v11297_v38 = vld [vmem:[#allocation64_spill] sm:$0xff]  ;;  %v4326_v17 = vsel %vm4258_vm5, %v9027_v60, 0.0 }
 0x9f5   :  { %v3360_v53 = vmul.f32 %v8379_v7, %v11297_v38 }
 0x9f6   :  { %5604 = vmatmul.msk.f32.gmra.mxu3 %vm2195_vm2, %v3651_v33  ;;  %v4317_v61 = vadd.f32 %v4316_v37, %v4315_v35  ;;  %v9034_v33 = vpop.f32.mrf.mxu3 }
 0x9f8   :  { %v4319_v40 = vadd.f32 %v4318_v23, %v4317_v61  ;;  %v3459_v23 = vmul.f32 %v8962_v52, %v3360_v53 }
 0x9fa   :  { %v4321_v0 = vadd.f32 %v4320_v62, %v4319_v40  ;;  %v3558_v40 = vadd.f32 %v8975_v2, %v3459_v23 }
 0x9fb   :  { %v9046_v35 = vpop.f32.mrf.mxu1 }
 0x9fc   :  { %v4323_v37 = vadd.f32 %v4322_v50, %v4321_v0  ;;  %v4328_v28 = vsel %vm4258_vm5, %v9046_v35, 0.0  ;;  %v11299_v50 = vld [vmem:[#allocation65_spill] sm:$0xff]  ;;  %v3654_v60 = vmax.f32 %v3558_v40, 0.0 }
 0x9fd   :  { %v3361_v0 = vmul.f32 %v8379_v7, %v11299_v50 }
 0x9fe   :  { %5605 = vmatmul.msk.f32.gmra.mxu3 %vm2195_vm2, %v3652_v9  ;;  %v3653_v9 = vmax.f32 %v3557_v6, 0.0  ;;  %v4325_v61 = vadd.f32 %v4324_v18, %v4323_v37  ;;  %v9054_v38 = vpop.f32.mrf.mxu3  ;;  %v4330_v6 = vsel %vm4258_vm5, %v8570_v22, 0.0  ;;  %v4332_v37 = vsel %vm4258_vm5, %v8584_v13, 0.0 }
 0x9ff   :  { %11298 = vst [vmem:[#allocation46_spill] sm:$0xff] %v9054_v38  ;;  %v3460_v53 = vmul.f32 %v8962_v52, %v3361_v0 }
 0xa00   :  { %v4327_v62 = vadd.f32 %v4326_v17, %v4325_v61 }
 0xa01   :  { %v3559_v17 = vadd.f32 %v8975_v2, %v3460_v53 }
 0xa02   :  { %v4329_v43 = vadd.f32 %v4328_v28, %v4327_v62  ;;  %v4334_v62 = vsel %vm4258_vm5, %v8598_v19, 0.0 }
 0xa03   :  { %v3655_v40 = vmax.f32 %v3559_v17, 0.0 }
 0xa04   :  { %v4331_v18 = vadd.f32 %v4330_v6, %v4329_v43  ;;  %v11301_v6 = vld [vmem:[#allocation67_spill] sm:$0xff] }
 0xa05   :  { %v3363_v53 = vmul.f32 %v8379_v7, %v11301_v6 }
 0xa06   :  { %5606 = vmatmul.msk.f32.gmra.mxu3 %vm2195_vm2, %v3653_v9  ;;  %v11300_v9 = vld [vmem:[#allocation66_spill] sm:$0xff]  ;;  %v9068_v61 = vpop.f32.mrf.mxu3  ;;  %v4333_v28 = vadd.f32 %v4332_v37, %v4331_v18  ;;  %v4338_v18 = vsel %vm4258_vm5, %v8626_v46, 0.0 }
 0xa07   :  { %v3362_v23 = vmul.f32 %v8379_v7, %v11300_v9  ;;  %v3462_v17 = vmul.f32 %v8962_v52, %v3363_v53 }
 0xa08   :  { %v4335_v43 = vadd.f32 %v4334_v62, %v4333_v28  ;;  %v4340_v28 = vsel %vm4258_vm5, %v8640_v39, 0.0 }
 0xa09   :  { %v3461_v50 = vmul.f32 %v8962_v52, %v3362_v23  ;;  %v3561_v62 = vadd.f32 %v8975_v2, %v3462_v17 }
 0xa0b   :  { %v3560_v0 = vadd.f32 %v8975_v2, %v3461_v50  ;;  %v3657_v6 = vmax.f32 %v3561_v62, 0.0 }
 0xa0d   :  { %v3656_v37 = vmax.f32 %v3560_v0, 0.0 }
 0xa0e   :  { %5607 = vmatmul.msk.f32.gmra.mxu3 %vm2195_vm2, %v3654_v60  ;;  %v4336_v60 = vsel %vm4258_vm5, %v8612_v25, 0.0  ;;  %v9079_v13 = vpop.f32.mrf.mxu3 }
 0xa0f   :  { %v4337_v9 = vadd.f32 %v4336_v60, %v4335_v43  ;;  %11302 = vst [vmem:[#allocation47_spill] sm:$0xff] %v9079_v13  ;;  %v4342_v60 = vsel %vm4258_vm5, %v8654_v11, 0.0 }
 0xa11   :  { %v4339_v23 = vadd.f32 %v4338_v18, %v4337_v9  ;;  %v4344_v9 = vsel %vm4258_vm5, %v8668_v63, 0.0 }
 0xa13   :  { %v4341_v43 = vadd.f32 %v4340_v28, %v4339_v23  ;;  %v4346_v28 = vsel %vm4258_vm5, %v8682_v27, 0.0 }
 0xa15   :  { %v4343_v46 = vadd.f32 %v4342_v60, %v4341_v43  ;;  %v4348_v60 = vsel %vm4258_vm5, %v8696_v10, 0.0 }
 0xa16   :  { %5608 = vmatmul.msk.f32.gmra.mxu3 %vm2195_vm2, %v3655_v40  ;;  %v11303_v40 = vld [vmem:[#allocation68_spill] sm:$0xff]  ;;  %v9093_v53 = vpop.f32.mrf.mxu3 }
 0xa17   :  { %v3364_v50 = vmul.f32 %v8379_v7, %v11303_v40  ;;  %v4345_v23 = vadd.f32 %v4344_v9, %v4343_v46  ;;  %v4350_v9 = vsel %vm4258_vm5, %v8710_v20, 0.0 }
 0xa19   :  { %v3463_v0 = vmul.f32 %v8962_v52, %v3364_v50  ;;  %v4347_v50 = vadd.f32 %v4346_v28, %v4345_v23 }
 0xa1b   :  { %v3562_v18 = vadd.f32 %v8975_v2, %v3463_v0  ;;  %v11306_v0 = vld [vmem:[#allocation70_spill] sm:$0xff]  ;;  %v4349_v46 = vadd.f32 %v4348_v60, %v4347_v50 }
 0xa1d   :  { %v3658_v62 = vmax.f32 %v3562_v18, 0.0  ;;  %v4351_v23 = vadd.f32 %v4350_v9, %v4349_v46 }
 0xa1e   :  { %5609 = vmatmul.msk.f32.gmra.mxu3 %vm2195_vm2, %v3656_v37  ;;  %v11304_v37 = vld [vmem:[#allocation69_spill] sm:$0xff]  ;;  %v9104_v43 = vpop.f32.mrf.mxu3 }
 0xa1f   :  { %v3365_v17 = vmul.f32 %v8379_v7, %v11304_v37  ;;  %11305 = vst [vmem:[#allocation48_spill] sm:$0xff] %v9104_v43  ;;  %v3366_v37 = vmul.f32 %v8379_v7, %v11306_v0  ;;  %v4354_v7 = vsel %vm4258_vm5, %v8738_v51, 0.0 }
 0xa21   :  { %v3464_v40 = vmul.f32 %v8962_v52, %v3365_v17  ;;  %v3465_v17 = vmul.f32 %v8962_v52, %v3366_v37  ;;  %v4356_v52 = vsel %vm4258_vm5, %v8752_v31, 0.0  ;;  %v4358_v37 = vsel %vm4258_vm5, %v8766_v47, 0.0  ;;  %v11317_v47 = vld [vmem:[#allocation42_spill] sm:$0xff] }
 0xa26   :  { %5610 = vmatmul.msk.f32.gmra.mxu3 %vm2195_vm2, %v3657_v6  ;;  %v3563_v6 = vadd.f32 %v8975_v2, %v3464_v40  ;;  %v9115_v28 = vpop.f32.mrf.mxu3  ;;  %v3564_v40 = vadd.f32 %v8975_v2, %v3465_v17  ;;  %v4360_v2 = vsel %vm4258_vm5, %v8780_v3, 0.0  ;;  %v11314_v3 = vld [vmem:[#allocation40_spill] sm:$0xff] }
 0xa28   :  { %v3659_v18 = vmax.f32 %v3563_v6, 0.0  ;;  %v3660_v50 = vmax.f32 %v3564_v40, 0.0 }
 0xa2e   :  { %5611 = vmatmul.msk.f32.gmra.mxu3 %vm2195_vm2, %v3658_v62  ;;  %v4352_v62 = vsel %vm4258_vm5, %v8724_v4, 0.0  ;;  %v9123_v0 = vpop.f32.mrf.mxu3 }
 0xa2f   :  { %v4353_v10 = vadd.f32 %v4352_v62, %v4351_v23  ;;  %11307 = vst [vmem:[#allocation49_spill] sm:$0xff] %v9123_v0  ;;  %v4364_v62 = vsel %vm4258_vm5, %v8808_v45, 0.0 }
 0xa31   :  { %v4355_v60 = vadd.f32 %v4354_v7, %v4353_v10  ;;  %v4362_v10 = vsel %vm4258_vm5, %v8794_v29, 0.0  ;;  %v4366_v7 = vsel %vm4258_vm5, %v8820_v21, 0.0  ;;  %v11312_v29 = vld [vmem:[#allocation38_spill] sm:$0xff] }
 0xa32   :  { %v4372_v45 = vsel %vm4258_vm5, %v11312_v29, 0.0  ;;  %v4380_v29 = vsel %vm4258_vm5, %v11317_v47, 0.0  ;;  %v4388_v47 = vsel %vm4258_vm5, %v8968_v42, 0.0  ;;  %v4396_v42 = vsel %vm4258_vm5, %v9054_v38, 0.0 }
 0xa33   :  { %v4357_v6 = vadd.f32 %v4356_v52, %v4355_v60  ;;  %v11310_v52 = vld [vmem:[#allocation37_spill] sm:$0xff]  ;;  %v4404_v38 = vsel %vm4258_vm5, %v9104_v43, 0.0 }
 0xa35   :  { %v4359_v46 = vadd.f32 %v4358_v37, %v4357_v6  ;;  %v4368_v6 = vsel %vm4258_vm5, %v11310_v52, 0.0  ;;  %v4376_v52 = vsel %vm4258_vm5, %v11314_v3, 0.0  ;;  %v4384_v3 = vsel %vm4258_vm5, %v8921_v56, 0.0 }
 0xa36   :  { %5612 = vmatmul.msk.f32.gmra.mxu3 %vm2195_vm2, %v3659_v18  ;;  %v9130_v9 = vpop.f32.mrf.mxu3  ;;  %v4392_v56 = vsel %vm4258_vm5, %v9014_v32, 0.0  ;;  %v4400_v32 = vsel %vm4258_vm5, %v9079_v13, 0.0  ;;  %v4408_v13 = vsel %vm4258_vm5, %v9123_v0, 0.0 }
 0xa37   :  { %v4361_v18 = vadd.f32 %v4360_v2, %v4359_v46  ;;  %v11311_v46 = vld [vmem:[#allocation83_spill] sm:$0xff] }
 0xa38   :  { %v4370_v2 = vsel %vm4258_vm5, %v11311_v46, 0.0 }
 0xa39   :  { %v4363_v17 = vadd.f32 %v4362_v10, %v4361_v18 }
 0xa3b   :  { %v4365_v40 = vadd.f32 %v4364_v62, %v4363_v17  ;;  %v11313_v62 = vld [vmem:[#allocation39_spill] sm:$0xff] }
 0xa3c   :  { %v4374_v21 = vsel %vm4258_vm5, %v11313_v62, 0.0 }
 0xa3e   :  { %5613 = vmatmul.msk.f32.gmra.mxu3 %vm2195_vm2, %v3660_v50  ;;  %v9136_v23 = vpop.f32.mrf.mxu3  ;;  %v4367_v50 = vadd.f32 %v4366_v7, %v4365_v40 }
 0xa3f   :  { %11308 = vst [vmem:[#allocation50_spill] sm:$0xff] %v9136_v23  ;;  %v4412_v43 = vsel %vm4258_vm5, %v9136_v23, 0.0 }
 0xa40   :  { %v4369_v37 = vadd.f32 %v4368_v6, %v4367_v50  ;;  %v11315_v6 = vld [vmem:[#allocation41_spill] sm:$0xff] }
 0xa41   :  { %v4378_v46 = vsel %vm4258_vm5, %v11315_v6, 0.0 }
 0xa42   :  { %v4371_v18 = vadd.f32 %v4370_v2, %v4369_v37 }
 0xa44   :  { %v4373_v17 = vadd.f32 %v4372_v45, %v4371_v18  ;;  %v11318_v18 = vld [vmem:[#allocation88_spill] sm:$0xff] }
 0xa45   :  { %v4382_v62 = vsel %vm4258_vm5, %v11318_v18, 0.0 }
 0xa46   :  { %v9142_v60 = vpop.f32.mrf.mxu3  ;;  %v4375_v40 = vadd.f32 %v4374_v21, %v4373_v17 }
 0xa47   :  { %11309 = vst [vmem:[#allocation51_spill] sm:$0xff] %v9142_v60 }
 0xa48   :  { %v4377_v50 = vadd.f32 %v4376_v52, %v4375_v40  ;;  %v4386_v40 = vsel %vm4258_vm5, %v8943_v5, 0.0 }
 0xa4a   :  { %v4379_v37 = vadd.f32 %v4378_v46, %v4377_v50 }
 0xa4c   :  { %v4381_v45 = vadd.f32 %v4380_v29, %v4379_v37  ;;  %v4390_v37 = vsel %vm4258_vm5, %v8995_v36, 0.0 }
 0xa4e   :  { %v9148_v10 = vpop.f32.mrf.mxu3  ;;  %v4383_v21 = vadd.f32 %v4382_v62, %v4381_v45 }
 0xa4f   :  { %v4416_v0 = vsel %vm4258_vm5, %v9148_v10, 0.0 }
 0xa50   :  { %v4385_v52 = vadd.f32 %v4384_v3, %v4383_v21  ;;  %v4394_v21 = vsel %vm4258_vm5, %v9034_v33, 0.0 }
 0xa52   :  { %v4387_v46 = vadd.f32 %v4386_v40, %v4385_v52 }
 0xa54   :  { %v4389_v29 = vadd.f32 %v4388_v47, %v4387_v46  ;;  %v4398_v46 = vsel %vm4258_vm5, %v9068_v61, 0.0 }
 0xa56   :  { %v9154_v7 = vpop.f32.mrf.mxu3  ;;  %v4391_v62 = vadd.f32 %v4390_v37, %v4389_v29 }
 0xa58   :  { %v4393_v3 = vadd.f32 %v4392_v56, %v4391_v62  ;;  %v4402_v62 = vsel %vm4258_vm5, %v9093_v53, 0.0 }
 0xa5a   :  { %v4395_v52 = vadd.f32 %v4394_v21, %v4393_v3 }
 0xa5c   :  { %v4397_v47 = vadd.f32 %v4396_v42, %v4395_v52  ;;  %v4406_v52 = vsel %vm4258_vm5, %v9115_v28, 0.0 }
 0xa5e   :  { %v9160_v2 = vpop.f32.mrf.mxu3  ;;  %v4399_v29 = vadd.f32 %v4398_v46, %v4397_v47 }
 0xa5f   :  { %11316 = vst [vmem:[#allocation52_spill] sm:$0xff] %v9160_v2  ;;  %v4420_v23 = vsel %vm4258_vm5, %v9160_v2, 0.0 }
 0xa60   :  { %v4401_v56 = vadd.f32 %v4400_v32, %v4399_v29  ;;  %v4410_v29 = vsel %vm4258_vm5, %v9130_v9, 0.0 }
 0xa62   :  { %v4403_v3 = vadd.f32 %v4402_v62, %v4401_v56 }
 0xa64   :  { %v4405_v42 = vadd.f32 %v4404_v38, %v4403_v3  ;;  %v4414_v3 = vsel %vm4258_vm5, %v9142_v60, 0.0 }
 0xa66   :  { %v9166_v17 = vpop.f32.mrf.mxu3  ;;  %v4407_v47 = vadd.f32 %v4406_v52, %v4405_v42 }
 0xa67   :  { %11319 = vst [vmem:[#allocation53_spill] sm:$0xff] %v9166_v17 }
 0xa68   :  { %v4409_v32 = vadd.f32 %v4408_v13, %v4407_v47  ;;  %v4418_v47 = vsel %vm4258_vm5, %v9154_v7, 0.0 }
 0xa6a   :  { %v4411_v56 = vadd.f32 %v4410_v29, %v4409_v32 }
 0xa6c   :  { %v4413_v38 = vadd.f32 %v4412_v43, %v4411_v56  ;;  %v4422_v56 = vsel %vm4258_vm5, %v9166_v17, 0.0 }
 0xa6e   :  { %v9172_v50 = vpop.f32.mrf.mxu3  ;;  %v4415_v42 = vadd.f32 %v4414_v3, %v4413_v38 }
 0xa6f   :  { %11320 = vst [vmem:[#allocation54_spill] sm:$0xff] %v9172_v50  ;;  %v4424_v38 = vsel %vm4258_vm5, %v9172_v50, 0.0 }
 0xa70   :  { %v4417_v13 = vadd.f32 %v4416_v0, %v4415_v42 }
 0xa72   :  { %v4419_v32 = vadd.f32 %v4418_v47, %v4417_v13 }
 0xa74   :  { %v4421_v43 = vadd.f32 %v4420_v23, %v4419_v32 }
 0xa76   :  { %v9178_v45 = vpop.f32.mrf.mxu3  ;;  %v4423_v3 = vadd.f32 %v4422_v56, %v4421_v43 }
 0xa77   :  { %v4426_v0 = vsel %vm4258_vm5, %v9178_v45, 0.0 }
 0xa78   :  { %v4425_v42 = vadd.f32 %v4424_v38, %v4423_v3 }
 0xa7a   :  { %v4427_v47 = vadd.f32 %v4426_v0, %v4425_v42 }
 0xa7e   :  { %v9184_v40 = vpop.f32.mrf.mxu3 }
 0xa7f   :  { %v4428_v13 = vsel %vm4258_vm5, %v9184_v40, 0.0 }
 0xa80   :  { %v4429_v32 = vadd.f32 %v4428_v13, %v4427_v47 }
 0xa86   :  { %v9190_v37 = vpop.f32.mrf.mxu3 }
 0xa87   :  { %v4430_v23 = vsel %vm4258_vm5, %v9190_v37, 0.0 }
 0xa88   :  { %v4431_v2 = vadd.f32 %v4430_v23, %v4429_v32 }
 0xa8e   :  { %v9196_v21 = vpop.f32.mrf.mxu3 }
 0xa8f   :  { %11321 = vst [vmem:[#allocation55_spill] sm:$0xff] %v9196_v21  ;;  %v4432_v17 = vsel %vm4258_vm5, %v9196_v21, 0.0 }
 0xa90   :  { %v4433_v56 = vadd.f32 %v4432_v17, %v4431_v2 }
 0xa96   :  { %v9202_v46 = vpop.f32.mrf.mxu3 }
 0xa97   :  { %v4434_v43 = vsel %vm4258_vm5, %v9202_v46, 0.0 }
 0xa98   :  { %v4435_v3 = vadd.f32 %v4434_v43, %v4433_v56 }
 0xa9e   :  { %v9208_v62 = vpop.f32.mrf.mxu3 }
 0xa9f   :  { %11322 = vst [vmem:[#allocation56_spill] sm:$0xff] %v9208_v62  ;;  %v4436_v38 = vsel %vm4258_vm5, %v9208_v62, 0.0 }
 0xaa0   :  { %v4437_v42 = vadd.f32 %v4436_v38, %v4435_v3 }
 0xaa6   :  { %v9214_v52 = vpop.f32.mrf.mxu3 }
 0xaa7   :  { %11323 = vst [vmem:[#allocation57_spill] sm:$0xff] %v9214_v52  ;;  %v4438_v0 = vsel %vm4258_vm5, %v9214_v52, 0.0 }
 0xaa8   :  { %v4439_v47 = vadd.f32 %v4438_v0, %v4437_v42 }
 0xaae   :  { %v9220_v29 = vpop.f32.mrf.mxu3 }
 0xaaf   :  { %11324 = vst [vmem:[#allocation58_spill] sm:$0xff] %v9220_v29  ;;  %v4440_v13 = vsel %vm4258_vm5, %v9220_v29, 0.0 }
 0xab0   :  { %v4441_v32 = vadd.f32 %v4440_v13, %v4439_v47 }
 0xab6   :  { %v9228_v60 = vpop.f32.mrf.mxu3 }
 0xab7   :  { %11325 = vst [vmem:[#allocation59_spill] sm:$0xff] %v9228_v60  ;;  %v4442_v23 = vsel %vm4258_vm5, %v9228_v60, 0.0 }
 0xab8   :  { %v4443_v17 = vadd.f32 %v4442_v23, %v4441_v32 }
 0xabe   :  { %v9238_v50 = vpop.f32.mrf.mxu3 }
 0xabf   :  { %11326 = vst [vmem:[#allocation60_spill] sm:$0xff] %v9238_v50  ;;  %v4444_v2 = vsel %vm4258_vm5, %v9238_v50, 0.0 }
 0xac0   :  { %v4445_v56 = vadd.f32 %v4444_v2, %v4443_v17  ;;  %v11327_v2 = vld [vmem:[#allocation71_spill] sm:$0xff] }
 0xac6   :  { %v9248_v21 = vpop.f32.mrf.mxu3 }
 0xac7   :  { %v4446_v43 = vsel %vm4258_vm5, %v9248_v21, 0.0 }
 0xac8   :  { %v4447_v52 = vadd.f32 %v4446_v43, %v4445_v56  ;;  %v11328_v43 = vld [vmem:[#allocation72_spill] sm:$0xff] }
 0xace   :  { %v9256_v38 = vpop.f32.mrf.mxu3 }
 0xacf   :  { %v4448_v3 = vsel %vm4258_vm5, %v9256_v38, 0.0 }
 0xad0   :  { %v4449_v0 = vadd.f32 %v4448_v3, %v4447_v52 }
 0xad2   :  { %v4450_v42 = vrot.slane %v4449_v0, 4 }
 0xad4   :  { %v4451_v29 = vadd.f32 %v4450_v42, %v4449_v0 }
 0xad6   :  { %v4452_v62 = vrot.slane %v4451_v29, 2 }
 0xad8   :  { %v4453_v60 = vadd.f32 %v4452_v62, %v4451_v29  ;;  %v11330_v29 = vld [vmem:[#allocation74_spill] sm:$0xff] }
 0xada   :  { %v4454_v13 = vrot.slane %v4453_v60, 1 }
 0xadc   :  { %v4455_v47 = vadd.f32 %v4454_v13, %v4453_v60 }
 0xade   :  { %v4456_v50 = vsel %vm4258_vm5, %v4455_v47, 0.0 }
 0xadf   :  { %4457 = vadd.xlane.f32.xlu0 %v4456_v50 }
 0xb52   :  { %v4458_v23 = vpop.xlane.xlu0 %4457 }
 0xb53   :  { %v9261_v32 = vmul.f32 0.000108506945, %v4458_v23 }
 0xb55   :  { %v9265_v17 = vsub.f32 %v11327_v2, %v9261_v32  ;;  %v9269_v56 = vsub.f32 %v11328_v43, %v9261_v32  ;;  %v9273_v52 = vsub.f32 %v8586_v16, %v9261_v32  ;;  %v9277_v60 = vsub.f32 %v8600_v41, %v9261_v32  ;;  %v11332_v16 = vld [vmem:[#allocation76_spill] sm:$0xff] }
 0xb56   :  { %v9285_v3 = vsub.f32 %v11330_v29, %v9261_v32  ;;  %v9291_v42 = vsub.f32 %v11332_v16, %v9261_v32  ;;  %v9299_v2 = vsub.f32 %v8642_v49, %v9261_v32  ;;  %v9306_v16 = vsub.f32 %v8656_v58, %v9261_v32 }
 0xb57   :  { %11329 = vst [vmem:[#allocation61_spill] sm:$0xff] %v9273_v52  ;;  %v4556_v50 = vmul.f32 %v9265_v17, %v9265_v17  ;;  %v4557_v62 = vmul.f32 %v9269_v56, %v9269_v56  ;;  %v4558_v0 = vmul.f32 %v9273_v52, %v9273_v52  ;;  %v4559_v41 = vmul.f32 %v9277_v60, %v9277_v60 }
 0xb58   :  { %11331 = vst [vmem:[#allocation62_spill] sm:$0xff] %v9285_v3  ;;  %v4560_v43 = vmul.f32 %v9285_v3, %v9285_v3  ;;  %v4562_v3 = vmul.f32 %v9299_v2, %v9299_v2  ;;  %v9320_v58 = vsub.f32 %v8684_v8, %v9261_v32  ;;  %v9334_v8 = vsub.f32 %v8712_v34, %v9261_v32 }
 0xb59   :  { %v4652_v13 = vsel %vm4258_vm5, %v4556_v50, 0.0  ;;  %v4653_v47 = vsel %vm4258_vm5, %v4557_v62, 0.0  ;;  %v4655_v29 = vsel %vm4258_vm5, %v4558_v0, 0.0  ;;  %v4561_v50 = vmul.f32 %v9291_v42, %v9291_v42 }
 0xb5a   :  { %v4654_v23 = vadd.f32 %v4653_v47, %v4652_v13  ;;  %v4657_v62 = vsel %vm4258_vm5, %v4559_v41, 0.0  ;;  %v11333_v47 = vld [vmem:[#allocation77_spill] sm:$0xff]  ;;  %v4659_v0 = vsel %vm4258_vm5, %v4560_v43, 0.0  ;;  %v4663_v43 = vsel %vm4258_vm5, %v4562_v3, 0.0  ;;  %11335 = vst [vmem:[#allocation64_spill] sm:$0xff] %v9334_v8 }
 0xb5b   :  { %v9313_v49 = vsub.f32 %v11333_v47, %v9261_v32  ;;  %v4661_v41 = vsel %vm4258_vm5, %v4561_v50, 0.0  ;;  %v9348_v34 = vsub.f32 %v8740_v26, %v9261_v32 }
 0xb5c   :  { %v4656_v52 = vadd.f32 %v4655_v29, %v4654_v23  ;;  %v4563_v29 = vmul.f32 %v9306_v16, %v9306_v16 }
 0xb5d   :  { %v4564_v47 = vmul.f32 %v9313_v49, %v9313_v49 }
 0xb5e   :  { %v4658_v13 = vadd.f32 %v4657_v62, %v4656_v52  ;;  %v9327_v62 = vsub.f32 %v8698_v55, %v9261_v32  ;;  %v4665_v50 = vsel %vm4258_vm5, %v4563_v29, 0.0  ;;  %v9341_v55 = vsub.f32 %v8726_v24, %v9261_v32 }
 0xb5f   :  { %v4667_v3 = vsel %vm4258_vm5, %v4564_v47, 0.0 }
 0xb60   :  { %v4660_v23 = vadd.f32 %v4659_v0, %v4658_v13  ;;  %11334 = vst [vmem:[#allocation63_spill] sm:$0xff] %v9327_v62  ;;  %v4565_v0 = vmul.f32 %v9320_v58, %v9320_v58 }
 0xb61   :  { %11336 = vst [vmem:[#allocation65_spill] sm:$0xff] %v9341_v55 }
 0xb62   :  { %v4662_v52 = vadd.f32 %v4661_v41, %v4660_v23  ;;  %v4566_v41 = vmul.f32 %v9327_v62, %v9327_v62  ;;  %v4669_v29 = vsel %vm4258_vm5, %v4565_v0, 0.0  ;;  %v4568_v62 = vmul.f32 %v9341_v55, %v9341_v55 }
 0xb64   :  { %v4664_v13 = vadd.f32 %v4663_v43, %v4662_v52  ;;  %v4567_v43 = vmul.f32 %v9334_v8, %v9334_v8  ;;  %v4671_v47 = vsel %vm4258_vm5, %v4566_v41, 0.0  ;;  %v4569_v8 = vmul.f32 %v9348_v34, %v9348_v34 }
 0xb65   :  { %v4675_v41 = vsel %vm4258_vm5, %v4568_v62, 0.0 }
 0xb66   :  { %v4666_v23 = vadd.f32 %v4665_v50, %v4664_v13  ;;  %v11337_v50 = vld [vmem:[#allocation78_spill] sm:$0xff]  ;;  %v4673_v0 = vsel %vm4258_vm5, %v4567_v43, 0.0  ;;  %v4677_v43 = vsel %vm4258_vm5, %v4569_v8, 0.0 }
 0xb67   :  { %v9355_v24 = vsub.f32 %v11337_v50, %v9261_v32 }
 0xb68   :  { %v4668_v52 = vadd.f32 %v4667_v3, %v4666_v23  ;;  %v11339_v3 = vld [vmem:[#allocation79_spill] sm:$0xff] }
 0xb69   :  { %11338 = vst [vmem:[#allocation66_spill] sm:$0xff] %v9355_v24  ;;  %v9362_v26 = vsub.f32 %v11339_v3, %v9261_v32  ;;  %v4570_v55 = vmul.f32 %v9355_v24, %v9355_v24 }
 0xb6a   :  { %v4670_v13 = vadd.f32 %v4669_v29, %v4668_v52  ;;  %v11340_v29 = vld [vmem:[#allocation80_spill] sm:$0xff] }
 0xb6b   :  { %v9369_v50 = vsub.f32 %v11340_v29, %v9261_v32  ;;  %v4571_v3 = vmul.f32 %v9362_v26, %v9362_v26  ;;  %v4679_v62 = vsel %vm4258_vm5, %v4570_v55, 0.0 }
 0xb6c   :  { %v4672_v23 = vadd.f32 %v4671_v47, %v4670_v13  ;;  %v9376_v47 = vsub.f32 %v8796_v1, %v9261_v32  ;;  %v9390_v1 = vsub.f32 %v8822_v30, %v9261_v32  ;;  %v9404_v30 = vsub.f32 %v8841_v44, %v9261_v32 }
 0xb6d   :  { %v4572_v24 = vmul.f32 %v9369_v50, %v9369_v50  ;;  %v4681_v8 = vsel %vm4258_vm5, %v4571_v3, 0.0 }
 0xb6e   :  { %v4674_v52 = vadd.f32 %v4673_v0, %v4672_v23  ;;  %v11341_v0 = vld [vmem:[#allocation36_spill] sm:$0xff]  ;;  %11343 = vst [vmem:[#allocation68_spill] sm:$0xff] %v9390_v1 }
 0xb6f   :  { %v9383_v29 = vsub.f32 %v11341_v0, %v9261_v32  ;;  %v4683_v55 = vsel %vm4258_vm5, %v4572_v24, 0.0  ;;  %11345 = vst [vmem:[#allocation70_spill] sm:$0xff] %v9404_v30 }
 0xb70   :  { %v4676_v13 = vadd.f32 %v4675_v41, %v4674_v52  ;;  %v4573_v41 = vmul.f32 %v9376_v47, %v9376_v47 }
 0xb71   :  { %11342 = vst [vmem:[#allocation67_spill] sm:$0xff] %v9383_v29  ;;  %v4574_v0 = vmul.f32 %v9383_v29, %v9383_v29 }
 0xb72   :  { %v4678_v23 = vadd.f32 %v4677_v43, %v4676_v13  ;;  %v9397_v43 = vsub.f32 %v8832_v59, %v9261_v32  ;;  %v4685_v3 = vsel %vm4258_vm5, %v4573_v41, 0.0 }
 0xb73   :  { %v4687_v24 = vsel %vm4258_vm5, %v4574_v0, 0.0 }
 0xb74   :  { %v4680_v52 = vadd.f32 %v4679_v62, %v4678_v23  ;;  %11344 = vst [vmem:[#allocation69_spill] sm:$0xff] %v9397_v43  ;;  %v4575_v62 = vmul.f32 %v9390_v1, %v9390_v1  ;;  %v4576_v29 = vmul.f32 %v9397_v43, %v9397_v43  ;;  %v4577_v1 = vmul.f32 %v9404_v30, %v9404_v30 }
 0xb76   :  { %v4682_v13 = vadd.f32 %v4681_v8, %v4680_v52  ;;  %v11346_v8 = vld [vmem:[#allocation84_spill] sm:$0xff]  ;;  %v4689_v41 = vsel %vm4258_vm5, %v4575_v62, 0.0  ;;  %v4691_v0 = vsel %vm4258_vm5, %v4576_v29, 0.0  ;;  %v4693_v62 = vsel %vm4258_vm5, %v4577_v1, 0.0 }
 0xb77   :  { %v9411_v59 = vsub.f32 %v11346_v8, %v9261_v32 }
 0xb78   :  { %v4684_v23 = vadd.f32 %v4683_v55, %v4682_v13  ;;  %v11348_v55 = vld [vmem:[#allocation85_spill] sm:$0xff] }
 0xb79   :  { %11347 = vst [vmem:[#allocation41_spill] sm:$0xff] %v9411_v59  ;;  %v9418_v44 = vsub.f32 %v11348_v55, %v9261_v32  ;;  %v4578_v8 = vmul.f32 %v9411_v59, %v9411_v59 }
 0xb7a   :  { %v4686_v52 = vadd.f32 %v4685_v3, %v4684_v23  ;;  %v9425_v3 = vsub.f32 %v8868_v14, %v9261_v32 }
 0xb7b   :  { %11349 = vst [vmem:[#allocation88_spill] sm:$0xff] %v9418_v44  ;;  %v4579_v30 = vmul.f32 %v9418_v44, %v9418_v44  ;;  %v4695_v29 = vsel %vm4258_vm5, %v4578_v8, 0.0 }
 0xb7c   :  { %v4688_v13 = vadd.f32 %v4687_v24, %v4686_v52  ;;  %11350 = vst [vmem:[#allocation71_spill] sm:$0xff] %v9425_v3  ;;  %v11351_v24 = vld [vmem:[#allocation86_spill] sm:$0xff]  ;;  %v4580_v59 = vmul.f32 %v9425_v3, %v9425_v3 }
 0xb7d   :  { %v9432_v55 = vsub.f32 %v11351_v24, %v9261_v32  ;;  %v4697_v1 = vsel %vm4258_vm5, %v4579_v30, 0.0 }
 0xb7e   :  { %v4690_v23 = vadd.f32 %v4689_v41, %v4688_v13  ;;  %v11353_v41 = vld [vmem:[#allocation87_spill] sm:$0xff]  ;;  %v4699_v8 = vsel %vm4258_vm5, %v4580_v59, 0.0 }
 0xb7f   :  { %11352 = vst [vmem:[#allocation72_spill] sm:$0xff] %v9432_v55  ;;  %v9439_v14 = vsub.f32 %v11353_v41, %v9261_v32  ;;  %v4581_v24 = vmul.f32 %v9432_v55, %v9432_v55 }
 0xb80   :  { %v4692_v52 = vadd.f32 %v4691_v0, %v4690_v23  ;;  %v9446_v0 = vsub.f32 %v8893_v57, %v9261_v32  ;;  %v9460_v57 = vsub.f32 %v8923_v12, %v9261_v32 }
 0xb81   :  { %11354 = vst [vmem:[#allocation74_spill] sm:$0xff] %v9439_v14  ;;  %v4582_v41 = vmul.f32 %v9439_v14, %v9439_v14  ;;  %v4701_v30 = vsel %vm4258_vm5, %v4581_v24, 0.0 }
 0xb82   :  { %v4694_v13 = vadd.f32 %v4693_v62, %v4692_v52  ;;  %11355 = vst [vmem:[#allocation76_spill] sm:$0xff] %v9446_v0  ;;  %v9453_v62 = vsub.f32 %v8904_v48, %v9261_v32  ;;  %v9467_v48 = vsub.f32 %v8938_v15, %v9261_v32  ;;  %v9481_v15 = vsub.f32 %v8985_v54, %v9261_v32 }
 0xb83   :  { %11357 = vst [vmem:[#allocation78_spill] sm:$0xff] %v9460_v57  ;;  %v4703_v59 = vsel %vm4258_vm5, %v4582_v41, 0.0 }
 0xb84   :  { %v4696_v23 = vadd.f32 %v4695_v29, %v4694_v13  ;;  %11356 = vst [vmem:[#allocation77_spill] sm:$0xff] %v9453_v62  ;;  %v4583_v29 = vmul.f32 %v9446_v0, %v9446_v0  ;;  %v4585_v0 = vmul.f32 %v9460_v57, %v9460_v57 }
 0xb85   :  { %11358 = vst [vmem:[#allocation79_spill] sm:$0xff] %v9467_v48 }
 0xb86   :  { %v4698_v52 = vadd.f32 %v4697_v1, %v4696_v23  ;;  %v4584_v1 = vmul.f32 %v9453_v62, %v9453_v62  ;;  %v4705_v24 = vsel %vm4258_vm5, %v4583_v29, 0.0  ;;  %11361 = vst [vmem:[#allocation36_spill] sm:$0xff] %v9481_v15  ;;  %v4709_v29 = vsel %vm4258_vm5, %v4585_v0, 0.0 }
 0xb88   :  { %v4700_v13 = vadd.f32 %v4699_v8, %v4698_v52  ;;  %v11359_v8 = vld [vmem:[#allocation89_spill] sm:$0xff]  ;;  %v4707_v41 = vsel %vm4258_vm5, %v4584_v1, 0.0 }
 0xb89   :  { %v9474_v12 = vsub.f32 %v11359_v8, %v9261_v32 }
 0xb8a   :  { %v4702_v23 = vadd.f32 %v4701_v30, %v4700_v13  ;;  %v4586_v30 = vmul.f32 %v9467_v48, %v9467_v48  ;;  %v4588_v48 = vmul.f32 %v9481_v15, %v9481_v15 }
 0xb8b   :  { %11360 = vst [vmem:[#allocation80_spill] sm:$0xff] %v9474_v12  ;;  %v4587_v57 = vmul.f32 %v9474_v12, %v9474_v12 }
 0xb8c   :  { %v4704_v52 = vadd.f32 %v4703_v59, %v4702_v23  ;;  %v11362_v59 = vld [vmem:[#allocation90_spill] sm:$0xff]  ;;  %v4711_v1 = vsel %vm4258_vm5, %v4586_v30, 0.0  ;;  %v4715_v30 = vsel %vm4258_vm5, %v4588_v48, 0.0 }
 0xb8d   :  { %v9488_v8 = vsub.f32 %v11362_v59, %v9261_v32  ;;  %v4713_v0 = vsel %vm4258_vm5, %v4587_v57, 0.0 }
 0xb8e   :  { %v4706_v13 = vadd.f32 %v4705_v24, %v4704_v52  ;;  %v11364_v24 = vld [vmem:[#allocation91_spill] sm:$0xff] }
 0xb8f   :  { %11363 = vst [vmem:[#allocation84_spill] sm:$0xff] %v9488_v8  ;;  %v9495_v54 = vsub.f32 %v11364_v24, %v9261_v32  ;;  %v4589_v59 = vmul.f32 %v9488_v8, %v9488_v8 }
 0xb90   :  { %v4708_v23 = vadd.f32 %v4707_v41, %v4706_v13  ;;  %v9502_v41 = vsub.f32 %v9046_v35, %v9261_v32 }
 0xb91   :  { %11365 = vst [vmem:[#allocation85_spill] sm:$0xff] %v9495_v54  ;;  %v4590_v24 = vmul.f32 %v9495_v54, %v9495_v54  ;;  %v4717_v57 = vsel %vm4258_vm5, %v4589_v59, 0.0  ;;  %v5953_v54 = vmov 0  }
 0xb92   :  { %v4710_v52 = vadd.f32 %v4709_v29, %v4708_v23  ;;  %11366 = vst [vmem:[#allocation86_spill] sm:$0xff] %v9502_v41  ;;  %v9509_v29 = vsub.f32 %v8570_v22, %v9261_v32  ;;  %v4591_v8 = vmul.f32 %v9502_v41, %v9502_v41  ;;  %v9523_v22 = vsub.f32 %v8598_v19, %v9261_v32 }
 0xb93   :  { %v4719_v48 = vsel %vm4258_vm5, %v4590_v24, 0.0  ;;  %5633 = vset.pattern.permute.xlu1 %v5953_v54  ;;  %5634 = vset.pattern.permute.xlu0 %v5953_v54 }
 0xb94   :  { %v4712_v13 = vadd.f32 %v4711_v1, %v4710_v52  ;;  %11367 = vst [vmem:[#allocation87_spill] sm:$0xff] %v9509_v29  ;;  %v11368_v1 = vld [vmem:[#allocation73_spill] sm:$0xff]  ;;  %v4721_v59 = vsel %vm4258_vm5, %v4591_v8, 0.0 }
 0xb95   :  { %v9516_v35 = vsub.f32 %v11368_v1, %v9261_v32  ;;  %11370 = vst [vmem:[#allocation90_spill] sm:$0xff] %v9523_v22 }
 0xb96   :  { %v4714_v23 = vadd.f32 %v4713_v0, %v4712_v13  ;;  %v4592_v0 = vmul.f32 %v9509_v29, %v9509_v29  ;;  %v4594_v29 = vmul.f32 %v9523_v22, %v9523_v22 }
 0xb97   :  { %11369 = vst [vmem:[#allocation89_spill] sm:$0xff] %v9516_v35  ;;  %v4593_v1 = vmul.f32 %v9516_v35, %v9516_v35 }
 0xb98   :  { %v4716_v52 = vadd.f32 %v4715_v30, %v4714_v23  ;;  %v9530_v30 = vsub.f32 %v8612_v25, %v9261_v32  ;;  %v4723_v24 = vsel %vm4258_vm5, %v4592_v0, 0.0  ;;  %v9544_v25 = vsub.f32 %v8640_v39, %v9261_v32 }
 0xb99   :  { %v4725_v8 = vsel %vm4258_vm5, %v4593_v1, 0.0  ;;  %v4727_v0 = vsel %vm4258_vm5, %v4594_v29, 0.0  ;;  %v9558_v39 = vsub.f32 %v8668_v63, %v9261_v32 }
 0xb9a   :  { %v4718_v13 = vadd.f32 %v4717_v57, %v4716_v52  ;;  %11371 = vst [vmem:[#allocation91_spill] sm:$0xff] %v9530_v30  ;;  %v11372_v57 = vld [vmem:[#allocation75_spill] sm:$0xff] }
 0xb9b   :  { %v9537_v19 = vsub.f32 %v11372_v57, %v9261_v32  ;;  %11374 = vst [vmem:[#allocation75_spill] sm:$0xff] %v9544_v25 }
 0xb9c   :  { %v4720_v23 = vadd.f32 %v4719_v48, %v4718_v13  ;;  %v4595_v48 = vmul.f32 %v9530_v30, %v9530_v30  ;;  %11376 = vst [vmem:[#allocation93_spill] sm:$0xff] %v9558_v39 }
 0xb9d   :  { %11373 = vst [vmem:[#allocation73_spill] sm:$0xff] %v9537_v19  ;;  %v4596_v57 = vmul.f32 %v9537_v19, %v9537_v19 }
 0xb9e   :  { %v4722_v52 = vadd.f32 %v4721_v59, %v4720_v23  ;;  %v9551_v59 = vsub.f32 %v8654_v11, %v9261_v32  ;;  %v4729_v1 = vsel %vm4258_vm5, %v4595_v48, 0.0  ;;  %v9565_v11 = vsub.f32 %v8682_v27, %v9261_v32 }
 0xb9f   :  { %v4731_v29 = vsel %vm4258_vm5, %v4596_v57, 0.0  ;;  %v9579_v27 = vsub.f32 %v8710_v20, %v9261_v32  ;;  %v9593_v20 = vsub.f32 %v8738_v51, %v9261_v32 }
 0xba0   :  { %v4724_v13 = vadd.f32 %v4723_v24, %v4722_v52  ;;  %11375 = vst [vmem:[#allocation92_spill] sm:$0xff] %v9551_v59  ;;  %v4597_v24 = vmul.f32 %v9544_v25, %v9544_v25  ;;  %v4599_v25 = vmul.f32 %v9558_v39, %v9558_v39 }
 0xba1   :  { %11377 = vst [vmem:[#allocation94_spill] sm:$0xff] %v9565_v11 }
 0xba2   :  { %v4726_v23 = vadd.f32 %v4725_v8, %v4724_v13  ;;  %v4598_v8 = vmul.f32 %v9551_v59, %v9551_v59  ;;  %v4733_v48 = vsel %vm4258_vm5, %v4597_v24, 0.0  ;;  %11380 = vst [vmem:[#allocation95_spill] sm:$0xff] %v9579_v27  ;;  %v4737_v24 = vsel %vm4258_vm5, %v4599_v25, 0.0 }
 0xba3   :  { %11382 = vst [vmem:[#allocation97_spill] sm:$0xff] %v9593_v20 }
 0xba4   :  { %v4728_v52 = vadd.f32 %v4727_v0, %v4726_v23  ;;  %v11378_v0 = vld [vmem:[#allocation32_spill] sm:$0xff]  ;;  %v4735_v57 = vsel %vm4258_vm5, %v4598_v8, 0.0 }
 0xba5   :  { %v9572_v63 = vsub.f32 %v11378_v0, %v9261_v32 }
 0xba6   :  { %v4730_v13 = vadd.f32 %v4729_v1, %v4728_v52  ;;  %v4600_v1 = vmul.f32 %v9565_v11, %v9565_v11 }
 0xba7   :  { %11379 = vst [vmem:[#allocation32_spill] sm:$0xff] %v9572_v63  ;;  %v4601_v0 = vmul.f32 %v9572_v63, %v9572_v63 }
 0xba8   :  { %v4732_v23 = vadd.f32 %v4731_v29, %v4730_v13  ;;  %v9586_v29 = vsub.f32 %v8724_v4, %v9261_v32  ;;  %v4739_v8 = vsel %vm4258_vm5, %v4600_v1, 0.0  ;;  %v9600_v4 = vsub.f32 %v8752_v31, %v9261_v32 }
 0xba9   :  { %v4741_v25 = vsel %vm4258_vm5, %v4601_v0, 0.0 }
 0xbaa   :  { %v4734_v52 = vadd.f32 %v4733_v48, %v4732_v23  ;;  %11381 = vst [vmem:[#allocation96_spill] sm:$0xff] %v9586_v29  ;;  %v4602_v48 = vmul.f32 %v9579_v27, %v9579_v27  ;;  %v4604_v27 = vmul.f32 %v9593_v20, %v9593_v20 }
 0xbab   :  { %11383 = vst [vmem:[#allocation98_spill] sm:$0xff] %v9600_v4 }
 0xbac   :  { %v4736_v13 = vadd.f32 %v4735_v57, %v4734_v52  ;;  %v4603_v57 = vmul.f32 %v9586_v29, %v9586_v29  ;;  %v4743_v1 = vsel %vm4258_vm5, %v4602_v48, 0.0  ;;  %v4605_v29 = vmul.f32 %v9600_v4, %v9600_v4 }
 0xbad   :  { %v4747_v48 = vsel %vm4258_vm5, %v4604_v27, 0.0 }
 0xbae   :  { %v4738_v23 = vadd.f32 %v4737_v24, %v4736_v13  ;;  %v11384_v24 = vld [vmem:[#allocation33_spill] sm:$0xff]  ;;  %v4745_v0 = vsel %vm4258_vm5, %v4603_v57, 0.0  ;;  %v4749_v57 = vsel %vm4258_vm5, %v4605_v29, 0.0 }
 0xbaf   :  { %v9607_v51 = vsub.f32 %v11384_v24, %v9261_v32 }
 0xbb0   :  { %v4740_v52 = vadd.f32 %v4739_v8, %v4738_v23  ;;  %v11386_v8 = vld [vmem:[#allocation34_spill] sm:$0xff] }
 0xbb1   :  { %11385 = vst [vmem:[#allocation33_spill] sm:$0xff] %v9607_v51  ;;  %v9614_v31 = vsub.f32 %v11386_v8, %v9261_v32  ;;  %v4606_v20 = vmul.f32 %v9607_v51, %v9607_v51 }
 0xbb2   :  { %v4742_v13 = vadd.f32 %v4741_v25, %v4740_v52  ;;  %v11388_v25 = vld [vmem:[#allocation35_spill] sm:$0xff] }
 0xbb3   :  { %11387 = vst [vmem:[#allocation34_spill] sm:$0xff] %v9614_v31  ;;  %v9621_v24 = vsub.f32 %v11388_v25, %v9261_v32  ;;  %v4607_v4 = vmul.f32 %v9614_v31, %v9614_v31  ;;  %v4751_v27 = vsel %vm4258_vm5, %v4606_v20, 0.0 }
 0xbb4   :  { %v4744_v23 = vadd.f32 %v4743_v1, %v4742_v13  ;;  %v11390_v1 = vld [vmem:[#allocation81_spill] sm:$0xff] }
 0xbb5   :  { %11389 = vst [vmem:[#allocation35_spill] sm:$0xff] %v9621_v24  ;;  %v9628_v8 = vsub.f32 %v11390_v1, %v9261_v32  ;;  %v4608_v51 = vmul.f32 %v9621_v24, %v9621_v24  ;;  %v4753_v29 = vsel %vm4258_vm5, %v4607_v4, 0.0 }
 0xbb6   :  { %v4746_v52 = vadd.f32 %v4745_v0, %v4744_v23  ;;  %v11392_v0 = vld [vmem:[#allocation82_spill] sm:$0xff] }
 0xbb7   :  { %11391 = vst [vmem:[#allocation81_spill] sm:$0xff] %v9628_v8  ;;  %v9635_v25 = vsub.f32 %v11392_v0, %v9261_v32  ;;  %v4609_v31 = vmul.f32 %v9628_v8, %v9628_v8  ;;  %v4755_v20 = vsel %vm4258_vm5, %v4608_v51, 0.0 }
 0xbb8   :  { %v4748_v13 = vadd.f32 %v4747_v48, %v4746_v52  ;;  %v11394_v48 = vld [vmem:[#allocation37_spill] sm:$0xff] }
 0xbb9   :  { %11393 = vst [vmem:[#allocation82_spill] sm:$0xff] %v9635_v25  ;;  %v9642_v1 = vsub.f32 %v11394_v48, %v9261_v32  ;;  %v4610_v24 = vmul.f32 %v9635_v25, %v9635_v25  ;;  %v4757_v4 = vsel %vm4258_vm5, %v4609_v31, 0.0 }
 0xbba   :  { %v4750_v23 = vadd.f32 %v4749_v57, %v4748_v13  ;;  %v11396_v57 = vld [vmem:[#allocation83_spill] sm:$0xff] }
 0xbbb   :  { %11395 = vst [vmem:[#allocation37_spill] sm:$0xff] %v9642_v1  ;;  %v9649_v0 = vsub.f32 %v11396_v57, %v9261_v32  ;;  %v4611_v8 = vmul.f32 %v9642_v1, %v9642_v1  ;;  %v4759_v51 = vsel %vm4258_vm5, %v4610_v24, 0.0 }
 0xbbc   :  { %v4752_v52 = vadd.f32 %v4751_v27, %v4750_v23  ;;  %v11398_v27 = vld [vmem:[#allocation38_spill] sm:$0xff] }
 0xbbd   :  { %11397 = vst [vmem:[#allocation83_spill] sm:$0xff] %v9649_v0  ;;  %v9656_v48 = vsub.f32 %v11398_v27, %v9261_v32  ;;  %v4612_v25 = vmul.f32 %v9649_v0, %v9649_v0  ;;  %v4761_v31 = vsel %vm4258_vm5, %v4611_v8, 0.0 }
 0xbbe   :  { %v4754_v13 = vadd.f32 %v4753_v29, %v4752_v52  ;;  %v11400_v29 = vld [vmem:[#allocation39_spill] sm:$0xff] }
 0xbbf   :  { %11399 = vst [vmem:[#allocation38_spill] sm:$0xff] %v9656_v48  ;;  %v9663_v57 = vsub.f32 %v11400_v29, %v9261_v32  ;;  %v4613_v1 = vmul.f32 %v9656_v48, %v9656_v48  ;;  %v4763_v24 = vsel %vm4258_vm5, %v4612_v25, 0.0 }
 0xbc0   :  { %v4756_v23 = vadd.f32 %v4755_v20, %v4754_v13  ;;  %v11402_v20 = vld [vmem:[#allocation40_spill] sm:$0xff] }
 0xbc1   :  { %11401 = vst [vmem:[#allocation39_spill] sm:$0xff] %v9663_v57  ;;  %v9670_v27 = vsub.f32 %v11402_v20, %v9261_v32  ;;  %v4614_v29 = vmul.f32 %v9663_v57, %v9663_v57  ;;  %v4765_v8 = vsel %vm4258_vm5, %v4613_v1, 0.0 }
 0xbc2   :  { %v4758_v52 = vadd.f32 %v4757_v4, %v4756_v23  ;;  %v9677_v4 = vsub.f32 %v11315_v6, %v9261_v32  ;;  %v9691_v6 = vsub.f32 %v11318_v18, %v9261_v32  ;;  %v9705_v18 = vsub.f32 %v8943_v5, %v9261_v32 }
 0xbc3   :  { %11403 = vst [vmem:[#allocation40_spill] sm:$0xff] %v9670_v27  ;;  %v4615_v48 = vmul.f32 %v9670_v27, %v9670_v27  ;;  %v4767_v25 = vsel %vm4258_vm5, %v4614_v29, 0.0  ;;  %v9719_v5 = vsub.f32 %v8995_v36, %v9261_v32  ;;  %v9733_v36 = vsub.f32 %v9034_v33, %v9261_v32 }
 0xbc4   :  { %v4760_v13 = vadd.f32 %v4759_v51, %v4758_v52  ;;  %11404 = vst [vmem:[#allocation99_spill] sm:$0xff] %v9677_v4  ;;  %v11405_v51 = vld [vmem:[#allocation42_spill] sm:$0xff]  ;;  %v9747_v33 = vsub.f32 %v9068_v61, %v9261_v32  ;;  %v9761_v61 = vsub.f32 %v9093_v53, %v9261_v32  ;;  %v9775_v53 = vsub.f32 %v9115_v28, %v9261_v32 }
 0xbc5   :  { %v9684_v20 = vsub.f32 %v11405_v51, %v9261_v32  ;;  %11407 = vst [vmem:[#allocation100_spill] sm:$0xff] %v9691_v6  ;;  %v4769_v1 = vsel %vm4258_vm5, %v4615_v48, 0.0  ;;  %v9789_v28 = vsub.f32 %v9130_v9, %v9261_v32 }
 0xbc6   :  { %v4762_v23 = vadd.f32 %v4761_v31, %v4760_v13  ;;  %v4616_v31 = vmul.f32 %v9677_v4, %v9677_v4 }
 0xbc7   :  { %11406 = vst [vmem:[#allocation42_spill] sm:$0xff] %v9684_v20  ;;  %v4617_v27 = vmul.f32 %v9684_v20, %v9684_v20  ;;  %v4632_v11 = vmul.f32 %v9789_v28, %v9789_v28 }
 0xbc8   :  { %v4764_v52 = vadd.f32 %v4763_v24, %v4762_v23  ;;  %v11408_v24 = vld [vmem:[#allocation43_spill] sm:$0xff]  ;;  %v4771_v29 = vsel %vm4258_vm5, %v4616_v31, 0.0 }
 0xbc9   :  { %v9698_v51 = vsub.f32 %v11408_v24, %v9261_v32  ;;  %v4773_v48 = vsel %vm4258_vm5, %v4617_v27, 0.0 }
 0xbca   :  { %v4766_v13 = vadd.f32 %v4765_v8, %v4764_v52  ;;  %v4618_v8 = vmul.f32 %v9691_v6, %v9691_v6 }
 0xbcb   :  { %11409 = vst [vmem:[#allocation43_spill] sm:$0xff] %v9698_v51  ;;  %v4619_v20 = vmul.f32 %v9698_v51, %v9698_v51 }
 0xbcc   :  { %v4768_v23 = vadd.f32 %v4767_v25, %v4766_v13  ;;  %v11410_v25 = vld [vmem:[#allocation44_spill] sm:$0xff]  ;;  %v4775_v31 = vsel %vm4258_vm5, %v4618_v8, 0.0 }
 0xbcd   :  { %v9712_v24 = vsub.f32 %v11410_v25, %v9261_v32  ;;  %v4777_v27 = vsel %vm4258_vm5, %v4619_v20, 0.0 }
 0xbce   :  { %v4770_v52 = vadd.f32 %v4769_v1, %v4768_v23  ;;  %v4620_v1 = vmul.f32 %v9705_v18, %v9705_v18 }
 0xbcf   :  { %v4621_v51 = vmul.f32 %v9712_v24, %v9712_v24 }
 0xbd0   :  { %v4772_v13 = vadd.f32 %v4771_v29, %v4770_v52  ;;  %v11411_v29 = vld [vmem:[#allocation45_spill] sm:$0xff]  ;;  %v4779_v8 = vsel %vm4258_vm5, %v4620_v1, 0.0 }
 0xbd1   :  { %v9726_v25 = vsub.f32 %v11411_v29, %v9261_v32  ;;  %v4781_v20 = vsel %vm4258_vm5, %v4621_v51, 0.0 }
 0xbd2   :  { %v4774_v23 = vadd.f32 %v4773_v48, %v4772_v13  ;;  %v4622_v48 = vmul.f32 %v9719_v5, %v9719_v5 }
 0xbd3   :  { %v4623_v6 = vmul.f32 %v9726_v25, %v9726_v25 }
 0xbd4   :  { %v4776_v52 = vadd.f32 %v4775_v31, %v4774_v23  ;;  %v11412_v31 = vld [vmem:[#allocation46_spill] sm:$0xff]  ;;  %v4783_v1 = vsel %vm4258_vm5, %v4622_v48, 0.0 }
 0xbd5   :  { %v9740_v29 = vsub.f32 %v11412_v31, %v9261_v32  ;;  %v4785_v51 = vsel %vm4258_vm5, %v4623_v6, 0.0 }
 0xbd6   :  { %v4778_v13 = vadd.f32 %v4777_v27, %v4776_v52  ;;  %v4624_v27 = vmul.f32 %v9733_v36, %v9733_v36 }
 0xbd7   :  { %v4625_v4 = vmul.f32 %v9740_v29, %v9740_v29 }
 0xbd8   :  { %v4780_v23 = vadd.f32 %v4779_v8, %v4778_v13  ;;  %v11413_v8 = vld [vmem:[#allocation47_spill] sm:$0xff]  ;;  %v4787_v48 = vsel %vm4258_vm5, %v4624_v27, 0.0 }
 0xbd9   :  { %v9754_v31 = vsub.f32 %v11413_v8, %v9261_v32  ;;  %v4789_v6 = vsel %vm4258_vm5, %v4625_v4, 0.0 }
 0xbda   :  { %v4782_v52 = vadd.f32 %v4781_v20, %v4780_v23  ;;  %v4626_v20 = vmul.f32 %v9747_v33, %v9747_v33 }
 0xbdb   :  { %v4627_v57 = vmul.f32 %v9754_v31, %v9754_v31 }
 0xbdc   :  { %v4784_v13 = vadd.f32 %v4783_v1, %v4782_v52  ;;  %v11414_v1 = vld [vmem:[#allocation48_spill] sm:$0xff]  ;;  %v4791_v27 = vsel %vm4258_vm5, %v4626_v20, 0.0 }
 0xbdd   :  { %v9768_v8 = vsub.f32 %v11414_v1, %v9261_v32  ;;  %v4793_v4 = vsel %vm4258_vm5, %v4627_v57, 0.0 }
 0xbde   :  { %v4786_v23 = vadd.f32 %v4785_v51, %v4784_v13  ;;  %v4628_v51 = vmul.f32 %v9761_v61, %v9761_v61 }
 0xbdf   :  { %v4629_v0 = vmul.f32 %v9768_v8, %v9768_v8 }
 0xbe0   :  { %v4788_v52 = vadd.f32 %v4787_v48, %v4786_v23  ;;  %v11415_v48 = vld [vmem:[#allocation49_spill] sm:$0xff]  ;;  %v4795_v20 = vsel %vm4258_vm5, %v4628_v51, 0.0 }
 0xbe1   :  { %v9782_v1 = vsub.f32 %v11415_v48, %v9261_v32  ;;  %v4797_v57 = vsel %vm4258_vm5, %v4629_v0, 0.0 }
 0xbe2   :  { %v4790_v13 = vadd.f32 %v4789_v6, %v4788_v52  ;;  %v4630_v6 = vmul.f32 %v9775_v53, %v9775_v53 }
 0xbe3   :  { %v4631_v63 = vmul.f32 %v9782_v1, %v9782_v1 }
 0xbe4   :  { %v4792_v23 = vadd.f32 %v4791_v27, %v4790_v13  ;;  %v11416_v27 = vld [vmem:[#allocation50_spill] sm:$0xff]  ;;  %v4799_v51 = vsel %vm4258_vm5, %v4630_v6, 0.0  ;;  %v4803_v6 = vsel %vm4258_vm5, %v4632_v11, 0.0 }
 0xbe5   :  { %v9796_v48 = vsub.f32 %v11416_v27, %v9261_v32  ;;  %v4801_v0 = vsel %vm4258_vm5, %v4631_v63, 0.0 }
 0xbe6   :  { %v4794_v52 = vadd.f32 %v4793_v4, %v4792_v23  ;;  %v11417_v4 = vld [vmem:[#allocation51_spill] sm:$0xff] }
 0xbe7   :  { %v9803_v9 = vsub.f32 %v11417_v4, %v9261_v32  ;;  %v4633_v27 = vmul.f32 %v9796_v48, %v9796_v48 }
 0xbe8   :  { %v4796_v13 = vadd.f32 %v4795_v20, %v4794_v52  ;;  %v9810_v20 = vsub.f32 %v9148_v10, %v9261_v32 }
 0xbe9   :  { %v4634_v4 = vmul.f32 %v9803_v9, %v9803_v9  ;;  %v4805_v63 = vsel %vm4258_vm5, %v4633_v27, 0.0 }
 0xbea   :  { %v4798_v23 = vadd.f32 %v4797_v57, %v4796_v13  ;;  %v9817_v57 = vsub.f32 %v9154_v7, %v9261_v32  ;;  %v4635_v39 = vmul.f32 %v9810_v20, %v9810_v20 }
 0xbeb   :  { %v4807_v11 = vsel %vm4258_vm5, %v4634_v4, 0.0 }
 0xbec   :  { %v4800_v52 = vadd.f32 %v4799_v51, %v4798_v23  ;;  %v11418_v51 = vld [vmem:[#allocation52_spill] sm:$0xff]  ;;  %v4636_v59 = vmul.f32 %v9817_v57, %v9817_v57  ;;  %v4809_v27 = vsel %vm4258_vm5, %v4635_v39, 0.0 }
 0xbed   :  { %v9824_v10 = vsub.f32 %v11418_v51, %v9261_v32 }
 0xbee   :  { %v4802_v13 = vadd.f32 %v4801_v0, %v4800_v52  ;;  %v11419_v0 = vld [vmem:[#allocation53_spill] sm:$0xff]  ;;  %v4811_v4 = vsel %vm4258_vm5, %v4636_v59, 0.0 }
 0xbef   :  { %v9831_v7 = vsub.f32 %v11419_v0, %v9261_v32  ;;  %v4637_v19 = vmul.f32 %v9824_v10, %v9824_v10 }
 0xbf0   :  { %v4804_v23 = vadd.f32 %v4803_v6, %v4802_v13  ;;  %v11420_v6 = vld [vmem:[#allocation54_spill] sm:$0xff] }
 0xbf1   :  { %v9838_v51 = vsub.f32 %v11420_v6, %v9261_v32  ;;  %v4638_v0 = vmul.f32 %v9831_v7, %v9831_v7  ;;  %v4813_v39 = vsel %vm4258_vm5, %v4637_v19, 0.0 }
 0xbf2   :  { %v4806_v52 = vadd.f32 %v4805_v63, %v4804_v23  ;;  %v9845_v63 = vsub.f32 %v9178_v45, %v9261_v32  ;;  %v9859_v45 = vsub.f32 %v9190_v37, %v9261_v32  ;;  %v9873_v37 = vsub.f32 %v9202_v46, %v9261_v32 }
 0xbf3   :  { %v4639_v6 = vmul.f32 %v9838_v51, %v9838_v51  ;;  %v4815_v59 = vsel %vm4258_vm5, %v4638_v0, 0.0 }
 0xbf4   :  { %v4808_v13 = vadd.f32 %v4807_v11, %v4806_v52  ;;  %v9852_v11 = vsub.f32 %v9184_v40, %v9261_v32  ;;  %v4644_v35 = vmul.f32 %v9873_v37, %v9873_v37 }
 0xbf5   :  { %v4817_v19 = vsel %vm4258_vm5, %v4639_v6, 0.0 }
 0xbf6   :  { %v4810_v23 = vadd.f32 %v4809_v27, %v4808_v13  ;;  %v4640_v27 = vmul.f32 %v9845_v63, %v9845_v63  ;;  %v4641_v30 = vmul.f32 %v9852_v11, %v9852_v11 }
 0xbf8   :  { %v4812_v52 = vadd.f32 %v4811_v4, %v4810_v23  ;;  %v11421_v4 = vld [vmem:[#allocation55_spill] sm:$0xff]  ;;  %v4819_v0 = vsel %vm4258_vm5, %v4640_v27, 0.0  ;;  %v4821_v6 = vsel %vm4258_vm5, %v4641_v30, 0.0 }
 0xbf9   :  { %v9866_v40 = vsub.f32 %v11421_v4, %v9261_v32 }
 0xbfa   :  { %v4814_v13 = vadd.f32 %v4813_v39, %v4812_v52  ;;  %v4642_v39 = vmul.f32 %v9859_v45, %v9859_v45 }
 0xbfb   :  { %v4643_v22 = vmul.f32 %v9866_v40, %v9866_v40 }
 0xbfc   :  { %v4816_v23 = vadd.f32 %v4815_v59, %v4814_v13  ;;  %v11422_v59 = vld [vmem:[#allocation56_spill] sm:$0xff]  ;;  %v4823_v27 = vsel %vm4258_vm5, %v4642_v39, 0.0 }
 0xbfd   :  { %v9880_v4 = vsub.f32 %v11422_v59, %v9261_v32  ;;  %v4825_v30 = vsel %vm4258_vm5, %v4643_v22, 0.0 }
 0xbfe   :  { %v4818_v52 = vadd.f32 %v4817_v19, %v4816_v23  ;;  %v11423_v19 = vld [vmem:[#allocation57_spill] sm:$0xff] }
 0xbff   :  { %v9887_v46 = vsub.f32 %v11423_v19, %v9261_v32  ;;  %v4645_v41 = vmul.f32 %v9880_v4, %v9880_v4  ;;  %v11425_v19 = vld [vmem:[#allocation59_spill] sm:$0xff] }
 0xc00   :  { %v4820_v13 = vadd.f32 %v4819_v0, %v4818_v52  ;;  %v11424_v0 = vld [vmem:[#allocation58_spill] sm:$0xff]  ;;  %v9901_v15 = vsub.f32 %v11425_v19, %v9261_v32 }
 0xc01   :  { %v9894_v59 = vsub.f32 %v11424_v0, %v9261_v32  ;;  %v4646_v39 = vmul.f32 %v9887_v46, %v9887_v46  ;;  %v11426_v0 = vld [vmem:[#allocation60_spill] sm:$0xff]  ;;  %v4829_v54 = vsel %vm4258_vm5, %v4645_v41, 0.0 }
 0xc02   :  { %v4822_v23 = vadd.f32 %v4821_v6, %v4820_v13  ;;  %v5643_v13 = vld [vmem:[#allocation7] ss:$0 sm:$0xff]  ;;  %v9908_v12 = vsub.f32 %v11426_v0, %v9261_v32  ;;  %v4648_v19 = vmul.f32 %v9901_v15, %v9901_v15 }
 0xc03   :  { %4963 = vperm.xlu1 %5633, %v5643_v13   ;;  %v4647_v22 = vmul.f32 %v9894_v59, %v9894_v59  ;;  %v5644_v13 = vld [vmem:[#allocation8] ss:$0 sm:$0xff] }
 0xc04   :  { %v4824_v52 = vadd.f32 %v4823_v27, %v4822_v23  ;;  %v4827_v23 = vsel %vm4258_vm5, %v4644_v35, 0.0  ;;  %v4831_v35 = vsel %vm4258_vm5, %v4646_v39, 0.0  ;;  %v4649_v0 = vmul.f32 %v9908_v12, %v9908_v12 }
 0xc05   :  { %v4833_v41 = vsel %vm4258_vm5, %v4647_v22, 0.0 }
 0xc06   :  { %v4826_v6 = vadd.f32 %v4825_v30, %v4824_v52  ;;  %v9915_v30 = vsub.f32 %v9248_v21, %v9261_v32 }
 0xc08   :  { %v4828_v27 = vadd.f32 %v4827_v23, %v4826_v6  ;;  %v9922_v23 = vsub.f32 %v9256_v38, %v9261_v32  ;;  %v4650_v21 = vmul.f32 %v9915_v30, %v9915_v30 }
 0xc0a   :  { %v4830_v52 = vadd.f32 %v4829_v54, %v4828_v27  ;;  %v4835_v54 = vsel %vm4258_vm5, %v4648_v19, 0.0  ;;  %v4651_v39 = vmul.f32 %v9922_v23, %v9922_v23  ;;  %v4839_v32 = vsel %vm4258_vm5, %v4650_v21, 0.0 }
 0xc0b   :  { %5065 = vperm.xlu1 %5633, %v5644_v13  }
 0xc0c   :  { %v4832_v6 = vadd.f32 %v4831_v35, %v4830_v52  ;;  %v4837_v52 = vsel %vm4258_vm5, %v4649_v0, 0.0  ;;  %v4841_v14 = vsel %vm4258_vm5, %v4651_v39, 0.0 }
 0xc0e   :  { %v4834_v27 = vadd.f32 %v4833_v41, %v4832_v6 }
 0xc10   :  { %v4836_v62 = vadd.f32 %v4835_v54, %v4834_v27 }
 0xc12   :  { %v4838_v38 = vadd.f32 %v4837_v52, %v4836_v62 }
 0xc14   :  { %v4840_v35 = vadd.f32 %v4839_v32, %v4838_v38 }
 0xc16   :  { %v4842_v22 = vadd.f32 %v4841_v14, %v4840_v35 }
 0xc18   :  { %v4843_v6 = vrot.slane %v4842_v22, 4 }
 0xc1a   :  { %v4844_v41 = vadd.f32 %v4843_v6, %v4842_v22  ;;  %v11428_v22 = vld [vmem:[#allocation62_spill] sm:$0xff] }
 0xc1c   :  { %v4845_v55 = vrot.slane %v4844_v41, 2 }
 0xc1e   :  { %v4846_v3 = vadd.f32 %v4845_v55, %v4844_v41  ;;  %v11427_v55 = vld [vmem:[#allocation61_spill] sm:$0xff] }
 0xc20   :  { %v4847_v44 = vrot.slane %v4846_v3, 1 }
 0xc22   :  { %v4848_v19 = vadd.f32 %v4847_v44, %v4846_v3 }
 0xc24   :  { %v4849_v13 = vsel %vm4258_vm5, %v4848_v19, 0.0 }
 0xc25   :  { %4850 = vadd.xlane.f32.xlu0 %v4849_v13  ;;  %v11429_v13 = vld [vmem:[#allocation63_spill] sm:$0xff] }
 0xc98   :  { %v4851_v27 = vpop.xlane.xlu0 %4850 }
 0xc99   :  { %v4852_v54 = vmul.f32 0.000108506945, %v4851_v27  ;;  %v11430_v27 = vld [vmem:[#allocation64_spill] sm:$0xff] }
 0xc9b   :  { %v4853_v43 = vadd.f32 1e-05, %v4852_v54 }
 0xc9d   :  { %5657 = vrsqrt.f32 %v4853_v43  ;;  %vm4860_vm7 = vweird.f32 %v4853_v43 }
 0xca3   :  { %v5658_v62 = vpop.eup %5657 }
 0xca4   :  { %v4855_v0 = vmul.f32 %v5658_v62, %v4853_v43  ;;  %vm4861_vm6 = vweird.f32 %v5658_v62 }
 0xca5   :  { %vm4862_vm8 = vmor %vm4860_vm7, %vm4861_vm6 }
 0xca6   :  { %v4856_v21 = vmul.f32 %v5658_v62, %v4855_v0 }
 0xca8   :  { %v4857_v52 = vmul.f32 0.5, %v4856_v21 }
 0xcaa   :  { %v4858_v38 = vsub.f32 1.5, %v4857_v52 }
 0xcac   :  { %v4859_v39 = vmul.f32 %v5658_v62, %v4858_v38 }
 0xcae   :  { %v9936_v14 = vsel %vm4862_vm8, %v5658_v62, %v4859_v39 }
 0xcaf   :  { %v4864_v44 = vmul.f32 %v9936_v14, %v9265_v17  ;;  %v4865_v3 = vmul.f32 %v9936_v14, %v9269_v56  ;;  %v4866_v32 = vmul.f32 %v9936_v14, %v11427_v55  ;;  %v4867_v35 = vmul.f32 %v9936_v14, %v9277_v60  ;;  %v10026_v55 = vpop.permute.xlu1 %4963 }
 0xcb0   :  { %v4868_v6 = vmul.f32 %v9936_v14, %v11428_v22  ;;  %v4869_v43 = vmul.f32 %v9936_v14, %v9291_v42  ;;  %v4870_v41 = vmul.f32 %v9936_v14, %v9299_v2  ;;  %v4871_v17 = vmul.f32 %v9936_v14, %v9306_v16  ;;  %v11431_v42 = vld [vmem:[#allocation65_spill] sm:$0xff]  ;;  %v11432_v16 = vld [vmem:[#allocation66_spill] sm:$0xff] }
 0xcb1   :  { %v4872_v56 = vmul.f32 %v9936_v14, %v9313_v49  ;;  %v4873_v19 = vmul.f32 %v9936_v14, %v9320_v58  ;;  %v4874_v60 = vmul.f32 %v9936_v14, %v11429_v13  ;;  %v9962_v54 = vmul.f32 %v9936_v14, %v11430_v27 }
 0xcb2   :  { %v9966_v62 = vmul.f32 %v9936_v14, %v11431_v42  ;;  %v9970_v2 = vmul.f32 %v9936_v14, %v9348_v34  ;;  %v9974_v49 = vmul.f32 %v9936_v14, %v11432_v16  ;;  %v4928_v58 = vmul.f32 %v9936_v14, %v9705_v18 }
 0xcb3   :  { %v4929_v0 = vmul.f32 %v9936_v14, %v9712_v24  ;;  %v4930_v21 = vmul.f32 %v9936_v14, %v9719_v5  ;;  %v4931_v52 = vmul.f32 %v9936_v14, %v9726_v25  ;;  %v4932_v34 = vmul.f32 %v9936_v14, %v9733_v36 }
 0xcb4   :  { %v4933_v38 = vmul.f32 %v9936_v14, %v9740_v29  ;;  %v4934_v39 = vmul.f32 %v9936_v14, %v9747_v33  ;;  %v4935_v18 = vmul.f32 %v9936_v14, %v9754_v31  ;;  %v4936_v24 = vmul.f32 %v9936_v14, %v9761_v61 }
 0xcb5   :  { %v4937_v5 = vmul.f32 %v9936_v14, %v9768_v8  ;;  %v4938_v25 = vmul.f32 %v9936_v14, %v9775_v53  ;;  %v4939_v36 = vmul.f32 %v9936_v14, %v9782_v1  ;;  %v4940_v29 = vmul.f32 %v9936_v14, %v9789_v28 }
 0xcb6   :  { %v4941_v33 = vmul.f32 %v9936_v14, %v9796_v48  ;;  %v4942_v31 = vmul.f32 %v9936_v14, %v9803_v9  ;;  %v4943_v61 = vmul.f32 %v9936_v14, %v9810_v20  ;;  %v4944_v8 = vmul.f32 %v9936_v14, %v9817_v57 }
 0xcb7   :  { %v4945_v53 = vmul.f32 %v9936_v14, %v9824_v10  ;;  %v4946_v1 = vmul.f32 %v9936_v14, %v9831_v7  ;;  %v4947_v28 = vmul.f32 %v9936_v14, %v9838_v51  ;;  %v4948_v48 = vmul.f32 %v9936_v14, %v9845_v63 }
 0xcb8   :  { %v4949_v9 = vmul.f32 %v9936_v14, %v9852_v11  ;;  %v4950_v20 = vmul.f32 %v9936_v14, %v9859_v45  ;;  %v4951_v57 = vmul.f32 %v9936_v14, %v9866_v40  ;;  %v4952_v10 = vmul.f32 %v9936_v14, %v9873_v37 }
 0xcb9   :  { %v4953_v7 = vmul.f32 %v9936_v14, %v9880_v4  ;;  %v4954_v51 = vmul.f32 %v9936_v14, %v9887_v46  ;;  %v4955_v63 = vmul.f32 %v9936_v14, %v9894_v59  ;;  %v4956_v11 = vmul.f32 %v9936_v14, %v9901_v15 }
 0xcba   :  { %v4957_v45 = vmul.f32 %v9936_v14, %v9908_v12  ;;  %v4958_v40 = vmul.f32 %v9936_v14, %v9915_v30  ;;  %v4959_v37 = vmul.f32 %v9936_v14, %v9922_v23  ;;  %v4966_v4 = vmul.f32 %v10026_v55, %v4864_v44 }
 0xcbb   :  { %v4967_v22 = vmul.f32 %v10026_v55, %v4865_v3  ;;  %v4968_v46 = vmul.f32 %v10026_v55, %v4866_v32  ;;  %v4969_v59 = vmul.f32 %v10026_v55, %v4867_v35  ;;  %v4970_v13 = vmul.f32 %v10026_v55, %v4868_v6 }
 0xcbc   :  { %v4971_v15 = vmul.f32 %v10026_v55, %v4869_v43  ;;  %v10049_v12 = vmul.f32 %v10026_v55, %v4870_v41  ;;  %v10052_v30 = vmul.f32 %v10026_v55, %v4871_v17  ;;  %v10055_v23 = vmul.f32 %v10026_v55, %v4872_v56 }
 0xcbd   :  { %v10058_v44 = vmul.f32 %v10026_v55, %v4873_v19  ;;  %v10061_v3 = vmul.f32 %v10026_v55, %v4874_v60  ;;  %v5030_v32 = vmul.f32 %v10026_v55, %v4928_v58  ;;  %v5031_v35 = vmul.f32 %v10026_v55, %v4929_v0 }
 0xcbe   :  { %v5032_v6 = vmul.f32 %v10026_v55, %v4930_v21  ;;  %v5033_v43 = vmul.f32 %v10026_v55, %v4931_v52  ;;  %v5034_v41 = vmul.f32 %v10026_v55, %v4932_v34  ;;  %v5035_v17 = vmul.f32 %v10026_v55, %v4933_v38 }
 0xcbf   :  { %v5036_v56 = vmul.f32 %v10026_v55, %v4934_v39  ;;  %v5037_v19 = vmul.f32 %v10026_v55, %v4935_v18  ;;  %v5038_v27 = vmul.f32 %v10026_v55, %v4936_v24  ;;  %v5039_v60 = vmul.f32 %v10026_v55, %v4937_v5 }
 0xcc0   :  { %v5040_v42 = vmul.f32 %v10026_v55, %v4938_v25  ;;  %v5041_v16 = vmul.f32 %v10026_v55, %v4939_v36  ;;  %v5042_v58 = vmul.f32 %v10026_v55, %v4940_v29  ;;  %v5043_v0 = vmul.f32 %v10026_v55, %v4941_v33 }
 0xcc1   :  { %v5044_v21 = vmul.f32 %v10026_v55, %v4942_v31  ;;  %v5045_v52 = vmul.f32 %v10026_v55, %v4943_v61  ;;  %v5046_v34 = vmul.f32 %v10026_v55, %v4944_v8  ;;  %v5047_v38 = vmul.f32 %v10026_v55, %v4945_v53  ;;  %v10089_v31 = vpop.permute.xlu1 %5065 }
 0xcc2   :  { %v5048_v39 = vmul.f32 %v10026_v55, %v4946_v1  ;;  %v5049_v18 = vmul.f32 %v10026_v55, %v4947_v28  ;;  %v5050_v24 = vmul.f32 %v10026_v55, %v4948_v48  ;;  %v5051_v5 = vmul.f32 %v10026_v55, %v4949_v9 }
 0xcc3   :  { %v5052_v25 = vmul.f32 %v10026_v55, %v4950_v20  ;;  %v5053_v36 = vmul.f32 %v10026_v55, %v4951_v57  ;;  %v5054_v29 = vmul.f32 %v10026_v55, %v4952_v10  ;;  %v5055_v33 = vmul.f32 %v10026_v55, %v4953_v7 }
 0xcc4   :  { %v5056_v61 = vmul.f32 %v10026_v55, %v4954_v51  ;;  %v5057_v8 = vmul.f32 %v10026_v55, %v4955_v63  ;;  %v5058_v53 = vmul.f32 %v10026_v55, %v4956_v11  ;;  %v5059_v1 = vmul.f32 %v10026_v55, %v4957_v45 }
 0xcc5   :  { %v5060_v28 = vmul.f32 %v10026_v55, %v4958_v40  ;;  %v5061_v48 = vmul.f32 %v10026_v55, %v4959_v37  ;;  %v5068_v9 = vadd.f32 %v10089_v31, %v4966_v4  ;;  %v5069_v20 = vadd.f32 %v10089_v31, %v4967_v22 }
 0xcc6   :  { %v5070_v57 = vadd.f32 %v10089_v31, %v4968_v46  ;;  %v10101_v10 = vadd.f32 %v10089_v31, %v4969_v59  ;;  %v10104_v7 = vadd.f32 %v10089_v31, %v4970_v13  ;;  %v10107_v51 = vadd.f32 %v10089_v31, %v4971_v15 }
 0xcc7   :  { %v10110_v63 = vadd.f32 %v10089_v31, %v5030_v32  ;;  %v10113_v11 = vadd.f32 %v10089_v31, %v5031_v35  ;;  %v10116_v45 = vadd.f32 %v10089_v31, %v5032_v6  ;;  %v10119_v40 = vadd.f32 %v10089_v31, %v5033_v43 }
 0xcc8   :  { %v10122_v37 = vadd.f32 %v10089_v31, %v5034_v41  ;;  %v10125_v4 = vadd.f32 %v10089_v31, %v5035_v17  ;;  %v10128_v22 = vadd.f32 %v10089_v31, %v5036_v56  ;;  %v10131_v46 = vadd.f32 %v10089_v31, %v5037_v19 }
 0xcc9   :  { %v10134_v59 = vadd.f32 %v10089_v31, %v5038_v27  ;;  %v10137_v13 = vadd.f32 %v10089_v31, %v5039_v60  ;;  %v10140_v15 = vadd.f32 %v10089_v31, %v5040_v42  ;;  %v10143_v32 = vadd.f32 %v10089_v31, %v5041_v16 }
 0xcca   :  { %v10146_v35 = vadd.f32 %v10089_v31, %v5042_v58  ;;  %v10149_v6 = vadd.f32 %v10089_v31, %v5043_v0  ;;  %v10152_v43 = vadd.f32 %v10089_v31, %v5044_v21  ;;  %v10155_v41 = vadd.f32 %v10089_v31, %v5045_v52 }
 0xccb   :  { %v10158_v17 = vadd.f32 %v10089_v31, %v5046_v34  ;;  %v10161_v56 = vadd.f32 %v10089_v31, %v5047_v38  ;;  %v10164_v19 = vadd.f32 %v10089_v31, %v5048_v39  ;;  %v10167_v27 = vadd.f32 %v10089_v31, %v5049_v18 }
 0xccc   :  { %v10170_v60 = vadd.f32 %v10089_v31, %v5050_v24  ;;  %v10173_v42 = vadd.f32 %v10089_v31, %v5051_v5  ;;  %v10176_v16 = vadd.f32 %v10089_v31, %v5052_v25  ;;  %v10179_v58 = vadd.f32 %v10089_v31, %v5053_v36 }
 0xccd   :  { %v10182_v0 = vadd.f32 %v10089_v31, %v5054_v29  ;;  %v10185_v21 = vadd.f32 %v10089_v31, %v5055_v33  ;;  %v10188_v52 = vadd.f32 %v10089_v31, %v5056_v61  ;;  %v10191_v34 = vadd.f32 %v10089_v31, %v5057_v8 }
 0xcce   :  { %v10194_v38 = vadd.f32 %v10089_v31, %v5058_v53  ;;  %v10197_v39 = vadd.f32 %v10089_v31, %v5059_v1  ;;  %v10200_v18 = vadd.f32 %v10089_v31, %v5060_v28  ;;  %v10203_v24 = vadd.f32 %v10089_v31, %v5061_v48 }
 0xccf   :  { %v5074_v5 = vadd.f32 %v10089_v31, %v10049_v12  ;;  %v5164_v25 = vmax.f32 %v5068_v9, 0.0  ;;  %v5165_v36 = vmax.f32 %v5069_v20, 0.0  ;;  %v5166_v29 = vmax.f32 %v5070_v57, 0.0 }
 0xcd0   :  { %v4879_v33 = vmul.f32 %v9936_v14, %v9362_v26  ;;  %v4977_v61 = vmul.f32 %v10026_v55, %v9962_v54  ;;  %v5075_v8 = vadd.f32 %v10089_v31, %v10052_v30  ;;  %v5167_v53 = vmax.f32 %v10101_v10, 0.0  ;;  %v11433_v30 = vld [vmem:[#allocation67_spill] sm:$0xff] }
 0xcd1   :  { %v4880_v1 = vmul.f32 %v9936_v14, %v9369_v50  ;;  %v4978_v12 = vmul.f32 %v10026_v55, %v9966_v62  ;;  %v5076_v28 = vadd.f32 %v10089_v31, %v10055_v23  ;;  %v5168_v48 = vmax.f32 %v10104_v7, 0.0  ;;  %5260 = vst.msk [vmem:[%s10860_s19] sm:$0xff] %vm4258_vm5, %v5164_v25 }
 0xcd2   :  { %v4881_v26 = vmul.f32 %v9936_v14, %v9376_v47  ;;  %v4979_v54 = vmul.f32 %v10026_v55, %v9970_v2  ;;  %v5077_v50 = vadd.f32 %v10089_v31, %v10058_v44  ;;  %v5169_v62 = vmax.f32 %v10107_v51, 0.0  ;;  %5261 = vst.msk [vmem:[%s10860_s19 + $0x8] sm:$0xff] %vm4258_vm5, %v5165_v36  ;;  %v11434_v44 = vld [vmem:[#allocation68_spill] sm:$0xff]  ;;  %v11436_v36 = vld [vmem:[#allocation70_spill] sm:$0xff] }
 0xcd3   :  { %v4882_v23 = vmul.f32 %v9936_v14, %v11433_v30  ;;  %v4980_v9 = vmul.f32 %v10026_v55, %v9974_v49  ;;  %v5078_v47 = vadd.f32 %v10089_v31, %v10061_v3  ;;  %v5170_v2 = vmax.f32 %v5074_v5, 0.0  ;;  %5262 = vst.msk [vmem:[%s10860_s19 + $0x10] sm:$0xff] %vm4258_vm5, %v5166_v29  ;;  %v11435_v49 = vld [vmem:[#allocation69_spill] sm:$0xff] }
 0xcd4   :  { %v4883_v20 = vmul.f32 %v9936_v14, %v11434_v44  ;;  %v4981_v57 = vmul.f32 %v10026_v55, %v4879_v33  ;;  %v5079_v10 = vadd.f32 %v10089_v31, %v4977_v61  ;;  %v5171_v7 = vmax.f32 %v5075_v8, 0.0  ;;  %5263 = vst.msk [vmem:[%s10860_s19 + $0x18] sm:$0xff] %vm4258_vm5, %v5167_v53  ;;  %v11437_v53 = vld [vmem:[#allocation41_spill] sm:$0xff] }
 0xcd5   :  { %v4884_v3 = vmul.f32 %v9936_v14, %v11435_v49  ;;  %v4982_v51 = vmul.f32 %v10026_v55, %v4880_v1  ;;  %v5080_v5 = vadd.f32 %v10089_v31, %v4978_v12  ;;  %v5172_v25 = vmax.f32 %v5076_v28, 0.0  ;;  %5264 = vst.msk [vmem:[%s10860_s19 + $0x20] sm:$0xff] %vm4258_vm5, %v5168_v48 }
 0xcd6   :  { %v4885_v29 = vmul.f32 %v9936_v14, %v11436_v36  ;;  %v4983_v33 = vmul.f32 %v10026_v55, %v4881_v26  ;;  %v5081_v61 = vadd.f32 %v10089_v31, %v4979_v54  ;;  %v5173_v8 = vmax.f32 %v5077_v50, 0.0  ;;  %5265 = vst.msk [vmem:[%s10860_s19 + $0x28] sm:$0xff] %vm4258_vm5, %v5169_v62  ;;  %v11438_v26 = vld [vmem:[#allocation88_spill] sm:$0xff] }
 0xcd7   :  { %v4886_v1 = vmul.f32 %v9936_v14, %v11437_v53  ;;  %v4984_v12 = vmul.f32 %v10026_v55, %v4882_v23  ;;  %v5082_v28 = vadd.f32 %v10089_v31, %v4980_v9  ;;  %v5174_v48 = vmax.f32 %v5078_v47, 0.0  ;;  %5266 = vst.msk [vmem:[%s10860_s19 + $0x30] sm:$0xff] %vm4258_vm5, %v5170_v2  ;;  %v11439_v23 = vld [vmem:[#allocation71_spill] sm:$0xff] }
 0xcd8   :  { %v4887_v54 = vmul.f32 %v9936_v14, %v11438_v26  ;;  %v4985_v50 = vmul.f32 %v10026_v55, %v4883_v20  ;;  %v5083_v62 = vadd.f32 %v10089_v31, %v4981_v57  ;;  %v5175_v30 = vmax.f32 %v5079_v10, 0.0  ;;  %5267 = vst.msk [vmem:[%s10860_s19 + $0x38] sm:$0xff] %vm4258_vm5, %v5171_v7  ;;  %v11440_v20 = vld [vmem:[#allocation72_spill] sm:$0xff] }
 0xcd9   :  { %v4888_v9 = vmul.f32 %v9936_v14, %v11439_v23  ;;  %v4986_v47 = vmul.f32 %v10026_v55, %v4884_v3  ;;  %v5084_v2 = vadd.f32 %v10089_v31, %v4982_v51  ;;  %v5176_v44 = vmax.f32 %v5080_v5, 0.0  ;;  %5268 = vst.msk [vmem:[%s10860_s19 + $0x40] sm:$0xff] %vm4258_vm5, %v5172_v25  ;;  %v11441_v3 = vld [vmem:[#allocation74_spill] sm:$0xff] }
 0xcda   :  { %v4889_v57 = vmul.f32 %v9936_v14, %v11440_v20  ;;  %v4987_v10 = vmul.f32 %v10026_v55, %v4885_v29  ;;  %v5085_v7 = vadd.f32 %v10089_v31, %v4983_v33  ;;  %v5177_v49 = vmax.f32 %v5081_v61, 0.0  ;;  %5269 = vst.msk [vmem:[%s10860_s19 + $0x48] sm:$0xff] %vm4258_vm5, %v5173_v8  ;;  %v11442_v29 = vld [vmem:[#allocation76_spill] sm:$0xff] }
 0xcdb   :  { %v4890_v51 = vmul.f32 %v9936_v14, %v11441_v3  ;;  %v4988_v5 = vmul.f32 %v10026_v55, %v4886_v1  ;;  %v5086_v25 = vadd.f32 %v10089_v31, %v4984_v12  ;;  %v5178_v36 = vmax.f32 %v5082_v28, 0.0  ;;  %5270 = vst.msk [vmem:[%s10860_s19 + $0x50] sm:$0xff] %vm4258_vm5, %v5174_v48  ;;  %v11443_v1 = vld [vmem:[#allocation77_spill] sm:$0xff] }
 0xcdc   :  { %v4891_v33 = vmul.f32 %v9936_v14, %v11442_v29  ;;  %v4989_v61 = vmul.f32 %v10026_v55, %v4887_v54  ;;  %v5087_v8 = vadd.f32 %v10089_v31, %v4985_v50  ;;  %v5179_v53 = vmax.f32 %v5083_v62, 0.0  ;;  %5271 = vst.msk [vmem:[%s10860_s19 + $0x58] sm:$0xff] %vm4258_vm5, %v5175_v30  ;;  %v11444_v54 = vld [vmem:[#allocation78_spill] sm:$0xff] }
 0xcdd   :  { %v4892_v12 = vmul.f32 %v9936_v14, %v11443_v1  ;;  %v4990_v28 = vmul.f32 %v10026_v55, %v4888_v9  ;;  %v5088_v48 = vadd.f32 %v10089_v31, %v4986_v47  ;;  %v5180_v26 = vmax.f32 %v5084_v2, 0.0  ;;  %5272 = vst.msk [vmem:[%s10860_s19 + $0x60] sm:$0xff] %vm4258_vm5, %v5176_v44  ;;  %v11445_v9 = vld [vmem:[#allocation79_spill] sm:$0xff] }
 0xcde   :  { %v4893_v50 = vmul.f32 %v9936_v14, %v11444_v54  ;;  %v4991_v62 = vmul.f32 %v10026_v55, %v4889_v57  ;;  %v5089_v30 = vadd.f32 %v10089_v31, %v4987_v10  ;;  %v5181_v23 = vmax.f32 %v5085_v7, 0.0  ;;  %5273 = vst.msk [vmem:[%s10860_s19 + $0x68] sm:$0xff] %vm4258_vm5, %v5177_v49  ;;  %v11446_v57 = vld [vmem:[#allocation80_spill] sm:$0xff] }
 0xcdf   :  { %v4894_v47 = vmul.f32 %v9936_v14, %v11445_v9  ;;  %v4992_v2 = vmul.f32 %v10026_v55, %v4890_v51  ;;  %v5090_v44 = vadd.f32 %v10089_v31, %v4988_v5  ;;  %v5182_v20 = vmax.f32 %v5086_v25, 0.0  ;;  %5274 = vst.msk [vmem:[%s10860_s19 + $0x70] sm:$0xff] %vm4258_vm5, %v5178_v36  ;;  %v11447_v51 = vld [vmem:[#allocation36_spill] sm:$0xff] }
 0xce0   :  { %v4895_v10 = vmul.f32 %v9936_v14, %v11446_v57  ;;  %v4993_v7 = vmul.f32 %v10026_v55, %v4891_v33  ;;  %v5091_v49 = vadd.f32 %v10089_v31, %v4989_v61  ;;  %v5183_v3 = vmax.f32 %v5087_v8, 0.0  ;;  %5275 = vst.msk [vmem:[%s10860_s19 + $0x78] sm:$0xff] %vm4258_vm5, %v5179_v53  ;;  %v11448_v33 = vld [vmem:[#allocation84_spill] sm:$0xff] }
 0xce1   :  { %v4896_v5 = vmul.f32 %v9936_v14, %v11447_v51  ;;  %v4994_v25 = vmul.f32 %v10026_v55, %v4892_v12  ;;  %v5092_v36 = vadd.f32 %v10089_v31, %v4990_v28  ;;  %v5184_v29 = vmax.f32 %v5088_v48, 0.0  ;;  %5276 = vst.msk [vmem:[%s10860_s19 + $0x80] sm:$0xff] %vm4258_vm5, %v5180_v26  ;;  %v11449_v12 = vld [vmem:[#allocation85_spill] sm:$0xff] }
 0xce2   :  { %v4897_v61 = vmul.f32 %v9936_v14, %v11448_v33  ;;  %v4995_v8 = vmul.f32 %v10026_v55, %v4893_v50  ;;  %v5093_v53 = vadd.f32 %v10089_v31, %v4991_v62  ;;  %v5185_v1 = vmax.f32 %v5089_v30, 0.0  ;;  %5277 = vst.msk [vmem:[%s10860_s19 + $0x88] sm:$0xff] %vm4258_vm5, %v5181_v23  ;;  %v11450_v50 = vld [vmem:[#allocation86_spill] sm:$0xff] }
 0xce3   :  { %v4898_v28 = vmul.f32 %v9936_v14, %v11449_v12  ;;  %v4996_v48 = vmul.f32 %v10026_v55, %v4894_v47  ;;  %v5094_v26 = vadd.f32 %v10089_v31, %v4992_v2  ;;  %v5186_v54 = vmax.f32 %v5090_v44, 0.0  ;;  %5278 = vst.msk [vmem:[%s10860_s19 + $0x90] sm:$0xff] %vm4258_vm5, %v5182_v20  ;;  %v11451_v47 = vld [vmem:[#allocation87_spill] sm:$0xff] }
 0xce4   :  { %v4899_v62 = vmul.f32 %v9936_v14, %v11450_v50  ;;  %v4997_v30 = vmul.f32 %v10026_v55, %v4895_v10  ;;  %v5095_v23 = vadd.f32 %v10089_v31, %v4993_v7  ;;  %v5187_v9 = vmax.f32 %v5091_v49, 0.0  ;;  %5279 = vst.msk [vmem:[%s10860_s19 + $0x98] sm:$0xff] %vm4258_vm5, %v5183_v3  ;;  %v11452_v10 = vld [vmem:[#allocation89_spill] sm:$0xff] }
 0xce5   :  { %v4900_v2 = vmul.f32 %v9936_v14, %v11451_v47  ;;  %v4998_v44 = vmul.f32 %v10026_v55, %v4896_v5  ;;  %v5096_v20 = vadd.f32 %v10089_v31, %v4994_v25  ;;  %v5188_v57 = vmax.f32 %v5092_v36, 0.0  ;;  %5280 = vst.msk [vmem:[%s10860_s19 + $0xa0] sm:$0xff] %vm4258_vm5, %v5184_v29  ;;  %v11453_v5 = vld [vmem:[#allocation90_spill] sm:$0xff] }
 0xce6   :  { %v4901_v7 = vmul.f32 %v9936_v14, %v11452_v10  ;;  %v4999_v49 = vmul.f32 %v10026_v55, %v4897_v61  ;;  %v5097_v3 = vadd.f32 %v10089_v31, %v4995_v8  ;;  %v5189_v51 = vmax.f32 %v5093_v53, 0.0  ;;  %5281 = vst.msk [vmem:[%s10860_s19 + $0xa8] sm:$0xff] %vm4258_vm5, %v5185_v1  ;;  %v11454_v61 = vld [vmem:[#allocation91_spill] sm:$0xff] }
 0xce7   :  { %v4902_v25 = vmul.f32 %v9936_v14, %v11453_v5  ;;  %v5000_v36 = vmul.f32 %v10026_v55, %v4898_v28  ;;  %v5098_v29 = vadd.f32 %v10089_v31, %v4996_v48  ;;  %v5190_v33 = vmax.f32 %v5094_v26, 0.0  ;;  %5282 = vst.msk [vmem:[%s10860_s19 + $0xb0] sm:$0xff] %vm4258_vm5, %v5186_v54  ;;  %v11455_v28 = vld [vmem:[#allocation73_spill] sm:$0xff] }
 0xce8   :  { %v4903_v8 = vmul.f32 %v9936_v14, %v11454_v61  ;;  %v5001_v53 = vmul.f32 %v10026_v55, %v4899_v62  ;;  %v5099_v1 = vadd.f32 %v10089_v31, %v4997_v30  ;;  %v5191_v12 = vmax.f32 %v5095_v23, 0.0  ;;  %5283 = vst.msk [vmem:[%s10860_s19 + $0xb8] sm:$0xff] %vm4258_vm5, %v5187_v9  ;;  %v11456_v62 = vld [vmem:[#allocation75_spill] sm:$0xff] }
 0xce9   :  { %v4904_v48 = vmul.f32 %v9936_v14, %v11455_v28  ;;  %v5002_v26 = vmul.f32 %v10026_v55, %v4900_v2  ;;  %v5100_v54 = vadd.f32 %v10089_v31, %v4998_v44  ;;  %v5192_v50 = vmax.f32 %v5096_v20, 0.0  ;;  %5284 = vst.msk [vmem:[%s10860_s19 + $0xc0] sm:$0xff] %vm4258_vm5, %v5188_v57  ;;  %v11457_v2 = vld [vmem:[#allocation92_spill] sm:$0xff] }
 0xcea   :  { %v4905_v30 = vmul.f32 %v9936_v14, %v11456_v62  ;;  %v5003_v23 = vmul.f32 %v10026_v55, %v4901_v7  ;;  %v5101_v9 = vadd.f32 %v10089_v31, %v4999_v49  ;;  %v5193_v47 = vmax.f32 %v5097_v3, 0.0  ;;  %5285 = vst.msk [vmem:[%s10860_s19 + $0xc8] sm:$0xff] %vm4258_vm5, %v5189_v51  ;;  %v11458_v7 = vld [vmem:[#allocation93_spill] sm:$0xff] }
 0xceb   :  { %v4906_v44 = vmul.f32 %v9936_v14, %v11457_v2  ;;  %v5004_v20 = vmul.f32 %v10026_v55, %v4902_v25  ;;  %v5102_v57 = vadd.f32 %v10089_v31, %v5000_v36  ;;  %v5194_v10 = vmax.f32 %v5098_v29, 0.0  ;;  %5286 = vst.msk [vmem:[%s10860_s19 + $0xd0] sm:$0xff] %vm4258_vm5, %v5190_v33  ;;  %v11459_v25 = vld [vmem:[#allocation94_spill] sm:$0xff] }
 0xcec   :  { %v4907_v49 = vmul.f32 %v9936_v14, %v11458_v7  ;;  %v5005_v3 = vmul.f32 %v10026_v55, %v4903_v8  ;;  %v5103_v51 = vadd.f32 %v10089_v31, %v5001_v53  ;;  %v5195_v5 = vmax.f32 %v5099_v1, 0.0  ;;  %5287 = vst.msk [vmem:[%s10860_s19 + $0xd8] sm:$0xff] %vm4258_vm5, %v5191_v12  ;;  %v11460_v8 = vld [vmem:[#allocation32_spill] sm:$0xff] }
 0xced   :  { %v4908_v36 = vmul.f32 %v9936_v14, %v11459_v25  ;;  %v5006_v29 = vmul.f32 %v10026_v55, %v4904_v48  ;;  %v5104_v33 = vadd.f32 %v10089_v31, %v5002_v26  ;;  %v5196_v61 = vmax.f32 %v5100_v54, 0.0  ;;  %5288 = vst.msk [vmem:[%s10860_s19 + $0xe0] sm:$0xff] %vm4258_vm5, %v5192_v50  ;;  %v11461_v48 = vld [vmem:[#allocation95_spill] sm:$0xff] }
 0xcee   :  { %v4909_v53 = vmul.f32 %v9936_v14, %v11460_v8  ;;  %v5007_v1 = vmul.f32 %v10026_v55, %v4905_v30  ;;  %v5105_v12 = vadd.f32 %v10089_v31, %v5003_v23  ;;  %v5197_v28 = vmax.f32 %v5101_v9, 0.0  ;;  %5289 = vst.msk [vmem:[%s10860_s19 + $0xe8] sm:$0xff] %vm4258_vm5, %v5193_v47  ;;  %v11462_v30 = vld [vmem:[#allocation96_spill] sm:$0xff] }
 0xcef   :  { %v4910_v26 = vmul.f32 %v9936_v14, %v11461_v48  ;;  %v5008_v54 = vmul.f32 %v10026_v55, %v4906_v44  ;;  %v5106_v50 = vadd.f32 %v10089_v31, %v5004_v20  ;;  %v5198_v62 = vmax.f32 %v5102_v57, 0.0  ;;  %5290 = vst.msk [vmem:[%s10860_s19 + $0xf0] sm:$0xff] %vm4258_vm5, %v5194_v10  ;;  %v11463_v44 = vld [vmem:[#allocation97_spill] sm:$0xff] }
 0xcf0   :  { %v4911_v23 = vmul.f32 %v9936_v14, %v11462_v30  ;;  %v5009_v9 = vmul.f32 %v10026_v55, %v4907_v49  ;;  %v5107_v47 = vadd.f32 %v10089_v31, %v5005_v3  ;;  %v5199_v2 = vmax.f32 %v5103_v51, 0.0  ;;  %5291 = vst.msk [vmem:[%s10860_s19 + $0xf8] sm:$0xff] %vm4258_vm5, %v5195_v5  ;;  %v11464_v49 = vld [vmem:[#allocation98_spill] sm:$0xff] }
 0xcf1   :  { %v4912_v20 = vmul.f32 %v9936_v14, %v11463_v44  ;;  %v5010_v57 = vmul.f32 %v10026_v55, %v4908_v36  ;;  %v5108_v10 = vadd.f32 %v10089_v31, %v5006_v29  ;;  %v5200_v7 = vmax.f32 %v5104_v33, 0.0  ;;  %5292 = vst.msk [vmem:[%s10860_s19 + $0x100] sm:$0xff] %vm4258_vm5, %v5196_v61  ;;  %v11465_v36 = vld [vmem:[#allocation33_spill] sm:$0xff] }
 0xcf2   :  { %v4913_v3 = vmul.f32 %v9936_v14, %v11464_v49  ;;  %v5011_v51 = vmul.f32 %v10026_v55, %v4909_v53  ;;  %v5109_v5 = vadd.f32 %v10089_v31, %v5007_v1  ;;  %v5201_v25 = vmax.f32 %v5105_v12, 0.0  ;;  %5293 = vst.msk [vmem:[%s10860_s19 + $0x108] sm:$0xff] %vm4258_vm5, %v5197_v28  ;;  %v11466_v53 = vld [vmem:[#allocation34_spill] sm:$0xff] }
 0xcf3   :  { %v4914_v29 = vmul.f32 %v9936_v14, %v11465_v36  ;;  %v5012_v33 = vmul.f32 %v10026_v55, %v4910_v26  ;;  %v5110_v61 = vadd.f32 %v10089_v31, %v5008_v54  ;;  %v5202_v8 = vmax.f32 %v5106_v50, 0.0  ;;  %5294 = vst.msk [vmem:[%s10860_s19 + $0x110] sm:$0xff] %vm4258_vm5, %v5198_v62  ;;  %v11467_v26 = vld [vmem:[#allocation35_spill] sm:$0xff] }
 0xcf4   :  { %v4915_v1 = vmul.f32 %v9936_v14, %v11466_v53  ;;  %v5013_v12 = vmul.f32 %v10026_v55, %v4911_v23  ;;  %v5111_v28 = vadd.f32 %v10089_v31, %v5009_v9  ;;  %v5203_v48 = vmax.f32 %v5107_v47, 0.0  ;;  %5295 = vst.msk [vmem:[%s10860_s19 + $0x118] sm:$0xff] %vm4258_vm5, %v5199_v2  ;;  %v11468_v23 = vld [vmem:[#allocation81_spill] sm:$0xff] }
 0xcf5   :  { %v4916_v54 = vmul.f32 %v9936_v14, %v11467_v26  ;;  %v5014_v50 = vmul.f32 %v10026_v55, %v4912_v20  ;;  %v5112_v62 = vadd.f32 %v10089_v31, %v5010_v57  ;;  %v5204_v30 = vmax.f32 %v5108_v10, 0.0  ;;  %5296 = vst.msk [vmem:[%s10860_s19 + $0x120] sm:$0xff] %vm4258_vm5, %v5200_v7  ;;  %v11469_v20 = vld [vmem:[#allocation82_spill] sm:$0xff] }
 0xcf6   :  { %v4917_v9 = vmul.f32 %v9936_v14, %v11468_v23  ;;  %v5015_v47 = vmul.f32 %v10026_v55, %v4913_v3  ;;  %v5113_v2 = vadd.f32 %v10089_v31, %v5011_v51  ;;  %v5205_v44 = vmax.f32 %v5109_v5, 0.0  ;;  %5297 = vst.msk [vmem:[%s10860_s19 + $0x128] sm:$0xff] %vm4258_vm5, %v5201_v25  ;;  %v11470_v3 = vld [vmem:[#allocation37_spill] sm:$0xff] }
 0xcf7   :  { %v4918_v57 = vmul.f32 %v9936_v14, %v11469_v20  ;;  %v5016_v10 = vmul.f32 %v10026_v55, %v4914_v29  ;;  %v5114_v7 = vadd.f32 %v10089_v31, %v5012_v33  ;;  %v5206_v49 = vmax.f32 %v5110_v61, 0.0  ;;  %5298 = vst.msk [vmem:[%s10860_s19 + $0x130] sm:$0xff] %vm4258_vm5, %v5202_v8  ;;  %v11471_v29 = vld [vmem:[#allocation83_spill] sm:$0xff] }
 0xcf8   :  { %v4919_v51 = vmul.f32 %v9936_v14, %v11470_v3  ;;  %v5017_v5 = vmul.f32 %v10026_v55, %v4915_v1  ;;  %v5115_v25 = vadd.f32 %v10089_v31, %v5013_v12  ;;  %v5207_v36 = vmax.f32 %v5111_v28, 0.0  ;;  %5299 = vst.msk [vmem:[%s10860_s19 + $0x138] sm:$0xff] %vm4258_vm5, %v5203_v48  ;;  %v11472_v1 = vld [vmem:[#allocation38_spill] sm:$0xff] }
 0xcf9   :  { %v4920_v33 = vmul.f32 %v9936_v14, %v11471_v29  ;;  %v5018_v61 = vmul.f32 %v10026_v55, %v4916_v54  ;;  %v5116_v8 = vadd.f32 %v10089_v31, %v5014_v50  ;;  %v5208_v53 = vmax.f32 %v5112_v62, 0.0  ;;  %5300 = vst.msk [vmem:[%s10860_s19 + $0x140] sm:$0xff] %vm4258_vm5, %v5204_v30  ;;  %v11473_v54 = vld [vmem:[#allocation39_spill] sm:$0xff] }
 0xcfa   :  { %v4921_v12 = vmul.f32 %v9936_v14, %v11472_v1  ;;  %v5019_v28 = vmul.f32 %v10026_v55, %v4917_v9  ;;  %v5117_v48 = vadd.f32 %v10089_v31, %v5015_v47  ;;  %v5209_v26 = vmax.f32 %v5113_v2, 0.0  ;;  %5301 = vst.msk [vmem:[%s10860_s19 + $0x148] sm:$0xff] %vm4258_vm5, %v5205_v44  ;;  %v11474_v9 = vld [vmem:[#allocation40_spill] sm:$0xff] }
 0xcfb   :  { %v4922_v50 = vmul.f32 %v9936_v14, %v11473_v54  ;;  %v5020_v62 = vmul.f32 %v10026_v55, %v4918_v57  ;;  %v5118_v30 = vadd.f32 %v10089_v31, %v5016_v10  ;;  %v5210_v23 = vmax.f32 %v5114_v7, 0.0  ;;  %5302 = vst.msk [vmem:[%s10860_s19 + $0x150] sm:$0xff] %vm4258_vm5, %v5206_v49  ;;  %v11475_v57 = vld [vmem:[#allocation99_spill] sm:$0xff] }
 0xcfc   :  { %v4923_v47 = vmul.f32 %v9936_v14, %v11474_v9  ;;  %v5021_v2 = vmul.f32 %v10026_v55, %v4919_v51  ;;  %v5119_v44 = vadd.f32 %v10089_v31, %v5017_v5  ;;  %v5211_v20 = vmax.f32 %v5115_v25, 0.0  ;;  %5303 = vst.msk [vmem:[%s10860_s19 + $0x158] sm:$0xff] %vm4258_vm5, %v5207_v36  ;;  %v11476_v51 = vld [vmem:[#allocation42_spill] sm:$0xff] }
 0xcfd   :  { %v4924_v10 = vmul.f32 %v9936_v14, %v11475_v57  ;;  %v5022_v7 = vmul.f32 %v10026_v55, %v4920_v33  ;;  %v5120_v49 = vadd.f32 %v10089_v31, %v5018_v61  ;;  %v5212_v3 = vmax.f32 %v5116_v8, 0.0  ;;  %5304 = vst.msk [vmem:[%s10860_s19 + $0x160] sm:$0xff] %vm4258_vm5, %v5208_v53  ;;  %v11477_v33 = vld [vmem:[#allocation100_spill] sm:$0xff] }
 0xcfe   :  { %v4925_v5 = vmul.f32 %v9936_v14, %v11476_v51  ;;  %v5023_v25 = vmul.f32 %v10026_v55, %v4921_v12  ;;  %v5121_v36 = vadd.f32 %v10089_v31, %v5019_v28  ;;  %v5213_v29 = vmax.f32 %v5117_v48, 0.0  ;;  %5305 = vst.msk [vmem:[%s10860_s19 + $0x168] sm:$0xff] %vm4258_vm5, %v5209_v26  ;;  %v11478_v12 = vld [vmem:[#allocation43_spill] sm:$0xff] }
 0xcff   :  { %v4926_v61 = vmul.f32 %v9936_v14, %v11477_v33  ;;  %v5024_v8 = vmul.f32 %v10026_v55, %v4922_v50  ;;  %v5122_v53 = vadd.f32 %v10089_v31, %v5020_v62  ;;  %v5214_v1 = vmax.f32 %v5118_v30, 0.0  ;;  %5306 = vst.msk [vmem:[%s10860_s19 + $0x170] sm:$0xff] %vm4258_vm5, %v5210_v23 }
 0xd00   :  { %v4927_v28 = vmul.f32 %v9936_v14, %v11478_v12  ;;  %v5025_v48 = vmul.f32 %v10026_v55, %v4923_v47  ;;  %v5123_v26 = vadd.f32 %v10089_v31, %v5021_v2  ;;  %v5215_v54 = vmax.f32 %v5119_v44, 0.0  ;;  %5307 = vst.msk [vmem:[%s10860_s19 + $0x178] sm:$0xff] %vm4258_vm5, %v5211_v20 }
 0xd01   :  { %v5026_v50 = vmul.f32 %v10026_v55, %v4924_v10  ;;  %v5124_v62 = vadd.f32 %v10089_v31, %v5022_v7  ;;  %v5216_v30 = vmax.f32 %v5120_v49, 0.0  ;;  %5308 = vst.msk [vmem:[%s10860_s19 + $0x180] sm:$0xff] %vm4258_vm5, %v5212_v3  ;;  %v5027_v14 = vmul.f32 %v10026_v55, %v4925_v5 }
 0xd02   :  { %v5125_v23 = vadd.f32 %v10089_v31, %v5023_v25  ;;  %v5217_v9 = vmax.f32 %v5121_v36, 0.0  ;;  %5309 = vst.msk [vmem:[%s10860_s19 + $0x188] sm:$0xff] %vm4258_vm5, %v5213_v29  ;;  %v5028_v47 = vmul.f32 %v10026_v55, %v4926_v61  ;;  %v5126_v2 = vadd.f32 %v10089_v31, %v5024_v8 }
 0xd03   :  { %v5218_v44 = vmax.f32 %v5122_v53, 0.0  ;;  %5310 = vst.msk [vmem:[%s10860_s19 + $0x190] sm:$0xff] %vm4258_vm5, %v5214_v1  ;;  %v5029_v20 = vmul.f32 %v10026_v55, %v4927_v28  ;;  %v5127_v57 = vadd.f32 %v10089_v31, %v5025_v48  ;;  %v5219_v10 = vmax.f32 %v5123_v26, 0.0 }
 0xd04   :  { %5311 = vst.msk [vmem:[%s10860_s19 + $0x198] sm:$0xff] %vm4258_vm5, %v5215_v54  ;;  %v5128_v7 = vadd.f32 %v10089_v31, %v5026_v50  ;;  %v5220_v49 = vmax.f32 %v5124_v62, 0.0  ;;  %v5129_v3 = vadd.f32 %v10089_v31, %v5027_v14  ;;  %v5221_v51 = vmax.f32 %v5125_v23, 0.0 }
 0xd05   :  { %5312 = vst.msk [vmem:[%s10860_s19 + $0x1a0] sm:$0xff] %vm4258_vm5, %v5216_v30  ;;  %v5130_v55 = vadd.f32 %v10089_v31, %v5028_v47  ;;  %v5222_v5 = vmax.f32 %v5126_v2, 0.0  ;;  %v5131_v25 = vadd.f32 %v10089_v31, %v5029_v20  ;;  %v5223_v36 = vmax.f32 %v5127_v57, 0.0 }
 0xd06   :  { %5313 = vst.msk [vmem:[%s10860_s19 + $0x1a8] sm:$0xff] %vm4258_vm5, %v5217_v9  ;;  %v5224_v29 = vmax.f32 %v5128_v7, 0.0  ;;  %v5225_v33 = vmax.f32 %v5129_v3, 0.0  ;;  %v5228_v8 = vmax.f32 %v10110_v63, 0.0  ;;  %v5229_v53 = vmax.f32 %v10113_v11, 0.0 }
 0xd07   :  { %5314 = vst.msk [vmem:[%s10860_s19 + $0x1b0] sm:$0xff] %vm4258_vm5, %v5218_v44  ;;  %v5226_v61 = vmax.f32 %v5130_v55, 0.0  ;;  %v5227_v31 = vmax.f32 %v5131_v25, 0.0  ;;  %v5230_v1 = vmax.f32 %v10116_v45, 0.0  ;;  %v5231_v63 = vmax.f32 %v10119_v40, 0.0 }
 0xd08   :  { %5315 = vst.msk [vmem:[%s10860_s19 + $0x1b8] sm:$0xff] %vm4258_vm5, %v5219_v10  ;;  %v5232_v11 = vmax.f32 %v10122_v37, 0.0  ;;  %v5233_v45 = vmax.f32 %v10125_v4, 0.0  ;;  %v5234_v40 = vmax.f32 %v10128_v22, 0.0  ;;  %v5235_v37 = vmax.f32 %v10131_v46, 0.0 }
 0xd09   :  { %5316 = vst.msk [vmem:[%s10860_s19 + $0x1c0] sm:$0xff] %vm4258_vm5, %v5220_v49  ;;  %v5236_v4 = vmax.f32 %v10134_v59, 0.0  ;;  %v5237_v22 = vmax.f32 %v10137_v13, 0.0  ;;  %v5238_v46 = vmax.f32 %v10140_v15, 0.0  ;;  %v5239_v59 = vmax.f32 %v10143_v32, 0.0 }
 0xd0a   :  { %5317 = vst.msk [vmem:[%s10860_s19 + $0x1c8] sm:$0xff] %vm4258_vm5, %v5221_v51  ;;  %v5240_v13 = vmax.f32 %v10146_v35, 0.0  ;;  %v5241_v15 = vmax.f32 %v10149_v6, 0.0  ;;  %v5242_v32 = vmax.f32 %v10152_v43, 0.0  ;;  %v5243_v35 = vmax.f32 %v10155_v41, 0.0 }
 0xd0b   :  { %5318 = vst.msk [vmem:[%s10860_s19 + $0x1d0] sm:$0xff] %vm4258_vm5, %v5222_v5  ;;  %v5244_v6 = vmax.f32 %v10158_v17, 0.0  ;;  %v5245_v43 = vmax.f32 %v10161_v56, 0.0  ;;  %v5246_v41 = vmax.f32 %v10164_v19, 0.0  ;;  %v5247_v17 = vmax.f32 %v10167_v27, 0.0 }
 0xd0c   :  { %5319 = vst.msk [vmem:[%s10860_s19 + $0x1d8] sm:$0xff] %vm4258_vm5, %v5223_v36  ;;  %v5248_v56 = vmax.f32 %v10170_v60, 0.0  ;;  %v5249_v19 = vmax.f32 %v10173_v42, 0.0  ;;  %v5250_v27 = vmax.f32 %v10176_v16, 0.0  ;;  %v5251_v60 = vmax.f32 %v10179_v58, 0.0 }
 0xd0d   :  { %5320 = vst.msk [vmem:[%s10860_s19 + $0x1e0] sm:$0xff] %vm4258_vm5, %v5224_v29  ;;  %v5252_v42 = vmax.f32 %v10182_v0, 0.0  ;;  %v5253_v16 = vmax.f32 %v10185_v21, 0.0  ;;  %v5254_v58 = vmax.f32 %v10188_v52, 0.0  ;;  %v5255_v0 = vmax.f32 %v10191_v34, 0.0 }
 0xd0e   :  { %5321 = vst.msk [vmem:[%s10860_s19 + $0x1e8] sm:$0xff] %vm4258_vm5, %v5225_v33  ;;  %v5256_v21 = vmax.f32 %v10194_v38, 0.0  ;;  %v5257_v52 = vmax.f32 %v10197_v39, 0.0  ;;  %v5258_v34 = vmax.f32 %v10200_v18, 0.0  ;;  %v5259_v38 = vmax.f32 %v10203_v24, 0.0 }
 0xd0f   :  { %5322 = vst.msk [vmem:[%s10860_s19 + $0x1f0] sm:$0xff] %vm4258_vm5, %v5226_v61 }
 0xd10   :  { %5323 = vst.msk [vmem:[%s10860_s19 + $0x1f8] sm:$0xff] %vm4258_vm5, %v5227_v31 }
 0xd11   :  { %5324 = vst.msk [vmem:[%s10860_s19 + $0x200] sm:$0xff] %vm4258_vm5, %v5228_v8 }
 0xd12   :  { %5325 = vst.msk [vmem:[%s10860_s19 + $0x208] sm:$0xff] %vm4258_vm5, %v5229_v53 }
 0xd13   :  { %5326 = vst.msk [vmem:[%s10860_s19 + $0x210] sm:$0xff] %vm4258_vm5, %v5230_v1 }
 0xd14   :  { %5327 = vst.msk [vmem:[%s10860_s19 + $0x218] sm:$0xff] %vm4258_vm5, %v5231_v63 }
 0xd15   :  { %5328 = vst.msk [vmem:[%s10860_s19 + $0x220] sm:$0xff] %vm4258_vm5, %v5232_v11 }
 0xd16   :  { %5329 = vst.msk [vmem:[%s10860_s19 + $0x228] sm:$0xff] %vm4258_vm5, %v5233_v45 }
 0xd17   :  { %5330 = vst.msk [vmem:[%s10860_s19 + $0x230] sm:$0xff] %vm4258_vm5, %v5234_v40 }
 0xd18   :  { %5331 = vst.msk [vmem:[%s10860_s19 + $0x238] sm:$0xff] %vm4258_vm5, %v5235_v37 }
 0xd19   :  { %5332 = vst.msk [vmem:[%s10860_s19 + $0x240] sm:$0xff] %vm4258_vm5, %v5236_v4 }
 0xd1a   :  { %5333 = vst.msk [vmem:[%s10860_s19 + $0x248] sm:$0xff] %vm4258_vm5, %v5237_v22 }
 0xd1b   :  { %5334 = vst.msk [vmem:[%s10860_s19 + $0x250] sm:$0xff] %vm4258_vm5, %v5238_v46 }
 0xd1c   :  { %5335 = vst.msk [vmem:[%s10860_s19 + $0x258] sm:$0xff] %vm4258_vm5, %v5239_v59 }
 0xd1d   :  { %5336 = vst.msk [vmem:[%s10860_s19 + $0x260] sm:$0xff] %vm4258_vm5, %v5240_v13 }
 0xd1e   :  { %5337 = vst.msk [vmem:[%s10860_s19 + $0x268] sm:$0xff] %vm4258_vm5, %v5241_v15 }
 0xd1f   :  { %5338 = vst.msk [vmem:[%s10860_s19 + $0x270] sm:$0xff] %vm4258_vm5, %v5242_v32 }
 0xd20   :  { %5339 = vst.msk [vmem:[%s10860_s19 + $0x278] sm:$0xff] %vm4258_vm5, %v5243_v35 }
 0xd21   :  { %5340 = vst.msk [vmem:[%s10860_s19 + $0x280] sm:$0xff] %vm4258_vm5, %v5244_v6 }
 0xd22   :  { %5341 = vst.msk [vmem:[%s10860_s19 + $0x288] sm:$0xff] %vm4258_vm5, %v5245_v43 }
 0xd23   :  { %5342 = vst.msk [vmem:[%s10860_s19 + $0x290] sm:$0xff] %vm4258_vm5, %v5246_v41 }
 0xd24   :  { %5343 = vst.msk [vmem:[%s10860_s19 + $0x298] sm:$0xff] %vm4258_vm5, %v5247_v17 }
 0xd25   :  { %5344 = vst.msk [vmem:[%s10860_s19 + $0x2a0] sm:$0xff] %vm4258_vm5, %v5248_v56 }
 0xd26   :  { %5345 = vst.msk [vmem:[%s10860_s19 + $0x2a8] sm:$0xff] %vm4258_vm5, %v5249_v19 }
 0xd27   :  { %5346 = vst.msk [vmem:[%s10860_s19 + $0x2b0] sm:$0xff] %vm4258_vm5, %v5250_v27 }
 0xd28   :  { %5347 = vst.msk [vmem:[%s10860_s19 + $0x2b8] sm:$0xff] %vm4258_vm5, %v5251_v60 }
 0xd29   :  { %5348 = vst.msk [vmem:[%s10860_s19 + $0x2c0] sm:$0xff] %vm4258_vm5, %v5252_v42 }
 0xd2a   :  { %5349 = vst.msk [vmem:[%s10860_s19 + $0x2c8] sm:$0xff] %vm4258_vm5, %v5253_v16 }
 0xd2b   :  { %5350 = vst.msk [vmem:[%s10860_s19 + $0x2d0] sm:$0xff] %vm4258_vm5, %v5254_v58 }
 0xd2c   :  { %5351 = vst.msk [vmem:[%s10860_s19 + $0x2d8] sm:$0xff] %vm4258_vm5, %v5255_v0 }
 0xd2d   :  { %5352 = vst.msk [vmem:[%s10860_s19 + $0x2e0] sm:$0xff] %vm4258_vm5, %v5256_v21 }
 0xd2e   :  { %5353 = vst.msk [vmem:[%s10860_s19 + $0x2e8] sm:$0xff] %vm4258_vm5, %v5257_v52 }
 0xd2f   :  { %5354 = vst.msk [vmem:[%s10860_s19 + $0x2f0] sm:$0xff] %vm4258_vm5, %v5258_v34 }
 0xd30   :  { %5355 = vst.msk [vmem:[%s10860_s19 + $0x2f8] sm:$0xff] %vm4258_vm5, %v5259_v38 }
 0xd31   :  { %5360 = vsyncpa [#allocation10], 1 }
 0xd32   :  { %5361 = vsyncpa [#allocation12], 1 }
 0xd33   :  { %5362 = vsyncpa [#allocation15], 1 }
 0xd34   :  { %5363 = vsyncpa [#allocation18], 1 }
 0xd35   :  { %5364 = vsyncpa [#allocation21], 1 }
 0xd36   :  { %5365 = vsyncpa [#allocation24], 1 }

</bundles_post_ra>
